<compile_context>
chip_gen: v6e
topology: v6e:2x2x1
jax: 0.10.0
libtpu: 0.0.40
codegen_flags: <defaults>
</compile_context>

<pallas_src>
import functools

import jax
import jax.numpy as jnp
from jax.experimental import pallas as pl
from jax.experimental.pallas import tpu as pltpu

EPS = 1e-5            # torch.nn.InstanceNorm2d default (affine=False)
LEAKY_SLOPE = 0.2     # nn.LeakyReLU(0.2)


def _round_up(x, m):
    return (x + m - 1) // m * m


def _pick_tk(K):
    return 512 if K >= 512 else _round_up(K, 128)


def _pick_tn(Cout):
    if Cout % 256 == 0:
        return 256                     # fills the 256-wide MXU on v6e/v7x
    if Cout % 128 == 0:
        return 128
    return Cout                        # < 128 (64 for conv1): full-extent block


def _pick_tm(M, rows_per_image=None, cap=512):
    """Pick an M tile (16-aligned for bf16 sublane packing).

    If rows_per_image is given the tile must divide it exactly so every output
    tile belongs to a single image (required for fused InstanceNorm stats);
    returns (None, None) if impossible.  Otherwise M is rounded up to a
    16-multiple and the largest 16-aligned divisor <= cap is used.
    """
    if rows_per_image is not None:
        t = min(cap, rows_per_image)
        t -= t % 16
        while t >= 16:
            if rows_per_image % t == 0:
                return t, M            # Mp == M (tm | rows | M)
            t -= 16
        return None, None
    Mp = _round_up(max(M, 16), 16)
    t = min(cap, Mp)
    t -= t % 16
    while t >= 16:
        if Mp % t == 0:
            return t, Mp
        t -= 16
    return Mp, Mp


# ----------------------------------------------------------------------------
# Pallas kernel: tiled conv matmul (bf16 MXU, f32 accumulator)
#   epilogue fuses bias (+ optional LeakyReLU) and optional per-tile
#   InstanceNorm statistics (channel sum / sum-of-squares of the
#   pre-activation output).
# ----------------------------------------------------------------------------
def _conv_kernel(p_ref, w_ref, b_ref, *rest, activation, collect_stats):
    if collect_stats:
        o_ref, sum_ref, ssq_ref, acc_ref = rest
    else:
        o_ref, acc_ref = rest

    k = pl.program_id(2)

    @pl.when(k == 0)
    def _():
        acc_ref[...] = jnp.zeros_like(acc_ref)

    acc_ref[...] += jnp.dot(p_ref[...], w_ref[...],
                            preferred_element_type=jnp.float32)

    @pl.when(k == pl.num_programs(2) - 1)
    def _():
        y = acc_ref[...] + b_ref[...]
        if collect_stats:
            sum_ref[...] = jnp.sum(y, axis=0, keepdims=True)[None]
            ssq_ref[...] = jnp.sum(y * y, axis=0, keepdims=True)[None]
        if activation == "leaky_relu":
            y = jnp.where(y > 0, y, LEAKY_SLOPE * y)
        o_ref[...] = y.astype(o_ref.dtype)


def _conv_matmul(patches, w2, b2, activation="none",
                 out_dtype=jnp.bfloat16, rows_per_image=None):
    """patches (M, K) bf16, w2 (Kp, Cout) bf16 pre-packed, b2 (1, Cout) f32.

    Returns (out (M, Cout), stats) where stats is None or
    (sums, ssqs, tm): per-M-tile f32 channel sums / sums-of-squares of the
    pre-activation conv output (for fused InstanceNorm statistics).
    """
    M, K = patches.shape
    Kp, Cout = w2.shape
    tk = min(512, Kp)
    assert Kp % tk == 0
    tn = _pick_tn(Cout)

    collect_stats = rows_per_image is not None
    tm, Mp = _pick_tm(M, rows_per_image if collect_stats else None)
    if tm is None:                       # tile would straddle images -> fallback
        collect_stats = False
        tm, Mp = _pick_tm(M, None)

    p = patches
    if Kp != K or Mp != M:
        p = jnp.pad(p, ((0, Mp - M), (0, Kp - K)))

    grid = (Mp // tm, Cout // tn, Kp // tk)
    m_tiles = grid[0]

    in_specs = [
        pl.BlockSpec((tm, tk), lambda i, j, k: (i, k)),
        pl.BlockSpec((tk, tn), lambda i, j, k: (k, j)),
        pl.BlockSpec((1, tn), lambda i, j, k: (0, j)),
    ]
    out_spec = pl.BlockSpec((tm, tn), lambda i, j, k: (i, j))
    out_shape = jax.ShapeDtypeStruct((Mp, Cout), out_dtype)
    if collect_stats:
        stat_shape = jax.ShapeDtypeStruct((m_tiles, 1, Cout), jnp.float32)
        stat_spec = pl.BlockSpec((1, 1, tn), lambda i, j, k: (i, 0, j))
        out_shape = (out_shape, stat_shape, stat_shape)
        out_specs = (out_spec, stat_spec, stat_spec)
    else:
        out_specs = out_spec

    result = pl.pallas_call(
        functools.partial(_conv_kernel, activation=activation,
                          collect_stats=collect_stats),
        out_shape=out_shape,
        grid=grid,
        in_specs=in_specs,
        out_specs=out_specs,
        scratch_shapes=[pltpu.VMEM((tm, tn), jnp.float32)],
        compiler_params=pltpu.CompilerParams(
            dimension_semantics=("parallel", "parallel", "arbitrary")),
    )(p, w2, b2)

    if collect_stats:
        out, sums, ssqs = result
        return out[:M], (sums, ssqs, tm)
    return result[:M], None


# ----------------------------------------------------------------------------
# Pallas kernel: single-output-channel conv (final layer, Cout == 1)
#   VPU multiply + lane reduction against a (1, Kp) row weight; no 128-wide
#   zero padding of the output / weights in HBM, no MXU needed.
# ----------------------------------------------------------------------------
def _conv1_kernel(p_ref, w_ref, b_ref, o_ref, acc_ref):
    k = pl.program_id(1)

    @pl.when(k == 0)
    def _():
        acc_ref[...] = jnp.zeros_like(acc_ref)

    prod = p_ref[...].astype(jnp.float32) * w_ref[...].astype(jnp.float32)
    acc_ref[...] += jnp.sum(prod, axis=1, keepdims=True)

    @pl.when(k == pl.num_programs(1) - 1)
    def _():
        o_ref[...] = (acc_ref[...] + b_ref[...]).astype(o_ref.dtype)


def _conv1_matmul(patches, w_row, b2, out_dtype=jnp.float32):
    M, K = patches.shape
    Kp = w_row.shape[1]
    tk = min(512, Kp)
    assert Kp % tk == 0
    tm, Mp = _pick_tm(M, None)

    p = patches
    if Kp != K or Mp != M:
        p = jnp.pad(p, ((0, Mp - M), (0, Kp - K)))

    out = pl.pallas_call(
        _conv1_kernel,
        out_shape=jax.ShapeDtypeStruct((Mp, 1), out_dtype),
        grid=(Mp // tm, Kp // tk),
        in_specs=[
            pl.BlockSpec((tm, tk), lambda i, k: (i, k)),
            pl.BlockSpec((1, tk), lambda i, k: (0, k)),
            pl.BlockSpec((1, 1), lambda i, k: (0, 0)),
        ],
        out_specs=pl.BlockSpec((tm, 1), lambda i, k: (i, 0)),
        scratch_shapes=[pltpu.VMEM((tm, 1), jnp.float32)],
        compiler_params=pltpu.CompilerParams(
            dimension_semantics=("parallel", "arbitrary")),
    )(p, w_row, b2)
    return out[:M]


# ----------------------------------------------------------------------------
# Pallas kernels: InstanceNorm (+ LeakyReLU).  Normalize pass is always Pallas;
# the stats pass only runs when the conv could not fuse statistics.
# ----------------------------------------------------------------------------
def _in_stats_kernel(x_ref, mean_ref, rstd_ref, sum_sc, ssq_sc, *, hw):
    s = pl.program_id(1)

    @pl.when(s == 0)
    def _():
        sum_sc[...] = jnp.zeros_like(sum_sc)
        ssq_sc[...] = jnp.zeros_like(ssq_sc)

    x = x_ref[...].astype(jnp.float32)
    sum_sc[...] += jnp.sum(x, axis=1, keepdims=True)
    ssq_sc[...] += jnp.sum(x * x, axis=1, keepdims=True)

    @pl.when(s == pl.num_programs(1) - 1)
    def _():
        mean = sum_sc[...] / hw
        var = jnp.maximum(ssq_sc[...] / hw - mean * mean, 0.0)
        mean_ref[...] = mean
        rstd_ref[...] = jax.lax.rsqrt(var + EPS)


def _in_norm_kernel(x_ref, mean_ref, rstd_ref, o_ref):
    y = (x_ref[...].astype(jnp.float32) - mean_ref[...]) * rstd_ref[...]
    o_ref[...] = jnp.where(y > 0, y, LEAKY_SLOPE * y).astype(o_ref.dtype)


def _pick_spatial_tile(hw, cap=2048):
    if hw <= cap:
        return hw
    t = cap - cap % 16
    while t >= 16:
        if hw % t == 0:
            return t
        t -= 16
    return hw


def instance_norm_leaky_relu(x, stats=None):
    """x: (N, H, W, C) bf16.  InstanceNorm2d(affine=False, eps=1e-5) + LeakyReLU(0.2).

    stats: optional (mean, rstd), each (N, 1, C) f32, fused from the conv
    epilogue; if None a Pallas reduction pass computes them first.
    """
    N, H, W, C = x.shape
    HW = H * W
    xr = x.reshape(N, HW, C)
    thw = _pick_spatial_tile(HW)
    grid = (N, HW // thw)

    x_spec = pl.BlockSpec((1, thw, C), lambda n, s: (n, s, 0))
    stat_spec = pl.BlockSpec((1, 1, C), lambda n, s: (n, 0, 0))

    if stats is None:
        mean, rstd = pl.pallas_call(
            functools.partial(_in_stats_kernel, hw=float(HW)),
            out_shape=(jax.ShapeDtypeStruct((N, 1, C), jnp.float32),
                       jax.ShapeDtypeStruct((N, 1, C), jnp.float32)),
            grid=grid,
            in_specs=[x_spec],
            out_specs=(stat_spec, stat_spec),
            scratch_shapes=[pltpu.VMEM((1, 1, C), jnp.float32),
                            pltpu.VMEM((1, 1, C), jnp.float32)],
            compiler_params=pltpu.CompilerParams(
                dimension_semantics=("parallel", "arbitrary")),
        )(xr)
    else:
        mean, rstd = stats

    out = pl.pallas_call(
        _in_norm_kernel,
        out_shape=jax.ShapeDtypeStruct((N, HW, C), x.dtype),
        grid=grid,
        in_specs=[x_spec, stat_spec, stat_spec],
        out_specs=x_spec,
        compiler_params=pltpu.CompilerParams(
            dimension_semantics=("parallel", "parallel")),
    )(xr, mean, rstd)
    return out.reshape(N, H, W, C)


# ----------------------------------------------------------------------------
# Convolution glue (padding + bf16 im2col) feeding the Pallas matmuls
# ----------------------------------------------------------------------------
def _im2col(x, kh, kw, stride):
    """x: (N, H, W, C) already padded -> (N*Ho*Wo, kh*kw*C)."""
    N, H, W, C = x.shape
    Ho = (H - kh) // stride + 1
    Wo = (W - kw) // stride + 1
    cols = []
    for i in range(kh):
        for j in range(kw):
            cols.append(x[:, i:i + (Ho - 1) * stride + 1:stride,
                          j:j + (Wo - 1) * stride + 1:stride, :])
    patches = jnp.concatenate(cols, axis=-1)          # (N, Ho, Wo, kh*kw*C)
    return patches.reshape(N * Ho * Wo, kh * kw * C), (N, Ho, Wo)


def conv2d(x, w2, b2, kh, kw, stride=1, pad=0, activation="none",
           out_dtype=jnp.bfloat16, collect_stats=False):
    """x: NHWC bf16; w2/b2: pre-packed weights from init_params.

    Returns (out NHWC, stats) with stats = (mean, rstd) each (N, 1, Cout) f32
    when collect_stats succeeded, else None.
    """
    if pad:
        x = jnp.pad(x, ((0, 0), (pad, pad), (pad, pad), (0, 0)))
    patches, (N, Ho, Wo) = _im2col(x, kh, kw, stride)

    if w2.shape[0] == 1:                 # single-output-channel (final conv)
        out = _conv1_matmul(patches, w2, b2, out_dtype=out_dtype)
        return out.reshape(N, Ho, Wo, 1), None

    Cout = w2.shape[1]
    rows = Ho * Wo if collect_stats else None
    out, stats = _conv_matmul(patches, w2, b2, activation=activation,
                              out_dtype=out_dtype, rows_per_image=rows)
    out = out.reshape(N, Ho, Wo, Cout)
    if stats is None:
        return out, None

    # Finalize fused InstanceNorm statistics (tiny (N, tiles, C) reduction).
    sums, ssqs, tm = stats
    tiles_per_img = (Ho * Wo) // tm
    hw = float(Ho * Wo)
    sums = sums[:, 0, :].reshape(N, tiles_per_img, Cout).sum(axis=1)
    ssqs = ssqs[:, 0, :].reshape(N, tiles_per_img, Cout).sum(axis=1)
    mean = sums / hw
    var = jnp.maximum(ssqs / hw - mean * mean, 0.0)   # clamp: avoid rsqrt(<0)
    rstd = jax.lax.rsqrt(var + EPS)
    return out, (mean.reshape(N, 1, Cout), rstd.reshape(N, 1, Cout))


# ----------------------------------------------------------------------------
# Parameters (deterministic synthetic init, pre-packed for the kernels)
# ----------------------------------------------------------------------------
def _pack_conv(key, cout, cin, ks):
    k1, k2 = jax.random.split(key)
    w = jax.random.normal(k1, (cout, cin, ks, ks), jnp.float32) * 0.02
    b = jax.random.normal(k2, (cout,), jnp.float32) * 0.02
    K = ks * ks * cin
    tk = _pick_tk(K)
    Kp = _round_up(K, tk)
    w2 = jnp.transpose(w, (2, 3, 1, 0)).reshape(K, cout)        # (K, Cout)
    w2 = jnp.pad(w2, ((0, Kp - K), (0, 0))).astype(jnp.bfloat16)
    b2 = b.reshape(1, cout).astype(jnp.float32)
    if cout == 1:                       # row-vector layout for the VPU path
        w2 = w2.reshape(1, Kp)
    return {"w": w2, "b": b2}


def init_params(key, inp_channels):
    keys = jax.random.split(key, 5)
    return {
        "c1": _pack_conv(keys[0], 64, inp_channels, 4),
        "c2": _pack_conv(keys[1], 128, 64, 4),
        "c3": _pack_conv(keys[2], 256, 128, 4),
        "c4": _pack_conv(keys[3], 512, 256, 4),
        "c5": _pack_conv(keys[4], 1, 512, 4),
    }


# ----------------------------------------------------------------------------
# Discriminator forward (mirrors the PyTorch nn.Sequential exactly)
# ----------------------------------------------------------------------------
def discriminator_forward(x_nchw, params):
    x = jnp.transpose(x_nchw, (0, 2, 3, 1)).astype(jnp.bfloat16)  # NCHW -> NHWC

    # Conv(inp, 64, k4, s2, p1) + LeakyReLU(0.2) (activation fused into matmul)
    x, _ = conv2d(x, params["c1"]["w"], params["c1"]["b"], 4, 4,
                  stride=2, pad=1, activation="leaky_relu")
    # conv_block(64, 128): Conv + InstanceNorm + LeakyReLU (IN stats fused in conv)
    x, st = conv2d(x, params["c2"]["w"], params["c2"]["b"], 4, 4,
                   stride=2, pad=1, collect_stats=True)
    x = instance_norm_leaky_relu(x, st)
    # conv_block(128, 256)
    x, st = conv2d(x, params["c3"]["w"], params["c3"]["b"], 4, 4,
                   stride=2, pad=1, collect_stats=True)
    x = instance_norm_leaky_relu(x, st)
    # conv_block(256, 512)
    x, st = conv2d(x, params["c4"]["w"], params["c4"]["b"], 4, 4,
                   stride=2, pad=1, collect_stats=True)
    x = instance_norm_leaky_relu(x, st)
    # Conv(512, 1, k4, s1, p1) — single-channel VPU path, f32 output
    x, _ = conv2d(x, params["c5"]["w"], params["c5"]["b"], 4, 4,
                  stride=1, pad=1, out_dtype=jnp.float32)

    # F.avg_pool2d(x, x.size()[2:]).view(N, -1): global spatial mean -> (N, 1)
    N, Ho, Wo, C = x.shape
    return jnp.mean(x.reshape(N, Ho * Wo, C), axis=1)


if __name__ == "__main__":
    key = jax.random.PRNGKey(0)
    k_param, k_input = jax.random.split(key)

    INP_CH = 3
    params = init_params(k_param, INP_CH)

    # Smallest "real" discriminator input: 4 stride-2 convs + final k4/s1/p1
    # conv require spatial >= 32; use 64x64 so the tiled grids have >1 step.
    x = jax.random.normal(k_input, (2, INP_CH, 64, 64), jnp.float32)

    fwd = jax.jit(discriminator_forward)
    y = fwd(x, params)
    jax.block_until_ready(y)

    assert y.shape == (2, 1), y.shape
    assert bool(jnp.all(jnp.isfinite(y)))
    print("KERNEL_OK")
</pallas_src>

<mosaic_0001>
module attributes {stable_mosaic.version = 11 : i64} {
  func.func @_conv_kernel(%arg0: i32, %arg1: i32, %arg2: i32, %arg3: memref<512x128xbf16, #tpu.memory_space<vmem>>, %arg4: memref<128x64xbf16, #tpu.memory_space<vmem>>, %arg5: memref<1x64xf32, #tpu.memory_space<vmem>>, %arg6: memref<512x64xbf16, #tpu.memory_space<vmem>>, %arg7: memref<512x64xf32, #tpu.memory_space<vmem>>) attributes {dimension_semantics = [#tpu.dimension_semantics<parallel>, #tpu.dimension_semantics<parallel>, #tpu.dimension_semantics<arbitrary>], iteration_bounds = array<i64: 4, 1, 1>, scalar_prefetch = 0 : i64, scratch_operands = 1 : i64, tpu.core_type = #tpu.core_type<tc>, window_params = [{transform_indices = @transform_0, window_bounds = array<i64: 512, 128>}, {transform_indices = @transform_1, window_bounds = array<i64: 128, 64>}, {transform_indices = @transform_2, window_bounds = array<i64: 1, 64>}, {transform_indices = @transform_3, window_bounds = array<i64: 512, 64>}]} {
    %c0_i32 = arith.constant 0 : i32
    %0 = arith.cmpi eq, %arg2, %c0_i32 : i32
    %1 = arith.extui %0 : i1 to i32
    %c0_i32_0 = arith.constant 0 : i32
    %2 = arith.cmpi ne, %1, %c0_i32_0 : i32
    scf.if %2 {
      %cst_10 = arith.constant 0.000000e+00 : f32
      %12 = vector.broadcast %cst_10 : f32 to vector<512x64xf32>
      %c0_11 = arith.constant 0 : index
      %c0_12 = arith.constant 0 : index
      %13 = vector.load %arg7[%c0_11, %c0_12] : memref<512x64xf32, #tpu.memory_space<vmem>>, vector<512x64xf32>
      tpu.vector_store %arg7[%c0_11, %c0_12], %12 {strides = array<i32>} : memref<512x64xf32, #tpu.memory_space<vmem>>, vector<512x64xf32>,
    } else {
    }
    %c0 = arith.constant 0 : index
    %c0_1 = arith.constant 0 : index
    %3 = vector.load %arg7[%c0, %c0_1] : memref<512x64xf32, #tpu.memory_space<vmem>>, vector<512x64xf32>
    %c0_2 = arith.constant 0 : index
    %c0_3 = arith.constant 0 : index
    %4 = vector.load %arg3[%c0_2, %c0_3] : memref<512x128xbf16, #tpu.memory_space<vmem>>, vector<512x128xbf16>
    %c0_4 = arith.constant 0 : index
    %c0_5 = arith.constant 0 : index
    %5 = vector.load %arg4[%c0_4, %c0_5] : memref<128x64xbf16, #tpu.memory_space<vmem>>, vector<128x64xbf16>
    %cst = arith.constant dense<0.000000e+00> : vector<512x64xf32>
    %6 = tpu.matmul %4, %5, %cst {dimension_numbers = #tpu.dot_dimension_numbers<[1], [0], [0], [1], [0, 0, 1, 1], [], []>} : vector<512x128xbf16>, vector<128x64xbf16>, vector<512x64xf32> -> vector<512x64xf32>
    %7 = arith.addf %3, %6 : vector<512x64xf32>
    %c0_6 = arith.constant 0 : index
    %c0_7 = arith.constant 0 : index
    %8 = vector.load %arg7[%c0_6, %c0_7] : memref<512x64xf32, #tpu.memory_space<vmem>>, vector<512x64xf32>
    tpu.vector_store %arg7[%c0_6, %c0_7], %7 {strides = array<i32>} : memref<512x64xf32, #tpu.memory_space<vmem>>, vector<512x64xf32>,
    %c0_i32_8 = arith.constant 0 : i32
    %9 = arith.cmpi eq, %arg2, %c0_i32_8 : i32
    %10 = arith.extui %9 : i1 to i32
    %c0_i32_9 = arith.constant 0 : i32
    %11 = arith.cmpi ne, %10, %c0_i32_9 : i32
    scf.if %11 {
      %c0_10 = arith.constant 0 : index
      %c0_11 = arith.constant 0 : index
      %12 = vector.load %arg7[%c0_10, %c0_11] : memref<512x64xf32, #tpu.memory_space<vmem>>, vector<512x64xf32>
      %c0_12 = arith.constant 0 : index
      %c0_13 = arith.constant 0 : index
      %13 = vector.load %arg5[%c0_12, %c0_13] : memref<1x64xf32, #tpu.memory_space<vmem>>, vector<1x64xf32>
      %14 = vector.broadcast %13 : vector<1x64xf32> to vector<512x64xf32>
      %15 = arith.addf %12, %14 : vector<512x64xf32>
      %cst_14 = arith.constant 0.000000e+00 : f32
      %16 = vector.broadcast %cst_14 : f32 to vector<512x64xf32>
      %17 = arith.cmpf ogt, %15, %16 : vector<512x64xf32>
      %cst_15 = arith.constant 2.000000e-01 : f32
      %18 = vector.broadcast %cst_15 : f32 to vector<512x64xf32>
      %19 = arith.mulf %18, %15 : vector<512x64xf32>
      %20 = arith.select %17, %15, %19 : vector<512x64xi1>, vector<512x64xf32>
      %21 = arith.truncf %20 : vector<512x64xf32> to vector<512x64xbf16>
      %c0_16 = arith.constant 0 : index
      %c0_17 = arith.constant 0 : index
      %22 = vector.load %arg6[%c0_16, %c0_17] : memref<512x64xbf16, #tpu.memory_space<vmem>>, vector<512x64xbf16>
      tpu.vector_store %arg6[%c0_16, %c0_17], %21 {strides = array<i32>} : memref<512x64xbf16, #tpu.memory_space<vmem>>, vector<512x64xbf16>,
    } else {
    }
    return
  }
  func.func @transform_0(%arg0: i32, %arg1: i32, %arg2: i32) -> (i32, i32) {
    %c0_i32 = arith.constant 0 : i32
    return %arg0, %arg2 : i32, i32
  }
  func.func @transform_1(%arg0: i32, %arg1: i32, %arg2: i32) -> (i32, i32) {
    %c0_i32 = arith.constant 0 : i32
    return %arg2, %arg1 : i32, i32
  }
  func.func @transform_2(%arg0: i32, %arg1: i32, %arg2: i32) -> (i32, i32) {
    %c0_i32 = arith.constant 0 : i32
    %c0_i32_0 = arith.constant 0 : i32
    return %c0_i32, %arg1 : i32, i32
  }
  func.func @transform_3(%arg0: i32, %arg1: i32, %arg2: i32) -> (i32, i32) {
    %c0_i32 = arith.constant 0 : i32
    return %arg0, %arg1 : i32, i32
  }
}

module attributes {stable_mosaic.version = 11 : i64} {
  func.func @_conv_kernel(%arg0: i32, %arg1: i32, %arg2: i32, %arg3: memref<256x512xbf16, #tpu.memory_space<vmem>>, %arg4: memref<512x128xbf16, #tpu.memory_space<vmem>>, %arg5: memref<1x128xf32, #tpu.memory_space<vmem>>, %arg6: memref<256x128xbf16, #tpu.memory_space<vmem>>, %arg7: memref<1x1x128xf32, #tpu.memory_space<vmem>>, %arg8: memref<1x1x128xf32, #tpu.memory_space<vmem>>, %arg9: memref<256x128xf32, #tpu.memory_space<vmem>>) attributes {dimension_semantics = [#tpu.dimension_semantics<parallel>, #tpu.dimension_semantics<parallel>, #tpu.dimension_semantics<arbitrary>], iteration_bounds = array<i64: 2, 1, 2>, scalar_prefetch = 0 : i64, scratch_operands = 1 : i64, tpu.core_type = #tpu.core_type<tc>, window_params = [{transform_indices = @transform_0, window_bounds = array<i64: 256, 512>}, {transform_indices = @transform_1, window_bounds = array<i64: 512, 128>}, {transform_indices = @transform_2, window_bounds = array<i64: 1, 128>}, {transform_indices = @transform_3, window_bounds = array<i64: 256, 128>}, {transform_indices = @transform_4, window_bounds = array<i64: 1, 1, 128>}, {transform_indices = @transform_5, window_bounds = array<i64: 1, 1, 128>}]} {
    %c0_i32 = arith.constant 0 : i32
    %0 = arith.cmpi eq, %arg2, %c0_i32 : i32
    %1 = arith.extui %0 : i1 to i32
    %c0_i32_0 = arith.constant 0 : i32
    %2 = arith.cmpi ne, %1, %c0_i32_0 : i32
    scf.if %2 {
      %cst_9 = arith.constant 0.000000e+00 : f32
      %12 = vector.broadcast %cst_9 : f32 to vector<256x128xf32>
      %c0_10 = arith.constant 0 : index
      %c0_11 = arith.constant 0 : index
      %13 = vector.load %arg9[%c0_10, %c0_11] : memref<256x128xf32, #tpu.memory_space<vmem>>, vector<256x128xf32>
      tpu.vector_store %arg9[%c0_10, %c0_11], %12 {strides = array<i32>} : memref<256x128xf32, #tpu.memory_space<vmem>>, vector<256x128xf32>,
    } else {
    }
    %c0 = arith.constant 0 : index
    %c0_1 = arith.constant 0 : index
    %3 = vector.load %arg9[%c0, %c0_1] : memref<256x128xf32, #tpu.memory_space<vmem>>, vector<256x128xf32>
    %c0_2 = arith.constant 0 : index
    %c0_3 = arith.constant 0 : index
    %4 = vector.load %arg3[%c0_2, %c0_3] : memref<256x512xbf16, #tpu.memory_space<vmem>>, vector<256x512xbf16>
    %c0_4 = arith.constant 0 : index
    %c0_5 = arith.constant 0 : index
    %5 = vector.load %arg4[%c0_4, %c0_5] : memref<512x128xbf16, #tpu.memory_space<vmem>>, vector<512x128xbf16>
    %cst = arith.constant dense<0.000000e+00> : vector<256x128xf32>
    %6 = tpu.matmul %4, %5, %cst {dimension_numbers = #tpu.dot_dimension_numbers<[1], [0], [0], [1], [0, 0, 1, 1], [], []>} : vector<256x512xbf16>, vector<512x128xbf16>, vector<256x128xf32> -> vector<256x128xf32>
    %7 = arith.addf %3, %6 : vector<256x128xf32>
    %c0_6 = arith.constant 0 : index
    %c0_7 = arith.constant 0 : index
    %8 = vector.load %arg9[%c0_6, %c0_7] : memref<256x128xf32, #tpu.memory_space<vmem>>, vector<256x128xf32>
    tpu.vector_store %arg9[%c0_6, %c0_7], %7 {strides = array<i32>} : memref<256x128xf32, #tpu.memory_space<vmem>>, vector<256x128xf32>,
    %c1_i32 = arith.constant 1 : i32
    %9 = arith.cmpi eq, %arg2, %c1_i32 : i32
    %10 = arith.extui %9 : i1 to i32
    %c0_i32_8 = arith.constant 0 : i32
    %11 = arith.cmpi ne, %10, %c0_i32_8 : i32
    scf.if %11 {
      %c0_9 = arith.constant 0 : index
      %c0_10 = arith.constant 0 : index
      %12 = vector.load %arg9[%c0_9, %c0_10] : memref<256x128xf32, #tpu.memory_space<vmem>>, vector<256x128xf32>
      %c0_11 = arith.constant 0 : index
      %c0_12 = arith.constant 0 : index
      %13 = vector.load %arg5[%c0_11, %c0_12] : memref<1x128xf32, #tpu.memory_space<vmem>>, vector<1x128xf32>
      %14 = vector.broadcast %13 : vector<1x128xf32> to vector<256x128xf32>
      %15 = arith.addf %12, %14 : vector<256x128xf32>
      %cst_13 = arith.constant dense<0.000000e+00> : vector<128xf32>
      %16 = vector.multi_reduction <add>, %15, %cst_13 [0] : vector<256x128xf32> to vector<128xf32>
      %17 = vector.shape_cast %16 : vector<128xf32> to vector<1x128xf32>
      %18 = vector.shape_cast %17 : vector<1x128xf32> to vector<1x1x128xf32>
      %c0_14 = arith.constant 0 : index
      %c0_15 = arith.constant 0 : index
      %c0_16 = arith.constant 0 : index
      %19 = vector.load %arg7[%c0_14, %c0_15, %c0_16] : memref<1x1x128xf32, #tpu.memory_space<vmem>>, vector<1x1x128xf32>
      tpu.vector_store %arg7[%c0_14, %c0_15, %c0_16], %18 {strides = array<i32>} : memref<1x1x128xf32, #tpu.memory_space<vmem>>, vector<1x1x128xf32>,
      %20 = arith.mulf %15, %15 : vector<256x128xf32>
      %cst_17 = arith.constant dense<0.000000e+00> : vector<128xf32>
      %21 = vector.multi_reduction <add>, %20, %cst_17 [0] : vector<256x128xf32> to vector<128xf32>
      %22 = vector.shape_cast %21 : vector<128xf32> to vector<1x128xf32>
      %23 = vector.shape_cast %22 : vector<1x128xf32> to vector<1x1x128xf32>
      %c0_18 = arith.constant 0 : index
      %c0_19 = arith.constant 0 : index
      %c0_20 = arith.constant 0 : index
      %24 = vector.load %arg8[%c0_18, %c0_19, %c0_20] : memref<1x1x128xf32, #tpu.memory_space<vmem>>, vector<1x1x128xf32>
      tpu.vector_store %arg8[%c0_18, %c0_19, %c0_20], %23 {strides = array<i32>} : memref<1x1x128xf32, #tpu.memory_space<vmem>>, vector<1x1x128xf32>,
      %25 = arith.truncf %15 : vector<256x128xf32> to vector<256x128xbf16>
      %c0_21 = arith.constant 0 : index
      %c0_22 = arith.constant 0 : index
      %26 = vector.load %arg6[%c0_21, %c0_22] : memref<256x128xbf16, #tpu.memory_space<vmem>>, vector<256x128xbf16>
      tpu.vector_store %arg6[%c0_21, %c0_22], %25 {strides = array<i32>} : memref<256x128xbf16, #tpu.memory_space<vmem>>, vector<256x128xbf16>,
    } else {
    }
    return
  }
  func.func @transform_0(%arg0: i32, %arg1: i32, %arg2: i32) -> (i32, i32) {
    %c0_i32 = arith.constant 0 : i32
    return %arg0, %arg2 : i32, i32
  }
  func.func @transform_1(%arg0: i32, %arg1: i32, %arg2: i32) -> (i32, i32) {
    %c0_i32 = arith.constant 0 : i32
    return %arg2, %arg1 : i32, i32
  }
  func.func @transform_2(%arg0: i32, %arg1: i32, %arg2: i32) -> (i32, i32) {
    %c0_i32 = arith.constant 0 : i32
    %c0_i32_0 = arith.constant 0 : i32
    return %c0_i32, %arg1 : i32, i32
  }
  func.func @transform_3(%arg0: i32, %arg1: i32, %arg2: i32) -> (i32, i32) {
    %c0_i32 = arith.constant 0 : i32
    return %arg0, %arg1 : i32, i32
  }
  func.func @transform_4(%arg0: i32, %arg1: i32, %arg2: i32) -> (i32, i32, i32) {
    %c0_i32 = arith.constant 0 : i32
    %c0_i32_0 = arith.constant 0 : i32
    return %arg0, %c0_i32, %arg1 : i32, i32, i32
  }
  func.func @transform_5(%arg0: i32, %arg1: i32, %arg2: i32) -> (i32, i32, i32) {
    %c0_i32 = arith.constant 0 : i32
    %c0_i32_0 = arith.constant 0 : i32
    return %arg0, %c0_i32, %arg1 : i32, i32, i32
  }
}

module attributes {stable_mosaic.version = 11 : i64} {
  func.func @_in_norm_kernel(%arg0: i32, %arg1: i32, %arg2: memref<1x256x128xbf16, #tpu.memory_space<vmem>>, %arg3: memref<1x1x128xf32, #tpu.memory_space<vmem>>, %arg4: memref<1x1x128xf32, #tpu.memory_space<vmem>>, %arg5: memref<1x256x128xbf16, #tpu.memory_space<vmem>>) attributes {dimension_semantics = [#tpu.dimension_semantics<parallel>, #tpu.dimension_semantics<parallel>], iteration_bounds = array<i64: 2, 1>, scalar_prefetch = 0 : i64, scratch_operands = 0 : i64, tpu.core_type = #tpu.core_type<tc>, window_params = [{transform_indices = @transform_0, window_bounds = array<i64: 1, 256, 128>}, {transform_indices = @transform_1, window_bounds = array<i64: 1, 1, 128>}, {transform_indices = @transform_2, window_bounds = array<i64: 1, 1, 128>}, {transform_indices = @transform_3, window_bounds = array<i64: 1, 256, 128>}]} {
    %c0 = arith.constant 0 : index
    %c0_0 = arith.constant 0 : index
    %c0_1 = arith.constant 0 : index
    %0 = vector.load %arg2[%c0, %c0_0, %c0_1] : memref<1x256x128xbf16, #tpu.memory_space<vmem>>, vector<1x256x128xbf16>
    %1 = arith.extf %0 : vector<1x256x128xbf16> to vector<1x256x128xf32>
    %c0_2 = arith.constant 0 : index
    %c0_3 = arith.constant 0 : index
    %c0_4 = arith.constant 0 : index
    %2 = vector.load %arg3[%c0_2, %c0_3, %c0_4] : memref<1x1x128xf32, #tpu.memory_space<vmem>>, vector<1x1x128xf32>
    %3 = vector.broadcast %2 : vector<1x1x128xf32> to vector<1x256x128xf32>
    %4 = arith.subf %1, %3 : vector<1x256x128xf32>
    %c0_5 = arith.constant 0 : index
    %c0_6 = arith.constant 0 : index
    %c0_7 = arith.constant 0 : index
    %5 = vector.load %arg4[%c0_5, %c0_6, %c0_7] : memref<1x1x128xf32, #tpu.memory_space<vmem>>, vector<1x1x128xf32>
    %6 = vector.broadcast %5 : vector<1x1x128xf32> to vector<1x256x128xf32>
    %7 = arith.mulf %4, %6 : vector<1x256x128xf32>
    %cst = arith.constant 0.000000e+00 : f32
    %8 = vector.broadcast %cst : f32 to vector<1x256x128xf32>
    %9 = arith.cmpf ogt, %7, %8 : vector<1x256x128xf32>
    %cst_8 = arith.constant 2.000000e-01 : f32
    %10 = vector.broadcast %cst_8 : f32 to vector<1x256x128xf32>
    %11 = arith.mulf %10, %7 : vector<1x256x128xf32>
    %12 = arith.select %9, %7, %11 : vector<1x256x128xi1>, vector<1x256x128xf32>
    %13 = arith.truncf %12 : vector<1x256x128xf32> to vector<1x256x128xbf16>
    %c0_9 = arith.constant 0 : index
    %c0_10 = arith.constant 0 : index
    %c0_11 = arith.constant 0 : index
    %14 = vector.load %arg5[%c0_9, %c0_10, %c0_11] : memref<1x256x128xbf16, #tpu.memory_space<vmem>>, vector<1x256x128xbf16>
    tpu.vector_store %arg5[%c0_9, %c0_10, %c0_11], %13 {strides = array<i32>} : memref<1x256x128xbf16, #tpu.memory_space<vmem>>, vector<1x256x128xbf16>,
    return
  }
  func.func @transform_0(%arg0: i32, %arg1: i32) -> (i32, i32, i32) {
    %c0_i32 = arith.constant 0 : i32
    %c0_i32_0 = arith.constant 0 : i32
    return %arg0, %arg1, %c0_i32 : i32, i32, i32
  }
  func.func @transform_1(%arg0: i32, %arg1: i32) -> (i32, i32, i32) {
    %c0_i32 = arith.constant 0 : i32
    %c0_i32_0 = arith.constant 0 : i32
    %c0_i32_1 = arith.constant 0 : i32
    return %arg0, %c0_i32, %c0_i32_0 : i32, i32, i32
  }
  func.func @transform_2(%arg0: i32, %arg1: i32) -> (i32, i32, i32) {
    %c0_i32 = arith.constant 0 : i32
    %c0_i32_0 = arith.constant 0 : i32
    %c0_i32_1 = arith.constant 0 : i32
    return %arg0, %c0_i32, %c0_i32_0 : i32, i32, i32
  }
  func.func @transform_3(%arg0: i32, %arg1: i32) -> (i32, i32, i32) {
    %c0_i32 = arith.constant 0 : i32
    %c0_i32_0 = arith.constant 0 : i32
    return %arg0, %arg1, %c0_i32 : i32, i32, i32
  }
}

module attributes {stable_mosaic.version = 11 : i64} {
  func.func @_in_norm_kernel(%arg0: i32, %arg1: i32, %arg2: memref<1x64x256xbf16, #tpu.memory_space<vmem>>, %arg3: memref<1x1x256xf32, #tpu.memory_space<vmem>>, %arg4: memref<1x1x256xf32, #tpu.memory_space<vmem>>, %arg5: memref<1x64x256xbf16, #tpu.memory_space<vmem>>) attributes {dimension_semantics = [#tpu.dimension_semantics<parallel>, #tpu.dimension_semantics<parallel>], iteration_bounds = array<i64: 2, 1>, scalar_prefetch = 0 : i64, scratch_operands = 0 : i64, tpu.core_type = #tpu.core_type<tc>, window_params = [{transform_indices = @transform_0, window_bounds = array<i64: 1, 64, 256>}, {transform_indices = @transform_1, window_bounds = array<i64: 1, 1, 256>}, {transform_indices = @transform_2, window_bounds = array<i64: 1, 1, 256>}, {transform_indices = @transform_3, window_bounds = array<i64: 1, 64, 256>}]} {
    %c0 = arith.constant 0 : index
    %c0_0 = arith.constant 0 : index
    %c0_1 = arith.constant 0 : index
    %0 = vector.load %arg2[%c0, %c0_0, %c0_1] : memref<1x64x256xbf16, #tpu.memory_space<vmem>>, vector<1x64x256xbf16>
    %1 = arith.extf %0 : vector<1x64x256xbf16> to vector<1x64x256xf32>
    %c0_2 = arith.constant 0 : index
    %c0_3 = arith.constant 0 : index
    %c0_4 = arith.constant 0 : index
    %2 = vector.load %arg3[%c0_2, %c0_3, %c0_4] : memref<1x1x256xf32, #tpu.memory_space<vmem>>, vector<1x1x256xf32>
    %3 = vector.broadcast %2 : vector<1x1x256xf32> to vector<1x64x256xf32>
    %4 = arith.subf %1, %3 : vector<1x64x256xf32>
    %c0_5 = arith.constant 0 : index
    %c0_6 = arith.constant 0 : index
    %c0_7 = arith.constant 0 : index
    %5 = vector.load %arg4[%c0_5, %c0_6, %c0_7] : memref<1x1x256xf32, #tpu.memory_space<vmem>>, vector<1x1x256xf32>
    %6 = vector.broadcast %5 : vector<1x1x256xf32> to vector<1x64x256xf32>
    %7 = arith.mulf %4, %6 : vector<1x64x256xf32>
    %cst = arith.constant 0.000000e+00 : f32
    %8 = vector.broadcast %cst : f32 to vector<1x64x256xf32>
    %9 = arith.cmpf ogt, %7, %8 : vector<1x64x256xf32>
    %cst_8 = arith.constant 2.000000e-01 : f32
    %10 = vector.broadcast %cst_8 : f32 to vector<1x64x256xf32>
    %11 = arith.mulf %10, %7 : vector<1x64x256xf32>
    %12 = arith.select %9, %7, %11 : vector<1x64x256xi1>, vector<1x64x256xf32>
    %13 = arith.truncf %12 : vector<1x64x256xf32> to vector<1x64x256xbf16>
    %c0_9 = arith.constant 0 : index
    %c0_10 = arith.constant 0 : index
    %c0_11 = arith.constant 0 : index
    %14 = vector.load %arg5[%c0_9, %c0_10, %c0_11] : memref<1x64x256xbf16, #tpu.memory_space<vmem>>, vector<1x64x256xbf16>
    tpu.vector_store %arg5[%c0_9, %c0_10, %c0_11], %13 {strides = array<i32>} : memref<1x64x256xbf16, #tpu.memory_space<vmem>>, vector<1x64x256xbf16>,
    return
  }
  func.func @transform_0(%arg0: i32, %arg1: i32) -> (i32, i32, i32) {
    %c0_i32 = arith.constant 0 : i32
    %c0_i32_0 = arith.constant 0 : i32
    return %arg0, %arg1, %c0_i32 : i32, i32, i32
  }
  func.func @transform_1(%arg0: i32, %arg1: i32) -> (i32, i32, i32) {
    %c0_i32 = arith.constant 0 : i32
    %c0_i32_0 = arith.constant 0 : i32
    %c0_i32_1 = arith.constant 0 : i32
    return %arg0, %c0_i32, %c0_i32_0 : i32, i32, i32
  }
  func.func @transform_2(%arg0: i32, %arg1: i32) -> (i32, i32, i32) {
    %c0_i32 = arith.constant 0 : i32
    %c0_i32_0 = arith.constant 0 : i32
    %c0_i32_1 = arith.constant 0 : i32
    return %arg0, %c0_i32, %c0_i32_0 : i32, i32, i32
  }
  func.func @transform_3(%arg0: i32, %arg1: i32) -> (i32, i32, i32) {
    %c0_i32 = arith.constant 0 : i32
    %c0_i32_0 = arith.constant 0 : i32
    return %arg0, %arg1, %c0_i32 : i32, i32, i32
  }
}

module attributes {stable_mosaic.version = 11 : i64} {
  func.func @_conv_kernel(%arg0: i32, %arg1: i32, %arg2: i32, %arg3: memref<64x512xbf16, #tpu.memory_space<vmem>>, %arg4: memref<512x256xbf16, #tpu.memory_space<vmem>>, %arg5: memref<1x256xf32, #tpu.memory_space<vmem>>, %arg6: memref<64x256xbf16, #tpu.memory_space<vmem>>, %arg7: memref<1x1x256xf32, #tpu.memory_space<vmem>>, %arg8: memref<1x1x256xf32, #tpu.memory_space<vmem>>, %arg9: memref<64x256xf32, #tpu.memory_space<vmem>>) attributes {dimension_semantics = [#tpu.dimension_semantics<parallel>, #tpu.dimension_semantics<parallel>, #tpu.dimension_semantics<arbitrary>], iteration_bounds = array<i64: 2, 1, 4>, scalar_prefetch = 0 : i64, scratch_operands = 1 : i64, tpu.core_type = #tpu.core_type<tc>, window_params = [{transform_indices = @transform_0, window_bounds = array<i64: 64, 512>}, {transform_indices = @transform_1, window_bounds = array<i64: 512, 256>}, {transform_indices = @transform_2, window_bounds = array<i64: 1, 256>}, {transform_indices = @transform_3, window_bounds = array<i64: 64, 256>}, {transform_indices = @transform_4, window_bounds = array<i64: 1, 1, 256>}, {transform_indices = @transform_5, window_bounds = array<i64: 1, 1, 256>}]} {
    %c0_i32 = arith.constant 0 : i32
    %0 = arith.cmpi eq, %arg2, %c0_i32 : i32
    %1 = arith.extui %0 : i1 to i32
    %c0_i32_0 = arith.constant 0 : i32
    %2 = arith.cmpi ne, %1, %c0_i32_0 : i32
    scf.if %2 {
      %cst_9 = arith.constant 0.000000e+00 : f32
      %12 = vector.broadcast %cst_9 : f32 to vector<64x256xf32>
      %c0_10 = arith.constant 0 : index
      %c0_11 = arith.constant 0 : index
      %13 = vector.load %arg9[%c0_10, %c0_11] : memref<64x256xf32, #tpu.memory_space<vmem>>, vector<64x256xf32>
      tpu.vector_store %arg9[%c0_10, %c0_11], %12 {strides = array<i32>} : memref<64x256xf32, #tpu.memory_space<vmem>>, vector<64x256xf32>,
    } else {
    }
    %c0 = arith.constant 0 : index
    %c0_1 = arith.constant 0 : index
    %3 = vector.load %arg9[%c0, %c0_1] : memref<64x256xf32, #tpu.memory_space<vmem>>, vector<64x256xf32>
    %c0_2 = arith.constant 0 : index
    %c0_3 = arith.constant 0 : index
    %4 = vector.load %arg3[%c0_2, %c0_3] : memref<64x512xbf16, #tpu.memory_space<vmem>>, vector<64x512xbf16>
    %c0_4 = arith.constant 0 : index
    %c0_5 = arith.constant 0 : index
    %5 = vector.load %arg4[%c0_4, %c0_5] : memref<512x256xbf16, #tpu.memory_space<vmem>>, vector<512x256xbf16>
    %cst = arith.constant dense<0.000000e+00> : vector<64x256xf32>
    %6 = tpu.matmul %4, %5, %cst {dimension_numbers = #tpu.dot_dimension_numbers<[1], [0], [0], [1], [0, 0, 1, 1], [], []>} : vector<64x512xbf16>, vector<512x256xbf16>, vector<64x256xf32> -> vector<64x256xf32>
    %7 = arith.addf %3, %6 : vector<64x256xf32>
    %c0_6 = arith.constant 0 : index
    %c0_7 = arith.constant 0 : index
    %8 = vector.load %arg9[%c0_6, %c0_7] : memref<64x256xf32, #tpu.memory_space<vmem>>, vector<64x256xf32>
    tpu.vector_store %arg9[%c0_6, %c0_7], %7 {strides = array<i32>} : memref<64x256xf32, #tpu.memory_space<vmem>>, vector<64x256xf32>,
    %c3_i32 = arith.constant 3 : i32
    %9 = arith.cmpi eq, %arg2, %c3_i32 : i32
    %10 = arith.extui %9 : i1 to i32
    %c0_i32_8 = arith.constant 0 : i32
    %11 = arith.cmpi ne, %10, %c0_i32_8 : i32
    scf.if %11 {
      %c0_9 = arith.constant 0 : index
      %c0_10 = arith.constant 0 : index
      %12 = vector.load %arg9[%c0_9, %c0_10] : memref<64x256xf32, #tpu.memory_space<vmem>>, vector<64x256xf32>
      %c0_11 = arith.constant 0 : index
      %c0_12 = arith.constant 0 : index
      %13 = vector.load %arg5[%c0_11, %c0_12] : memref<1x256xf32, #tpu.memory_space<vmem>>, vector<1x256xf32>
      %14 = vector.broadcast %13 : vector<1x256xf32> to vector<64x256xf32>
      %15 = arith.addf %12, %14 : vector<64x256xf32>
      %cst_13 = arith.constant dense<0.000000e+00> : vector<256xf32>
      %16 = vector.multi_reduction <add>, %15, %cst_13 [0] : vector<64x256xf32> to vector<256xf32>
      %17 = vector.shape_cast %16 : vector<256xf32> to vector<1x256xf32>
      %18 = vector.shape_cast %17 : vector<1x256xf32> to vector<1x1x256xf32>
      %c0_14 = arith.constant 0 : index
      %c0_15 = arith.constant 0 : index
      %c0_16 = arith.constant 0 : index
      %19 = vector.load %arg7[%c0_14, %c0_15, %c0_16] : memref<1x1x256xf32, #tpu.memory_space<vmem>>, vector<1x1x256xf32>
      tpu.vector_store %arg7[%c0_14, %c0_15, %c0_16], %18 {strides = array<i32>} : memref<1x1x256xf32, #tpu.memory_space<vmem>>, vector<1x1x256xf32>,
      %20 = arith.mulf %15, %15 : vector<64x256xf32>
      %cst_17 = arith.constant dense<0.000000e+00> : vector<256xf32>
      %21 = vector.multi_reduction <add>, %20, %cst_17 [0] : vector<64x256xf32> to vector<256xf32>
      %22 = vector.shape_cast %21 : vector<256xf32> to vector<1x256xf32>
      %23 = vector.shape_cast %22 : vector<1x256xf32> to vector<1x1x256xf32>
      %c0_18 = arith.constant 0 : index
      %c0_19 = arith.constant 0 : index
      %c0_20 = arith.constant 0 : index
      %24 = vector.load %arg8[%c0_18, %c0_19, %c0_20] : memref<1x1x256xf32, #tpu.memory_space<vmem>>, vector<1x1x256xf32>
      tpu.vector_store %arg8[%c0_18, %c0_19, %c0_20], %23 {strides = array<i32>} : memref<1x1x256xf32, #tpu.memory_space<vmem>>, vector<1x1x256xf32>,
      %25 = arith.truncf %15 : vector<64x256xf32> to vector<64x256xbf16>
      %c0_21 = arith.constant 0 : index
      %c0_22 = arith.constant 0 : index
      %26 = vector.load %arg6[%c0_21, %c0_22] : memref<64x256xbf16, #tpu.memory_space<vmem>>, vector<64x256xbf16>
      tpu.vector_store %arg6[%c0_21, %c0_22], %25 {strides = array<i32>} : memref<64x256xbf16, #tpu.memory_space<vmem>>, vector<64x256xbf16>,
    } else {
    }
    return
  }
  func.func @transform_0(%arg0: i32, %arg1: i32, %arg2: i32) -> (i32, i32) {
    %c0_i32 = arith.constant 0 : i32
    return %arg0, %arg2 : i32, i32
  }
  func.func @transform_1(%arg0: i32, %arg1: i32, %arg2: i32) -> (i32, i32) {
    %c0_i32 = arith.constant 0 : i32
    return %arg2, %arg1 : i32, i32
  }
  func.func @transform_2(%arg0: i32, %arg1: i32, %arg2: i32) -> (i32, i32) {
    %c0_i32 = arith.constant 0 : i32
    %c0_i32_0 = arith.constant 0 : i32
    return %c0_i32, %arg1 : i32, i32
  }
  func.func @transform_3(%arg0: i32, %arg1: i32, %arg2: i32) -> (i32, i32) {
    %c0_i32 = arith.constant 0 : i32
    return %arg0, %arg1 : i32, i32
  }
  func.func @transform_4(%arg0: i32, %arg1: i32, %arg2: i32) -> (i32, i32, i32) {
    %c0_i32 = arith.constant 0 : i32
    %c0_i32_0 = arith.constant 0 : i32
    return %arg0, %c0_i32, %arg1 : i32, i32, i32
  }
  func.func @transform_5(%arg0: i32, %arg1: i32, %arg2: i32) -> (i32, i32, i32) {
    %c0_i32 = arith.constant 0 : i32
    %c0_i32_0 = arith.constant 0 : i32
    return %arg0, %c0_i32, %arg1 : i32, i32, i32
  }
}

module attributes {stable_mosaic.version = 11 : i64} {
  func.func @_in_norm_kernel(%arg0: i32, %arg1: i32, %arg2: memref<1x16x512xbf16, #tpu.memory_space<vmem>>, %arg3: memref<1x1x512xf32, #tpu.memory_space<vmem>>, %arg4: memref<1x1x512xf32, #tpu.memory_space<vmem>>, %arg5: memref<1x16x512xbf16, #tpu.memory_space<vmem>>) attributes {dimension_semantics = [#tpu.dimension_semantics<parallel>, #tpu.dimension_semantics<parallel>], iteration_bounds = array<i64: 2, 1>, scalar_prefetch = 0 : i64, scratch_operands = 0 : i64, tpu.core_type = #tpu.core_type<tc>, window_params = [{transform_indices = @transform_0, window_bounds = array<i64: 1, 16, 512>}, {transform_indices = @transform_1, window_bounds = array<i64: 1, 1, 512>}, {transform_indices = @transform_2, window_bounds = array<i64: 1, 1, 512>}, {transform_indices = @transform_3, window_bounds = array<i64: 1, 16, 512>}]} {
    %c0 = arith.constant 0 : index
    %c0_0 = arith.constant 0 : index
    %c0_1 = arith.constant 0 : index
    %0 = vector.load %arg2[%c0, %c0_0, %c0_1] : memref<1x16x512xbf16, #tpu.memory_space<vmem>>, vector<1x16x512xbf16>
    %1 = arith.extf %0 : vector<1x16x512xbf16> to vector<1x16x512xf32>
    %c0_2 = arith.constant 0 : index
    %c0_3 = arith.constant 0 : index
    %c0_4 = arith.constant 0 : index
    %2 = vector.load %arg3[%c0_2, %c0_3, %c0_4] : memref<1x1x512xf32, #tpu.memory_space<vmem>>, vector<1x1x512xf32>
    %3 = vector.broadcast %2 : vector<1x1x512xf32> to vector<1x16x512xf32>
    %4 = arith.subf %1, %3 : vector<1x16x512xf32>
    %c0_5 = arith.constant 0 : index
    %c0_6 = arith.constant 0 : index
    %c0_7 = arith.constant 0 : index
    %5 = vector.load %arg4[%c0_5, %c0_6, %c0_7] : memref<1x1x512xf32, #tpu.memory_space<vmem>>, vector<1x1x512xf32>
    %6 = vector.broadcast %5 : vector<1x1x512xf32> to vector<1x16x512xf32>
    %7 = arith.mulf %4, %6 : vector<1x16x512xf32>
    %cst = arith.constant 0.000000e+00 : f32
    %8 = vector.broadcast %cst : f32 to vector<1x16x512xf32>
    %9 = arith.cmpf ogt, %7, %8 : vector<1x16x512xf32>
    %cst_8 = arith.constant 2.000000e-01 : f32
    %10 = vector.broadcast %cst_8 : f32 to vector<1x16x512xf32>
    %11 = arith.mulf %10, %7 : vector<1x16x512xf32>
    %12 = arith.select %9, %7, %11 : vector<1x16x512xi1>, vector<1x16x512xf32>
    %13 = arith.truncf %12 : vector<1x16x512xf32> to vector<1x16x512xbf16>
    %c0_9 = arith.constant 0 : index
    %c0_10 = arith.constant 0 : index
    %c0_11 = arith.constant 0 : index
    %14 = vector.load %arg5[%c0_9, %c0_10, %c0_11] : memref<1x16x512xbf16, #tpu.memory_space<vmem>>, vector<1x16x512xbf16>
    tpu.vector_store %arg5[%c0_9, %c0_10, %c0_11], %13 {strides = array<i32>} : memref<1x16x512xbf16, #tpu.memory_space<vmem>>, vector<1x16x512xbf16>,
    return
  }
  func.func @transform_0(%arg0: i32, %arg1: i32) -> (i32, i32, i32) {
    %c0_i32 = arith.constant 0 : i32
    %c0_i32_0 = arith.constant 0 : i32
    return %arg0, %arg1, %c0_i32 : i32, i32, i32
  }
  func.func @transform_1(%arg0: i32, %arg1: i32) -> (i32, i32, i32) {
    %c0_i32 = arith.constant 0 : i32
    %c0_i32_0 = arith.constant 0 : i32
    %c0_i32_1 = arith.constant 0 : i32
    return %arg0, %c0_i32, %c0_i32_0 : i32, i32, i32
  }
  func.func @transform_2(%arg0: i32, %arg1: i32) -> (i32, i32, i32) {
    %c0_i32 = arith.constant 0 : i32
    %c0_i32_0 = arith.constant 0 : i32
    %c0_i32_1 = arith.constant 0 : i32
    return %arg0, %c0_i32, %c0_i32_0 : i32, i32, i32
  }
  func.func @transform_3(%arg0: i32, %arg1: i32) -> (i32, i32, i32) {
    %c0_i32 = arith.constant 0 : i32
    %c0_i32_0 = arith.constant 0 : i32
    return %arg0, %arg1, %c0_i32 : i32, i32, i32
  }
}

module attributes {stable_mosaic.version = 11 : i64} {
  func.func @_conv_kernel(%arg0: i32, %arg1: i32, %arg2: i32, %arg3: memref<16x512xbf16, #tpu.memory_space<vmem>>, %arg4: memref<512x256xbf16, #tpu.memory_space<vmem>>, %arg5: memref<1x256xf32, #tpu.memory_space<vmem>>, %arg6: memref<16x256xbf16, #tpu.memory_space<vmem>>, %arg7: memref<1x1x256xf32, #tpu.memory_space<vmem>>, %arg8: memref<1x1x256xf32, #tpu.memory_space<vmem>>, %arg9: memref<16x256xf32, #tpu.memory_space<vmem>>) attributes {dimension_semantics = [#tpu.dimension_semantics<parallel>, #tpu.dimension_semantics<parallel>, #tpu.dimension_semantics<arbitrary>], iteration_bounds = array<i64: 2, 2, 8>, scalar_prefetch = 0 : i64, scratch_operands = 1 : i64, tpu.core_type = #tpu.core_type<tc>, window_params = [{transform_indices = @transform_0, window_bounds = array<i64: 16, 512>}, {transform_indices = @transform_1, window_bounds = array<i64: 512, 256>}, {transform_indices = @transform_2, window_bounds = array<i64: 1, 256>}, {transform_indices = @transform_3, window_bounds = array<i64: 16, 256>}, {transform_indices = @transform_4, window_bounds = array<i64: 1, 1, 256>}, {transform_indices = @transform_5, window_bounds = array<i64: 1, 1, 256>}]} {
    %c0_i32 = arith.constant 0 : i32
    %0 = arith.cmpi eq, %arg2, %c0_i32 : i32
    %1 = arith.extui %0 : i1 to i32
    %c0_i32_0 = arith.constant 0 : i32
    %2 = arith.cmpi ne, %1, %c0_i32_0 : i32
    scf.if %2 {
      %cst_9 = arith.constant 0.000000e+00 : f32
      %12 = vector.broadcast %cst_9 : f32 to vector<16x256xf32>
      %c0_10 = arith.constant 0 : index
      %c0_11 = arith.constant 0 : index
      %13 = vector.load %arg9[%c0_10, %c0_11] : memref<16x256xf32, #tpu.memory_space<vmem>>, vector<16x256xf32>
      tpu.vector_store %arg9[%c0_10, %c0_11], %12 {strides = array<i32>} : memref<16x256xf32, #tpu.memory_space<vmem>>, vector<16x256xf32>,
    } else {
    }
    %c0 = arith.constant 0 : index
    %c0_1 = arith.constant 0 : index
    %3 = vector.load %arg9[%c0, %c0_1] : memref<16x256xf32, #tpu.memory_space<vmem>>, vector<16x256xf32>
    %c0_2 = arith.constant 0 : index
    %c0_3 = arith.constant 0 : index
    %4 = vector.load %arg3[%c0_2, %c0_3] : memref<16x512xbf16, #tpu.memory_space<vmem>>, vector<16x512xbf16>
    %c0_4 = arith.constant 0 : index
    %c0_5 = arith.constant 0 : index
    %5 = vector.load %arg4[%c0_4, %c0_5] : memref<512x256xbf16, #tpu.memory_space<vmem>>, vector<512x256xbf16>
    %cst = arith.constant dense<0.000000e+00> : vector<16x256xf32>
    %6 = tpu.matmul %4, %5, %cst {dimension_numbers = #tpu.dot_dimension_numbers<[1], [0], [0], [1], [0, 0, 1, 1], [], []>} : vector<16x512xbf16>, vector<512x256xbf16>, vector<16x256xf32> -> vector<16x256xf32>
    %7 = arith.addf %3, %6 : vector<16x256xf32>
    %c0_6 = arith.constant 0 : index
    %c0_7 = arith.constant 0 : index
    %8 = vector.load %arg9[%c0_6, %c0_7] : memref<16x256xf32, #tpu.memory_space<vmem>>, vector<16x256xf32>
    tpu.vector_store %arg9[%c0_6, %c0_7], %7 {strides = array<i32>} : memref<16x256xf32, #tpu.memory_space<vmem>>, vector<16x256xf32>,
    %c7_i32 = arith.constant 7 : i32
    %9 = arith.cmpi eq, %arg2, %c7_i32 : i32
    %10 = arith.extui %9 : i1 to i32
    %c0_i32_8 = arith.constant 0 : i32
    %11 = arith.cmpi ne, %10, %c0_i32_8 : i32
    scf.if %11 {
      %c0_9 = arith.constant 0 : index
      %c0_10 = arith.constant 0 : index
      %12 = vector.load %arg9[%c0_9, %c0_10] : memref<16x256xf32, #tpu.memory_space<vmem>>, vector<16x256xf32>
      %c0_11 = arith.constant 0 : index
      %c0_12 = arith.constant 0 : index
      %13 = vector.load %arg5[%c0_11, %c0_12] : memref<1x256xf32, #tpu.memory_space<vmem>>, vector<1x256xf32>
      %14 = vector.broadcast %13 : vector<1x256xf32> to vector<16x256xf32>
      %15 = arith.addf %12, %14 : vector<16x256xf32>
      %cst_13 = arith.constant dense<0.000000e+00> : vector<256xf32>
      %16 = vector.multi_reduction <add>, %15, %cst_13 [0] : vector<16x256xf32> to vector<256xf32>
      %17 = vector.shape_cast %16 : vector<256xf32> to vector<1x256xf32>
      %18 = vector.shape_cast %17 : vector<1x256xf32> to vector<1x1x256xf32>
      %c0_14 = arith.constant 0 : index
      %c0_15 = arith.constant 0 : index
      %c0_16 = arith.constant 0 : index
      %19 = vector.load %arg7[%c0_14, %c0_15, %c0_16] : memref<1x1x256xf32, #tpu.memory_space<vmem>>, vector<1x1x256xf32>
      tpu.vector_store %arg7[%c0_14, %c0_15, %c0_16], %18 {strides = array<i32>} : memref<1x1x256xf32, #tpu.memory_space<vmem>>, vector<1x1x256xf32>,
      %20 = arith.mulf %15, %15 : vector<16x256xf32>
      %cst_17 = arith.constant dense<0.000000e+00> : vector<256xf32>
      %21 = vector.multi_reduction <add>, %20, %cst_17 [0] : vector<16x256xf32> to vector<256xf32>
      %22 = vector.shape_cast %21 : vector<256xf32> to vector<1x256xf32>
      %23 = vector.shape_cast %22 : vector<1x256xf32> to vector<1x1x256xf32>
      %c0_18 = arith.constant 0 : index
      %c0_19 = arith.constant 0 : index
      %c0_20 = arith.constant 0 : index
      %24 = vector.load %arg8[%c0_18, %c0_19, %c0_20] : memref<1x1x256xf32, #tpu.memory_space<vmem>>, vector<1x1x256xf32>
      tpu.vector_store %arg8[%c0_18, %c0_19, %c0_20], %23 {strides = array<i32>} : memref<1x1x256xf32, #tpu.memory_space<vmem>>, vector<1x1x256xf32>,
      %25 = arith.truncf %15 : vector<16x256xf32> to vector<16x256xbf16>
      %c0_21 = arith.constant 0 : index
      %c0_22 = arith.constant 0 : index
      %26 = vector.load %arg6[%c0_21, %c0_22] : memref<16x256xbf16, #tpu.memory_space<vmem>>, vector<16x256xbf16>
      tpu.vector_store %arg6[%c0_21, %c0_22], %25 {strides = array<i32>} : memref<16x256xbf16, #tpu.memory_space<vmem>>, vector<16x256xbf16>,
    } else {
    }
    return
  }
  func.func @transform_0(%arg0: i32, %arg1: i32, %arg2: i32) -> (i32, i32) {
    %c0_i32 = arith.constant 0 : i32
    return %arg0, %arg2 : i32, i32
  }
  func.func @transform_1(%arg0: i32, %arg1: i32, %arg2: i32) -> (i32, i32) {
    %c0_i32 = arith.constant 0 : i32
    return %arg2, %arg1 : i32, i32
  }
  func.func @transform_2(%arg0: i32, %arg1: i32, %arg2: i32) -> (i32, i32) {
    %c0_i32 = arith.constant 0 : i32
    %c0_i32_0 = arith.constant 0 : i32
    return %c0_i32, %arg1 : i32, i32
  }
  func.func @transform_3(%arg0: i32, %arg1: i32, %arg2: i32) -> (i32, i32) {
    %c0_i32 = arith.constant 0 : i32
    return %arg0, %arg1 : i32, i32
  }
  func.func @transform_4(%arg0: i32, %arg1: i32, %arg2: i32) -> (i32, i32, i32) {
    %c0_i32 = arith.constant 0 : i32
    %c0_i32_0 = arith.constant 0 : i32
    return %arg0, %c0_i32, %arg1 : i32, i32, i32
  }
  func.func @transform_5(%arg0: i32, %arg1: i32, %arg2: i32) -> (i32, i32, i32) {
    %c0_i32 = arith.constant 0 : i32
    %c0_i32_0 = arith.constant 0 : i32
    return %arg0, %c0_i32, %arg1 : i32, i32, i32
  }
}

module attributes {stable_mosaic.version = 11 : i64} {
  func.func @_conv1_kernel(%arg0: i32, %arg1: i32, %arg2: memref<32x512xbf16, #tpu.memory_space<vmem>>, %arg3: memref<1x512xbf16, #tpu.memory_space<vmem>>, %arg4: memref<1x1xf32, #tpu.memory_space<vmem>>, %arg5: memref<32x1xf32, #tpu.memory_space<vmem>>, %arg6: memref<32x1xf32, #tpu.memory_space<vmem>>) attributes {dimension_semantics = [#tpu.dimension_semantics<parallel>, #tpu.dimension_semantics<arbitrary>], iteration_bounds = array<i64: 1, 16>, scalar_prefetch = 0 : i64, scratch_operands = 1 : i64, tpu.core_type = #tpu.core_type<tc>, window_params = [{transform_indices = @transform_0, window_bounds = array<i64: 32, 512>}, {transform_indices = @transform_1, window_bounds = array<i64: 1, 512>}, {pipeline_mode = #tpu.pipeline_mode<synchronous>, transform_indices = @transform_2, window_bounds = array<i64: 1, 1>}, {transform_indices = @transform_3, window_bounds = array<i64: 32, 1>}]} {
    %c0_i32 = arith.constant 0 : i32
    %0 = arith.cmpi eq, %arg1, %c0_i32 : i32
    %1 = arith.extui %0 : i1 to i32
    %c0_i32_0 = arith.constant 0 : i32
    %2 = arith.cmpi ne, %1, %c0_i32_0 : i32
    scf.if %2 {
      %cst_9 = arith.constant 0.000000e+00 : f32
      %17 = vector.broadcast %cst_9 : f32 to vector<32x1xf32>
      %c0_10 = arith.constant 0 : index
      %c0_11 = arith.constant 0 : index
      %18 = vector.load %arg6[%c0_10, %c0_11] : memref<32x1xf32, #tpu.memory_space<vmem>>, vector<32x1xf32>
      tpu.vector_store %arg6[%c0_10, %c0_11], %17 {strides = array<i32>} : memref<32x1xf32, #tpu.memory_space<vmem>>, vector<32x1xf32>,
    } else {
    }
    %c0 = arith.constant 0 : index
    %c0_1 = arith.constant 0 : index
    %3 = vector.load %arg2[%c0, %c0_1] : memref<32x512xbf16, #tpu.memory_space<vmem>>, vector<32x512xbf16>
    %4 = arith.extf %3 : vector<32x512xbf16> to vector<32x512xf32>
    %c0_2 = arith.constant 0 : index
    %c0_3 = arith.constant 0 : index
    %5 = vector.load %arg3[%c0_2, %c0_3] : memref<1x512xbf16, #tpu.memory_space<vmem>>, vector<1x512xbf16>
    %6 = arith.extf %5 : vector<1x512xbf16> to vector<1x512xf32>
    %7 = vector.broadcast %6 : vector<1x512xf32> to vector<32x512xf32>
    %8 = arith.mulf %4, %7 : vector<32x512xf32>
    %c0_4 = arith.constant 0 : index
    %c0_5 = arith.constant 0 : index
    %9 = vector.load %arg6[%c0_4, %c0_5] : memref<32x1xf32, #tpu.memory_space<vmem>>, vector<32x1xf32>
    %cst = arith.constant dense<0.000000e+00> : vector<32xf32>
    %10 = vector.multi_reduction <add>, %8, %cst [1] : vector<32x512xf32> to vector<32xf32>
    %11 = vector.shape_cast %10 : vector<32xf32> to vector<32x1xf32>
    %12 = arith.addf %9, %11 : vector<32x1xf32>
    %c0_6 = arith.constant 0 : index
    %c0_7 = arith.constant 0 : index
    %13 = vector.load %arg6[%c0_6, %c0_7] : memref<32x1xf32, #tpu.memory_space<vmem>>, vector<32x1xf32>
    tpu.vector_store %arg6[%c0_6, %c0_7], %12 {strides = array<i32>} : memref<32x1xf32, #tpu.memory_space<vmem>>, vector<32x1xf32>,
    %c15_i32 = arith.constant 15 : i32
    %14 = arith.cmpi eq, %arg1, %c15_i32 : i32
    %15 = arith.extui %14 : i1 to i32
    %c0_i32_8 = arith.constant 0 : i32
    %16 = arith.cmpi ne, %15, %c0_i32_8 : i32
    scf.if %16 {
      %c0_9 = arith.constant 0 : index
      %c0_10 = arith.constant 0 : index
      %17 = vector.load %arg6[%c0_9, %c0_10] : memref<32x1xf32, #tpu.memory_space<vmem>>, vector<32x1xf32>
      %c0_11 = arith.constant 0 : index
      %c0_12 = arith.constant 0 : index
      %18 = vector.load %arg4[%c0_11, %c0_12] : memref<1x1xf32, #tpu.memory_space<vmem>>, vector<1x1xf32>
      %19 = vector.broadcast %18 : vector<1x1xf32> to vector<32x1xf32>
      %20 = arith.addf %17, %19 : vector<32x1xf32>
      %c0_13 = arith.constant 0 : index
      %c0_14 = arith.constant 0 : index
      %21 = vector.load %arg5[%c0_13, %c0_14] : memref<32x1xf32, #tpu.memory_space<vmem>>, vector<32x1xf32>
      tpu.vector_store %arg5[%c0_13, %c0_14], %20 {strides = array<i32>} : memref<32x1xf32, #tpu.memory_space<vmem>>, vector<32x1xf32>,
    } else {
    }
    return
  }
  func.func @transform_0(%arg0: i32, %arg1: i32) -> (i32, i32) {
    %c0_i32 = arith.constant 0 : i32
    return %arg0, %arg1 : i32, i32
  }
  func.func @transform_1(%arg0: i32, %arg1: i32) -> (i32, i32) {
    %c0_i32 = arith.constant 0 : i32
    %c0_i32_0 = arith.constant 0 : i32
    return %c0_i32, %arg1 : i32, i32
  }
  func.func @transform_2(%arg0: i32, %arg1: i32) -> (i32, i32) {
    %c0_i32 = arith.constant 0 : i32
    %c0_i32_0 = arith.constant 0 : i32
    %c0_i32_1 = arith.constant 0 : i32
    return %c0_i32, %c0_i32_0 : i32, i32
  }
  func.func @transform_3(%arg0: i32, %arg1: i32) -> (i32, i32) {
    %c0_i32 = arith.constant 0 : i32
    %c0_i32_0 = arith.constant 0 : i32
    return %arg0, %c0_i32 : i32, i32
  }
}

</mosaic_0001>

<bundles_post_ra>
// kernel: discriminator_forward.8
= control target key start
LH: loop header
LB: loop body
LE: loop exit
PB: predicated region body
PF: predicated region fallthrough
CT: control target
= control target key end

     0   :  { %s2322_s12 = smov 0   ;;  %s2324_s13 = smov 0   ;;  %s2937_s0 = inlined_call_operand.vmem [shape: bf16[2048,128], index: 0, kind: input, shape index: {}]   ;;  %s2938_s1 = inlined_call_operand.vmem [shape: bf16[128,64], index: 1, kind: input, shape index: {}]   ;;  %s2939_s2 = inlined_call_operand.vmem [shape: f32[1,64], index: 2, kind: input, shape index: {}]   ;;  %s2940_s3 = inlined_call_operand.vmem [shape: bf16[2048,64], index: 3, kind: output, shape index: {}]  }
   0x1   :  { %s2326_s14 = smov 0  }
   0x2 LB: > { %s32_s15 = sadd.s32 1, %s2295_s13  ;;  %p1899_p0 = scmp.ge.s32.totalorder %s2299_s14, 1  ;;  %s2299_s14 = sphi %s2326_s14, %s13_s14   ;;  %s2295_s13 = sphi %s2324_s13, %s2942_s13   ;;  %s2291_s12 = sphi %s2322_s12, %s2941_s12  }
   0x3   : > { %p34_p1 = scmp.ge.s32.totalorder %s32_s15, 4  ;;  %p188_p2 = scmp.lt.s32.totalorder %s2299_s14, 5 }
   0x5   : > { %s2944_s15 = smov (%p34_p1, %s32_s15), 0  ;;  %p189_p3 = pnand %p1899_p0, %p188_p2 }
   0x6   : > { %s1900_s18 = sshll.u32 (!%p189_p3), %s2291_s12, 6 }
   0x7   : > { %192 = sbr.rel (%p189_p3) target bundleno = 354 (0x162), region = 32  ;;  %p230_p4 = scmp.lt.s32.totalorder (!%p189_p3), %s1900_s18, 255 }
   0xc   : > { %v2236_v0 = vld [vmem:[%s2938_s1 + $0x38] sm:$0xff]   ;;  %v2346_v1 = vld [vmem:[%s2938_s1 + $0x30] sm:$0xff]   ;;  %vm264_vm0 = vcmask 523264   ;;  %s2946_s18 = smov (!%p230_p4, %s1900_s18), 255  ;;  %v2355_v2 = vld [vmem:[%s2938_s1 + $0x28] sm:$0xff]   ;;  %v2301_v3 = vmov 0.0  }
   0xd   : > { %2115 = vmatprep.subr.bf16.mxu0 %v2236_v0  ;;  %2195 = vmatprep.subr.bf16.mxu1 %v2236_v0  ;;  %s1901_s23 = sshll.u32 %s2946_s18, 2  ;;  %267 = vst.msk [vmem:[#allocation2 + $0x10] sm:$0xff] %vm264_vm0, %v2301_v3  ;;  %265 = vst.msk [vmem:[#allocation2] sm:$0xff] %vm264_vm0, %v2301_v3  ;;  %v2239_v4 = vld [vmem:[%s2938_s1 + $0x20] sm:$0xff]   ;;  %v2240_v7 = vld [vmem:[%s2938_s1 + $0x18] sm:$0xff]   ;;  %vm1717_vm1 = vcmask 519168  }
   0xe   : > { %2116 = vmatpush3.bf16.msra.mxu0 %v2236_v0  ;;  %2203 = vmatpush3.bf16.msra.mxu1 %v2236_v0  ;;  %266 = vst.msk [vmem:[#allocation2 + $0x8] sm:$0xff] %vm264_vm0, %v2301_v3  ;;  %268 = vst.msk [vmem:[#allocation2 + $0x18] sm:$0xff] %vm264_vm0, %v2301_v3  ;;  %s2491_s26 = scalar_lea.vmem %s2937_s0, %s1901_s23  ;;  %v2241_v8 = vld [vmem:[%s2938_s1 + $0x10] sm:$0xff]   ;;  %v2242_v9 = vld [vmem:[%s2938_s1 + $0x8] sm:$0xff]   ;;  %s2572_s17 = scalar_lea.vmem %s2940_s3, %s1901_s23 }
   0xf   : > { %2117 = vmatprep.subr.bf16.mxu0 %v2346_v1  ;;  %2196 = vmatprep.subr.bf16.mxu1 %v2346_v1  ;;  %269 = vst.msk [vmem:[#allocation2 + $0x20] sm:$0xff] %vm264_vm0, %v2301_v3  ;;  %270 = vst.msk [vmem:[#allocation2 + $0x28] sm:$0xff] %vm264_vm0, %v2301_v3  ;;  %v2244_v5 = vld [vmem:[%s2491_s26] sm:$0xff]   ;;  %v2246_v11 = vld [vmem:[%s2491_s26 + $0x8] sm:$0xff]  }
  0x10   : > { %271 = vst.msk [vmem:[#allocation2 + $0x30] sm:$0xff] %vm264_vm0, %v2301_v3  ;;  %272 = vst.msk [vmem:[#allocation2 + $0x38] sm:$0xff] %vm264_vm0, %v2301_v3  ;;  %v2245_v6 = vld [vmem:[%s2491_s26 + $0x80] sm:$0xff]   ;;  %2131 = vmatprep.mubr.bf16.mxu0 %v2244_v5  ;;  %v2247_v12 = vld [vmem:[%s2491_s26 + $0x88] sm:$0xff]  }
  0x11   : > { %273 = vst.msk [vmem:[#allocation2 + $0x40] sm:$0xff] %vm264_vm0, %v2301_v3  ;;  %274 = vst.msk [vmem:[#allocation2 + $0x48] sm:$0xff] %vm264_vm0, %v2301_v3  ;;  %2163 = vmatprep.mubr.bf16.mxu1 %v2245_v6  ;;  %v2243_v10 = vld [vmem:[%s2938_s1] sm:$0xff]   ;;  %v2248_v13 = vld [vmem:[%s2491_s26 + $0x10] sm:$0xff]  }
  0x12   : > { %275 = vst.msk [vmem:[#allocation2 + $0x50] sm:$0xff] %vm264_vm0, %v2301_v3  ;;  %276 = vst.msk [vmem:[#allocation2 + $0x58] sm:$0xff] %vm264_vm0, %v2301_v3  ;;  %2118 = vmatpush3.bf16.msra.mxu0 %v2346_v1  ;;  %2204 = vmatpush3.bf16.msra.mxu1 %v2346_v1  ;;  %v2249_v14 = vld [vmem:[%s2491_s26 + $0x90] sm:$0xff]   ;;  %v2250_v15 = vld [vmem:[%s2491_s26 + $0x18] sm:$0xff]  }
  0x13   : > { %277 = vst.msk [vmem:[#allocation2 + $0x60] sm:$0xff] %vm264_vm0, %v2301_v3  ;;  %278 = vst.msk [vmem:[#allocation2 + $0x68] sm:$0xff] %vm264_vm0, %v2301_v3  ;;  %2119 = vmatprep.subr.bf16.mxu0 %v2355_v2  ;;  %2197 = vmatprep.subr.bf16.mxu1 %v2355_v2  ;;  %v2251_v16 = vld [vmem:[%s2491_s26 + $0x98] sm:$0xff]   ;;  %v2252_v17 = vld [vmem:[%s2491_s26 + $0x20] sm:$0xff]  }
  0x14   : > { %279 = vst.msk [vmem:[#allocation2 + $0x70] sm:$0xff] %vm264_vm0, %v2301_v3  ;;  %280 = vst.msk [vmem:[#allocation2 + $0x78] sm:$0xff] %vm264_vm0, %v2301_v3  ;;  %v2253_v18 = vld [vmem:[%s2491_s26 + $0xa0] sm:$0xff]   ;;  %v2254_v19 = vld [vmem:[%s2491_s26 + $0x28] sm:$0xff]  }
  0x15   : > { %281 = vst.msk [vmem:[#allocation2 + $0x80] sm:$0xff] %vm264_vm0, %v2301_v3  ;;  %282 = vst.msk [vmem:[#allocation2 + $0x88] sm:$0xff] %vm264_vm0, %v2301_v3  ;;  %v2255_v20 = vld [vmem:[%s2491_s26 + $0xa8] sm:$0xff]   ;;  %v2256_v21 = vld [vmem:[%s2491_s26 + $0x30] sm:$0xff]  }
  0x16   : > { %283 = vst.msk [vmem:[#allocation2 + $0x90] sm:$0xff] %vm264_vm0, %v2301_v3  ;;  %284 = vst.msk [vmem:[#allocation2 + $0x98] sm:$0xff] %vm264_vm0, %v2301_v3  ;;  %2120 = vmatpush3.bf16.msra.mxu0 %v2355_v2  ;;  %2205 = vmatpush3.bf16.msra.mxu1 %v2355_v2  ;;  %v2257_v22 = vld [vmem:[%s2491_s26 + $0xb0] sm:$0xff]   ;;  %v2258_v23 = vld [vmem:[%s2491_s26 + $0x38] sm:$0xff]  }
  0x17   : > { %285 = vst.msk [vmem:[#allocation2 + $0xa0] sm:$0xff] %vm264_vm0, %v2301_v3  ;;  %286 = vst.msk [vmem:[#allocation2 + $0xa8] sm:$0xff] %vm264_vm0, %v2301_v3  ;;  %2121 = vmatprep.subr.bf16.mxu0 %v2239_v4  ;;  %2198 = vmatprep.subr.bf16.mxu1 %v2239_v4  ;;  %v2259_v24 = vld [vmem:[%s2491_s26 + $0xb8] sm:$0xff]   ;;  %v2260_v25 = vld [vmem:[%s2491_s26 + $0x40] sm:$0xff]  }
  0x18   : > { %287 = vst.msk [vmem:[#allocation2 + $0xb0] sm:$0xff] %vm264_vm0, %v2301_v3  ;;  %288 = vst.msk [vmem:[#allocation2 + $0xb8] sm:$0xff] %vm264_vm0, %v2301_v3  ;;  %v2261_v26 = vld [vmem:[%s2491_s26 + $0xc0] sm:$0xff]   ;;  %v2262_v27 = vld [vmem:[%s2491_s26 + $0x48] sm:$0xff]  }
  0x19   : > { %289 = vst.msk [vmem:[#allocation2 + $0xc0] sm:$0xff] %vm264_vm0, %v2301_v3  ;;  %290 = vst.msk [vmem:[#allocation2 + $0xc8] sm:$0xff] %vm264_vm0, %v2301_v3  ;;  %v2263_v28 = vld [vmem:[%s2491_s26 + $0xc8] sm:$0xff]   ;;  %v2264_v29 = vld [vmem:[%s2491_s26 + $0x50] sm:$0xff]  }
  0x1a   : > { %291 = vst.msk [vmem:[#allocation2 + $0xd0] sm:$0xff] %vm264_vm0, %v2301_v3  ;;  %292 = vst.msk [vmem:[#allocation2 + $0xd8] sm:$0xff] %vm264_vm0, %v2301_v3  ;;  %2122 = vmatpush3.bf16.msra.mxu0 %v2239_v4  ;;  %2206 = vmatpush3.bf16.msra.mxu1 %v2239_v4  ;;  %v2265_v30 = vld [vmem:[%s2491_s26 + $0xd0] sm:$0xff]   ;;  %v2266_v31 = vld [vmem:[%s2491_s26 + $0x58] sm:$0xff]  }
  0x1b   : > { %293 = vst.msk [vmem:[#allocation2 + $0xe0] sm:$0xff] %vm264_vm0, %v2301_v3  ;;  %294 = vst.msk [vmem:[#allocation2 + $0xe8] sm:$0xff] %vm264_vm0, %v2301_v3  ;;  %2123 = vmatprep.subr.bf16.mxu0 %v2240_v7  ;;  %2199 = vmatprep.subr.bf16.mxu1 %v2240_v7  ;;  %v2267_v32 = vld [vmem:[%s2491_s26 + $0xd8] sm:$0xff]   ;;  %v2268_v33 = vld [vmem:[%s2491_s26 + $0x60] sm:$0xff]  }
  0x1c   : > { %295 = vst.msk [vmem:[#allocation2 + $0xf0] sm:$0xff] %vm264_vm0, %v2301_v3  ;;  %296 = vst.msk [vmem:[#allocation2 + $0xf8] sm:$0xff] %vm264_vm0, %v2301_v3  ;;  %v2269_v34 = vld [vmem:[%s2491_s26 + $0xe0] sm:$0xff]   ;;  %v2270_v35 = vld [vmem:[%s2491_s26 + $0x68] sm:$0xff]  }
  0x1d   : > { %297 = vst.msk [vmem:[#allocation2 + $0x100] sm:$0xff] %vm264_vm0, %v2301_v3  ;;  %298 = vst.msk [vmem:[#allocation2 + $0x108] sm:$0xff] %vm264_vm0, %v2301_v3  ;;  %v2271_v36 = vld [vmem:[%s2491_s26 + $0xe8] sm:$0xff]   ;;  %v2272_v37 = vld [vmem:[%s2491_s26 + $0x70] sm:$0xff]  }
  0x1e   : > { %299 = vst.msk [vmem:[#allocation2 + $0x110] sm:$0xff] %vm264_vm0, %v2301_v3  ;;  %300 = vst.msk [vmem:[#allocation2 + $0x118] sm:$0xff] %vm264_vm0, %v2301_v3  ;;  %2124 = vmatpush3.bf16.msra.mxu0 %v2240_v7  ;;  %2207 = vmatpush3.bf16.msra.mxu1 %v2240_v7  ;;  %v2273_v38 = vld [vmem:[%s2491_s26 + $0xf0] sm:$0xff]   ;;  %v2274_v39 = vld [vmem:[%s2491_s26 + $0x78] sm:$0xff]  }
  0x1f   : > { %301 = vst.msk [vmem:[#allocation2 + $0x120] sm:$0xff] %vm264_vm0, %v2301_v3  ;;  %302 = vst.msk [vmem:[#allocation2 + $0x128] sm:$0xff] %vm264_vm0, %v2301_v3  ;;  %2125 = vmatprep.subr.bf16.mxu0 %v2241_v8  ;;  %2200 = vmatprep.subr.bf16.mxu1 %v2241_v8  ;;  %v2275_v40 = vld [vmem:[%s2491_s26 + $0xf8] sm:$0xff]   ;;  %v331_v41 = vld [vmem:[#allocation2 + $0x10] sm:$0xff] }
  0x20   : > { %303 = vst.msk [vmem:[#allocation2 + $0x130] sm:$0xff] %vm264_vm0, %v2301_v3  ;;  %304 = vst.msk [vmem:[#allocation2 + $0x138] sm:$0xff] %vm264_vm0, %v2301_v3  ;;  %v329_v45 = vld [vmem:[#allocation2] sm:$0xff]  ;;  %v332_v51 = vld [vmem:[#allocation2 + $0x18] sm:$0xff] }
  0x21   : > { %305 = vst.msk [vmem:[#allocation2 + $0x140] sm:$0xff] %vm264_vm0, %v2301_v3  ;;  %306 = vst.msk [vmem:[#allocation2 + $0x148] sm:$0xff] %vm264_vm0, %v2301_v3  ;;  %v330_v57 = vld [vmem:[#allocation2 + $0x8] sm:$0xff]  ;;  %v335_v63 = vld [vmem:[#allocation2 + $0x30] sm:$0xff] }
  0x22   : > { %307 = vst.msk [vmem:[#allocation2 + $0x150] sm:$0xff] %vm264_vm0, %v2301_v3  ;;  %308 = vst.msk [vmem:[#allocation2 + $0x158] sm:$0xff] %vm264_vm0, %v2301_v3  ;;  %2126 = vmatpush3.bf16.msra.mxu0 %v2241_v8  ;;  %2208 = vmatpush3.bf16.msra.mxu1 %v2241_v8  ;;  %v333_v6 = vld [vmem:[#allocation2 + $0x20] sm:$0xff] }
  0x23   : > { %309 = vst.msk [vmem:[#allocation2 + $0x160] sm:$0xff] %vm264_vm0, %v2301_v3  ;;  %310 = vst.msk [vmem:[#allocation2 + $0x168] sm:$0xff] %vm264_vm0, %v2301_v3  ;;  %2127 = vmatprep.subr.bf16.mxu0 %v2242_v9  ;;  %2201 = vmatprep.subr.bf16.mxu1 %v2242_v9 }
  0x24   : > { %311 = vst.msk [vmem:[#allocation2 + $0x170] sm:$0xff] %vm264_vm0, %v2301_v3  ;;  %312 = vst.msk [vmem:[#allocation2 + $0x178] sm:$0xff] %vm264_vm0, %v2301_v3  ;;  %v361_v46 = vld [vmem:[#allocation2 + $0x100] sm:$0xff]  ;;  %v362_v58 = vld [vmem:[#allocation2 + $0x108] sm:$0xff] }
  0x25   : > { %313 = vst.msk [vmem:[#allocation2 + $0x180] sm:$0xff] %vm264_vm0, %v2301_v3  ;;  %314 = vst.msk [vmem:[#allocation2 + $0x188] sm:$0xff] %vm264_vm0, %v2301_v3  ;;  %v363_v42 = vld [vmem:[#allocation2 + $0x110] sm:$0xff]  ;;  %v364_v52 = vld [vmem:[#allocation2 + $0x118] sm:$0xff] }
  0x26   : > { %315 = vst.msk [vmem:[#allocation2 + $0x190] sm:$0xff] %vm264_vm0, %v2301_v3  ;;  %316 = vst.msk [vmem:[#allocation2 + $0x198] sm:$0xff] %vm264_vm0, %v2301_v3  ;;  %2128 = vmatpush3.bf16.msra.mxu0 %v2242_v9  ;;  %2209 = vmatpush3.bf16.msra.mxu1 %v2242_v9  ;;  %v365_v7 = vld [vmem:[#allocation2 + $0x120] sm:$0xff] }
  0x27   : > { %317 = vst.msk [vmem:[#allocation2 + $0x1a0] sm:$0xff] %vm264_vm0, %v2301_v3  ;;  %318 = vst.msk [vmem:[#allocation2 + $0x1a8] sm:$0xff] %vm264_vm0, %v2301_v3  ;;  %2129 = vmatprep.subr.bf16.mxu0 %v2243_v10  ;;  %2202 = vmatprep.subr.bf16.mxu1 %v2243_v10  ;;  %v367_v0 = vld [vmem:[#allocation2 + $0x130] sm:$0xff] }
  0x28   : > { %319 = vst.msk [vmem:[#allocation2 + $0x1b0] sm:$0xff] %vm264_vm0, %v2301_v3  ;;  %320 = vst.msk [vmem:[#allocation2 + $0x1b8] sm:$0xff] %vm264_vm0, %v2301_v3 }
  0x29   : > { %321 = vst.msk [vmem:[#allocation2 + $0x1c0] sm:$0xff] %vm264_vm0, %v2301_v3  ;;  %322 = vst.msk [vmem:[#allocation2 + $0x1c8] sm:$0xff] %vm264_vm0, %v2301_v3 }
  0x2a   : > { %323 = vst.msk [vmem:[#allocation2 + $0x1d0] sm:$0xff] %vm264_vm0, %v2301_v3  ;;  %324 = vst.msk [vmem:[#allocation2 + $0x1d8] sm:$0xff] %vm264_vm0, %v2301_v3  ;;  %2130 = vmatpush3.bf16.msra.mxu0 %v2243_v10  ;;  %2210 = vmatpush3.bf16.msra.mxu1 %v2243_v10 }
  0x2b   : > { %325 = vst.msk [vmem:[#allocation2 + $0x1e0] sm:$0xff] %vm264_vm0, %v2301_v3  ;;  %326 = vst.msk [vmem:[#allocation2 + $0x1e8] sm:$0xff] %vm264_vm0, %v2301_v3 }
  0x2c   : > { %327 = vst.msk [vmem:[#allocation2 + $0x1f0] sm:$0xff] %vm264_vm0, %v2301_v3  ;;  %328 = vst.msk [vmem:[#allocation2 + $0x1f8] sm:$0xff] %vm264_vm0, %v2301_v3  ;;  %v2555_v3 = vld [vmem:[%s2939_s2] ss:$0 sm:$0xff] }
  0x2d   : > { %2132 = vmatmul.mubr.bf16.vlgmr.msra.gmra.mxu0 %v2246_v11  ;;  %2164 = vmatmul.mubr.bf16.vlgmr.msra.gmra.mxu1 %v2247_v12 }
  0x2e   : > { %2135 = vmatprep.mubr.bf16.mxu0 %v2248_v13  ;;  %2167 = vmatprep.mubr.bf16.mxu1 %v2249_v14 }
  0x35   : > { %2136 = vmatmul.mubr.bf16.gmra.mxu0 %v2250_v15  ;;  %2168 = vmatmul.mubr.bf16.gmra.mxu1 %v2251_v16 }
  0x36   : > { %2139 = vmatprep.mubr.bf16.mxu0 %v2252_v17  ;;  %2171 = vmatprep.mubr.bf16.mxu1 %v2253_v18  ;;  %v336_v18 = vld [vmem:[#allocation2 + $0x38] sm:$0xff] }
  0x3d   : > { %2140 = vmatmul.mubr.bf16.gmra.mxu0 %v2254_v19  ;;  %2172 = vmatmul.mubr.bf16.gmra.mxu1 %v2255_v20  ;;  %v368_v19 = vld [vmem:[#allocation2 + $0x138] sm:$0xff] }
  0x3e   : > { %2143 = vmatprep.mubr.bf16.mxu0 %v2256_v21  ;;  %2175 = vmatprep.mubr.bf16.mxu1 %v2257_v22 }
  0x45   : > { %2144 = vmatmul.mubr.bf16.gmra.mxu0 %v2258_v23  ;;  %2176 = vmatmul.mubr.bf16.gmra.mxu1 %v2259_v24 }
  0x46   : > { %2147 = vmatprep.mubr.bf16.mxu0 %v2260_v25  ;;  %2179 = vmatprep.mubr.bf16.mxu1 %v2261_v26 }
  0x4d   : > { %2148 = vmatmul.mubr.bf16.gmra.mxu0 %v2262_v27  ;;  %2180 = vmatmul.mubr.bf16.gmra.mxu1 %v2263_v28 }
  0x4e   : > { %2151 = vmatprep.mubr.bf16.mxu0 %v2264_v29  ;;  %2183 = vmatprep.mubr.bf16.mxu1 %v2265_v30 }
  0x55   : > { %2152 = vmatmul.mubr.bf16.gmra.mxu0 %v2266_v31  ;;  %2184 = vmatmul.mubr.bf16.gmra.mxu1 %v2267_v32 }
  0x56   : > { %2155 = vmatprep.mubr.bf16.mxu0 %v2268_v33  ;;  %2187 = vmatprep.mubr.bf16.mxu1 %v2269_v34 }
  0x5d   : > { %2156 = vmatmul.mubr.bf16.gmra.mxu0 %v2270_v35  ;;  %2188 = vmatmul.mubr.bf16.gmra.mxu1 %v2271_v36 }
  0x5e   : > { %2159 = vmatprep.mubr.bf16.mxu0 %v2272_v37  ;;  %2191 = vmatprep.mubr.bf16.mxu1 %v2273_v38 }
  0x65   : > { %2160 = vmatmul.mubr.bf16.gmra.mxu0 %v2274_v39  ;;  %2192 = vmatmul.mubr.bf16.gmra.mxu1 %v2275_v40 }
  0xed   : > { %v2133_v43 = vpop.f32.mrf.mxu0  ;;  %v2165_v44 = vpop.f32.mrf.mxu1 }
  0xee   : > { %v1004_v47 = vadd.f32 %v2133_v43, %v331_v41  ;;  %v1036_v48 = vadd.f32 %v2165_v44, %v363_v42 }
  0xef   : > { %v747_v49 = vpop.f32.mrf.mxu0  ;;  %v875_v50 = vpop.f32.mrf.mxu1 }
  0xf0   : > { %1069 = vst.msk [vmem:[#allocation2 + $0x10] sm:$0xff] %vm264_vm0, %v1004_v47  ;;  %1101 = vst.msk [vmem:[#allocation2 + $0x110] sm:$0xff] %vm264_vm0, %v1036_v48  ;;  %v1002_v53 = vadd.f32 %v747_v49, %v329_v45  ;;  %v1034_v54 = vadd.f32 %v875_v50, %v361_v46 }
  0xf1   : > { %v2134_v55 = vpop.f32.mrf.mxu0  ;;  %v2166_v56 = vpop.f32.mrf.mxu1 }
  0xf2   : > { %1067 = vst.msk [vmem:[#allocation2] sm:$0xff] %vm264_vm0, %v1002_v53  ;;  %1099 = vst.msk [vmem:[#allocation2 + $0x100] sm:$0xff] %vm264_vm0, %v1034_v54  ;;  %v1005_v59 = vadd.f32 %v2134_v55, %v332_v51  ;;  %v1037_v60 = vadd.f32 %v2166_v56, %v364_v52 }
  0xf3   : > { %v750_v61 = vpop.f32.mrf.mxu0  ;;  %v878_v62 = vpop.f32.mrf.mxu1 }
  0xf4   : > { %1070 = vst.msk [vmem:[#allocation2 + $0x18] sm:$0xff] %vm264_vm0, %v1005_v59  ;;  %1102 = vst.msk [vmem:[#allocation2 + $0x118] sm:$0xff] %vm264_vm0, %v1037_v60  ;;  %v1003_v1 = vadd.f32 %v750_v61, %v330_v57  ;;  %v1035_v2 = vadd.f32 %v878_v62, %v362_v58  ;;  %v334_v58 = vld [vmem:[#allocation2 + $0x28] sm:$0xff] }
  0xf5   : > { %v2137_v4 = vpop.f32.mrf.mxu0  ;;  %v2169_v5 = vpop.f32.mrf.mxu1 }
  0xf6   : > { %1068 = vst.msk [vmem:[#allocation2 + $0x8] sm:$0xff] %vm264_vm0, %v1003_v1  ;;  %1100 = vst.msk [vmem:[#allocation2 + $0x108] sm:$0xff] %vm264_vm0, %v1035_v2  ;;  %v1008_v8 = vadd.f32 %v2137_v4, %v335_v63  ;;  %v1040_v9 = vadd.f32 %v2169_v5, %v367_v0  ;;  %v366_v0 = vld [vmem:[#allocation2 + $0x128] sm:$0xff] }
  0xf7   : > { %v1136_v10 = vld [vmem:[#allocation2 + $0x10] sm:$0xff]  ;;  %v763_v12 = vpop.f32.mrf.mxu0  ;;  %v891_v13 = vpop.f32.mrf.mxu1 }
  0xf8   : > { %v1168_v11 = vld [vmem:[#allocation2 + $0x110] sm:$0xff]  ;;  %v1207_v14 = vadd.f32 %v2555_v3, %v1136_v10  ;;  %1073 = vst.msk [vmem:[#allocation2 + $0x30] sm:$0xff] %vm264_vm0, %v1008_v8  ;;  %1105 = vst.msk [vmem:[#allocation2 + $0x130] sm:$0xff] %vm264_vm0, %v1040_v9  ;;  %v1006_v16 = vadd.f32 %v763_v12, %v333_v6  ;;  %v1038_v17 = vadd.f32 %v891_v13, %v365_v7 }
  0xf9   : > { %v1239_v15 = vadd.f32 %v2555_v3, %v1168_v11  ;;  %v1134_v20 = vld [vmem:[#allocation2] sm:$0xff]  ;;  %v2138_v22 = vpop.f32.mrf.mxu0  ;;  %v2170_v23 = vpop.f32.mrf.mxu1 }
  0xfa   : > { %v1166_v21 = vld [vmem:[#allocation2 + $0x100] sm:$0xff]  ;;  %vm1271_vm2 = vcmp.gt.f32.partialorder %v1207_v14, 0.0  ;;  %v1335_v24 = vmul.f32 0.2, %v1207_v14  ;;  %1071 = vst.msk [vmem:[#allocation2 + $0x20] sm:$0xff] %vm264_vm0, %v1006_v16  ;;  %1103 = vst.msk [vmem:[#allocation2 + $0x120] sm:$0xff] %vm264_vm0, %v1038_v17  ;;  %v1205_v26 = vadd.f32 %v2555_v3, %v1134_v20  ;;  %v1009_v30 = vadd.f32 %v2138_v22, %v336_v18 }
  0xfb   : > { %vm1303_vm3 = vcmp.gt.f32.partialorder %v1239_v15, 0.0  ;;  %v1367_v25 = vmul.f32 0.2, %v1239_v15  ;;  %v1237_v27 = vadd.f32 %v2555_v3, %v1166_v21  ;;  %v1137_v28 = vld [vmem:[#allocation2 + $0x18] sm:$0xff]  ;;  %v1041_v31 = vadd.f32 %v2170_v23, %v368_v19  ;;  %v766_v32 = vpop.f32.mrf.mxu0  ;;  %v894_v33 = vpop.f32.mrf.mxu1 }
  0xfc   : > { %v1169_v29 = vld [vmem:[#allocation2 + $0x118] sm:$0xff]  ;;  %v1399_v34 = vsel %vm1271_vm2, %v1207_v14, %v1335_v24  ;;  %v1208_v36 = vadd.f32 %v2555_v3, %v1137_v28  ;;  %vm1269_vm4 = vcmp.gt.f32.partialorder %v1205_v26, 0.0  ;;  %v1333_v40 = vmul.f32 0.2, %v1205_v26  ;;  %1074 = vst.msk [vmem:[#allocation2 + $0x38] sm:$0xff] %vm264_vm0, %v1009_v30  ;;  %v371_v30 = vld [vmem:[#allocation2 + $0x150] sm:$0xff] }
  0xfd   : > { %v1431_v35 = vsel %vm1303_vm3, %v1239_v15, %v1367_v25  ;;  %v1240_v37 = vadd.f32 %v2555_v3, %v1169_v29  ;;  %v2013_v38 = vpack.c.bf16 %v1399_v34, %v1399_v34  ;;  %v1135_v41 = vld [vmem:[#allocation2 + $0x8] sm:$0xff]  ;;  %1106 = vst.msk [vmem:[#allocation2 + $0x138] sm:$0xff] %vm264_vm0, %v1041_v31  ;;  %v2578_v43 = vpop.f32.mrf.mxu0  ;;  %v2580_v44 = vpop.f32.mrf.mxu1  ;;  %vm1301_vm5 = vcmp.gt.f32.partialorder %v1237_v27, 0.0  ;;  %v339_v29 = vld [vmem:[#allocation2 + $0x50] sm:$0xff] }
  0xfe   : > { %v2045_v39 = vpack.c.bf16 %v1431_v35, %v1431_v35  ;;  %v1167_v42 = vld [vmem:[#allocation2 + $0x108] sm:$0xff]  ;;  %v1365_v45 = vmul.f32 0.2, %v1237_v27  ;;  %vm1272_vm6 = vcmp.gt.f32.partialorder %v1208_v36, 0.0  ;;  %v1336_v46 = vmul.f32 0.2, %v1208_v36 }
  0xff   : > { %1720 = vst.msk [vmem:[%s2572_s17 + $0x8] sm:$0xf] %vm1717_vm1, %v2013_v38  ;;  %v1397_v47 = vsel %vm1269_vm4, %v1205_v26, %v1333_v40  ;;  %vm1304_vm7 = vcmp.gt.f32.partialorder %v1240_v37, 0.0  ;;  %v1368_v48 = vmul.f32 0.2, %v1240_v37  ;;  %v1206_v49 = vadd.f32 %v2555_v3, %v1135_v41  ;;  %v2587_v50 = vpop.f32.mrf.mxu0  ;;  %v2589_v51 = vpop.f32.mrf.mxu1  ;;  %v1140_v56 = vld [vmem:[#allocation2 + $0x30] sm:$0xff] }
 0x100   : > { %1752 = vst.msk [vmem:[%s2572_s17 + $0x88] sm:$0xf] %vm1717_vm1, %v2045_v39  ;;  %v2011_v52 = vpack.c.bf16 %v1397_v47, %v1397_v47  ;;  %v1429_v53 = vsel %vm1301_vm5, %v1237_v27, %v1365_v45  ;;  %v1400_v54 = vsel %vm1272_vm6, %v1208_v36, %v1336_v46  ;;  %v1238_v55 = vadd.f32 %v2555_v3, %v1167_v42  ;;  %v1172_v57 = vld [vmem:[#allocation2 + $0x130] sm:$0xff]  ;;  %v369_v38 = vld [vmem:[#allocation2 + $0x140] sm:$0xff]  ;;  %v340_v39 = vld [vmem:[#allocation2 + $0x58] sm:$0xff] }
 0x101   : > { %v2043_v59 = vpack.c.bf16 %v1429_v53, %v1429_v53  ;;  %v2014_v60 = vpack.c.bf16 %v1400_v54, %v1400_v54  ;;  %v1432_v61 = vsel %vm1304_vm7, %v1240_v37, %v1368_v48  ;;  %vm1270_vm8 = vcmp.gt.f32.partialorder %v1206_v49, 0.0  ;;  %v1138_v62 = vld [vmem:[#allocation2 + $0x20] sm:$0xff]  ;;  %v2592_v1 = vpop.f32.mrf.mxu0  ;;  %v2594_v2 = vpop.f32.mrf.mxu1  ;;  %v372_v45 = vld [vmem:[#allocation2 + $0x158] sm:$0xff]  ;;  %v338_v46 = vld [vmem:[#allocation2 + $0x48] sm:$0xff] }
 0x102   : > { %v1170_v63 = vld [vmem:[#allocation2 + $0x120] sm:$0xff]  ;;  %1718 = vst.msk [vmem:[%s2572_s17] sm:$0xf] %vm1717_vm1, %v2011_v52  ;;  %v2046_v4 = vpack.c.bf16 %v1432_v61, %v1432_v61  ;;  %v1334_v5 = vmul.f32 0.2, %v1206_v49  ;;  %vm1302_vm9 = vcmp.gt.f32.partialorder %v1238_v55, 0.0  ;;  %v1211_v7 = vadd.f32 %v2555_v3, %v1140_v56 }
 0x103   : > { %v1366_v6 = vmul.f32 0.2, %v1238_v55  ;;  %1750 = vst.msk [vmem:[%s2572_s17 + $0x80] sm:$0xf] %vm1717_vm1, %v2043_v59  ;;  %1721 = vst.msk [vmem:[%s2572_s17 + $0xc] sm:$0xf] %vm1717_vm1, %v2014_v60  ;;  %v1243_v8 = vadd.f32 %v2555_v3, %v1172_v57  ;;  %v1209_v9 = vadd.f32 %v2555_v3, %v1138_v62  ;;  %v1241_v10 = vadd.f32 %v2555_v3, %v1170_v63  ;;  %v2606_v11 = vpop.f32.mrf.mxu0  ;;  %v2608_v12 = vpop.f32.mrf.mxu1 }
 0x104   : > { %1753 = vst.msk [vmem:[%s2572_s17 + $0x8c] sm:$0xf] %vm1717_vm1, %v2046_v4  ;;  %v1398_v13 = vsel %vm1270_vm8, %v1206_v49, %v1334_v5  ;;  %v1141_v15 = vld [vmem:[#allocation2 + $0x38] sm:$0xff]  ;;  %v1007_v16 = vadd.f32 %v766_v32, %v334_v58  ;;  %v1039_v17 = vadd.f32 %v894_v33, %v366_v0  ;;  %vm1275_vm10 = vcmp.gt.f32.partialorder %v1211_v7, 0.0  ;;  %v337_v37 = vld [vmem:[#allocation2 + $0x40] sm:$0xff]  ;;  %v370_v47 = vld [vmem:[#allocation2 + $0x148] sm:$0xff] }
 0x105   : > { %v1430_v14 = vsel %vm1302_vm9, %v1238_v55, %v1366_v6  ;;  %v2012_v18 = vpack.c.bf16 %v1398_v13, %v1398_v13  ;;  %v1339_v20 = vmul.f32 0.2, %v1211_v7  ;;  %v1173_v21 = vld [vmem:[#allocation2 + $0x138] sm:$0xff]  ;;  %v2613_v22 = vpop.f32.mrf.mxu0  ;;  %v2615_v23 = vpop.f32.mrf.mxu1  ;;  %vm1307_vm11 = vcmp.gt.f32.partialorder %v1243_v8, 0.0  ;;  %v343_v55 = vld [vmem:[#allocation2 + $0x70] sm:$0xff]  ;;  %v341_v61 = vld [vmem:[#allocation2 + $0x60] sm:$0xff] }
 0x106   : > { %v2044_v19 = vpack.c.bf16 %v1430_v14, %v1430_v14  ;;  %v1371_v24 = vmul.f32 0.2, %v1243_v8  ;;  %vm1273_vm12 = vcmp.gt.f32.partialorder %v1209_v9, 0.0  ;;  %v1337_v25 = vmul.f32 0.2, %v1209_v9  ;;  %1072 = vst.msk [vmem:[#allocation2 + $0x28] sm:$0xff] %vm264_vm0, %v1007_v16 }
 0x107   : > { %1104 = vst.msk [vmem:[#allocation2 + $0x128] sm:$0xff] %vm264_vm0, %v1039_v17  ;;  %v1403_v26 = vsel %vm1275_vm10, %v1211_v7, %v1339_v20  ;;  %vm1305_vm13 = vcmp.gt.f32.partialorder %v1241_v10, 0.0  ;;  %v1369_v27 = vmul.f32 0.2, %v1241_v10  ;;  %v1212_v28 = vadd.f32 %v2555_v3, %v1141_v15  ;;  %v2624_v31 = vpop.f32.mrf.mxu0  ;;  %v2626_v32 = vpop.f32.mrf.mxu1  ;;  %v375_v60 = vld [vmem:[#allocation2 + $0x170] sm:$0xff]  ;;  %v373_v62 = vld [vmem:[#allocation2 + $0x160] sm:$0xff] }
 0x108   : > { %1719 = vst.msk [vmem:[%s2572_s17 + $0x4] sm:$0xf] %vm1717_vm1, %v2012_v18  ;;  %1751 = vst.msk [vmem:[%s2572_s17 + $0x84] sm:$0xf] %vm1717_vm1, %v2044_v19  ;;  %v2017_v33 = vpack.c.bf16 %v1403_v26, %v1403_v26  ;;  %v1435_v34 = vsel %vm1307_vm11, %v1243_v8, %v1371_v24  ;;  %v1401_v35 = vsel %vm1273_vm12, %v1209_v9, %v1337_v25  ;;  %v376_v7 = vld [vmem:[#allocation2 + $0x178] sm:$0xff]  ;;  %v374_v13 = vld [vmem:[#allocation2 + $0x168] sm:$0xff] }
 0x109   : > { %v1244_v36 = vadd.f32 %v2555_v3, %v1173_v21  ;;  %v2049_v40 = vpack.c.bf16 %v1435_v34, %v1435_v34  ;;  %v2015_v41 = vpack.c.bf16 %v1401_v35, %v1401_v35  ;;  %v1433_v42 = vsel %vm1305_vm13, %v1241_v10, %v1369_v27  ;;  %v2146_v48 = vpop.f32.mrf.mxu0  ;;  %v2178_v49 = vpop.f32.mrf.mxu1  ;;  %v347_v20 = vld [vmem:[#allocation2 + $0x90] sm:$0xff]  ;;  %v377_v27 = vld [vmem:[#allocation2 + $0x180] sm:$0xff] }
 0x10a   : > { %vm1276_vm14 = vcmp.gt.f32.partialorder %v1212_v28, 0.0  ;;  %1724 = vst.msk [vmem:[%s2572_s17 + $0x18] sm:$0xf] %vm1717_vm1, %v2017_v33  ;;  %v2047_v52 = vpack.c.bf16 %v1433_v42, %v1433_v42  ;;  %v1340_v53 = vmul.f32 0.2, %v1212_v28  ;;  %v1012_v56 = vadd.f32 %v2578_v43, %v339_v29  ;;  %v379_v21 = vld [vmem:[#allocation2 + $0x190] sm:$0xff] }
 0x10b   : > { %vm1308_vm15 = vcmp.gt.f32.partialorder %v1244_v36, 0.0  ;;  %v1372_v54 = vmul.f32 0.2, %v1244_v36  ;;  %1756 = vst.msk [vmem:[%s2572_s17 + $0x98] sm:$0xf] %vm1717_vm1, %v2049_v40  ;;  %v1044_v57 = vadd.f32 %v2580_v44, %v371_v30  ;;  %v1010_v58 = vadd.f32 %v2587_v50, %v337_v37  ;;  %v798_v63 = vpop.f32.mrf.mxu0  ;;  %v926_v0 = vpop.f32.mrf.mxu1  ;;  %v344_v44 = vld [vmem:[#allocation2 + $0x78] sm:$0xff] }
 0x10c   : > { %1722 = vst.msk [vmem:[%s2572_s17 + $0x10] sm:$0xf] %vm1717_vm1, %v2015_v41  ;;  %v1042_v59 = vadd.f32 %v2589_v51, %v369_v38  ;;  %1754 = vst.msk [vmem:[%s2572_s17 + $0x90] sm:$0xf] %vm1717_vm1, %v2047_v52  ;;  %v1404_v4 = vsel %vm1276_vm14, %v1212_v28, %v1340_v53  ;;  %v1013_v6 = vadd.f32 %v2592_v1, %v340_v39  ;;  %v342_v50 = vld [vmem:[#allocation2 + $0x68] sm:$0xff]  ;;  %v348_v28 = vld [vmem:[#allocation2 + $0x98] sm:$0xff] }
 0x10d   : > { %v1436_v5 = vsel %vm1308_vm15, %v1244_v36, %v1372_v54  ;;  %v1045_v43 = vadd.f32 %v2594_v2, %v372_v45  ;;  %v2018_v8 = vpack.c.bf16 %v1404_v4, %v1404_v4  ;;  %v1139_v9 = vld [vmem:[#allocation2 + $0x28] sm:$0xff]  ;;  %1077 = vst.msk [vmem:[#allocation2 + $0x50] sm:$0xff] %vm264_vm0, %v1012_v56  ;;  %1109 = vst.msk [vmem:[#allocation2 + $0x150] sm:$0xff] %vm264_vm0, %v1044_v57  ;;  %v2149_v14 = vpop.f32.mrf.mxu0  ;;  %v2181_v15 = vpop.f32.mrf.mxu1  ;;  %v380_v29 = vld [vmem:[#allocation2 + $0x198] sm:$0xff] }
 0x10e   : > { %v2050_v51 = vpack.c.bf16 %v1436_v5, %v1436_v5  ;;  %v1171_v10 = vld [vmem:[#allocation2 + $0x128] sm:$0xff]  ;;  %1075 = vst.msk [vmem:[#allocation2 + $0x40] sm:$0xff] %vm264_vm0, %v1010_v58  ;;  %1107 = vst.msk [vmem:[#allocation2 + $0x140] sm:$0xff] %vm264_vm0, %v1042_v59  ;;  %v1011_v1 = vadd.f32 %v2606_v11, %v338_v46  ;;  %v1043_v2 = vadd.f32 %v2608_v12, %v370_v47  ;;  %v345_v11 = vld [vmem:[#allocation2 + $0x80] sm:$0xff] }
 0x10f   : > { %v1210_v16 = vadd.f32 %v2555_v3, %v1139_v9  ;;  %v1242_v17 = vadd.f32 %v2555_v3, %v1171_v10  ;;  %1078 = vst.msk [vmem:[#allocation2 + $0x58] sm:$0xff] %vm264_vm0, %v1013_v6  ;;  %1110 = vst.msk [vmem:[#allocation2 + $0x158] sm:$0xff] %vm264_vm0, %v1045_v43  ;;  %v1016_v18 = vadd.f32 %v2613_v22, %v343_v55  ;;  %v811_v22 = vpop.f32.mrf.mxu0  ;;  %v346_v38 = vld [vmem:[#allocation2 + $0x88] sm:$0xff]  ;;  %v351_v54 = vld [vmem:[#allocation2 + $0xb0] sm:$0xff] }
 0x110   : > { %v1048_v19 = vadd.f32 %v2615_v23, %v375_v60  ;;  %1725 = vst.msk [vmem:[%s2572_s17 + $0x1c] sm:$0xf] %vm1717_vm1, %v2018_v8  ;;  %1757 = vst.msk [vmem:[%s2572_s17 + $0x9c] sm:$0xf] %vm1717_vm1, %v2050_v51  ;;  %v1014_v12 = vadd.f32 %v2624_v31, %v341_v61  ;;  %v1046_v24 = vadd.f32 %v2626_v32, %v373_v62  ;;  %v939_v23 = vpop.f32.mrf.mxu1  ;;  %v378_v39 = vld [vmem:[#allocation2 + $0x188] sm:$0xff] }
 0x111   : > { %1076 = vst.msk [vmem:[#allocation2 + $0x48] sm:$0xff] %vm264_vm0, %v1011_v1  ;;  %1108 = vst.msk [vmem:[#allocation2 + $0x148] sm:$0xff] %vm264_vm0, %v1043_v2  ;;  %v1017_v25 = vadd.f32 %v2146_v48, %v344_v44  ;;  %v1049_v26 = vadd.f32 %v2178_v49, %v376_v7  ;;  %vm1274_vm2 = vcmp.gt.f32.partialorder %v1210_v16, 0.0  ;;  %v1338_v30 = vmul.f32 0.2, %v1210_v16  ;;  %v2150_v36 = vpop.f32.mrf.mxu0 }
 0x112   : > { %vm1306_vm3 = vcmp.gt.f32.partialorder %v1242_v17, 0.0  ;;  %v1370_v33 = vmul.f32 0.2, %v1242_v17  ;;  %1081 = vst.msk [vmem:[#allocation2 + $0x70] sm:$0xff] %vm264_vm0, %v1016_v18  ;;  %1113 = vst.msk [vmem:[#allocation2 + $0x170] sm:$0xff] %vm264_vm0, %v1048_v19  ;;  %v1015_v31 = vadd.f32 %v798_v63, %v342_v50  ;;  %v1047_v32 = vadd.f32 %v926_v0, %v374_v13  ;;  %v2182_v37 = vpop.f32.mrf.mxu1 }
 0x113   : > { %1079 = vst.msk [vmem:[#allocation2 + $0x60] sm:$0xff] %vm264_vm0, %v1014_v12  ;;  %1111 = vst.msk [vmem:[#allocation2 + $0x160] sm:$0xff] %vm264_vm0, %v1046_v24  ;;  %v1020_v34 = vadd.f32 %v2149_v14, %v347_v20  ;;  %v1052_v35 = vadd.f32 %v2181_v15, %v379_v21  ;;  %v1402_v40 = vsel %vm1274_vm2, %v1210_v16, %v1338_v30  ;;  %v814_v52 = vpop.f32.mrf.mxu0 }
 0x114   : > { %1082 = vst.msk [vmem:[#allocation2 + $0x78] sm:$0xff] %vm264_vm0, %v1017_v25  ;;  %1114 = vst.msk [vmem:[#allocation2 + $0x178] sm:$0xff] %vm264_vm0, %v1049_v26  ;;  %v1434_v41 = vsel %vm1306_vm3, %v1242_v17, %v1370_v33  ;;  %v1018_v42 = vadd.f32 %v811_v22, %v345_v11  ;;  %v1050_v45 = vadd.f32 %v939_v23, %v377_v27  ;;  %v942_v53 = vpop.f32.mrf.mxu1  ;;  %v1144_v55 = vld [vmem:[#allocation2 + $0x50] sm:$0xff] }
 0x115   : > { %v2016_v46 = vpack.c.bf16 %v1402_v40, %v1402_v40  ;;  %v2048_v47 = vpack.c.bf16 %v1434_v41, %v1434_v41  ;;  %1080 = vst.msk [vmem:[#allocation2 + $0x68] sm:$0xff] %vm264_vm0, %v1015_v31  ;;  %1112 = vst.msk [vmem:[#allocation2 + $0x168] sm:$0xff] %vm264_vm0, %v1047_v32  ;;  %v1021_v48 = vadd.f32 %v2150_v36, %v348_v28  ;;  %v1176_v56 = vld [vmem:[#allocation2 + $0x150] sm:$0xff]  ;;  %v1142_v57 = vld [vmem:[#allocation2 + $0x40] sm:$0xff]  ;;  %v2153_v5 = vpop.f32.mrf.mxu0 }
 0x116   : > { %1085 = vst.msk [vmem:[#allocation2 + $0x90] sm:$0xff] %vm264_vm0, %v1020_v34  ;;  %1117 = vst.msk [vmem:[#allocation2 + $0x190] sm:$0xff] %vm264_vm0, %v1052_v35  ;;  %v1053_v49 = vadd.f32 %v2182_v37, %v380_v29  ;;  %v1019_v58 = vadd.f32 %v814_v52, %v346_v38  ;;  %v1051_v59 = vadd.f32 %v942_v53, %v378_v39  ;;  %v1174_v63 = vld [vmem:[#allocation2 + $0x140] sm:$0xff]  ;;  %v1145_v0 = vld [vmem:[#allocation2 + $0x58] sm:$0xff]  ;;  %v2691_v6 = vpop.f32.mrf.mxu1 }
 0x117   : > { %1083 = vst.msk [vmem:[#allocation2 + $0x80] sm:$0xff] %vm264_vm0, %v1018_v42  ;;  %1115 = vst.msk [vmem:[#allocation2 + $0x180] sm:$0xff] %vm264_vm0, %v1050_v45  ;;  %v1215_v60 = vadd.f32 %v2555_v3, %v1144_v55  ;;  %v1247_v61 = vadd.f32 %v2555_v3, %v1176_v56  ;;  %v1213_v62 = vadd.f32 %v2555_v3, %v1142_v57  ;;  %v1177_v4 = vld [vmem:[#allocation2 + $0x158] sm:$0xff]  ;;  %v2698_v9 = vpop.f32.mrf.mxu0 }
 0x118   : > { %1723 = vst.msk [vmem:[%s2572_s17 + $0x14] sm:$0xf] %vm1717_vm1, %v2016_v46  ;;  %1755 = vst.msk [vmem:[%s2572_s17 + $0x94] sm:$0xf] %vm1717_vm1, %v2048_v47  ;;  %v1245_v43 = vadd.f32 %v2555_v3, %v1174_v63  ;;  %v1216_v44 = vadd.f32 %v2555_v3, %v1145_v0  ;;  %v1248_v7 = vadd.f32 %v2555_v3, %v1177_v4  ;;  %v2700_v10 = vpop.f32.mrf.mxu1  ;;  %v1143_v16 = vld [vmem:[#allocation2 + $0x48] sm:$0xff] }
 0x119   : > { %1086 = vst.msk [vmem:[#allocation2 + $0x98] sm:$0xff] %vm264_vm0, %v1021_v48  ;;  %1118 = vst.msk [vmem:[#allocation2 + $0x198] sm:$0xff] %vm264_vm0, %v1053_v49  ;;  %v1024_v50 = vadd.f32 %v2153_v5, %v351_v54  ;;  %vm1279_vm4 = vcmp.gt.f32.partialorder %v1215_v60, 0.0  ;;  %v1343_v8 = vmul.f32 0.2, %v1215_v60  ;;  %vm1311_vm5 = vcmp.gt.f32.partialorder %v1247_v61, 0.0  ;;  %v2703_v19 = vpop.f32.mrf.mxu0 }
 0x11a   : > { %1084 = vst.msk [vmem:[#allocation2 + $0x88] sm:$0xff] %vm264_vm0, %v1019_v58  ;;  %1116 = vst.msk [vmem:[#allocation2 + $0x188] sm:$0xff] %vm264_vm0, %v1051_v59  ;;  %v1375_v51 = vmul.f32 0.2, %v1247_v61  ;;  %vm1277_vm6 = vcmp.gt.f32.partialorder %v1213_v62, 0.0  ;;  %vm1309_vm7 = vcmp.gt.f32.partialorder %v1245_v43, 0.0  ;;  %v2705_v20 = vpop.f32.mrf.mxu1  ;;  %v1214_v32 = vadd.f32 %v2555_v3, %v1143_v16 }
 0x11b   : > { %v1341_v1 = vmul.f32 0.2, %v1213_v62  ;;  %v1373_v2 = vmul.f32 0.2, %v1245_v43  ;;  %1089 = vst.msk [vmem:[#allocation2 + $0xb0] sm:$0xff] %vm264_vm0, %v1024_v50  ;;  %v1407_v13 = vsel %vm1279_vm4, %v1215_v60, %v1343_v8  ;;  %vm1280_vm8 = vcmp.gt.f32.partialorder %v1216_v44, 0.0  ;;  %v2709_v29 = vpop.f32.mrf.mxu0 }
 0x11c   : > { %v1439_v14 = vsel %vm1311_vm5, %v1247_v61, %v1375_v51  ;;  %v1344_v15 = vmul.f32 0.2, %v1216_v44  ;;  %v1175_v17 = vld [vmem:[#allocation2 + $0x148] sm:$0xff]  ;;  %v1148_v18 = vld [vmem:[#allocation2 + $0x70] sm:$0xff]  ;;  %v2021_v21 = vpack.c.bf16 %v1407_v13, %v1407_v13  ;;  %v1146_v26 = vld [vmem:[#allocation2 + $0x60] sm:$0xff]  ;;  %vm1312_vm9 = vcmp.gt.f32.partialorder %v1248_v7, 0.0  ;;  %v2711_v30 = vpop.f32.mrf.mxu1 }
 0x11d   : > { %v2053_v11 = vpack.c.bf16 %v1439_v14, %v1439_v14  ;;  %v1405_v12 = vsel %vm1277_vm6, %v1213_v62, %v1341_v1  ;;  %v1437_v24 = vsel %vm1309_vm7, %v1245_v43, %v1373_v2  ;;  %v1180_v25 = vld [vmem:[#allocation2 + $0x170] sm:$0xff]  ;;  %v1178_v22 = vld [vmem:[#allocation2 + $0x160] sm:$0xff]  ;;  %v1376_v31 = vmul.f32 0.2, %v1248_v7  ;;  %v2727_v39 = vpop.f32.mrf.mxu0  ;;  %v1149_v54 = vld [vmem:[#allocation2 + $0x78] sm:$0xff] }
 0x11e   : > { %v2019_v27 = vpack.c.bf16 %v1405_v12, %v1405_v12  ;;  %v2051_v23 = vpack.c.bf16 %v1437_v24, %v1437_v24  ;;  %v1408_v28 = vsel %vm1280_vm8, %v1216_v44, %v1344_v15  ;;  %1728 = vst.msk [vmem:[%s2572_s17 + $0x28] sm:$0xf] %vm1717_vm1, %v2021_v21  ;;  %v1246_v34 = vadd.f32 %v2555_v3, %v1175_v17  ;;  %v2729_v40 = vpop.f32.mrf.mxu1  ;;  %v1181_v59 = vld [vmem:[#allocation2 + $0x178] sm:$0xff]  ;;  %v1147_v60 = vld [vmem:[#allocation2 + $0x68] sm:$0xff]  ;;  %v1152_v4 = vld [vmem:[#allocation2 + $0x90] sm:$0xff] }
 0x11f   : > { %1760 = vst.msk [vmem:[%s2572_s17 + $0xa8] sm:$0xf] %vm1717_vm1, %v2053_v11  ;;  %v2022_v33 = vpack.c.bf16 %v1408_v28, %v1408_v28  ;;  %v1219_v35 = vadd.f32 %v2555_v3, %v1148_v18  ;;  %v1251_v36 = vadd.f32 %v2555_v3, %v1180_v25  ;;  %v1217_v37 = vadd.f32 %v2555_v3, %v1146_v26  ;;  %v2734_v48 = vpop.f32.mrf.mxu0  ;;  %v1179_v61 = vld [vmem:[#allocation2 + $0x168] sm:$0xff]  ;;  %v1184_v21 = vld [vmem:[#allocation2 + $0x190] sm:$0xff]  ;;  %v1150_v25 = vld [vmem:[#allocation2 + $0x80] sm:$0xff] }
 0x120   : > { %1726 = vst.msk [vmem:[%s2572_s17 + $0x20] sm:$0xf] %vm1717_vm1, %v2019_v27  ;;  %1758 = vst.msk [vmem:[%s2572_s17 + $0xa0] sm:$0xf] %vm1717_vm1, %v2051_v23  ;;  %v1249_v38 = vadd.f32 %v2555_v3, %v1178_v22  ;;  %v1440_v41 = vsel %vm1312_vm9, %v1248_v7, %v1376_v31  ;;  %vm1278_vm10 = vcmp.gt.f32.partialorder %v1214_v32, 0.0  ;;  %vm1310_vm11 = vcmp.gt.f32.partialorder %v1246_v34, 0.0  ;;  %v2736_v49 = vpop.f32.mrf.mxu1 }
 0x121   : > { %1729 = vst.msk [vmem:[%s2572_s17 + $0x2c] sm:$0xf] %vm1717_vm1, %v2022_v33  ;;  %v1342_v42 = vmul.f32 0.2, %v1214_v32  ;;  %v2054_v45 = vpack.c.bf16 %v1440_v41, %v1440_v41  ;;  %v1374_v46 = vmul.f32 0.2, %v1246_v34  ;;  %v1220_v7 = vadd.f32 %v2555_v3, %v1149_v54  ;;  %v2744_v50 = vpop.f32.mrf.mxu0 }
 0x122   : > { %vm1283_vm12 = vcmp.gt.f32.partialorder %v1219_v35, 0.0  ;;  %v1347_v47 = vmul.f32 0.2, %v1219_v35  ;;  %vm1315_vm13 = vcmp.gt.f32.partialorder %v1251_v36, 0.0  ;;  %v1379_v53 = vmul.f32 0.2, %v1251_v36  ;;  %v2746_v8 = vpop.f32.mrf.mxu1 }
 0x123   : > { %v1406_v52 = vsel %vm1278_vm10, %v1214_v32, %v1342_v42  ;;  %vm1281_vm14 = vcmp.gt.f32.partialorder %v1217_v37, 0.0  ;;  %1761 = vst.msk [vmem:[%s2572_s17 + $0xac] sm:$0xf] %vm1717_vm1, %v2054_v45  ;;  %v1438_v56 = vsel %vm1310_vm11, %v1246_v34, %v1374_v46  ;;  %v1345_v58 = vmul.f32 0.2, %v1217_v37  ;;  %v2761_v26 = vpop.f32.mrf.mxu0  ;;  %v1182_v33 = vld [vmem:[#allocation2 + $0x180] sm:$0xff] }
 0x124   : > { %v2020_v55 = vpack.c.bf16 %v1406_v52, %v1406_v52  ;;  %v1411_v57 = vsel %vm1283_vm12, %v1219_v35, %v1347_v47  ;;  %v2052_v62 = vpack.c.bf16 %v1438_v56, %v1438_v56  ;;  %v1443_v0 = vsel %vm1315_vm13, %v1251_v36, %v1379_v53  ;;  %v2763_v22 = vpop.f32.mrf.mxu1  ;;  %v1153_v36 = vld [vmem:[#allocation2 + $0x98] sm:$0xff]  ;;  %v1151_v46 = vld [vmem:[#allocation2 + $0x88] sm:$0xff] }
 0x125   : > { %v2025_v63 = vpack.c.bf16 %v1411_v57, %v1411_v57  ;;  %vm1313_vm15 = vcmp.gt.f32.partialorder %v1249_v38, 0.0  ;;  %v2057_v5 = vpack.c.bf16 %v1443_v0, %v1443_v0  ;;  %v1409_v43 = vsel %vm1281_vm14, %v1217_v37, %v1345_v58  ;;  %v1185_v37 = vld [vmem:[#allocation2 + $0x198] sm:$0xff]  ;;  %v2775_v54 = vpop.f32.mrf.mxu0 }
 0x126   : > { %1727 = vst.msk [vmem:[%s2572_s17 + $0x24] sm:$0xf] %vm1717_vm1, %v2020_v55  ;;  %v1377_v44 = vmul.f32 0.2, %v1249_v38  ;;  %1759 = vst.msk [vmem:[%s2572_s17 + $0xa4] sm:$0xf] %vm1717_vm1, %v2052_v62  ;;  %v2023_v51 = vpack.c.bf16 %v1409_v43, %v1409_v43  ;;  %v1252_v1 = vadd.f32 %v2555_v3, %v1181_v59  ;;  %v1218_v2 = vadd.f32 %v2555_v3, %v1147_v60  ;;  %v2777_v55 = vpop.f32.mrf.mxu1 }
 0x127   : > { %1732 = vst.msk [vmem:[%s2572_s17 + $0x38] sm:$0xf] %vm1717_vm1, %v2025_v63  ;;  %v1250_v13 = vadd.f32 %v2555_v3, %v1179_v61  ;;  %1764 = vst.msk [vmem:[%s2572_s17 + $0xb8] sm:$0xf] %vm1717_vm1, %v2057_v5  ;;  %vm1284_vm2 = vcmp.gt.f32.partialorder %v1220_v7, 0.0  ;;  %v1223_v16 = vadd.f32 %v2555_v3, %v1152_v4  ;;  %v1255_v35 = vadd.f32 %v2555_v3, %v1184_v21  ;;  %v1183_v4 = vld [vmem:[#allocation2 + $0x188] sm:$0xff] }
 0x128   : > { %v1441_v14 = vsel %vm1313_vm15, %v1249_v38, %v1377_v44  ;;  %v1348_v15 = vmul.f32 0.2, %v1220_v7  ;;  %1730 = vst.msk [vmem:[%s2572_s17 + $0x30] sm:$0xf] %vm1717_vm1, %v2023_v51  ;;  %vm1316_vm3 = vcmp.gt.f32.partialorder %v1252_v1, 0.0  ;;  %vm1282_vm4 = vcmp.gt.f32.partialorder %v1218_v2, 0.0 }
 0x129   : > { %v2055_v17 = vpack.c.bf16 %v1441_v14, %v1441_v14  ;;  %v1380_v18 = vmul.f32 0.2, %v1252_v1  ;;  %v1346_v12 = vmul.f32 0.2, %v1218_v2  ;;  %vm1314_vm5 = vcmp.gt.f32.partialorder %v1250_v13, 0.0  ;;  %v1156_v5 = vld [vmem:[#allocation2 + $0xb0] sm:$0xff] }
 0x12a   : > { %v1412_v11 = vsel %vm1284_vm2, %v1220_v7, %v1348_v15  ;;  %v1378_v24 = vmul.f32 0.2, %v1250_v13  ;;  %vm1287_vm6 = vcmp.gt.f32.partialorder %v1223_v16, 0.0  ;;  %v1351_v28 = vmul.f32 0.2, %v1223_v16  ;;  %v383_v51 = vld [vmem:[#allocation2 + $0x1b0] sm:$0xff] }
 0x12b   : > { %1762 = vst.msk [vmem:[%s2572_s17 + $0xb0] sm:$0xf] %vm1717_vm1, %v2055_v17  ;;  %v2026_v27 = vpack.c.bf16 %v1412_v11, %v1412_v11  ;;  %v1444_v23 = vsel %vm1316_vm3, %v1252_v1, %v1380_v18  ;;  %v1410_v32 = vsel %vm1282_vm4, %v1218_v2, %v1346_v12  ;;  %v1221_v45 = vadd.f32 %v2555_v3, %v1150_v25  ;;  %v349_v1 = vld [vmem:[#allocation2 + $0xa0] sm:$0xff]  ;;  %v2788_v2 = vpop.f32.mrf.mxu0  ;;  %v352_v18 = vld [vmem:[#allocation2 + $0xb8] sm:$0xff] }
 0x12c   : > { %v2058_v31 = vpack.c.bf16 %v1444_v23, %v1444_v23  ;;  %v1442_v34 = vsel %vm1314_vm5, %v1250_v13, %v1378_v24  ;;  %v2024_v38 = vpack.c.bf16 %v1410_v32, %v1410_v32  ;;  %v1415_v42 = vsel %vm1287_vm6, %v1223_v16, %v1351_v28  ;;  %v2790_v13 = vpop.f32.mrf.mxu1  ;;  %v381_v17 = vld [vmem:[#allocation2 + $0x1a0] sm:$0xff]  ;;  %v384_v25 = vld [vmem:[#allocation2 + $0x1b8] sm:$0xff]  ;;  %v382_v23 = vld [vmem:[#allocation2 + $0x1a8] sm:$0xff] }
 0x12d   : > { %1733 = vst.msk [vmem:[%s2572_s17 + $0x3c] sm:$0xf] %vm1717_vm1, %v2026_v27  ;;  %v2056_v41 = vpack.c.bf16 %v1442_v34, %v1442_v34  ;;  %v2029_v47 = vpack.c.bf16 %v1415_v42, %v1415_v42  ;;  %vm1319_vm7 = vcmp.gt.f32.partialorder %v1255_v35, 0.0  ;;  %v1383_v52 = vmul.f32 0.2, %v1255_v35  ;;  %v350_v27 = vld [vmem:[#allocation2 + $0xa8] sm:$0xff]  ;;  %v2162_v42 = vpop.f32.mrf.mxu0 }
 0x12e   : > { %1765 = vst.msk [vmem:[%s2572_s17 + $0xbc] sm:$0xf] %vm1717_vm1, %v2058_v31  ;;  %v1253_v53 = vadd.f32 %v2555_v3, %v1182_v33  ;;  %1731 = vst.msk [vmem:[%s2572_s17 + $0x34] sm:$0xf] %vm1717_vm1, %v2024_v38  ;;  %vm1285_vm8 = vcmp.gt.f32.partialorder %v1221_v45, 0.0  ;;  %v1224_v57 = vadd.f32 %v2555_v3, %v1153_v36  ;;  %v1256_v58 = vadd.f32 %v2555_v3, %v1185_v37  ;;  %v355_v34 = vld [vmem:[#allocation2 + $0xd0] sm:$0xff] }
 0x12f   : > { %1763 = vst.msk [vmem:[%s2572_s17 + $0xb4] sm:$0xf] %vm1717_vm1, %v2056_v41  ;;  %v1349_v56 = vmul.f32 0.2, %v1221_v45  ;;  %1736 = vst.msk [vmem:[%s2572_s17 + $0x48] sm:$0xf] %vm1717_vm1, %v2029_v47  ;;  %v1447_v59 = vsel %vm1319_vm7, %v1255_v35, %v1383_v52  ;;  %v1222_v61 = vadd.f32 %v2555_v3, %v1151_v46  ;;  %v1254_v12 = vadd.f32 %v2555_v3, %v1183_v4 }
 0x130   : > { %vm1317_vm9 = vcmp.gt.f32.partialorder %v1253_v53, 0.0  ;;  %v1381_v60 = vmul.f32 0.2, %v1253_v53  ;;  %v2061_v62 = vpack.c.bf16 %v1447_v59, %v1447_v59  ;;  %vm1288_vm10 = vcmp.gt.f32.partialorder %v1224_v57, 0.0  ;;  %v387_v35 = vld [vmem:[#allocation2 + $0x1d0] sm:$0xff]  ;;  %v353_v36 = vld [vmem:[#allocation2 + $0xc0] sm:$0xff] }
 0x131   : > { %v1413_v63 = vsel %vm1285_vm8, %v1221_v45, %v1349_v56  ;;  %v1352_v0 = vmul.f32 0.2, %v1224_v57  ;;  %vm1320_vm11 = vcmp.gt.f32.partialorder %v1256_v58, 0.0  ;;  %v1384_v7 = vmul.f32 0.2, %v1256_v58  ;;  %v385_v38 = vld [vmem:[#allocation2 + $0x1c0] sm:$0xff]  ;;  %v2194_v45 = vpop.f32.mrf.mxu1 }
 0x132   : > { %v2027_v43 = vpack.c.bf16 %v1413_v63, %v1413_v63  ;;  %v1445_v44 = vsel %vm1317_vm9, %v1253_v53, %v1381_v60  ;;  %1768 = vst.msk [vmem:[%s2572_s17 + $0xc8] sm:$0xf] %vm1717_vm1, %v2061_v62  ;;  %vm1286_vm12 = vcmp.gt.f32.partialorder %v1222_v61, 0.0  ;;  %v1350_v16 = vmul.f32 0.2, %v1222_v61  ;;  %v356_v41 = vld [vmem:[#allocation2 + $0xd8] sm:$0xff] }
 0x133   : > { %v2059_v14 = vpack.c.bf16 %v1445_v44, %v1445_v44  ;;  %v1416_v15 = vsel %vm1288_vm10, %v1224_v57, %v1352_v0  ;;  %v1448_v11 = vsel %vm1320_vm11, %v1256_v58, %v1384_v7  ;;  %v1227_v24 = vadd.f32 %v2555_v3, %v1156_v5  ;;  %v388_v52 = vld [vmem:[#allocation2 + $0x1d8] sm:$0xff]  ;;  %v354_v53 = vld [vmem:[#allocation2 + $0xc8] sm:$0xff]  ;;  %v391_v62 = vld [vmem:[#allocation2 + $0x1f0] sm:$0xff]  ;;  %v862_v7 = vpop.f32.mrf.mxu0 }
 0x134   : > { %1734 = vst.msk [vmem:[%s2572_s17 + $0x40] sm:$0xf] %vm1717_vm1, %v2027_v43  ;;  %v2030_v21 = vpack.c.bf16 %v1416_v15, %v1416_v15  ;;  %v2062_v28 = vpack.c.bf16 %v1448_v11, %v1448_v11  ;;  %v1414_v33 = vsel %vm1286_vm12, %v1222_v61, %v1350_v16  ;;  %v1056_v31 = vadd.f32 %v2691_v6, %v383_v51  ;;  %v386_v56 = vld [vmem:[#allocation2 + $0x1c8] sm:$0xff]  ;;  %v359_v61 = vld [vmem:[#allocation2 + $0xf0] sm:$0xff]  ;;  %v360_v0 = vld [vmem:[#allocation2 + $0xf8] sm:$0xff]  ;;  %v990_v51 = vpop.f32.mrf.mxu1 }
 0x135   : > { %1766 = vst.msk [vmem:[%s2572_s17 + $0xc0] sm:$0xf] %vm1717_vm1, %v2059_v14  ;;  %v1022_v32 = vadd.f32 %v2698_v9, %v349_v1  ;;  %v2028_v37 = vpack.c.bf16 %v1414_v33, %v1414_v33  ;;  %vm1318_vm13 = vcmp.gt.f32.partialorder %v1254_v12, 0.0  ;;  %v1382_v3 = vmul.f32 0.2, %v1254_v12  ;;  %v358_v44 = vld [vmem:[#allocation2 + $0xe8] sm:$0xff] }
 0x136   : > { %1737 = vst.msk [vmem:[%s2572_s17 + $0x4c] sm:$0xf] %vm1717_vm1, %v2030_v21  ;;  %vm1291_vm14 = vcmp.gt.f32.partialorder %v1227_v24, 0.0  ;;  %1769 = vst.msk [vmem:[%s2572_s17 + $0xcc] sm:$0xf] %vm1717_vm1, %v2062_v28  ;;  %v1054_v6 = vadd.f32 %v2700_v10, %v381_v17  ;;  %v1025_v9 = vadd.f32 %v2703_v19, %v352_v18  ;;  %v1057_v47 = vadd.f32 %v2705_v20, %v384_v25  ;;  %v357_v10 = vld [vmem:[#allocation2 + $0xe0] sm:$0xff] }
 0x137   : > { %v1355_v46 = vmul.f32 0.2, %v1227_v24  ;;  %1121 = vst.msk [vmem:[#allocation2 + $0x1b0] sm:$0xff] %vm264_vm0, %v1056_v31  ;;  %1087 = vst.msk [vmem:[#allocation2 + $0xa0] sm:$0xff] %vm264_vm0, %v1022_v32  ;;  %v1446_v57 = vsel %vm1318_vm13, %v1254_v12, %v1382_v3  ;;  %v1023_v58 = vadd.f32 %v2709_v29, %v350_v27  ;;  %v1055_v59 = vadd.f32 %v2711_v30, %v382_v23  ;;  %v389_v30 = vld [vmem:[#allocation2 + $0x1e0] sm:$0xff] }
 0x138   : > { %1735 = vst.msk [vmem:[%s2572_s17 + $0x44] sm:$0xf] %vm1717_vm1, %v2028_v37  ;;  %v1028_v60 = vadd.f32 %v2727_v39, %v355_v34  ;;  %v2060_v63 = vpack.c.bf16 %v1446_v57, %v1446_v57  ;;  %v1060_v20 = vadd.f32 %v2729_v40, %v387_v35  ;;  %v1026_v29 = vadd.f32 %v2734_v48, %v353_v36  ;;  %v392_v39 = vld [vmem:[#allocation2 + $0x1f8] sm:$0xff]  ;;  %v390_v48 = vld [vmem:[#allocation2 + $0x1e8] sm:$0xff] }
 0x139   : > { %v1419_v19 = vsel %vm1291_vm14, %v1227_v24, %v1355_v46  ;;  %1119 = vst.msk [vmem:[#allocation2 + $0x1a0] sm:$0xff] %vm264_vm0, %v1054_v6  ;;  %1090 = vst.msk [vmem:[#allocation2 + $0xb8] sm:$0xff] %vm264_vm0, %v1025_v9  ;;  %v1058_v5 = vadd.f32 %v2736_v49, %v385_v38  ;;  %v1029_v43 = vadd.f32 %v2744_v50, %v356_v41 }
 0x13a   : > { %1122 = vst.msk [vmem:[#allocation2 + $0x1b8] sm:$0xff] %vm264_vm0, %v1057_v47  ;;  %v2033_v4 = vpack.c.bf16 %v1419_v19, %v1419_v19  ;;  %1088 = vst.msk [vmem:[#allocation2 + $0xa8] sm:$0xff] %vm264_vm0, %v1023_v58  ;;  %v1061_v40 = vadd.f32 %v2746_v8, %v388_v52  ;;  %v1027_v1 = vadd.f32 %v2761_v26, %v354_v53 }
 0x13b   : > { %1120 = vst.msk [vmem:[#allocation2 + $0x1a8] sm:$0xff] %vm264_vm0, %v1055_v59  ;;  %1093 = vst.msk [vmem:[#allocation2 + $0xd0] sm:$0xff] %vm264_vm0, %v1028_v60  ;;  %v1059_v14 = vadd.f32 %v2763_v22, %v386_v56  ;;  %v1032_v49 = vadd.f32 %v2775_v54, %v359_v61  ;;  %v1064_v50 = vadd.f32 %v2777_v55, %v391_v62 }
 0x13c   : > { %1767 = vst.msk [vmem:[%s2572_s17 + $0xc4] sm:$0xf] %vm1717_vm1, %v2060_v63  ;;  %1740 = vst.msk [vmem:[%s2572_s17 + $0x58] sm:$0xf] %vm1717_vm1, %v2033_v4  ;;  %v1030_v8 = vadd.f32 %v2788_v2, %v357_v10  ;;  %v1062_v15 = vadd.f32 %v2790_v13, %v389_v30  ;;  %v1033_v16 = vadd.f32 %v2162_v42, %v360_v0  ;;  %v2855_v2 = vld [vmem:[%s2939_s2] ss:$0 sm:$0xff] }
 0x13d   : > { %1125 = vst.msk [vmem:[#allocation2 + $0x1d0] sm:$0xff] %vm264_vm0, %v1060_v20  ;;  %1091 = vst.msk [vmem:[#allocation2 + $0xc0] sm:$0xff] %vm264_vm0, %v1026_v29  ;;  %v1065_v26 = vadd.f32 %v2194_v45, %v392_v39  ;;  %v1031_v22 = vadd.f32 %v862_v7, %v358_v44  ;;  %v1063_v54 = vadd.f32 %v990_v51, %v390_v48 }
 0x13e   : > { %1123 = vst.msk [vmem:[#allocation2 + $0x1c0] sm:$0xff] %vm264_vm0, %v1058_v5  ;;  %1094 = vst.msk [vmem:[#allocation2 + $0xd8] sm:$0xff] %vm264_vm0, %v1029_v43  ;;  %v1188_v55 = vld [vmem:[#allocation2 + $0x1b0] sm:$0xff]  ;;  %v1154_v17 = vld [vmem:[#allocation2 + $0xa0] sm:$0xff] }
 0x13f   : > { %1126 = vst.msk [vmem:[#allocation2 + $0x1d8] sm:$0xff] %vm264_vm0, %v1061_v40  ;;  %1092 = vst.msk [vmem:[#allocation2 + $0xc8] sm:$0xff] %vm264_vm0, %v1027_v1  ;;  %v1259_v13 = vadd.f32 %v2855_v2, %v1188_v55  ;;  %v1225_v18 = vadd.f32 %v2855_v2, %v1154_v17 }
 0x140   : > { %1124 = vst.msk [vmem:[#allocation2 + $0x1c8] sm:$0xff] %vm264_vm0, %v1059_v14  ;;  %1097 = vst.msk [vmem:[#allocation2 + $0xf0] sm:$0xff] %vm264_vm0, %v1032_v49  ;;  %v1186_v21 = vld [vmem:[#allocation2 + $0x1a0] sm:$0xff]  ;;  %v1157_v11 = vld [vmem:[#allocation2 + $0xb8] sm:$0xff] }
 0x141   : > { %1129 = vst.msk [vmem:[#allocation2 + $0x1f0] sm:$0xff] %vm264_vm0, %v1064_v50  ;;  %1095 = vst.msk [vmem:[#allocation2 + $0xe0] sm:$0xff] %vm264_vm0, %v1030_v8  ;;  %v1189_v12 = vld [vmem:[#allocation2 + $0x1b8] sm:$0xff]  ;;  %vm1323_vm15 = vcmp.gt.f32.partialorder %v1259_v13, 0.0  ;;  %v1387_v24 = vmul.f32 0.2, %v1259_v13  ;;  %v1257_v27 = vadd.f32 %v2855_v2, %v1186_v21  ;;  %v1228_v23 = vadd.f32 %v2855_v2, %v1157_v11 }
 0x142   : > { %1127 = vst.msk [vmem:[#allocation2 + $0x1e0] sm:$0xff] %vm264_vm0, %v1062_v15  ;;  %1098 = vst.msk [vmem:[#allocation2 + $0xf8] sm:$0xff] %vm264_vm0, %v1033_v16  ;;  %vm1289_vm2 = vcmp.gt.f32.partialorder %v1225_v18, 0.0  ;;  %v1353_v25 = vmul.f32 0.2, %v1225_v18  ;;  %v1260_v28 = vadd.f32 %v2855_v2, %v1189_v12  ;;  %v1155_v33 = vld [vmem:[#allocation2 + $0xa8] sm:$0xff] }
 0x143   : > { %1130 = vst.msk [vmem:[#allocation2 + $0x1f8] sm:$0xff] %vm264_vm0, %v1065_v26  ;;  %1096 = vst.msk [vmem:[#allocation2 + $0xe8] sm:$0xff] %vm264_vm0, %v1031_v22  ;;  %v1187_v31 = vld [vmem:[#allocation2 + $0x1a8] sm:$0xff]  ;;  %v1451_v32 = vsel %vm1323_vm15, %v1259_v13, %v1387_v24  ;;  %v1226_v35 = vadd.f32 %v2855_v2, %v1155_v33  ;;  %v1385_v38 = vmul.f32 0.2, %v1257_v27  ;;  %v1160_v41 = vld [vmem:[#allocation2 + $0xd0] sm:$0xff] }
 0x144   : > { %1128 = vst.msk [vmem:[#allocation2 + $0x1e8] sm:$0xff] %vm264_vm0, %v1063_v54  ;;  %v1417_v34 = vsel %vm1289_vm2, %v1225_v18, %v1353_v25  ;;  %v1258_v36 = vadd.f32 %v2855_v2, %v1187_v31  ;;  %v2065_v37 = vpack.c.bf16 %v1451_v32, %v1451_v32  ;;  %vm1321_vm0 = vcmp.gt.f32.partialorder %v1257_v27, 0.0  ;;  %v1192_v9 = vld [vmem:[#allocation2 + $0x1d0] sm:$0xff]  ;;  %v1158_v47 = vld [vmem:[#allocation2 + $0xc0] sm:$0xff] }
 0x145   : > { %v2031_v3 = vpack.c.bf16 %v1417_v34, %v1417_v34  ;;  %vm1292_vm3 = vcmp.gt.f32.partialorder %v1228_v23, 0.0  ;;  %v1356_v42 = vmul.f32 0.2, %v1228_v23  ;;  %vm1324_vm4 = vcmp.gt.f32.partialorder %v1260_v28, 0.0  ;;  %v1190_v58 = vld [vmem:[#allocation2 + $0x1c0] sm:$0xff]  ;;  %v1161_v29 = vld [vmem:[#allocation2 + $0xd8] sm:$0xff] }
 0x146   : > { %v1388_v45 = vmul.f32 0.2, %v1260_v28  ;;  %1772 = vst.msk [vmem:[%s2572_s17 + $0xd8] sm:$0xf] %vm1717_vm1, %v2065_v37  ;;  %v1449_v46 = vsel %vm1321_vm0, %v1257_v27, %v1385_v38  ;;  %vm1290_vm5 = vcmp.gt.f32.partialorder %v1226_v35, 0.0  ;;  %vm1322_vm6 = vcmp.gt.f32.partialorder %v1258_v36, 0.0 }
 0x147   : > { %1738 = vst.msk [vmem:[%s2572_s17 + $0x50] sm:$0xf] %vm1717_vm1, %v2031_v3  ;;  %v1354_v6 = vmul.f32 0.2, %v1226_v35  ;;  %v2063_v52 = vpack.c.bf16 %v1449_v46, %v1449_v46  ;;  %v1420_v53 = vsel %vm1292_vm3, %v1228_v23, %v1356_v42  ;;  %v1386_v57 = vmul.f32 0.2, %v1258_v36 }
 0x148   : > { %v1452_v56 = vsel %vm1324_vm4, %v1260_v28, %v1388_v45  ;;  %v2034_v59 = vpack.c.bf16 %v1420_v53, %v1420_v53  ;;  %v1231_v62 = vadd.f32 %v2855_v2, %v1160_v41  ;;  %v1263_v19 = vadd.f32 %v2855_v2, %v1192_v9  ;;  %v1193_v4 = vld [vmem:[#allocation2 + $0x1d8] sm:$0xff]  ;;  %v1159_v48 = vld [vmem:[#allocation2 + $0xc8] sm:$0xff]  ;;  %v1164_v8 = vld [vmem:[#allocation2 + $0xf0] sm:$0xff] }
 0x149   : > { %v2066_v60 = vpack.c.bf16 %v1452_v56, %v1452_v56  ;;  %v1418_v61 = vsel %vm1290_vm5, %v1226_v35, %v1354_v6  ;;  %1770 = vst.msk [vmem:[%s2572_s17 + $0xd0] sm:$0xf] %vm1717_vm1, %v2063_v52  ;;  %v1450_v63 = vsel %vm1322_vm6, %v1258_v36, %v1386_v57  ;;  %v1229_v20 = vadd.f32 %v2855_v2, %v1158_v47  ;;  %v1191_v50 = vld [vmem:[#allocation2 + $0x1c8] sm:$0xff]  ;;  %v1196_v15 = vld [vmem:[#allocation2 + $0x1f0] sm:$0xff]  ;;  %v1162_v54 = vld [vmem:[#allocation2 + $0xe0] sm:$0xff] }
 0x14a   : > { %v2032_v10 = vpack.c.bf16 %v1418_v61, %v1418_v61  ;;  %1741 = vst.msk [vmem:[%s2572_s17 + $0x5c] sm:$0xf] %vm1717_vm1, %v2034_v59  ;;  %v2064_v30 = vpack.c.bf16 %v1450_v63, %v1450_v63  ;;  %vm1295_vm7 = vcmp.gt.f32.partialorder %v1231_v62, 0.0  ;;  %v1359_v0 = vmul.f32 0.2, %v1231_v62  ;;  %v1194_v55 = vld [vmem:[#allocation2 + $0x1e0] sm:$0xff] }
 0x14b   : > { %1773 = vst.msk [vmem:[%s2572_s17 + $0xdc] sm:$0xf] %vm1717_vm1, %v2066_v60  ;;  %v1261_v39 = vadd.f32 %v2855_v2, %v1190_v58  ;;  %vm1327_vm8 = vcmp.gt.f32.partialorder %v1263_v19, 0.0  ;;  %v1391_v5 = vmul.f32 0.2, %v1263_v19  ;;  %vm1293_vm9 = vcmp.gt.f32.partialorder %v1229_v20, 0.0 }
 0x14c   : > { %1739 = vst.msk [vmem:[%s2572_s17 + $0x54] sm:$0xf] %vm1717_vm1, %v2032_v10  ;;  %v1357_v43 = vmul.f32 0.2, %v1229_v20  ;;  %1771 = vst.msk [vmem:[%s2572_s17 + $0xd4] sm:$0xf] %vm1717_vm1, %v2064_v30  ;;  %v1423_v40 = vsel %vm1295_vm7, %v1231_v62, %v1359_v0  ;;  %v1232_v7 = vadd.f32 %v2855_v2, %v1161_v29  ;;  %v1264_v49 = vadd.f32 %v2855_v2, %v1193_v4 }
 0x14d   : > { %vm1325_vm10 = vcmp.gt.f32.partialorder %v1261_v39, 0.0  ;;  %v1389_v44 = vmul.f32 0.2, %v1261_v39  ;;  %v2037_v51 = vpack.c.bf16 %v1423_v40, %v1423_v40  ;;  %v1455_v1 = vsel %vm1327_vm8, %v1263_v19, %v1391_v5  ;;  %v1165_v3 = vld [vmem:[#allocation2 + $0xf8] sm:$0xff]  ;;  %v1163_v6 = vld [vmem:[#allocation2 + $0xe8] sm:$0xff] }
 0x14e   : > { %v1421_v14 = vsel %vm1293_vm9, %v1229_v20, %v1357_v43  ;;  %v2069_v16 = vpack.c.bf16 %v1455_v1, %v1455_v1  ;;  %vm1296_vm11 = vcmp.gt.f32.partialorder %v1232_v7, 0.0  ;;  %v1360_v13 = vmul.f32 0.2, %v1232_v7  ;;  %v1197_v46 = vld [vmem:[#allocation2 + $0x1f8] sm:$0xff]  ;;  %v1195_v9 = vld [vmem:[#allocation2 + $0x1e8] sm:$0xff] }
 0x14f   : > { %v2035_v26 = vpack.c.bf16 %v1421_v14, %v1421_v14  ;;  %v1453_v22 = vsel %vm1325_vm10, %v1261_v39, %v1389_v44  ;;  %1744 = vst.msk [vmem:[%s2572_s17 + $0x68] sm:$0xf] %vm1717_vm1, %v2037_v51  ;;  %vm1328_vm12 = vcmp.gt.f32.partialorder %v1264_v49, 0.0  ;;  %v1392_v18 = vmul.f32 0.2, %v1264_v49 }
 0x150   : > { %v2067_v17 = vpack.c.bf16 %v1453_v22, %v1453_v22  ;;  %1776 = vst.msk [vmem:[%s2572_s17 + $0xe8] sm:$0xf] %vm1717_vm1, %v2069_v16  ;;  %v1230_v21 = vadd.f32 %v2855_v2, %v1159_v48  ;;  %v1262_v11 = vadd.f32 %v2855_v2, %v1191_v50  ;;  %v1235_v12 = vadd.f32 %v2855_v2, %v1164_v8 }
 0x151   : > { %1742 = vst.msk [vmem:[%s2572_s17 + $0x60] sm:$0xf] %vm1717_vm1, %v2035_v26  ;;  %v1267_v24 = vadd.f32 %v2855_v2, %v1196_v15  ;;  %v1424_v25 = vsel %vm1296_vm11, %v1232_v7, %v1360_v13  ;;  %v1456_v27 = vsel %vm1328_vm12, %v1264_v49, %v1392_v18  ;;  %v1233_v23 = vadd.f32 %v2855_v2, %v1162_v54 }
 0x152   : > { %1774 = vst.msk [vmem:[%s2572_s17 + $0xe0] sm:$0xf] %vm1717_vm1, %v2067_v17  ;;  %v1265_v28 = vadd.f32 %v2855_v2, %v1194_v55  ;;  %v2038_v33 = vpack.c.bf16 %v1424_v25, %v1424_v25  ;;  %v2070_v31 = vpack.c.bf16 %v1456_v27, %v1456_v27  ;;  %vm1294_vm13 = vcmp.gt.f32.partialorder %v1230_v21, 0.0 }
 0x153   : > { %v1358_v32 = vmul.f32 0.2, %v1230_v21  ;;  %vm1326_vm14 = vcmp.gt.f32.partialorder %v1262_v11, 0.0  ;;  %v1390_v34 = vmul.f32 0.2, %v1262_v11  ;;  %vm1299_vm15 = vcmp.gt.f32.partialorder %v1235_v12, 0.0 }
 0x154   : > { %v1363_v35 = vmul.f32 0.2, %v1235_v12  ;;  %1745 = vst.msk [vmem:[%s2572_s17 + $0x6c] sm:$0xf] %vm1717_vm1, %v2038_v33  ;;  %1777 = vst.msk [vmem:[%s2572_s17 + $0xec] sm:$0xf] %vm1717_vm1, %v2070_v31  ;;  %v1236_v59 = vadd.f32 %v2855_v2, %v1165_v3  ;;  %v1268_v61 = vadd.f32 %v2855_v2, %v1197_v46  ;;  %v1234_v62 = vadd.f32 %v2855_v2, %v1163_v6 }
 0x155   : > { %v1422_v36 = vsel %vm1294_vm13, %v1230_v21, %v1358_v32  ;;  %vm1331_vm2 = vcmp.gt.f32.partialorder %v1267_v24, 0.0  ;;  %v1395_v37 = vmul.f32 0.2, %v1267_v24  ;;  %vm1297_vm0 = vcmp.gt.f32.partialorder %v1233_v23, 0.0 }
 0x156   : > { %v2036_v38 = vpack.c.bf16 %v1422_v36, %v1422_v36  ;;  %v1454_v41 = vsel %vm1326_vm14, %v1262_v11, %v1390_v34  ;;  %v1427_v42 = vsel %vm1299_vm15, %v1235_v12, %v1363_v35  ;;  %v1361_v45 = vmul.f32 0.2, %v1233_v23 }
 0x157   : > { %v2068_v47 = vpack.c.bf16 %v1454_v41, %v1454_v41  ;;  %v2041_v52 = vpack.c.bf16 %v1427_v42, %v1427_v42  ;;  %v1459_v53 = vsel %vm1331_vm2, %v1267_v24, %v1395_v37  ;;  %vm1329_vm3 = vcmp.gt.f32.partialorder %v1265_v28, 0.0 }
 0x158   : > { %1743 = vst.msk [vmem:[%s2572_s17 + $0x64] sm:$0xf] %vm1717_vm1, %v2036_v38  ;;  %v2073_v56 = vpack.c.bf16 %v1459_v53, %v1459_v53  ;;  %v1425_v57 = vsel %vm1297_vm0, %v1233_v23, %v1361_v45  ;;  %v1393_v58 = vmul.f32 0.2, %v1265_v28  ;;  %v1266_v10 = vadd.f32 %v2855_v2, %v1195_v9 }
 0x159   : > { %1775 = vst.msk [vmem:[%s2572_s17 + $0xe4] sm:$0xf] %vm1717_vm1, %v2068_v47  ;;  %1748 = vst.msk [vmem:[%s2572_s17 + $0x78] sm:$0xf] %vm1717_vm1, %v2041_v52  ;;  %v2039_v60 = vpack.c.bf16 %v1425_v57, %v1425_v57  ;;  %vm1300_vm4 = vcmp.gt.f32.partialorder %v1236_v59, 0.0  ;;  %vm1332_vm5 = vcmp.gt.f32.partialorder %v1268_v61, 0.0 }
 0x15a   : > { %1780 = vst.msk [vmem:[%s2572_s17 + $0xf8] sm:$0xf] %vm1717_vm1, %v2073_v56  ;;  %v1457_v63 = vsel %vm1329_vm3, %v1265_v28, %v1393_v58  ;;  %v1364_v19 = vmul.f32 0.2, %v1236_v59  ;;  %v1396_v29 = vmul.f32 0.2, %v1268_v61 }
 0x15b   : > { %1746 = vst.msk [vmem:[%s2572_s17 + $0x70] sm:$0xf] %vm1717_vm1, %v2039_v60  ;;  %v2071_v20 = vpack.c.bf16 %v1457_v63, %v1457_v63  ;;  %vm1298_vm6 = vcmp.gt.f32.partialorder %v1234_v62, 0.0  ;;  %v1362_v0 = vmul.f32 0.2, %v1234_v62  ;;  %vm1330_vm7 = vcmp.gt.f32.partialorder %v1266_v10, 0.0 }
 0x15c   : > { %v1428_v30 = vsel %vm1300_vm4, %v1236_v59, %v1364_v19  ;;  %v1394_v39 = vmul.f32 0.2, %v1266_v10  ;;  %v1460_v4 = vsel %vm1332_vm5, %v1268_v61, %v1396_v29 }
 0x15d   : > { %1778 = vst.msk [vmem:[%s2572_s17 + $0xf0] sm:$0xf] %vm1717_vm1, %v2071_v20  ;;  %v2042_v2 = vpack.c.bf16 %v1428_v30, %v1428_v30  ;;  %v2074_v5 = vpack.c.bf16 %v1460_v4, %v1460_v4  ;;  %v1426_v43 = vsel %vm1298_vm6, %v1234_v62, %v1362_v0 }
 0x15e   : > { %v1458_v40 = vsel %vm1330_vm7, %v1266_v10, %v1394_v39  ;;  %v2040_v44 = vpack.c.bf16 %v1426_v43, %v1426_v43 }
 0x15f   : > { %1749 = vst.msk [vmem:[%s2572_s17 + $0x7c] sm:$0xf] %vm1717_vm1, %v2042_v2  ;;  %v2072_v7 = vpack.c.bf16 %v1458_v40, %v1458_v40  ;;  %1781 = vst.msk [vmem:[%s2572_s17 + $0xfc] sm:$0xf] %vm1717_vm1, %v2074_v5 }
 0x160   : > { %1747 = vst.msk [vmem:[%s2572_s17 + $0x74] sm:$0xf] %vm1717_vm1, %v2040_v44 }
 0x161   : > { %1779 = vst.msk [vmem:[%s2572_s17 + $0xf4] sm:$0xf] %vm1717_vm1, %v2072_v7 }
 0x162 PF: > { %s13_s14 = sadd.s32 1, %s2299_s14   ;;  %s2941_s12 = smov %s2295_s13 }
 0x163   : > { %p10_p5 = scmp.ge.s32.totalorder %s13_s14, 6   ;;  %s2942_s13 = smov %s2944_s15 }
 0x165   :  { %12 = sbr.rel (!%p10_p5) target bundleno = 2 (0x2), region = 76 }

// kernel: discriminator_forward.10
= control target key start
LH: loop header
LB: loop body
LE: loop exit
PB: predicated region body
PF: predicated region fallthrough
CT: control target
= control target key end

     0   :  { %s1062_s12 = smov 0   ;;  %s1064_s13 = smov 0   ;;  %s1215_s0 = inlined_call_operand.vmem [shape: bf16[2,256,128], index: 0, kind: input, shape index: {}]   ;;  %s1216_s1 = inlined_call_operand.vmem [shape: f32[2,1,128], index: 1, kind: input, shape index: {}]   ;;  %s1217_s2 = inlined_call_operand.vmem [shape: f32[2,1,128], index: 2, kind: input, shape index: {}]   ;;  %s1218_s3 = inlined_call_operand.vmem [shape: bf16[2,256,128], index: 3, kind: output, shape index: {}]  }
   0x1   :  { %s1066_s14 = smov 0  }
   0x2 LB: > { %s25_s15 = sadd.s32 1, %s1036_s13  ;;  %p745_p0 = scmp.ge.s32.totalorder %s1040_s14, 1  ;;  %s1040_s14 = sphi %s1066_s14, %s13_s14   ;;  %s1036_s13 = sphi %s1064_s13, %s1220_s13   ;;  %s1032_s12 = sphi %s1062_s12, %s1219_s12  }
   0x3   : > { %p27_p1 = scmp.ge.s32.totalorder %s25_s15, 2  ;;  %p174_p2 = scmp.lt.s32.totalorder %s1040_s14, 3 }
   0x5   : > { %s1222_s15 = smov (%p27_p1, %s25_s15), 0  ;;  %p175_p3 = pnand %p745_p0, %p174_p2 }
   0x6   : > { %p213_p4 = scmp.lt.s32.totalorder (!%p175_p3), %s1032_s12, 1 }
   0x7   : > { %178 = sbr.rel (%p175_p3) target bundleno = 75 (0x4b), region = 32 }
   0xc   : > { %s1224_s12 = smov (!%p213_p4, %s1032_s12), 1 }
   0xd   : > { %s786_s16 = sshll.u32 %s1224_s12, 7  ;;  %s224_s19 = scalar_lea.vmem %s1216_s1, %s1224_s12 }
   0xe   : > { %s1092_s22 = scalar_lea.vmem %s1215_s0, %s786_s16  ;;  %s227_s25 = scalar_lea.vmem %s1217_s2, %s1224_s12  ;;  %v1099_v1 = vld [vmem:[%s224_s19] ss:$0 sm:$0xff] }
   0xf   : > { %v821_v0 = vld [vmem:[%s1092_s22] sm:$0xff]   ;;  %v964_v2 = vld [vmem:[%s1092_s22 + $0x8] sm:$0xff]   ;;  %v965_v7 = vld [vmem:[%s1092_s22 + $0x10] sm:$0xff]   ;;  %s1127_s28 = scalar_lea.vmem %s1218_s3, %s786_s16 }
  0x10   : > { %v822_v3 = vunpack.c.l.bf16 %v821_v0  ;;  %v823_v4 = vunpack.c.h.bf16 %v821_v0  ;;  %v826_v5 = vunpack.c.l.bf16 %v964_v2  ;;  %v827_v6 = vunpack.c.h.bf16 %v964_v2  ;;  %v966_v8 = vld [vmem:[%s1092_s22 + $0x18] sm:$0xff]   ;;  %v1104_v9 = vld [vmem:[%s227_s25] ss:$0 sm:$0xff]  ;;  %v968_v41 = vld [vmem:[%s1092_s22 + $0x28] sm:$0xff]  }
  0x11   : > { %v830_v10 = vunpack.c.l.bf16 %v965_v7  ;;  %v831_v11 = vunpack.c.h.bf16 %v965_v7  ;;  %v834_v12 = vunpack.c.l.bf16 %v966_v8  ;;  %v835_v13 = vunpack.c.h.bf16 %v966_v8  ;;  %v967_v36 = vld [vmem:[%s1092_s22 + $0x20] sm:$0xff]   ;;  %v969_v52 = vld [vmem:[%s1092_s22 + $0x30] sm:$0xff]   ;;  %v970_v53 = vld [vmem:[%s1092_s22 + $0x38] sm:$0xff]  }
  0x12   : > { %v309_v14 = vsub.f32 %v822_v3, %v1099_v1  ;;  %v310_v15 = vsub.f32 %v823_v4, %v1099_v1  ;;  %v311_v16 = vsub.f32 %v826_v5, %v1099_v1  ;;  %v312_v17 = vsub.f32 %v827_v6, %v1099_v1 }
  0x13   : > { %v313_v18 = vsub.f32 %v830_v10, %v1099_v1  ;;  %v314_v19 = vsub.f32 %v831_v11, %v1099_v1  ;;  %v315_v20 = vsub.f32 %v834_v12, %v1099_v1  ;;  %v316_v21 = vsub.f32 %v835_v13, %v1099_v1 }
  0x14   : > { %v348_v22 = vmul.f32 %v1104_v9, %v309_v14  ;;  %v349_v23 = vmul.f32 %v1104_v9, %v310_v15  ;;  %v350_v24 = vmul.f32 %v1104_v9, %v311_v16  ;;  %v351_v25 = vmul.f32 %v1104_v9, %v312_v17 }
  0x15   : > { %v352_v26 = vmul.f32 %v1104_v9, %v313_v18  ;;  %v353_v27 = vmul.f32 %v1104_v9, %v314_v19  ;;  %v354_v28 = vmul.f32 %v1104_v9, %v315_v20  ;;  %v355_v29 = vmul.f32 %v1104_v9, %v316_v21  ;;  %v971_v20 = vld [vmem:[%s1092_s22 + $0x40] sm:$0xff]  }
  0x16   : > { %vm380_vm0 = vcmp.gt.f32.partialorder %v348_v22, 0.0  ;;  %vm381_vm1 = vcmp.gt.f32.partialorder %v349_v23, 0.0  ;;  %v412_v30 = vmul.f32 0.2, %v348_v22  ;;  %v413_v31 = vmul.f32 0.2, %v349_v23 }
  0x17   : > { %vm382_vm2 = vcmp.gt.f32.partialorder %v350_v24, 0.0  ;;  %vm383_vm3 = vcmp.gt.f32.partialorder %v351_v25, 0.0  ;;  %v414_v32 = vmul.f32 0.2, %v350_v24  ;;  %v415_v33 = vmul.f32 0.2, %v351_v25 }
  0x18   : > { %v444_v34 = vsel %vm380_vm0, %v348_v22, %v412_v30  ;;  %v445_v35 = vsel %vm381_vm1, %v349_v23, %v413_v31  ;;  %vm384_vm4 = vcmp.gt.f32.partialorder %v352_v26, 0.0  ;;  %vm385_vm5 = vcmp.gt.f32.partialorder %v353_v27, 0.0 }
  0x19   : > { %v887_v37 = vpack.c.bf16 %v445_v35, %v444_v34  ;;  %v446_v38 = vsel %vm382_vm2, %v350_v24, %v414_v32  ;;  %v447_v39 = vsel %vm383_vm3, %v351_v25, %v415_v33  ;;  %v416_v40 = vmul.f32 0.2, %v352_v26  ;;  %v972_v24 = vld [vmem:[%s1092_s22 + $0x48] sm:$0xff]  }
  0x1a   : > { %v892_v42 = vpack.c.bf16 %v447_v39, %v446_v38  ;;  %v417_v43 = vmul.f32 0.2, %v353_v27  ;;  %vm386_vm6 = vcmp.gt.f32.partialorder %v354_v28, 0.0  ;;  %vm387_vm7 = vcmp.gt.f32.partialorder %v355_v29, 0.0 }
  0x1b   : > { %888 = vst [vmem:[%s1127_s28] sm:$0xff] %v887_v37   ;;  %v448_v44 = vsel %vm384_vm4, %v352_v26, %v416_v40  ;;  %v418_v45 = vmul.f32 0.2, %v354_v28  ;;  %v419_v46 = vmul.f32 0.2, %v355_v29  ;;  %v838_v47 = vunpack.c.l.bf16 %v967_v36 }
  0x1c   : > { %979 = vst [vmem:[%s1127_s28 + $0x8] sm:$0xff] %v892_v42   ;;  %v449_v48 = vsel %vm385_vm5, %v353_v27, %v417_v43  ;;  %v839_v49 = vunpack.c.h.bf16 %v967_v36  ;;  %v842_v50 = vunpack.c.l.bf16 %v968_v41  ;;  %v843_v51 = vunpack.c.h.bf16 %v968_v41  ;;  %v973_v36 = vld [vmem:[%s1092_s22 + $0x50] sm:$0xff]  }
  0x1d   : > { %v897_v54 = vpack.c.bf16 %v449_v48, %v448_v44  ;;  %v450_v55 = vsel %vm386_vm6, %v354_v28, %v418_v45  ;;  %v451_v56 = vsel %vm387_vm7, %v355_v29, %v419_v46  ;;  %v317_v57 = vsub.f32 %v838_v47, %v1099_v1 }
  0x1e   : > { %v902_v58 = vpack.c.bf16 %v451_v56, %v450_v55  ;;  %v318_v59 = vsub.f32 %v839_v49, %v1099_v1  ;;  %v319_v60 = vsub.f32 %v842_v50, %v1099_v1  ;;  %v320_v61 = vsub.f32 %v843_v51, %v1099_v1  ;;  %v974_v55 = vld [vmem:[%s1092_s22 + $0x58] sm:$0xff]  }
  0x1f   : > { %980 = vst [vmem:[%s1127_s28 + $0x10] sm:$0xff] %v897_v54   ;;  %v356_v62 = vmul.f32 %v1104_v9, %v317_v57  ;;  %v846_v63 = vunpack.c.l.bf16 %v969_v52  ;;  %v847_v0 = vunpack.c.h.bf16 %v969_v52  ;;  %v850_v2 = vunpack.c.l.bf16 %v970_v53 }
  0x20   : > { %981 = vst [vmem:[%s1127_s28 + $0x18] sm:$0xff] %v902_v58   ;;  %v357_v3 = vmul.f32 %v1104_v9, %v318_v59  ;;  %v358_v4 = vmul.f32 %v1104_v9, %v319_v60  ;;  %v359_v5 = vmul.f32 %v1104_v9, %v320_v61  ;;  %v851_v6 = vunpack.c.h.bf16 %v970_v53 }
  0x21   : > { %vm388_vm8 = vcmp.gt.f32.partialorder %v356_v62, 0.0  ;;  %v420_v7 = vmul.f32 0.2, %v356_v62  ;;  %v321_v8 = vsub.f32 %v846_v63, %v1099_v1  ;;  %v322_v10 = vsub.f32 %v847_v0, %v1099_v1  ;;  %v975_v0 = vld [vmem:[%s1092_s22 + $0x60] sm:$0xff]  }
  0x22   : > { %vm389_vm9 = vcmp.gt.f32.partialorder %v357_v3, 0.0  ;;  %v421_v11 = vmul.f32 0.2, %v357_v3  ;;  %vm390_vm10 = vcmp.gt.f32.partialorder %v358_v4, 0.0  ;;  %vm391_vm11 = vcmp.gt.f32.partialorder %v359_v5, 0.0 }
  0x23   : > { %v452_v12 = vsel %vm388_vm8, %v356_v62, %v420_v7  ;;  %v422_v13 = vmul.f32 0.2, %v358_v4  ;;  %v423_v14 = vmul.f32 0.2, %v359_v5  ;;  %v360_v15 = vmul.f32 %v1104_v9, %v321_v8 }
  0x24   : > { %v453_v16 = vsel %vm389_vm9, %v357_v3, %v421_v11  ;;  %v361_v17 = vmul.f32 %v1104_v9, %v322_v10  ;;  %v323_v18 = vsub.f32 %v850_v2, %v1099_v1  ;;  %v324_v19 = vsub.f32 %v851_v6, %v1099_v1  ;;  %v976_v6 = vld [vmem:[%s1092_s22 + $0x68] sm:$0xff]  }
  0x25   : > { %v907_v21 = vpack.c.bf16 %v453_v16, %v452_v12  ;;  %v454_v22 = vsel %vm390_vm10, %v358_v4, %v422_v13  ;;  %v455_v23 = vsel %vm391_vm11, %v359_v5, %v423_v14  ;;  %vm392_vm12 = vcmp.gt.f32.partialorder %v360_v15, 0.0 }
  0x26   : > { %v912_v25 = vpack.c.bf16 %v455_v23, %v454_v22  ;;  %vm393_vm13 = vcmp.gt.f32.partialorder %v361_v17, 0.0  ;;  %v424_v26 = vmul.f32 0.2, %v360_v15  ;;  %v425_v27 = vmul.f32 0.2, %v361_v17  ;;  %v977_v22 = vld [vmem:[%s1092_s22 + $0x70] sm:$0xff]  }
  0x27   : > { %982 = vst [vmem:[%s1127_s28 + $0x20] sm:$0xff] %v907_v21   ;;  %v362_v28 = vmul.f32 %v1104_v9, %v323_v18  ;;  %v363_v29 = vmul.f32 %v1104_v9, %v324_v19  ;;  %v854_v30 = vunpack.c.l.bf16 %v971_v20  ;;  %v855_v31 = vunpack.c.h.bf16 %v971_v20 }
  0x28   : > { %983 = vst [vmem:[%s1127_s28 + $0x28] sm:$0xff] %v912_v25   ;;  %v456_v32 = vsel %vm392_vm12, %v360_v15, %v424_v26  ;;  %v457_v33 = vsel %vm393_vm13, %v361_v17, %v425_v27  ;;  %v858_v34 = vunpack.c.l.bf16 %v972_v24  ;;  %v859_v35 = vunpack.c.h.bf16 %v972_v24 }
  0x29   : > { %v917_v37 = vpack.c.bf16 %v457_v33, %v456_v32  ;;  %vm394_vm14 = vcmp.gt.f32.partialorder %v362_v28, 0.0  ;;  %vm395_vm15 = vcmp.gt.f32.partialorder %v363_v29, 0.0  ;;  %v426_v38 = vmul.f32 0.2, %v362_v28 }
  0x2a   : > { %v427_v39 = vmul.f32 0.2, %v363_v29  ;;  %v325_v40 = vsub.f32 %v854_v30, %v1099_v1  ;;  %v326_v41 = vsub.f32 %v855_v31, %v1099_v1  ;;  %v327_v42 = vsub.f32 %v858_v34, %v1099_v1 }
  0x2b   : > { %984 = vst [vmem:[%s1127_s28 + $0x30] sm:$0xff] %v917_v37   ;;  %v458_v43 = vsel %vm394_vm14, %v362_v28, %v426_v38  ;;  %v328_v44 = vsub.f32 %v859_v35, %v1099_v1  ;;  %v862_v45 = vunpack.c.l.bf16 %v973_v36  ;;  %v863_v46 = vunpack.c.h.bf16 %v973_v36 }
  0x2c   : > { %v459_v47 = vsel %vm395_vm15, %v363_v29, %v427_v39  ;;  %v364_v48 = vmul.f32 %v1104_v9, %v325_v40  ;;  %v365_v49 = vmul.f32 %v1104_v9, %v326_v41  ;;  %v366_v50 = vmul.f32 %v1104_v9, %v327_v42  ;;  %v978_v41 = vld [vmem:[%s1092_s22 + $0x78] sm:$0xff]  }
  0x2d   : > { %v922_v51 = vpack.c.bf16 %v459_v47, %v458_v43  ;;  %v367_v52 = vmul.f32 %v1104_v9, %v328_v44  ;;  %v329_v53 = vsub.f32 %v862_v45, %v1099_v1  ;;  %v330_v54 = vsub.f32 %v863_v46, %v1099_v1 }
  0x2e   : > { %vm396_vm0 = vcmp.gt.f32.partialorder %v364_v48, 0.0  ;;  %vm397_vm1 = vcmp.gt.f32.partialorder %v365_v49, 0.0  ;;  %v428_v56 = vmul.f32 0.2, %v364_v48  ;;  %v429_v57 = vmul.f32 0.2, %v365_v49 }
  0x2f   : > { %985 = vst [vmem:[%s1127_s28 + $0x38] sm:$0xff] %v922_v51   ;;  %vm398_vm2 = vcmp.gt.f32.partialorder %v366_v50, 0.0  ;;  %vm399_vm3 = vcmp.gt.f32.partialorder %v367_v52, 0.0  ;;  %v430_v58 = vmul.f32 0.2, %v366_v50  ;;  %v368_v62 = vmul.f32 %v1104_v9, %v329_v53 }
  0x30   : > { %v431_v59 = vmul.f32 0.2, %v367_v52  ;;  %v460_v60 = vsel %vm396_vm0, %v364_v48, %v428_v56  ;;  %v461_v61 = vsel %vm397_vm1, %v365_v49, %v429_v57  ;;  %v369_v63 = vmul.f32 %v1104_v9, %v330_v54 }
  0x31   : > { %v927_v2 = vpack.c.bf16 %v461_v61, %v460_v60  ;;  %v462_v3 = vsel %vm398_vm2, %v366_v50, %v430_v58  ;;  %v866_v5 = vunpack.c.l.bf16 %v974_v55  ;;  %vm400_vm4 = vcmp.gt.f32.partialorder %v368_v62, 0.0 }
  0x32   : > { %v463_v4 = vsel %vm399_vm3, %v367_v52, %v431_v59  ;;  %vm401_vm5 = vcmp.gt.f32.partialorder %v369_v63, 0.0  ;;  %v432_v8 = vmul.f32 0.2, %v368_v62  ;;  %v433_v10 = vmul.f32 0.2, %v369_v63 }
  0x33   : > { %v932_v7 = vpack.c.bf16 %v463_v4, %v462_v3  ;;  %986 = vst [vmem:[%s1127_s28 + $0x40] sm:$0xff] %v927_v2   ;;  %v867_v11 = vunpack.c.h.bf16 %v974_v55  ;;  %v331_v12 = vsub.f32 %v866_v5, %v1099_v1  ;;  %v870_v13 = vunpack.c.l.bf16 %v975_v0 }
  0x34   : > { %v464_v14 = vsel %vm400_vm4, %v368_v62, %v432_v8  ;;  %v871_v15 = vunpack.c.h.bf16 %v975_v0  ;;  %v874_v16 = vunpack.c.l.bf16 %v976_v6  ;;  %v875_v17 = vunpack.c.h.bf16 %v976_v6 }
  0x35   : > { %987 = vst [vmem:[%s1127_s28 + $0x48] sm:$0xff] %v932_v7   ;;  %v465_v18 = vsel %vm401_vm5, %v369_v63, %v433_v10  ;;  %v332_v19 = vsub.f32 %v867_v11, %v1099_v1  ;;  %v370_v20 = vmul.f32 %v1104_v9, %v331_v12  ;;  %v333_v21 = vsub.f32 %v870_v13, %v1099_v1 }
  0x36   : > { %v937_v23 = vpack.c.bf16 %v465_v18, %v464_v14  ;;  %v334_v24 = vsub.f32 %v871_v15, %v1099_v1  ;;  %v335_v25 = vsub.f32 %v874_v16, %v1099_v1  ;;  %v336_v26 = vsub.f32 %v875_v17, %v1099_v1 }
  0x37   : > { %v371_v27 = vmul.f32 %v1104_v9, %v332_v19  ;;  %vm402_vm6 = vcmp.gt.f32.partialorder %v370_v20, 0.0  ;;  %v434_v28 = vmul.f32 0.2, %v370_v20  ;;  %v372_v29 = vmul.f32 %v1104_v9, %v333_v21 }
  0x38   : > { %988 = vst [vmem:[%s1127_s28 + $0x50] sm:$0xff] %v937_v23   ;;  %v373_v30 = vmul.f32 %v1104_v9, %v334_v24  ;;  %v374_v31 = vmul.f32 %v1104_v9, %v335_v25  ;;  %v375_v32 = vmul.f32 %v1104_v9, %v336_v26  ;;  %v878_v33 = vunpack.c.l.bf16 %v977_v22 }
  0x39   : > { %vm403_vm7 = vcmp.gt.f32.partialorder %v371_v27, 0.0  ;;  %v435_v34 = vmul.f32 0.2, %v371_v27  ;;  %v466_v35 = vsel %vm402_vm6, %v370_v20, %v434_v28  ;;  %vm404_vm8 = vcmp.gt.f32.partialorder %v372_v29, 0.0 }
  0x3a   : > { %vm405_vm9 = vcmp.gt.f32.partialorder %v373_v30, 0.0  ;;  %v436_v36 = vmul.f32 0.2, %v372_v29  ;;  %v437_v37 = vmul.f32 0.2, %v373_v30  ;;  %vm406_vm10 = vcmp.gt.f32.partialorder %v374_v31, 0.0 }
  0x3b   : > { %v467_v38 = vsel %vm403_vm7, %v371_v27, %v435_v34  ;;  %vm407_vm11 = vcmp.gt.f32.partialorder %v375_v32, 0.0  ;;  %v438_v39 = vmul.f32 0.2, %v374_v31  ;;  %v439_v40 = vmul.f32 0.2, %v375_v32 }
  0x3c   : > { %v942_v42 = vpack.c.bf16 %v467_v38, %v466_v35  ;;  %v468_v43 = vsel %vm404_vm8, %v372_v29, %v436_v36  ;;  %v469_v44 = vsel %vm405_vm9, %v373_v30, %v437_v37  ;;  %v879_v45 = vunpack.c.h.bf16 %v977_v22 }
  0x3d   : > { %v947_v46 = vpack.c.bf16 %v469_v44, %v468_v43  ;;  %v470_v47 = vsel %vm406_vm10, %v374_v31, %v438_v39  ;;  %v471_v48 = vsel %vm407_vm11, %v375_v32, %v439_v40  ;;  %v337_v49 = vsub.f32 %v878_v33, %v1099_v1 }
  0x3e   : > { %989 = vst [vmem:[%s1127_s28 + $0x58] sm:$0xff] %v942_v42   ;;  %v952_v50 = vpack.c.bf16 %v471_v48, %v470_v47  ;;  %v338_v51 = vsub.f32 %v879_v45, %v1099_v1  ;;  %v882_v52 = vunpack.c.l.bf16 %v978_v41  ;;  %v883_v53 = vunpack.c.h.bf16 %v978_v41 }
  0x3f   : > { %990 = vst [vmem:[%s1127_s28 + $0x60] sm:$0xff] %v947_v46   ;;  %v376_v54 = vmul.f32 %v1104_v9, %v337_v49 }
  0x40   : > { %991 = vst [vmem:[%s1127_s28 + $0x68] sm:$0xff] %v952_v50   ;;  %v377_v55 = vmul.f32 %v1104_v9, %v338_v51  ;;  %v339_v56 = vsub.f32 %v882_v52, %v1099_v1  ;;  %v340_v57 = vsub.f32 %v883_v53, %v1099_v1 }
  0x41   : > { %vm408_vm12 = vcmp.gt.f32.partialorder %v376_v54, 0.0  ;;  %v440_v58 = vmul.f32 0.2, %v376_v54 }
  0x42   : > { %vm409_vm13 = vcmp.gt.f32.partialorder %v377_v55, 0.0  ;;  %v441_v59 = vmul.f32 0.2, %v377_v55  ;;  %v378_v60 = vmul.f32 %v1104_v9, %v339_v56  ;;  %v379_v61 = vmul.f32 %v1104_v9, %v340_v57 }
  0x43   : > { %v472_v62 = vsel %vm408_vm12, %v376_v54, %v440_v58 }
  0x44   : > { %v473_v63 = vsel %vm409_vm13, %v377_v55, %v441_v59  ;;  %vm410_vm14 = vcmp.gt.f32.partialorder %v378_v60, 0.0  ;;  %vm411_vm15 = vcmp.gt.f32.partialorder %v379_v61, 0.0  ;;  %v442_v0 = vmul.f32 0.2, %v378_v60 }
  0x45   : > { %v957_v2 = vpack.c.bf16 %v473_v63, %v472_v62  ;;  %v443_v3 = vmul.f32 0.2, %v379_v61 }
  0x46   : > { %v474_v4 = vsel %vm410_vm14, %v378_v60, %v442_v0 }
  0x47   : > { %992 = vst [vmem:[%s1127_s28 + $0x70] sm:$0xff] %v957_v2   ;;  %v475_v5 = vsel %vm411_vm15, %v379_v61, %v443_v3 }
  0x48   : > { %v962_v1 = vpack.c.bf16 %v475_v5, %v474_v4 }
  0x4a   : > { %993 = vst [vmem:[%s1127_s28 + $0x78] sm:$0xff] %v962_v1  }
  0x4b PF: > { %s13_s14 = sadd.s32 1, %s1040_s14   ;;  %s1219_s12 = smov %s1036_s13 }
  0x4c   : > { %p10_p5 = scmp.ge.s32.totalorder %s13_s14, 4   ;;  %s1220_s13 = smov %s1222_s15 }
  0x4e   :  { %12 = sbr.rel (!%p10_p5) target bundleno = 2 (0x2), region = 68 }

// kernel: discriminator_forward.9
= control target key start
LH: loop header
LB: loop body
LE: loop exit
PB: predicated region body
PF: predicated region fallthrough
CT: control target
= control target key end

     0   :  { %s2884_s18 = smov 0   ;;  %s2886_s19 = smov 0   ;;  %s3479_s0 = inlined_call_operand.vmem [shape: bf16[512,1024], index: 0, kind: input, shape index: {}]   ;;  %s3480_s1 = inlined_call_operand.vmem [shape: bf16[1024,128], index: 1, kind: input, shape index: {}]   ;;  %s3481_s2 = inlined_call_operand.vmem [shape: f32[1,128], index: 2, kind: input, shape index: {}]   ;;  %s3482_s3 = inlined_call_operand.vmem [shape: bf16[512,128], index: 3, kind: output, shape index: {0}]   ;;  %s3483_s4 = inlined_call_operand.vmem [shape: f32[2,1,128], index: 4, kind: output, shape index: {1}]   ;;  %s3484_s5 = inlined_call_operand.vmem [shape: f32[2,1,128], index: 5, kind: output, shape index: {2}]  }
   0x1   :  { %s2888_s20 = smov 0   ;;  %s2890_s21 = smov 0  }
   0x2   :  { %s2892_s22 = smov 0   ;;  %s2894_s23 = smov 0  }
   0x3   :  { %s2896_s24 = smov 0  }
   0x4 LB: > { %s28_s25 = sadd.s32 1, %s2843_s22  ;;  %s35_s26 = sadd.s32 1, %s2847_s23  ;;  %s2851_s24 = sphi %s2896_s24, %s16_s24   ;;  %s2847_s23 = sphi %s2894_s23, %s3490_s23   ;;  %s2843_s22 = sphi %s2892_s22, %s3489_s22   ;;  %s2839_s21 = sphi %s2890_s21, %s3488_s21   ;;  %s2835_s20 = sphi %s2888_s20, %s3487_s20   ;;  %s2831_s19 = sphi %s2886_s19, %s3486_s19   ;;  %s2827_s18 = sphi %s2884_s18, %s3485_s18  }
   0x5   : > { %p29_p0 = scmp.ge.s32.totalorder %s28_s25, 2  ;;  %p51_p1 = scmp.ne.s32.totalorder %s2831_s19, %s2827_s18 }
   0x6   : > { %p52_p2 = scmp.eq.s32.totalorder %s2851_s24, 0  ;;  %s44_s30 = sadd.s32 1, %s2831_s19 }
   0x7   : > { %s3492_s25 = smov (%p29_p0, %s28_s25), 0  ;;  %s3494_s26 = smov (!%p29_p0, %s35_s26), %s2847_s23 }
   0x8   : > { %p53_p3 = por %p52_p2, %p51_p1  ;;  %p37_p4 = scmp.ge.s32.totalorder %s3494_s26, 2 }
   0x9   : > { %s40_s27 = ssub.s32 %s2843_s22, %s3492_s25  ;;  %p2115_p6 = scmp.ge.s32.totalorder %s2851_s24, 4 }
   0xa   : > { %s3496_s26 = smov (%p37_p4, %s3494_s26), 0 }
   0xb   : > { %s39_s28 = ssub.s32 %s2847_s23, %s3496_s26  ;;  %221 = sbr.rel (%p2115_p6) target bundleno = 55 (0x37), region = 20 }
   0xc   : > { %s41_s29 = sor.u32 %s40_s27, %s39_s28 }
   0xd   : > { %p42_p5 = scmp.eq.s32.totalorder %s41_s29, 0 }
   0xf   : > { %s2935_s6 = scalar_select %p42_p5, %s2831_s19, %s44_s30  }
  0x10   : > { %224 = sbr.rel (!%p53_p3) target bundleno = 55 (0x37), region = 24  ;;  %s226_s7 = sand.u32 (%p53_p3), 1, %s2831_s19  }
  0x11   : > { %s2118_s8 = sshll.u32 (%p53_p3), %s2843_s22, 2  ;;  %s2116_s9 = sshll.u32 (%p53_p3), %s226_s7, 9 }
  0x12   : > { %s2260_s10 = sshll.u32 (%p53_p3), %s2847_s23, 8  ;;  %s2949_s16 = scalar_lea.vmem (%p53_p3), [#allocation3], %s2116_s9 }
  0x13   : > { %s232_s11 = sadd.s32 (%p53_p3), %s2260_s10, %s2118_s8 }
  0x14   : > { %s2120_s12 = sshll.u32 (%p53_p3), %s232_s11, 2 }
  0x15   : > { %s2944_s15 = scalar_lea.vmem %s3479_s0, %s2120_s12 }
  0x16   : > { %v247_v0 = vld [vmem:[%s2944_s15] sm:$0xff]  ;;  %v249_v1 = vld [vmem:[%s2944_s15 + $0x8] sm:$0xff] }
  0x17   : > { %v251_v2 = vld [vmem:[%s2944_s15 + $0x20] sm:$0xff]  ;;  %248 = vst [vmem:[%s2949_s16] sm:$0xff] %v247_v0  ;;  %250 = vst [vmem:[%s2949_s16 + $0x8] sm:$0xff] %v249_v1  ;;  %v253_v3 = vld [vmem:[%s2944_s15 + $0x28] sm:$0xff] }
  0x18   : > { %252 = vst [vmem:[%s2949_s16 + $0x10] sm:$0xff] %v251_v2  ;;  %v255_v4 = vld [vmem:[%s2944_s15 + $0x40] sm:$0xff]  ;;  %v257_v5 = vld [vmem:[%s2944_s15 + $0x48] sm:$0xff]  ;;  %254 = vst [vmem:[%s2949_s16 + $0x18] sm:$0xff] %v253_v3 }
  0x19   : > { %256 = vst [vmem:[%s2949_s16 + $0x20] sm:$0xff] %v255_v4  ;;  %258 = vst [vmem:[%s2949_s16 + $0x28] sm:$0xff] %v257_v5  ;;  %v259_v6 = vld [vmem:[%s2944_s15 + $0x60] sm:$0xff]  ;;  %v261_v7 = vld [vmem:[%s2944_s15 + $0x68] sm:$0xff] }
  0x1a   : > { %v263_v8 = vld [vmem:[%s2944_s15 + $0x80] sm:$0xff]  ;;  %260 = vst [vmem:[%s2949_s16 + $0x30] sm:$0xff] %v259_v6  ;;  %262 = vst [vmem:[%s2949_s16 + $0x38] sm:$0xff] %v261_v7  ;;  %v265_v9 = vld [vmem:[%s2944_s15 + $0x88] sm:$0xff] }
  0x1b   : > { %264 = vst [vmem:[%s2949_s16 + $0x40] sm:$0xff] %v263_v8  ;;  %v267_v10 = vld [vmem:[%s2944_s15 + $0xa0] sm:$0xff]  ;;  %v269_v11 = vld [vmem:[%s2944_s15 + $0xa8] sm:$0xff]  ;;  %266 = vst [vmem:[%s2949_s16 + $0x48] sm:$0xff] %v265_v9 }
  0x1c   : > { %268 = vst [vmem:[%s2949_s16 + $0x50] sm:$0xff] %v267_v10  ;;  %270 = vst [vmem:[%s2949_s16 + $0x58] sm:$0xff] %v269_v11  ;;  %v271_v12 = vld [vmem:[%s2944_s15 + $0xc0] sm:$0xff]  ;;  %v273_v13 = vld [vmem:[%s2944_s15 + $0xc8] sm:$0xff] }
  0x1d   : > { %v275_v14 = vld [vmem:[%s2944_s15 + $0xe0] sm:$0xff]  ;;  %272 = vst [vmem:[%s2949_s16 + $0x60] sm:$0xff] %v271_v12  ;;  %274 = vst [vmem:[%s2949_s16 + $0x68] sm:$0xff] %v273_v13  ;;  %v277_v15 = vld [vmem:[%s2944_s15 + $0xe8] sm:$0xff] }
  0x1e   : > { %276 = vst [vmem:[%s2949_s16 + $0x70] sm:$0xff] %v275_v14  ;;  %v279_v16 = vld [vmem:[%s2944_s15 + $0x100] sm:$0xff]  ;;  %v281_v17 = vld [vmem:[%s2944_s15 + $0x108] sm:$0xff]  ;;  %278 = vst [vmem:[%s2949_s16 + $0x78] sm:$0xff] %v277_v15 }
  0x1f   : > { %280 = vst [vmem:[%s2949_s16 + $0x80] sm:$0xff] %v279_v16  ;;  %282 = vst [vmem:[%s2949_s16 + $0x88] sm:$0xff] %v281_v17  ;;  %v283_v18 = vld [vmem:[%s2944_s15 + $0x120] sm:$0xff]  ;;  %v285_v19 = vld [vmem:[%s2944_s15 + $0x128] sm:$0xff] }
  0x20   : > { %v287_v20 = vld [vmem:[%s2944_s15 + $0x140] sm:$0xff]  ;;  %284 = vst [vmem:[%s2949_s16 + $0x90] sm:$0xff] %v283_v18  ;;  %286 = vst [vmem:[%s2949_s16 + $0x98] sm:$0xff] %v285_v19  ;;  %v289_v21 = vld [vmem:[%s2944_s15 + $0x148] sm:$0xff] }
  0x21   : > { %288 = vst [vmem:[%s2949_s16 + $0xa0] sm:$0xff] %v287_v20  ;;  %v291_v22 = vld [vmem:[%s2944_s15 + $0x160] sm:$0xff]  ;;  %v293_v23 = vld [vmem:[%s2944_s15 + $0x168] sm:$0xff]  ;;  %290 = vst [vmem:[%s2949_s16 + $0xa8] sm:$0xff] %v289_v21 }
  0x22   : > { %292 = vst [vmem:[%s2949_s16 + $0xb0] sm:$0xff] %v291_v22  ;;  %294 = vst [vmem:[%s2949_s16 + $0xb8] sm:$0xff] %v293_v23  ;;  %v295_v24 = vld [vmem:[%s2944_s15 + $0x180] sm:$0xff]  ;;  %v297_v25 = vld [vmem:[%s2944_s15 + $0x188] sm:$0xff] }
  0x23   : > { %v299_v26 = vld [vmem:[%s2944_s15 + $0x1a0] sm:$0xff]  ;;  %296 = vst [vmem:[%s2949_s16 + $0xc0] sm:$0xff] %v295_v24  ;;  %298 = vst [vmem:[%s2949_s16 + $0xc8] sm:$0xff] %v297_v25  ;;  %v301_v27 = vld [vmem:[%s2944_s15 + $0x1a8] sm:$0xff] }
  0x24   : > { %300 = vst [vmem:[%s2949_s16 + $0xd0] sm:$0xff] %v299_v26  ;;  %v303_v28 = vld [vmem:[%s2944_s15 + $0x1c0] sm:$0xff]  ;;  %v305_v29 = vld [vmem:[%s2944_s15 + $0x1c8] sm:$0xff]  ;;  %302 = vst [vmem:[%s2949_s16 + $0xd8] sm:$0xff] %v301_v27 }
  0x25   : > { %304 = vst [vmem:[%s2949_s16 + $0xe0] sm:$0xff] %v303_v28  ;;  %306 = vst [vmem:[%s2949_s16 + $0xe8] sm:$0xff] %v305_v29  ;;  %v307_v30 = vld [vmem:[%s2944_s15 + $0x1e0] sm:$0xff]  ;;  %v309_v31 = vld [vmem:[%s2944_s15 + $0x1e8] sm:$0xff] }
  0x26   : > { %v311_v32 = vld [vmem:[%s2944_s15 + $0x200] sm:$0xff]  ;;  %308 = vst [vmem:[%s2949_s16 + $0xf0] sm:$0xff] %v307_v30  ;;  %310 = vst [vmem:[%s2949_s16 + $0xf8] sm:$0xff] %v309_v31  ;;  %v313_v33 = vld [vmem:[%s2944_s15 + $0x208] sm:$0xff] }
  0x27   : > { %312 = vst [vmem:[%s2949_s16 + $0x100] sm:$0xff] %v311_v32  ;;  %v315_v34 = vld [vmem:[%s2944_s15 + $0x220] sm:$0xff]  ;;  %v317_v35 = vld [vmem:[%s2944_s15 + $0x228] sm:$0xff]  ;;  %314 = vst [vmem:[%s2949_s16 + $0x108] sm:$0xff] %v313_v33 }
  0x28   : > { %316 = vst [vmem:[%s2949_s16 + $0x110] sm:$0xff] %v315_v34  ;;  %318 = vst [vmem:[%s2949_s16 + $0x118] sm:$0xff] %v317_v35  ;;  %v319_v36 = vld [vmem:[%s2944_s15 + $0x240] sm:$0xff]  ;;  %v321_v37 = vld [vmem:[%s2944_s15 + $0x248] sm:$0xff] }
  0x29   : > { %v323_v38 = vld [vmem:[%s2944_s15 + $0x260] sm:$0xff]  ;;  %320 = vst [vmem:[%s2949_s16 + $0x120] sm:$0xff] %v319_v36  ;;  %322 = vst [vmem:[%s2949_s16 + $0x128] sm:$0xff] %v321_v37  ;;  %v325_v39 = vld [vmem:[%s2944_s15 + $0x268] sm:$0xff] }
  0x2a   : > { %324 = vst [vmem:[%s2949_s16 + $0x130] sm:$0xff] %v323_v38  ;;  %v327_v40 = vld [vmem:[%s2944_s15 + $0x280] sm:$0xff]  ;;  %v329_v41 = vld [vmem:[%s2944_s15 + $0x288] sm:$0xff]  ;;  %326 = vst [vmem:[%s2949_s16 + $0x138] sm:$0xff] %v325_v39 }
  0x2b   : > { %328 = vst [vmem:[%s2949_s16 + $0x140] sm:$0xff] %v327_v40  ;;  %330 = vst [vmem:[%s2949_s16 + $0x148] sm:$0xff] %v329_v41  ;;  %v331_v42 = vld [vmem:[%s2944_s15 + $0x2a0] sm:$0xff]  ;;  %v333_v43 = vld [vmem:[%s2944_s15 + $0x2a8] sm:$0xff] }
  0x2c   : > { %v335_v44 = vld [vmem:[%s2944_s15 + $0x2c0] sm:$0xff]  ;;  %332 = vst [vmem:[%s2949_s16 + $0x150] sm:$0xff] %v331_v42  ;;  %334 = vst [vmem:[%s2949_s16 + $0x158] sm:$0xff] %v333_v43  ;;  %v337_v45 = vld [vmem:[%s2944_s15 + $0x2c8] sm:$0xff] }
  0x2d   : > { %336 = vst [vmem:[%s2949_s16 + $0x160] sm:$0xff] %v335_v44  ;;  %v339_v46 = vld [vmem:[%s2944_s15 + $0x2e0] sm:$0xff]  ;;  %v341_v47 = vld [vmem:[%s2944_s15 + $0x2e8] sm:$0xff]  ;;  %338 = vst [vmem:[%s2949_s16 + $0x168] sm:$0xff] %v337_v45 }
  0x2e   : > { %340 = vst [vmem:[%s2949_s16 + $0x170] sm:$0xff] %v339_v46  ;;  %342 = vst [vmem:[%s2949_s16 + $0x178] sm:$0xff] %v341_v47  ;;  %v343_v48 = vld [vmem:[%s2944_s15 + $0x300] sm:$0xff]  ;;  %v345_v49 = vld [vmem:[%s2944_s15 + $0x308] sm:$0xff] }
  0x2f   : > { %v347_v50 = vld [vmem:[%s2944_s15 + $0x320] sm:$0xff]  ;;  %344 = vst [vmem:[%s2949_s16 + $0x180] sm:$0xff] %v343_v48  ;;  %346 = vst [vmem:[%s2949_s16 + $0x188] sm:$0xff] %v345_v49  ;;  %v349_v51 = vld [vmem:[%s2944_s15 + $0x328] sm:$0xff] }
  0x30   : > { %348 = vst [vmem:[%s2949_s16 + $0x190] sm:$0xff] %v347_v50  ;;  %v351_v52 = vld [vmem:[%s2944_s15 + $0x340] sm:$0xff]  ;;  %v353_v53 = vld [vmem:[%s2944_s15 + $0x348] sm:$0xff]  ;;  %350 = vst [vmem:[%s2949_s16 + $0x198] sm:$0xff] %v349_v51 }
  0x31   : > { %352 = vst [vmem:[%s2949_s16 + $0x1a0] sm:$0xff] %v351_v52  ;;  %354 = vst [vmem:[%s2949_s16 + $0x1a8] sm:$0xff] %v353_v53  ;;  %v355_v54 = vld [vmem:[%s2944_s15 + $0x360] sm:$0xff]  ;;  %v357_v55 = vld [vmem:[%s2944_s15 + $0x368] sm:$0xff] }
  0x32   : > { %v359_v56 = vld [vmem:[%s2944_s15 + $0x380] sm:$0xff]  ;;  %356 = vst [vmem:[%s2949_s16 + $0x1b0] sm:$0xff] %v355_v54  ;;  %358 = vst [vmem:[%s2949_s16 + $0x1b8] sm:$0xff] %v357_v55  ;;  %v361_v57 = vld [vmem:[%s2944_s15 + $0x388] sm:$0xff] }
  0x33   : > { %360 = vst [vmem:[%s2949_s16 + $0x1c0] sm:$0xff] %v359_v56  ;;  %v363_v58 = vld [vmem:[%s2944_s15 + $0x3a0] sm:$0xff]  ;;  %v365_v59 = vld [vmem:[%s2944_s15 + $0x3a8] sm:$0xff]  ;;  %362 = vst [vmem:[%s2949_s16 + $0x1c8] sm:$0xff] %v361_v57 }
  0x34   : > { %364 = vst [vmem:[%s2949_s16 + $0x1d0] sm:$0xff] %v363_v58  ;;  %366 = vst [vmem:[%s2949_s16 + $0x1d8] sm:$0xff] %v365_v59  ;;  %v367_v60 = vld [vmem:[%s2944_s15 + $0x3c0] sm:$0xff]  ;;  %v369_v61 = vld [vmem:[%s2944_s15 + $0x3c8] sm:$0xff] }
  0x35   : > { %v371_v62 = vld [vmem:[%s2944_s15 + $0x3e0] sm:$0xff]  ;;  %368 = vst [vmem:[%s2949_s16 + $0x1e0] sm:$0xff] %v367_v60  ;;  %370 = vst [vmem:[%s2949_s16 + $0x1e8] sm:$0xff] %v369_v61  ;;  %v373_v63 = vld [vmem:[%s2944_s15 + $0x3e8] sm:$0xff] }
  0x36   : > { %372 = vst [vmem:[%s2949_s16 + $0x1f0] sm:$0xff] %v371_v62  ;;  %374 = vst [vmem:[%s2949_s16 + $0x1f8] sm:$0xff] %v373_v63 }
  0x37 PF: > { %p2121_p7 = scmp.ge.s32.totalorder %s2851_s24, 1  ;;  %p391_p8 = scmp.lt.s32.totalorder %s2851_s24, 5 }
  0x39   : > { %p392_p9 = pnand %p2121_p7, %p391_p8 }
  0x3a   : > { %s398_s17 = sand.u32 (!%p392_p9), 1, %s2827_s18   ;;  %s2123_s27 = sshll.u32 (!%p392_p9), %s2835_s20, 6 }
  0x3b   : > { %395 = sbr.rel (%p392_p9) target bundleno = 540 (0x21c), region = 51  ;;  %s2122_s28 = sshll.u32 (!%p392_p9), %s398_s17, 9 }
  0x3c   : > { %p454_p10 = scmp.lt.s32.totalorder (!%p392_p9), %s2123_s27, 127  ;;  %s2125_s29 = sshll.u32 (!%p392_p9), %s2839_s21, 5 }
  0x3d   : > { %p466_p11 = scmp.lt.s32.totalorder (!%p392_p9), %s2125_s29, 63  ;;  %p474_p12 = scmp.lt.s32.totalorder (!%p392_p9), %s2839_s21, 1 }
  0x3e   : > { %p2127_p13 = scmp.ne.s32.totalorder (!%p392_p9), %s2835_s20, 0 }
  0x40   : > { %s3498_s27 = smov (!%p454_p10, %s2123_s27), 127  ;;  %s3500_s29 = smov (!%p466_p11, %s2125_s29), 63 }
  0x41   : > { %s2124_s30 = sshll.u32 %s3498_s27, 2  ;;  %s3502_s21 = smov (!%p474_p12, %s2839_s21), 1 }
  0x42   : > { %s3085_s9 = scalar_lea.vmem %s3480_s1, %s2124_s30  ;;  %s2126_s10 = sshll.u32 %s3500_s29, 2 }
  0x43   : > { %s3093_s12 = scalar_lea.vmem %s3482_s3, %s2126_s10  ;;  %s479_s15 = scalar_lea.vmem %s3483_s4, %s3502_s21 }
  0x44   : > { %s485_s27 = scalar_lea.vmem %s3484_s5, %s3502_s21  ;;  %s3103_s30 = scalar_lea.vmem [#allocation3], %s2122_s28 }
  0x45   : > { %490 = sbr.rel (%p2127_p13) target bundleno = 91 (0x5b), region = 59 }
  0x4a   : > { %v2853_v0 = vmov 0.0  }
  0x4b   : > { %491 = vst [vmem:[#allocation2 + $0xb0] sm:$0xff] %v2853_v0  ;;  %492 = vst [vmem:[#allocation2] sm:$0xff] %v2853_v0 }
  0x4c   : > { %493 = vst [vmem:[#allocation2 + $0xd8] sm:$0xff] %v2853_v0  ;;  %494 = vst [vmem:[#allocation2 + $0x18] sm:$0xff] %v2853_v0 }
  0x4d   : > { %495 = vst [vmem:[#allocation2 + $0x50] sm:$0xff] %v2853_v0  ;;  %496 = vst [vmem:[#allocation2 + $0x68] sm:$0xff] %v2853_v0 }
  0x4e   : > { %497 = vst [vmem:[#allocation2 + $0x30] sm:$0xff] %v2853_v0  ;;  %498 = vst [vmem:[#allocation2 + $0x48] sm:$0xff] %v2853_v0 }
  0x4f   : > { %499 = vst [vmem:[#allocation2 + $0x80] sm:$0xff] %v2853_v0  ;;  %500 = vst [vmem:[#allocation2 + $0x88] sm:$0xff] %v2853_v0 }
  0x50   : > { %501 = vst [vmem:[#allocation2 + $0xe8] sm:$0xff] %v2853_v0  ;;  %502 = vst [vmem:[#allocation2 + $0xb8] sm:$0xff] %v2853_v0 }
  0x51   : > { %503 = vst [vmem:[#allocation2 + $0x60] sm:$0xff] %v2853_v0  ;;  %504 = vst [vmem:[#allocation2 + $0xf0] sm:$0xff] %v2853_v0 }
  0x52   : > { %505 = vst [vmem:[#allocation2 + $0x8] sm:$0xff] %v2853_v0  ;;  %506 = vst [vmem:[#allocation2 + $0x78] sm:$0xff] %v2853_v0 }
  0x53   : > { %507 = vst [vmem:[#allocation2 + $0x38] sm:$0xff] %v2853_v0  ;;  %508 = vst [vmem:[#allocation2 + $0x58] sm:$0xff] %v2853_v0 }
  0x54   : > { %509 = vst [vmem:[#allocation2 + $0x40] sm:$0xff] %v2853_v0  ;;  %510 = vst [vmem:[#allocation2 + $0xc8] sm:$0xff] %v2853_v0 }
  0x55   : > { %511 = vst [vmem:[#allocation2 + $0xe0] sm:$0xff] %v2853_v0  ;;  %512 = vst [vmem:[#allocation2 + $0x90] sm:$0xff] %v2853_v0 }
  0x56   : > { %513 = vst [vmem:[#allocation2 + $0x70] sm:$0xff] %v2853_v0  ;;  %514 = vst [vmem:[#allocation2 + $0xc0] sm:$0xff] %v2853_v0 }
  0x57   : > { %515 = vst [vmem:[#allocation2 + $0xa8] sm:$0xff] %v2853_v0  ;;  %516 = vst [vmem:[#allocation2 + $0xd0] sm:$0xff] %v2853_v0 }
  0x58   : > { %517 = vst [vmem:[#allocation2 + $0x10] sm:$0xff] %v2853_v0  ;;  %518 = vst [vmem:[#allocation2 + $0x28] sm:$0xff] %v2853_v0 }
  0x59   : > { %519 = vst [vmem:[#allocation2 + $0xa0] sm:$0xff] %v2853_v0  ;;  %520 = vst [vmem:[#allocation2 + $0xf8] sm:$0xff] %v2853_v0 }
  0x5a   : > { %521 = vst [vmem:[#allocation2 + $0x20] sm:$0xff] %v2853_v0  ;;  %522 = vst [vmem:[#allocation2 + $0x98] sm:$0xff] %v2853_v0 }
  0x5b PF: > { %v2669_v1 = vld [vmem:[%s3085_s9 + $0x78] sm:$0xff]   ;;  %v2673_v5 = vld [vmem:[%s3085_s9 + $0x70] sm:$0xff]   ;;  %v2677_v9 = vld [vmem:[%s3085_s9 + $0x68] sm:$0xff]   ;;  %p2224_p0 = scmp.ne.s32.totalorder %s2835_s20, 1 }
  0x5c   : > { %v2670_v2 = vld [vmem:[%s3085_s9 + $0xf8] sm:$0xff]   ;;  %2388 = vmatprep.subr.bf16.mxu0 %v2669_v1  ;;  %v2674_v6 = vld [vmem:[%s3085_s9 + $0xf0] sm:$0xff]   ;;  %v2678_v10 = vld [vmem:[%s3085_s9 + $0xe8] sm:$0xff]  }
  0x5d   : > { %v2671_v3 = vld [vmem:[%s3085_s9 + $0x38] sm:$0xff]   ;;  %2500 = vmatprep.subr.bf16.mxu1 %v2670_v2  ;;  %v2675_v7 = vld [vmem:[%s3085_s9 + $0x30] sm:$0xff]   ;;  %v2679_v11 = vld [vmem:[%s3085_s9 + $0x28] sm:$0xff]  }
  0x5e   : > { %v2672_v4 = vld [vmem:[%s3085_s9 + $0xb8] sm:$0xff]   ;;  %2389 = vmatpush3.bf16.msra.mxu0 %v2671_v3  ;;  %v2676_v8 = vld [vmem:[%s3085_s9 + $0xb0] sm:$0xff]   ;;  %v2680_v12 = vld [vmem:[%s3085_s9 + $0xa8] sm:$0xff]  }
  0x5f   : > { %2501 = vmatpush3.bf16.msra.mxu1 %v2672_v4  ;;  %2390 = vmatprep.subr.bf16.mxu0 %v2673_v5  ;;  %v2681_v13 = vld [vmem:[%s3085_s9 + $0x60] sm:$0xff]   ;;  %v2685_v17 = vld [vmem:[%s3085_s9 + $0x58] sm:$0xff]   ;;  %v2689_v21 = vld [vmem:[%s3085_s9 + $0x50] sm:$0xff]  }
  0x60   : > { %2502 = vmatprep.subr.bf16.mxu1 %v2674_v6  ;;  %v2682_v14 = vld [vmem:[%s3085_s9 + $0xe0] sm:$0xff]   ;;  %v2686_v18 = vld [vmem:[%s3085_s9 + $0xd8] sm:$0xff]   ;;  %v2690_v22 = vld [vmem:[%s3085_s9 + $0xd0] sm:$0xff]  }
  0x61   : > { %v2683_v15 = vld [vmem:[%s3085_s9 + $0x20] sm:$0xff]   ;;  %v2687_v19 = vld [vmem:[%s3085_s9 + $0x18] sm:$0xff]   ;;  %v2691_v23 = vld [vmem:[%s3085_s9 + $0x10] sm:$0xff]  }
  0x62   : > { %2391 = vmatpush3.bf16.msra.mxu0 %v2675_v7  ;;  %v2684_v16 = vld [vmem:[%s3085_s9 + $0xa0] sm:$0xff]   ;;  %v2688_v20 = vld [vmem:[%s3085_s9 + $0x98] sm:$0xff]   ;;  %v2692_v24 = vld [vmem:[%s3085_s9 + $0x90] sm:$0xff]  }
  0x63   : > { %2503 = vmatpush3.bf16.msra.mxu1 %v2676_v8  ;;  %2392 = vmatprep.subr.bf16.mxu0 %v2677_v9  ;;  %v2693_v25 = vld [vmem:[%s3085_s9 + $0x48] sm:$0xff]   ;;  %v2697_v29 = vld [vmem:[%s3085_s9 + $0x40] sm:$0xff]  }
  0x64   : > { %2504 = vmatprep.subr.bf16.mxu1 %v2678_v10  ;;  %v2694_v26 = vld [vmem:[%s3085_s9 + $0xc8] sm:$0xff]   ;;  %v2698_v30 = vld [vmem:[%s3085_s9 + $0xc0] sm:$0xff]  }
  0x65   : > { %v2695_v27 = vld [vmem:[%s3085_s9 + $0x8] sm:$0xff]   ;;  %v2699_v31 = vld [vmem:[%s3085_s9] sm:$0xff]  }
  0x66   : > { %2393 = vmatpush3.bf16.msra.mxu0 %v2679_v11  ;;  %v2696_v28 = vld [vmem:[%s3085_s9 + $0x88] sm:$0xff]   ;;  %v2700_v32 = vld [vmem:[%s3085_s9 + $0x80] sm:$0xff]  }
  0x67   : > { %2505 = vmatpush3.bf16.msra.mxu1 %v2680_v12  ;;  %2394 = vmatprep.subr.bf16.mxu0 %v2681_v13  ;;  %v2701_v33 = vld [vmem:[%s3103_s30] ss:$16 sps:$4 sm:$0xff]   ;;  %v2703_v34 = vld [vmem:[%s3103_s30 + $0x4] ss:$16 sps:$4 sm:$0xff]   ;;  %v2704_v35 = vld [vmem:[%s3103_s30 + $0x8] ss:$16 sps:$4 sm:$0xff]  }
  0x68   : > { %2506 = vmatprep.subr.bf16.mxu1 %v2682_v14  ;;  %v2706_v36 = vld [vmem:[%s3103_s30 + $0xc] ss:$16 sps:$4 sm:$0xff]   ;;  %1227 = vmatprep.mubr.bf16.mxu0 %v2703_v34  ;;  %v2707_v37 = vld [vmem:[%s3103_s30 + $0x24] ss:$16 sps:$4 sm:$0xff]   ;;  %v2711_v39 = vld [vmem:[%s3103_s30 + $0x20] ss:$16 sps:$4 sm:$0xff]  }
  0x69   : > { %1388 = vmatprep.mubr.bf16.mxu1 %v2706_v36  ;;  %v2709_v38 = vld [vmem:[%s3103_s30 + $0x2c] ss:$16 sps:$4 sm:$0xff]   ;;  %v2712_v40 = vld [vmem:[%s3103_s30 + $0x28] ss:$16 sps:$4 sm:$0xff]   ;;  %v2713_v41 = vld [vmem:[%s3103_s30 + $0x44] ss:$16 sps:$4 sm:$0xff]  }
  0x6a   : > { %2395 = vmatpush3.bf16.msra.mxu0 %v2683_v15  ;;  %v2715_v42 = vld [vmem:[%s3103_s30 + $0x4c] ss:$16 sps:$4 sm:$0xff]   ;;  %v2717_v43 = vld [vmem:[%s3103_s30 + $0x40] ss:$16 sps:$4 sm:$0xff]   ;;  %v2718_v44 = vld [vmem:[%s3103_s30 + $0x48] ss:$16 sps:$4 sm:$0xff]  }
  0x6b   : > { %2507 = vmatpush3.bf16.msra.mxu1 %v2684_v16  ;;  %2396 = vmatprep.subr.bf16.mxu0 %v2685_v17  ;;  %v2719_v45 = vld [vmem:[%s3103_s30 + $0x64] ss:$16 sps:$4 sm:$0xff]   ;;  %v2721_v46 = vld [vmem:[%s3103_s30 + $0x6c] ss:$16 sps:$4 sm:$0xff]   ;;  %v2723_v47 = vld [vmem:[%s3103_s30 + $0x60] ss:$16 sps:$4 sm:$0xff]  }
  0x6c   : > { %2508 = vmatprep.subr.bf16.mxu1 %v2686_v18  ;;  %v2724_v48 = vld [vmem:[%s3103_s30 + $0x68] ss:$16 sps:$4 sm:$0xff]   ;;  %v2725_v49 = vld [vmem:[%s3103_s30 + $0x84] ss:$16 sps:$4 sm:$0xff]   ;;  %v2727_v50 = vld [vmem:[%s3103_s30 + $0x8c] ss:$16 sps:$4 sm:$0xff]  }
  0x6d   : > { %v2729_v51 = vld [vmem:[%s3103_s30 + $0x80] ss:$16 sps:$4 sm:$0xff]   ;;  %v2730_v52 = vld [vmem:[%s3103_s30 + $0x88] ss:$16 sps:$4 sm:$0xff]   ;;  %v2731_v53 = vld [vmem:[%s3103_s30 + $0xa4] ss:$16 sps:$4 sm:$0xff]  }
  0x6e   : > { %2397 = vmatpush3.bf16.msra.mxu0 %v2687_v19  ;;  %v2733_v54 = vld [vmem:[%s3103_s30 + $0xac] ss:$16 sps:$4 sm:$0xff]   ;;  %v2735_v55 = vld [vmem:[%s3103_s30 + $0xa0] ss:$16 sps:$4 sm:$0xff]   ;;  %v2736_v56 = vld [vmem:[%s3103_s30 + $0xa8] ss:$16 sps:$4 sm:$0xff]  }
  0x6f   : > { %2509 = vmatpush3.bf16.msra.mxu1 %v2688_v20  ;;  %2398 = vmatprep.subr.bf16.mxu0 %v2689_v21  ;;  %v2737_v57 = vld [vmem:[%s3103_s30 + $0xc4] ss:$16 sps:$4 sm:$0xff]   ;;  %v2739_v58 = vld [vmem:[%s3103_s30 + $0xcc] ss:$16 sps:$4 sm:$0xff]   ;;  %v2741_v59 = vld [vmem:[%s3103_s30 + $0xc0] ss:$16 sps:$4 sm:$0xff]  }
  0x70   : > { %2510 = vmatprep.subr.bf16.mxu1 %v2690_v22  ;;  %v2742_v60 = vld [vmem:[%s3103_s30 + $0xc8] ss:$16 sps:$4 sm:$0xff]   ;;  %v2743_v61 = vld [vmem:[%s3103_s30 + $0xe4] ss:$16 sps:$4 sm:$0xff]   ;;  %v2745_v62 = vld [vmem:[%s3103_s30 + $0xec] ss:$16 sps:$4 sm:$0xff]  }
  0x71   : > { %v2747_v63 = vld [vmem:[%s3103_s30 + $0xe0] ss:$16 sps:$4 sm:$0xff]   ;;  %v2748_v0 = vld [vmem:[%s3103_s30 + $0xe8] ss:$16 sps:$4 sm:$0xff]   ;;  %v2749_v1 = vld [vmem:[%s3103_s30 + $0x104] ss:$16 sps:$4 sm:$0xff]  }
  0x72   : > { %2399 = vmatpush3.bf16.msra.mxu0 %v2691_v23  ;;  %v2751_v2 = vld [vmem:[%s3103_s30 + $0x10c] ss:$16 sps:$4 sm:$0xff]   ;;  %v2753_v3 = vld [vmem:[%s3103_s30 + $0x100] ss:$16 sps:$4 sm:$0xff]   ;;  %v2754_v4 = vld [vmem:[%s3103_s30 + $0x108] ss:$16 sps:$4 sm:$0xff]  }
  0x73   : > { %2511 = vmatpush3.bf16.msra.mxu1 %v2692_v24  ;;  %2400 = vmatprep.subr.bf16.mxu0 %v2693_v25  ;;  %v2755_v5 = vld [vmem:[%s3103_s30 + $0x124] ss:$16 sps:$4 sm:$0xff]   ;;  %v2757_v6 = vld [vmem:[%s3103_s30 + $0x12c] ss:$16 sps:$4 sm:$0xff]   ;;  %v2759_v7 = vld [vmem:[%s3103_s30 + $0x120] ss:$16 sps:$4 sm:$0xff]  }
  0x74   : > { %2512 = vmatprep.subr.bf16.mxu1 %v2694_v26  ;;  %v2760_v8 = vld [vmem:[%s3103_s30 + $0x128] ss:$16 sps:$4 sm:$0xff]   ;;  %v2761_v9 = vld [vmem:[%s3103_s30 + $0x144] ss:$16 sps:$4 sm:$0xff]   ;;  %v2763_v10 = vld [vmem:[%s3103_s30 + $0x14c] ss:$16 sps:$4 sm:$0xff]  }
  0x75   : > { %v2765_v11 = vld [vmem:[%s3103_s30 + $0x140] ss:$16 sps:$4 sm:$0xff]   ;;  %v2766_v12 = vld [vmem:[%s3103_s30 + $0x148] ss:$16 sps:$4 sm:$0xff]   ;;  %v2767_v13 = vld [vmem:[%s3103_s30 + $0x164] ss:$16 sps:$4 sm:$0xff]  }
  0x76   : > { %2401 = vmatpush3.bf16.msra.mxu0 %v2695_v27  ;;  %v2769_v14 = vld [vmem:[%s3103_s30 + $0x16c] ss:$16 sps:$4 sm:$0xff]   ;;  %v2771_v15 = vld [vmem:[%s3103_s30 + $0x160] ss:$16 sps:$4 sm:$0xff]   ;;  %v2772_v16 = vld [vmem:[%s3103_s30 + $0x168] ss:$16 sps:$4 sm:$0xff]  }
  0x77   : > { %2513 = vmatpush3.bf16.msra.mxu1 %v2696_v28  ;;  %2402 = vmatprep.subr.bf16.mxu0 %v2697_v29  ;;  %v2773_v17 = vld [vmem:[%s3103_s30 + $0x184] ss:$16 sps:$4 sm:$0xff]   ;;  %v2775_v18 = vld [vmem:[%s3103_s30 + $0x18c] ss:$16 sps:$4 sm:$0xff]   ;;  %v2777_v19 = vld [vmem:[%s3103_s30 + $0x180] ss:$16 sps:$4 sm:$0xff]  }
  0x78   : > { %2514 = vmatprep.subr.bf16.mxu1 %v2698_v30  ;;  %v2778_v20 = vld [vmem:[%s3103_s30 + $0x188] ss:$16 sps:$4 sm:$0xff]   ;;  %v2779_v21 = vld [vmem:[%s3103_s30 + $0x1a4] ss:$16 sps:$4 sm:$0xff]   ;;  %v2781_v22 = vld [vmem:[%s3103_s30 + $0x1ac] ss:$16 sps:$4 sm:$0xff]  }
  0x79   : > { %v2783_v23 = vld [vmem:[%s3103_s30 + $0x1a0] ss:$16 sps:$4 sm:$0xff]   ;;  %v2784_v24 = vld [vmem:[%s3103_s30 + $0x1a8] ss:$16 sps:$4 sm:$0xff]   ;;  %v2785_v25 = vld [vmem:[%s3103_s30 + $0x1c4] ss:$16 sps:$4 sm:$0xff]  }
  0x7a   : > { %2403 = vmatpush3.bf16.msra.mxu0 %v2699_v31  ;;  %v2787_v26 = vld [vmem:[%s3103_s30 + $0x1cc] ss:$16 sps:$4 sm:$0xff]   ;;  %v2789_v27 = vld [vmem:[%s3103_s30 + $0x1c0] ss:$16 sps:$4 sm:$0xff]   ;;  %v2790_v28 = vld [vmem:[%s3103_s30 + $0x1c8] ss:$16 sps:$4 sm:$0xff]  }
  0x7b   : > { %2515 = vmatpush3.bf16.msra.mxu1 %v2700_v32  ;;  %v2791_v29 = vld [vmem:[%s3103_s30 + $0x1e4] ss:$16 sps:$4 sm:$0xff]   ;;  %v2793_v30 = vld [vmem:[%s3103_s30 + $0x1ec] ss:$16 sps:$4 sm:$0xff]   ;;  %v2795_v31 = vld [vmem:[%s3103_s30 + $0x1e0] ss:$16 sps:$4 sm:$0xff]  }
  0x7c   : > { %v2796_v32 = vld [vmem:[%s3103_s30 + $0x1e8] ss:$16 sps:$4 sm:$0xff]  }
  0x7d   : > { %1228 = vmatmul.mubr.bf16.vlgmr.msra.gmra.mxu0 %v2701_v33 }
  0x7e   : > { %1389 = vmatmul.mubr.bf16.vlgmr.msra.gmra.mxu1 %v2704_v35  ;;  %1235 = vmatprep.mubr.bf16.mxu0 %v2707_v37 }
  0x7f   : > { %1396 = vmatprep.mubr.bf16.mxu1 %v2709_v38 }
  0x85   : > { %1236 = vmatmul.mubr.bf16.gmra.mxu0 %v2711_v39 }
  0x86   : > { %1397 = vmatmul.mubr.bf16.gmra.mxu1 %v2712_v40  ;;  %1243 = vmatprep.mubr.bf16.mxu0 %v2713_v41  ;;  %v523_v40 = vld [vmem:[#allocation2 + $0xb0] sm:$0xff] }
  0x87   : > { %1404 = vmatprep.mubr.bf16.mxu1 %v2715_v42 }
  0x8d   : > { %1244 = vmatmul.mubr.bf16.gmra.mxu0 %v2717_v43 }
  0x8e   : > { %1405 = vmatmul.mubr.bf16.gmra.mxu1 %v2718_v44  ;;  %1251 = vmatprep.mubr.bf16.mxu0 %v2719_v45 }
  0x8f   : > { %1412 = vmatprep.mubr.bf16.mxu1 %v2721_v46 }
  0x95   : > { %1252 = vmatmul.mubr.bf16.gmra.mxu0 %v2723_v47 }
  0x96   : > { %1413 = vmatmul.mubr.bf16.gmra.mxu1 %v2724_v48  ;;  %1259 = vmatprep.mubr.bf16.mxu0 %v2725_v49  ;;  %v524_v49 = vld [vmem:[#allocation2] sm:$0xff] }
  0x97   : > { %1420 = vmatprep.mubr.bf16.mxu1 %v2727_v50 }
  0x9d   : > { %1260 = vmatmul.mubr.bf16.gmra.mxu0 %v2729_v51 }
  0x9e   : > { %1421 = vmatmul.mubr.bf16.gmra.mxu1 %v2730_v52  ;;  %1267 = vmatprep.mubr.bf16.mxu0 %v2731_v53 }
  0x9f   : > { %1428 = vmatprep.mubr.bf16.mxu1 %v2733_v54 }
  0xa5   : > { %1268 = vmatmul.mubr.bf16.gmra.mxu0 %v2735_v55 }
  0xa6   : > { %1429 = vmatmul.mubr.bf16.gmra.mxu1 %v2736_v56  ;;  %1275 = vmatprep.mubr.bf16.mxu0 %v2737_v57 }
  0xa7   : > { %1436 = vmatprep.mubr.bf16.mxu1 %v2739_v58  ;;  %v525_v58 = vld [vmem:[#allocation2 + $0xd8] sm:$0xff] }
  0xad   : > { %1276 = vmatmul.mubr.bf16.gmra.mxu0 %v2741_v59 }
  0xae   : > { %1437 = vmatmul.mubr.bf16.gmra.mxu1 %v2742_v60  ;;  %1283 = vmatprep.mubr.bf16.mxu0 %v2743_v61 }
  0xaf   : > { %1444 = vmatprep.mubr.bf16.mxu1 %v2745_v62 }
  0xb5   : > { %1284 = vmatmul.mubr.bf16.gmra.mxu0 %v2747_v63 }
  0xb6   : > { %1445 = vmatmul.mubr.bf16.gmra.mxu1 %v2748_v0  ;;  %1291 = vmatprep.mubr.bf16.mxu0 %v2749_v1 }
  0xb7   : > { %1452 = vmatprep.mubr.bf16.mxu1 %v2751_v2 }
  0xbd   : > { %1292 = vmatmul.mubr.bf16.gmra.mxu0 %v2753_v3  ;;  %v526_v3 = vld [vmem:[#allocation2 + $0x18] sm:$0xff] }
  0xbe   : > { %1453 = vmatmul.mubr.bf16.gmra.mxu1 %v2754_v4  ;;  %1299 = vmatprep.mubr.bf16.mxu0 %v2755_v5 }
  0xbf   : > { %1460 = vmatprep.mubr.bf16.mxu1 %v2757_v6 }
  0xc5   : > { %1300 = vmatmul.mubr.bf16.gmra.mxu0 %v2759_v7 }
  0xc6   : > { %1461 = vmatmul.mubr.bf16.gmra.mxu1 %v2760_v8  ;;  %1307 = vmatprep.mubr.bf16.mxu0 %v2761_v9 }
  0xc7   : > { %1468 = vmatprep.mubr.bf16.mxu1 %v2763_v10 }
  0xcd   : > { %1308 = vmatmul.mubr.bf16.gmra.mxu0 %v2765_v11 }
  0xce   : > { %1469 = vmatmul.mubr.bf16.gmra.mxu1 %v2766_v12  ;;  %1315 = vmatprep.mubr.bf16.mxu0 %v2767_v13  ;;  %v527_v12 = vld [vmem:[#allocation2 + $0x50] sm:$0xff] }
  0xcf   : > { %1476 = vmatprep.mubr.bf16.mxu1 %v2769_v14 }
  0xd5   : > { %1316 = vmatmul.mubr.bf16.gmra.mxu0 %v2771_v15 }
  0xd6   : > { %1477 = vmatmul.mubr.bf16.gmra.mxu1 %v2772_v16  ;;  %1323 = vmatprep.mubr.bf16.mxu0 %v2773_v17 }
  0xd7   : > { %1484 = vmatprep.mubr.bf16.mxu1 %v2775_v18 }
  0xdd   : > { %1324 = vmatmul.mubr.bf16.gmra.mxu0 %v2777_v19 }
  0xde   : > { %1485 = vmatmul.mubr.bf16.gmra.mxu1 %v2778_v20  ;;  %1331 = vmatprep.mubr.bf16.mxu0 %v2779_v21  ;;  %v528_v21 = vld [vmem:[#allocation2 + $0x68] sm:$0xff] }
  0xdf   : > { %1492 = vmatprep.mubr.bf16.mxu1 %v2781_v22 }
  0xe5   : > { %1332 = vmatmul.mubr.bf16.gmra.mxu0 %v2783_v23 }
  0xe6   : > { %1493 = vmatmul.mubr.bf16.gmra.mxu1 %v2784_v24  ;;  %1339 = vmatprep.mubr.bf16.mxu0 %v2785_v25 }
  0xe7   : > { %1500 = vmatprep.mubr.bf16.mxu1 %v2787_v26 }
  0xed   : > { %1340 = vmatmul.mubr.bf16.gmra.mxu0 %v2789_v27 }
  0xee   : > { %1501 = vmatmul.mubr.bf16.gmra.mxu1 %v2790_v28  ;;  %1347 = vmatprep.mubr.bf16.mxu0 %v2791_v29 }
  0xef   : > { %1508 = vmatprep.mubr.bf16.mxu1 %v2793_v30  ;;  %v529_v30 = vld [vmem:[#allocation2 + $0x30] sm:$0xff] }
  0xf5   : > { %1348 = vmatmul.mubr.bf16.gmra.mxu0 %v2795_v31 }
  0xf6   : > { %1509 = vmatmul.mubr.bf16.gmra.mxu1 %v2796_v32 }
 0x13d   : > { %v2404_v33 = vpop.f32.mrf.mxu0 }
 0x13e   : > { %v2516_v34 = vpop.f32.mrf.mxu1 }
 0x13f   : > { %v2405_v35 = vpop.f32.mrf.mxu0 }
 0x140   : > { %v2406_v36 = vadd.f32 %v2405_v35, %v2404_v33  ;;  %v2517_v37 = vpop.f32.mrf.mxu1 }
 0x141   : > { %v2518_v38 = vadd.f32 %v2517_v37, %v2516_v34  ;;  %v2407_v39 = vpop.f32.mrf.mxu0 }
 0x142   : > { %v2519_v41 = vpop.f32.mrf.mxu1 }
 0x143   : > { %v1391_v42 = vadd.f32 %v2518_v38, %v2406_v36  ;;  %v2408_v43 = vpop.f32.mrf.mxu0 }
 0x144   : > { %v2409_v44 = vadd.f32 %v2408_v43, %v2407_v39  ;;  %v2520_v45 = vpop.f32.mrf.mxu1  ;;  %v530_v39 = vld [vmem:[#allocation2 + $0x48] sm:$0xff] }
 0x145   : > { %v1517_v46 = vadd.f32 %v1391_v42, %v523_v40  ;;  %v2521_v47 = vadd.f32 %v2520_v45, %v2519_v41  ;;  %v2410_v48 = vpop.f32.mrf.mxu0 }
 0x146   : > { %v2522_v50 = vpop.f32.mrf.mxu1 }
 0x147   : > { %1549 = vst [vmem:[#allocation2 + $0xb0] sm:$0xff] %v1517_v46  ;;  %v1394_v51 = vadd.f32 %v2521_v47, %v2409_v44  ;;  %v2411_v52 = vpop.f32.mrf.mxu0 }
 0x148   : > { %v2412_v53 = vadd.f32 %v2411_v52, %v2410_v48  ;;  %v2523_v54 = vpop.f32.mrf.mxu1  ;;  %v531_v48 = vld [vmem:[#allocation2 + $0x80] sm:$0xff] }
 0x149   : > { %v1518_v55 = vadd.f32 %v1394_v51, %v524_v49  ;;  %v2524_v56 = vadd.f32 %v2523_v54, %v2522_v50  ;;  %v2413_v57 = vpop.f32.mrf.mxu0 }
 0x14a   : > { %v2525_v59 = vpop.f32.mrf.mxu1 }
 0x14b   : > { %1550 = vst [vmem:[#allocation2] sm:$0xff] %v1518_v55  ;;  %v1399_v60 = vadd.f32 %v2524_v56, %v2412_v53  ;;  %v2414_v61 = vpop.f32.mrf.mxu0 }
 0x14c   : > { %v2415_v62 = vadd.f32 %v2414_v61, %v2413_v57  ;;  %v2526_v63 = vpop.f32.mrf.mxu1  ;;  %v532_v57 = vld [vmem:[#allocation2 + $0x88] sm:$0xff] }
 0x14d   : > { %v1519_v0 = vadd.f32 %v1399_v60, %v525_v58  ;;  %v2527_v1 = vadd.f32 %v2526_v63, %v2525_v59  ;;  %v2416_v2 = vpop.f32.mrf.mxu0 }
 0x14e   : > { %v2528_v4 = vpop.f32.mrf.mxu1 }
 0x14f   : > { %1551 = vst [vmem:[#allocation2 + $0xd8] sm:$0xff] %v1519_v0  ;;  %v1402_v5 = vadd.f32 %v2527_v1, %v2415_v62  ;;  %v2417_v6 = vpop.f32.mrf.mxu0 }
 0x150   : > { %v2418_v7 = vadd.f32 %v2417_v6, %v2416_v2  ;;  %v2529_v8 = vpop.f32.mrf.mxu1  ;;  %v533_v2 = vld [vmem:[#allocation2 + $0xe8] sm:$0xff] }
 0x151   : > { %v1520_v9 = vadd.f32 %v1402_v5, %v526_v3  ;;  %v2530_v10 = vadd.f32 %v2529_v8, %v2528_v4  ;;  %v2419_v11 = vpop.f32.mrf.mxu0 }
 0x152   : > { %v2531_v13 = vpop.f32.mrf.mxu1 }
 0x153   : > { %1552 = vst [vmem:[#allocation2 + $0x18] sm:$0xff] %v1520_v9  ;;  %v1407_v14 = vadd.f32 %v2530_v10, %v2418_v7  ;;  %v2420_v15 = vpop.f32.mrf.mxu0 }
 0x154   : > { %v2421_v16 = vadd.f32 %v2420_v15, %v2419_v11  ;;  %v2532_v17 = vpop.f32.mrf.mxu1  ;;  %v534_v11 = vld [vmem:[#allocation2 + $0xb8] sm:$0xff] }
 0x155   : > { %v1521_v18 = vadd.f32 %v1407_v14, %v527_v12  ;;  %v2533_v19 = vadd.f32 %v2532_v17, %v2531_v13  ;;  %v2422_v20 = vpop.f32.mrf.mxu0 }
 0x156   : > { %v2534_v22 = vpop.f32.mrf.mxu1 }
 0x157   : > { %1553 = vst [vmem:[#allocation2 + $0x50] sm:$0xff] %v1521_v18  ;;  %v1410_v23 = vadd.f32 %v2533_v19, %v2421_v16  ;;  %v2423_v24 = vpop.f32.mrf.mxu0 }
 0x158   : > { %v2424_v25 = vadd.f32 %v2423_v24, %v2422_v20  ;;  %v2535_v26 = vpop.f32.mrf.mxu1  ;;  %v535_v20 = vld [vmem:[#allocation2 + $0x60] sm:$0xff] }
 0x159   : > { %v1522_v27 = vadd.f32 %v1410_v23, %v528_v21  ;;  %v2536_v28 = vadd.f32 %v2535_v26, %v2534_v22  ;;  %v2425_v29 = vpop.f32.mrf.mxu0 }
 0x15a   : > { %v2537_v31 = vpop.f32.mrf.mxu1 }
 0x15b   : > { %1554 = vst [vmem:[#allocation2 + $0x68] sm:$0xff] %v1522_v27  ;;  %v1415_v32 = vadd.f32 %v2536_v28, %v2424_v25  ;;  %v2426_v33 = vpop.f32.mrf.mxu0 }
 0x15c   : > { %v2427_v34 = vadd.f32 %v2426_v33, %v2425_v29  ;;  %v2538_v35 = vpop.f32.mrf.mxu1  ;;  %v536_v29 = vld [vmem:[#allocation2 + $0xf0] sm:$0xff] }
 0x15d   : > { %v1523_v36 = vadd.f32 %v1415_v32, %v529_v30  ;;  %v2539_v37 = vadd.f32 %v2538_v35, %v2537_v31  ;;  %v2428_v38 = vpop.f32.mrf.mxu0 }
 0x15e   : > { %v2540_v40 = vpop.f32.mrf.mxu1 }
 0x15f   : > { %1555 = vst [vmem:[#allocation2 + $0x30] sm:$0xff] %v1523_v36  ;;  %v1418_v41 = vadd.f32 %v2539_v37, %v2427_v34  ;;  %v2429_v42 = vpop.f32.mrf.mxu0 }
 0x160   : > { %v2430_v43 = vadd.f32 %v2429_v42, %v2428_v38  ;;  %v2541_v44 = vpop.f32.mrf.mxu1  ;;  %v537_v38 = vld [vmem:[#allocation2 + $0x8] sm:$0xff] }
 0x161   : > { %v1524_v45 = vadd.f32 %v1418_v41, %v530_v39  ;;  %v2542_v46 = vadd.f32 %v2541_v44, %v2540_v40  ;;  %v2431_v47 = vpop.f32.mrf.mxu0 }
 0x162   : > { %v2543_v49 = vpop.f32.mrf.mxu1 }
 0x163   : > { %1556 = vst [vmem:[#allocation2 + $0x48] sm:$0xff] %v1524_v45  ;;  %v1423_v50 = vadd.f32 %v2542_v46, %v2430_v43  ;;  %v2432_v51 = vpop.f32.mrf.mxu0 }
 0x164   : > { %v2433_v52 = vadd.f32 %v2432_v51, %v2431_v47  ;;  %v2544_v53 = vpop.f32.mrf.mxu1  ;;  %v538_v47 = vld [vmem:[#allocation2 + $0x78] sm:$0xff] }
 0x165   : > { %v1525_v54 = vadd.f32 %v1423_v50, %v531_v48  ;;  %v2545_v55 = vadd.f32 %v2544_v53, %v2543_v49  ;;  %v2434_v56 = vpop.f32.mrf.mxu0 }
 0x166   : > { %v2546_v58 = vpop.f32.mrf.mxu1 }
 0x167   : > { %1557 = vst [vmem:[#allocation2 + $0x80] sm:$0xff] %v1525_v54  ;;  %v1426_v59 = vadd.f32 %v2545_v55, %v2433_v52  ;;  %v2435_v60 = vpop.f32.mrf.mxu0 }
 0x168   : > { %v2436_v61 = vadd.f32 %v2435_v60, %v2434_v56  ;;  %v2547_v62 = vpop.f32.mrf.mxu1  ;;  %v539_v56 = vld [vmem:[#allocation2 + $0x38] sm:$0xff] }
 0x169   : > { %v1526_v63 = vadd.f32 %v1426_v59, %v532_v57  ;;  %v2548_v0 = vadd.f32 %v2547_v62, %v2546_v58  ;;  %v2437_v1 = vpop.f32.mrf.mxu0 }
 0x16a   : > { %v2549_v3 = vpop.f32.mrf.mxu1 }
 0x16b   : > { %1558 = vst [vmem:[#allocation2 + $0x88] sm:$0xff] %v1526_v63  ;;  %v1431_v4 = vadd.f32 %v2548_v0, %v2436_v61  ;;  %v2438_v5 = vpop.f32.mrf.mxu0 }
 0x16c   : > { %v2439_v6 = vadd.f32 %v2438_v5, %v2437_v1  ;;  %v2550_v7 = vpop.f32.mrf.mxu1  ;;  %v540_v1 = vld [vmem:[#allocation2 + $0x58] sm:$0xff] }
 0x16d   : > { %v1527_v8 = vadd.f32 %v1431_v4, %v533_v2  ;;  %v2551_v9 = vadd.f32 %v2550_v7, %v2549_v3  ;;  %v2440_v10 = vpop.f32.mrf.mxu0 }
 0x16e   : > { %v2552_v12 = vpop.f32.mrf.mxu1 }
 0x16f   : > { %1559 = vst [vmem:[#allocation2 + $0xe8] sm:$0xff] %v1527_v8  ;;  %v1434_v13 = vadd.f32 %v2551_v9, %v2439_v6  ;;  %v2441_v14 = vpop.f32.mrf.mxu0 }
 0x170   : > { %v2442_v15 = vadd.f32 %v2441_v14, %v2440_v10  ;;  %v2553_v16 = vpop.f32.mrf.mxu1  ;;  %v541_v10 = vld [vmem:[#allocation2 + $0x40] sm:$0xff] }
 0x171   : > { %v1528_v17 = vadd.f32 %v1434_v13, %v534_v11  ;;  %v2554_v18 = vadd.f32 %v2553_v16, %v2552_v12  ;;  %v2443_v19 = vpop.f32.mrf.mxu0 }
 0x172   : > { %v2555_v21 = vpop.f32.mrf.mxu1 }
 0x173   : > { %1560 = vst [vmem:[#allocation2 + $0xb8] sm:$0xff] %v1528_v17  ;;  %v1439_v22 = vadd.f32 %v2554_v18, %v2442_v15  ;;  %v2444_v23 = vpop.f32.mrf.mxu0 }
 0x174   : > { %v2445_v24 = vadd.f32 %v2444_v23, %v2443_v19  ;;  %v2556_v25 = vpop.f32.mrf.mxu1  ;;  %v542_v19 = vld [vmem:[#allocation2 + $0xc8] sm:$0xff] }
 0x175   : > { %v1529_v26 = vadd.f32 %v1439_v22, %v535_v20  ;;  %v2557_v27 = vadd.f32 %v2556_v25, %v2555_v21  ;;  %v2446_v28 = vpop.f32.mrf.mxu0 }
 0x176   : > { %v2558_v30 = vpop.f32.mrf.mxu1 }
 0x177   : > { %1561 = vst [vmem:[#allocation2 + $0x60] sm:$0xff] %v1529_v26  ;;  %v1442_v31 = vadd.f32 %v2557_v27, %v2445_v24  ;;  %v2447_v32 = vpop.f32.mrf.mxu0 }
 0x178   : > { %v2448_v33 = vadd.f32 %v2447_v32, %v2446_v28  ;;  %v2559_v34 = vpop.f32.mrf.mxu1  ;;  %v543_v28 = vld [vmem:[#allocation2 + $0xe0] sm:$0xff] }
 0x179   : > { %v1530_v35 = vadd.f32 %v1442_v31, %v536_v29  ;;  %v2560_v36 = vadd.f32 %v2559_v34, %v2558_v30  ;;  %v2449_v37 = vpop.f32.mrf.mxu0 }
 0x17a   : > { %v2561_v39 = vpop.f32.mrf.mxu1 }
 0x17b   : > { %1562 = vst [vmem:[#allocation2 + $0xf0] sm:$0xff] %v1530_v35  ;;  %v1447_v40 = vadd.f32 %v2560_v36, %v2448_v33  ;;  %v2450_v41 = vpop.f32.mrf.mxu0 }
 0x17c   : > { %v2451_v42 = vadd.f32 %v2450_v41, %v2449_v37  ;;  %v2562_v43 = vpop.f32.mrf.mxu1  ;;  %v544_v37 = vld [vmem:[#allocation2 + $0x90] sm:$0xff] }
 0x17d   : > { %v1531_v44 = vadd.f32 %v1447_v40, %v537_v38  ;;  %v2563_v45 = vadd.f32 %v2562_v43, %v2561_v39  ;;  %v2452_v46 = vpop.f32.mrf.mxu0 }
 0x17e   : > { %v2564_v48 = vpop.f32.mrf.mxu1 }
 0x17f   : > { %1563 = vst [vmem:[#allocation2 + $0x8] sm:$0xff] %v1531_v44  ;;  %v1450_v49 = vadd.f32 %v2563_v45, %v2451_v42  ;;  %v2453_v50 = vpop.f32.mrf.mxu0 }
 0x180   : > { %v2454_v51 = vadd.f32 %v2453_v50, %v2452_v46  ;;  %v2565_v52 = vpop.f32.mrf.mxu1  ;;  %v545_v46 = vld [vmem:[#allocation2 + $0x70] sm:$0xff] }
 0x181   : > { %v1532_v53 = vadd.f32 %v1450_v49, %v538_v47  ;;  %v2566_v54 = vadd.f32 %v2565_v52, %v2564_v48  ;;  %v2455_v55 = vpop.f32.mrf.mxu0 }
 0x182   : > { %v2567_v57 = vpop.f32.mrf.mxu1 }
 0x183   : > { %1564 = vst [vmem:[#allocation2 + $0x78] sm:$0xff] %v1532_v53  ;;  %v1455_v58 = vadd.f32 %v2566_v54, %v2454_v51  ;;  %v2456_v59 = vpop.f32.mrf.mxu0 }
 0x184   : > { %v2457_v60 = vadd.f32 %v2456_v59, %v2455_v55  ;;  %v2568_v61 = vpop.f32.mrf.mxu1  ;;  %v546_v55 = vld [vmem:[#allocation2 + $0xc0] sm:$0xff] }
 0x185   : > { %v1533_v62 = vadd.f32 %v1455_v58, %v539_v56  ;;  %v2569_v63 = vadd.f32 %v2568_v61, %v2567_v57  ;;  %v2458_v0 = vpop.f32.mrf.mxu0 }
 0x186   : > { %v2570_v2 = vpop.f32.mrf.mxu1 }
 0x187   : > { %1565 = vst [vmem:[#allocation2 + $0x38] sm:$0xff] %v1533_v62  ;;  %v1458_v3 = vadd.f32 %v2569_v63, %v2457_v60  ;;  %v2459_v4 = vpop.f32.mrf.mxu0 }
 0x188   : > { %v2460_v5 = vadd.f32 %v2459_v4, %v2458_v0  ;;  %v2571_v6 = vpop.f32.mrf.mxu1  ;;  %v547_v0 = vld [vmem:[#allocation2 + $0xa8] sm:$0xff] }
 0x189   : > { %v1534_v7 = vadd.f32 %v1458_v3, %v540_v1  ;;  %v2572_v8 = vadd.f32 %v2571_v6, %v2570_v2  ;;  %v2461_v9 = vpop.f32.mrf.mxu0 }
 0x18a   : > { %v2573_v11 = vpop.f32.mrf.mxu1 }
 0x18b   : > { %1566 = vst [vmem:[#allocation2 + $0x58] sm:$0xff] %v1534_v7  ;;  %v1463_v12 = vadd.f32 %v2572_v8, %v2460_v5  ;;  %v2462_v13 = vpop.f32.mrf.mxu0 }
 0x18c   : > { %v2463_v14 = vadd.f32 %v2462_v13, %v2461_v9  ;;  %v2574_v15 = vpop.f32.mrf.mxu1  ;;  %v548_v9 = vld [vmem:[#allocation2 + $0xd0] sm:$0xff] }
 0x18d   : > { %v1535_v16 = vadd.f32 %v1463_v12, %v541_v10  ;;  %v2575_v17 = vadd.f32 %v2574_v15, %v2573_v11  ;;  %v2464_v18 = vpop.f32.mrf.mxu0 }
 0x18e   : > { %v2576_v20 = vpop.f32.mrf.mxu1 }
 0x18f   : > { %1567 = vst [vmem:[#allocation2 + $0x40] sm:$0xff] %v1535_v16  ;;  %v1466_v21 = vadd.f32 %v2575_v17, %v2463_v14  ;;  %v2465_v22 = vpop.f32.mrf.mxu0 }
 0x190   : > { %v2466_v23 = vadd.f32 %v2465_v22, %v2464_v18  ;;  %v2577_v24 = vpop.f32.mrf.mxu1  ;;  %v549_v18 = vld [vmem:[#allocation2 + $0x10] sm:$0xff] }
 0x191   : > { %v1536_v25 = vadd.f32 %v1466_v21, %v542_v19  ;;  %v2578_v26 = vadd.f32 %v2577_v24, %v2576_v20  ;;  %v2467_v27 = vpop.f32.mrf.mxu0 }
 0x192   : > { %v2579_v29 = vpop.f32.mrf.mxu1 }
 0x193   : > { %1568 = vst [vmem:[#allocation2 + $0xc8] sm:$0xff] %v1536_v25  ;;  %v1471_v30 = vadd.f32 %v2578_v26, %v2466_v23  ;;  %v2468_v31 = vpop.f32.mrf.mxu0 }
 0x194   : > { %v2469_v32 = vadd.f32 %v2468_v31, %v2467_v27  ;;  %v2580_v33 = vpop.f32.mrf.mxu1  ;;  %v550_v27 = vld [vmem:[#allocation2 + $0x28] sm:$0xff] }
 0x195   : > { %v1537_v34 = vadd.f32 %v1471_v30, %v543_v28  ;;  %v2581_v35 = vadd.f32 %v2580_v33, %v2579_v29  ;;  %v2470_v36 = vpop.f32.mrf.mxu0 }
 0x196   : > { %v2582_v38 = vpop.f32.mrf.mxu1 }
 0x197   : > { %1569 = vst [vmem:[#allocation2 + $0xe0] sm:$0xff] %v1537_v34  ;;  %v1474_v39 = vadd.f32 %v2581_v35, %v2469_v32  ;;  %v2471_v40 = vpop.f32.mrf.mxu0 }
 0x198   : > { %v2472_v41 = vadd.f32 %v2471_v40, %v2470_v36  ;;  %v2583_v42 = vpop.f32.mrf.mxu1  ;;  %v551_v36 = vld [vmem:[#allocation2 + $0xa0] sm:$0xff] }
 0x199   : > { %v1538_v43 = vadd.f32 %v1474_v39, %v544_v37  ;;  %v2584_v44 = vadd.f32 %v2583_v42, %v2582_v38  ;;  %v2473_v45 = vpop.f32.mrf.mxu0 }
 0x19a   : > { %v2585_v47 = vpop.f32.mrf.mxu1 }
 0x19b   : > { %1570 = vst [vmem:[#allocation2 + $0x90] sm:$0xff] %v1538_v43  ;;  %v1479_v48 = vadd.f32 %v2584_v44, %v2472_v41  ;;  %v2474_v49 = vpop.f32.mrf.mxu0 }
 0x19c   : > { %v2475_v50 = vadd.f32 %v2474_v49, %v2473_v45  ;;  %v2586_v51 = vpop.f32.mrf.mxu1  ;;  %v552_v45 = vld [vmem:[#allocation2 + $0xf8] sm:$0xff] }
 0x19d   : > { %v1539_v52 = vadd.f32 %v1479_v48, %v545_v46  ;;  %v2587_v53 = vadd.f32 %v2586_v51, %v2585_v47  ;;  %v2476_v54 = vpop.f32.mrf.mxu0 }
 0x19e   : > { %v2588_v56 = vpop.f32.mrf.mxu1 }
 0x19f   : > { %1571 = vst [vmem:[#allocation2 + $0x70] sm:$0xff] %v1539_v52  ;;  %v1482_v57 = vadd.f32 %v2587_v53, %v2475_v50  ;;  %v2477_v58 = vpop.f32.mrf.mxu0 }
 0x1a0   : > { %v2478_v59 = vadd.f32 %v2477_v58, %v2476_v54  ;;  %v2589_v60 = vpop.f32.mrf.mxu1  ;;  %v553_v54 = vld [vmem:[#allocation2 + $0x20] sm:$0xff] }
 0x1a1   : > { %v1540_v61 = vadd.f32 %v1482_v57, %v546_v55  ;;  %v2590_v62 = vadd.f32 %v2589_v60, %v2588_v56  ;;  %v2479_v63 = vpop.f32.mrf.mxu0 }
 0x1a2   : > { %v2591_v1 = vpop.f32.mrf.mxu1 }
 0x1a3   : > { %1572 = vst [vmem:[#allocation2 + $0xc0] sm:$0xff] %v1540_v61  ;;  %v1487_v2 = vadd.f32 %v2590_v62, %v2478_v59  ;;  %v2480_v3 = vpop.f32.mrf.mxu0  ;;  %v554_v62 = vld [vmem:[#allocation2 + $0x98] sm:$0xff] }
 0x1a4   : > { %v2481_v4 = vadd.f32 %v2480_v3, %v2479_v63  ;;  %v2592_v5 = vpop.f32.mrf.mxu1 }
 0x1a5   : > { %v1541_v6 = vadd.f32 %v1487_v2, %v547_v0  ;;  %v2593_v7 = vadd.f32 %v2592_v5, %v2591_v1  ;;  %v2482_v8 = vpop.f32.mrf.mxu0 }
 0x1a6   : > { %v2594_v10 = vpop.f32.mrf.mxu1 }
 0x1a7   : > { %1573 = vst [vmem:[#allocation2 + $0xa8] sm:$0xff] %v1541_v6  ;;  %v1490_v11 = vadd.f32 %v2593_v7, %v2481_v4  ;;  %v2483_v12 = vpop.f32.mrf.mxu0 }
 0x1a8   : > { %v2484_v13 = vadd.f32 %v2483_v12, %v2482_v8  ;;  %v2595_v14 = vpop.f32.mrf.mxu1 }
 0x1a9   : > { %v1542_v15 = vadd.f32 %v1490_v11, %v548_v9  ;;  %v2596_v16 = vadd.f32 %v2595_v14, %v2594_v10  ;;  %v2485_v17 = vpop.f32.mrf.mxu0 }
 0x1aa   : > { %v2597_v19 = vpop.f32.mrf.mxu1 }
 0x1ab   : > { %1574 = vst [vmem:[#allocation2 + $0xd0] sm:$0xff] %v1542_v15  ;;  %v1495_v20 = vadd.f32 %v2596_v16, %v2484_v13  ;;  %v2486_v21 = vpop.f32.mrf.mxu0 }
 0x1ac   : > { %v2487_v22 = vadd.f32 %v2486_v21, %v2485_v17  ;;  %v2598_v23 = vpop.f32.mrf.mxu1 }
 0x1ad   : > { %v1543_v24 = vadd.f32 %v1495_v20, %v549_v18  ;;  %v2599_v25 = vadd.f32 %v2598_v23, %v2597_v19  ;;  %v2488_v26 = vpop.f32.mrf.mxu0 }
 0x1ae   : > { %v2600_v28 = vpop.f32.mrf.mxu1 }
 0x1af   : > { %1575 = vst [vmem:[#allocation2 + $0x10] sm:$0xff] %v1543_v24  ;;  %v1498_v29 = vadd.f32 %v2599_v25, %v2487_v22  ;;  %v2489_v30 = vpop.f32.mrf.mxu0 }
 0x1b0   : > { %v2490_v31 = vadd.f32 %v2489_v30, %v2488_v26  ;;  %v2601_v32 = vpop.f32.mrf.mxu1 }
 0x1b1   : > { %v1544_v33 = vadd.f32 %v1498_v29, %v550_v27  ;;  %v2602_v34 = vadd.f32 %v2601_v32, %v2600_v28  ;;  %v2491_v35 = vpop.f32.mrf.mxu0 }
 0x1b2   : > { %v2603_v37 = vpop.f32.mrf.mxu1 }
 0x1b3   : > { %1576 = vst [vmem:[#allocation2 + $0x28] sm:$0xff] %v1544_v33  ;;  %v1503_v38 = vadd.f32 %v2602_v34, %v2490_v31  ;;  %v2492_v39 = vpop.f32.mrf.mxu0 }
 0x1b4   : > { %v2493_v40 = vadd.f32 %v2492_v39, %v2491_v35  ;;  %v2604_v41 = vpop.f32.mrf.mxu1 }
 0x1b5   : > { %v1545_v42 = vadd.f32 %v1503_v38, %v551_v36  ;;  %v2605_v43 = vadd.f32 %v2604_v41, %v2603_v37  ;;  %v2494_v44 = vpop.f32.mrf.mxu0 }
 0x1b6   : > { %v2606_v46 = vpop.f32.mrf.mxu1 }
 0x1b7   : > { %1577 = vst [vmem:[#allocation2 + $0xa0] sm:$0xff] %v1545_v42  ;;  %v1506_v47 = vadd.f32 %v2605_v43, %v2493_v40  ;;  %v2495_v48 = vpop.f32.mrf.mxu0 }
 0x1b8   : > { %v2496_v49 = vadd.f32 %v2495_v48, %v2494_v44  ;;  %v2607_v50 = vpop.f32.mrf.mxu1 }
 0x1b9   : > { %v1546_v51 = vadd.f32 %v1506_v47, %v552_v45  ;;  %v2608_v52 = vadd.f32 %v2607_v50, %v2606_v46  ;;  %v2497_v53 = vpop.f32.mrf.mxu0 }
 0x1ba   : > { %v2609_v55 = vpop.f32.mrf.mxu1 }
 0x1bb   : > { %1578 = vst [vmem:[#allocation2 + $0xf8] sm:$0xff] %v1546_v51  ;;  %v1511_v56 = vadd.f32 %v2608_v52, %v2496_v49  ;;  %v2498_v57 = vpop.f32.mrf.mxu0 }
 0x1bc   : > { %v2499_v58 = vadd.f32 %v2498_v57, %v2497_v53  ;;  %v2610_v59 = vpop.f32.mrf.mxu1 }
 0x1bd   : > { %v1547_v60 = vadd.f32 %v1511_v56, %v553_v54  ;;  %v2611_v61 = vadd.f32 %v2610_v59, %v2609_v55 }
 0x1bf   : > { %1579 = vst [vmem:[#allocation2 + $0x20] sm:$0xff] %v1547_v60  ;;  %v1514_v63 = vadd.f32 %v2611_v61, %v2499_v58  ;;  %1584 = sbr.rel (%p2224_p0) target bundleno = 540 (0x21c), region = 63 }
 0x1c1   : > { %v1548_v0 = vadd.f32 %v1514_v63, %v554_v62 }
 0x1c3   : > { %1580 = vst [vmem:[#allocation2 + $0x98] sm:$0xff] %v1548_v0 }
 0x1c4   : > { %v1585_v1 = vld [vmem:[#allocation2 + $0xb0] sm:$0xff]  ;;  %v1586_v2 = vld [vmem:[#allocation2] sm:$0xff]  ;;  %v1587_v3 = vld [vmem:[#allocation2 + $0xd8] sm:$0xff] }
 0x1c5   : > { %v1588_v4 = vld [vmem:[#allocation2 + $0x18] sm:$0xff]  ;;  %v1589_v5 = vld [vmem:[#allocation2 + $0x50] sm:$0xff]  ;;  %v3206_v6 = vld [vmem:[%s3481_s2] ss:$0 sm:$0xff] }
 0x1c6   : > { %v1590_v7 = vld [vmem:[#allocation2 + $0x68] sm:$0xff]  ;;  %v1591_v8 = vld [vmem:[#allocation2 + $0x30] sm:$0xff]  ;;  %v1593_v10 = vld [vmem:[#allocation2 + $0x80] sm:$0xff]  ;;  %v3209_v16 = vadd.f32 %v3206_v6, %v1585_v1  ;;  %v3212_v17 = vadd.f32 %v3206_v6, %v1586_v2  ;;  %v3215_v21 = vadd.f32 %v3206_v6, %v1587_v3  ;;  %v3218_v22 = vadd.f32 %v3206_v6, %v1588_v4 }
 0x1c7   : > { %v1592_v9 = vld [vmem:[#allocation2 + $0x48] sm:$0xff]  ;;  %v1596_v13 = vld [vmem:[#allocation2 + $0xb8] sm:$0xff]  ;;  %v1597_v14 = vld [vmem:[#allocation2 + $0x60] sm:$0xff]  ;;  %v3221_v23 = vadd.f32 %v3206_v6, %v1589_v5  ;;  %v3224_v24 = vadd.f32 %v3206_v6, %v1590_v7  ;;  %v3227_v28 = vadd.f32 %v3206_v6, %v1591_v8  ;;  %v3233_v30 = vadd.f32 %v3206_v6, %v1593_v10 }
 0x1c8   : > { %v1594_v11 = vld [vmem:[#allocation2 + $0x88] sm:$0xff]  ;;  %v1598_v15 = vld [vmem:[#allocation2 + $0xf0] sm:$0xff]  ;;  %v1600_v19 = vld [vmem:[#allocation2 + $0x78] sm:$0xff]  ;;  %v3230_v29 = vadd.f32 %v3206_v6, %v1592_v9  ;;  %v1656_v31 = vadd.f32 %v3212_v17, %v3209_v16  ;;  %v3244_v37 = vadd.f32 %v3206_v6, %v1596_v13  ;;  %v3247_v38 = vadd.f32 %v3206_v6, %v1597_v14 }
 0x1c9   : > { %v1595_v12 = vld [vmem:[#allocation2 + $0xe8] sm:$0xff]  ;;  %v1601_v20 = vld [vmem:[#allocation2 + $0x38] sm:$0xff]  ;;  %v1603_v26 = vld [vmem:[#allocation2 + $0x40] sm:$0xff]  ;;  %v3238_v35 = vadd.f32 %v3206_v6, %v1594_v11  ;;  %v3250_v41 = vadd.f32 %v3206_v6, %v1598_v15  ;;  %v3256_v43 = vadd.f32 %v3206_v6, %v1600_v19  ;;  %v1694_v62 = vmul.f32 %v3209_v16, %v3209_v16 }
 0x1ca   : > { %v1599_v18 = vld [vmem:[#allocation2 + $0x8] sm:$0xff]  ;;  %v1602_v25 = vld [vmem:[#allocation2 + $0x58] sm:$0xff]  ;;  %v1605_v32 = vld [vmem:[#allocation2 + $0xe0] sm:$0xff]  ;;  %v3241_v36 = vadd.f32 %v3206_v6, %v1595_v12  ;;  %v1657_v44 = vadd.f32 %v1656_v31, %v3215_v21  ;;  %v3260_v48 = vadd.f32 %v3206_v6, %v1601_v20  ;;  %v3266_v50 = vadd.f32 %v3206_v6, %v1603_v26 }
 0x1cb   : > { %v1604_v27 = vld [vmem:[#allocation2 + $0xc8] sm:$0xff]  ;;  %v1606_v33 = vld [vmem:[#allocation2 + $0x90] sm:$0xff]  ;;  %v1608_v39 = vld [vmem:[#allocation2 + $0xc0] sm:$0xff]  ;;  %v3253_v42 = vadd.f32 %v3206_v6, %v1599_v18  ;;  %v3263_v49 = vadd.f32 %v3206_v6, %v1602_v25  ;;  %v3272_v55 = vadd.f32 %v3206_v6, %v1605_v32  ;;  %v1695_v63 = vmul.f32 %v3212_v17, %v3212_v17 }
 0x1cc   : > { %v1607_v34 = vld [vmem:[#allocation2 + $0x70] sm:$0xff]  ;;  %v1609_v40 = vld [vmem:[#allocation2 + $0xa8] sm:$0xff]  ;;  %v3269_v51 = vadd.f32 %v3206_v6, %v1604_v27  ;;  %v1613_v52 = vld [vmem:[#allocation2 + $0xa0] sm:$0xff]  ;;  %v3275_v56 = vadd.f32 %v3206_v6, %v1606_v33  ;;  %v1658_v58 = vadd.f32 %v1657_v44, %v3218_v22  ;;  %v3282_v60 = vadd.f32 %v3206_v6, %v1608_v39 }
 0x1cd   : > { %v1610_v45 = vld [vmem:[#allocation2 + $0xd0] sm:$0xff]  ;;  %v1612_v47 = vld [vmem:[#allocation2 + $0x28] sm:$0xff]  ;;  %v1614_v53 = vld [vmem:[#allocation2 + $0xf8] sm:$0xff]  ;;  %v3278_v57 = vadd.f32 %v3206_v6, %v1607_v34  ;;  %v3285_v61 = vadd.f32 %v3206_v6, %v1609_v40  ;;  %v3302_v4 = vadd.f32 %v3206_v6, %v1613_v52  ;;  %v1696_v8 = vmul.f32 %v3215_v21, %v3215_v21 }
 0x1ce   : > { %v1611_v46 = vld [vmem:[#allocation2 + $0x10] sm:$0xff]  ;;  %v1615_v54 = vld [vmem:[#allocation2 + $0x20] sm:$0xff]  ;;  %v1616_v59 = vld [vmem:[#allocation2 + $0x98] sm:$0xff]  ;;  %v3292_v0 = vadd.f32 %v3206_v6, %v1610_v45  ;;  %v3298_v2 = vadd.f32 %v3206_v6, %v1612_v47  ;;  %v1659_v3 = vadd.f32 %v1658_v58, %v3221_v23  ;;  %v3305_v5 = vadd.f32 %v3206_v6, %v1614_v53 }
 0x1cf   : > { %v3295_v1 = vadd.f32 %v3206_v6, %v1611_v46  ;;  %v3308_v7 = vadd.f32 %v3206_v6, %v1615_v54  ;;  %v3313_v9 = vadd.f32 %v3206_v6, %v1616_v59  ;;  %v1697_v11 = vmul.f32 %v3218_v22, %v3218_v22 }
 0x1d0   : > { %v1660_v10 = vadd.f32 %v1659_v3, %v3224_v24  ;;  %v1698_v12 = vmul.f32 %v3221_v23, %v3221_v23  ;;  %v1699_v13 = vmul.f32 %v3224_v24, %v3224_v24  ;;  %v1726_v14 = vadd.f32 %v1695_v63, %v1694_v62 }
 0x1d1   : > { %v2296_v15 = vpack.c.bf16 %v3212_v17, %v3209_v16  ;;  %v2301_v6 = vpack.c.bf16 %v3218_v22, %v3215_v21  ;;  %v2306_v19 = vpack.c.bf16 %v3224_v24, %v3221_v23  ;;  %v2311_v20 = vpack.c.bf16 %v3230_v29, %v3227_v28 }
 0x1d2   : > { %v1661_v18 = vadd.f32 %v1660_v10, %v3227_v28  ;;  %v2316_v25 = vpack.c.bf16 %v3238_v35, %v3233_v30  ;;  %v1727_v26 = vadd.f32 %v1726_v14, %v1696_v8  ;;  %v2321_v16 = vpack.c.bf16 %v3244_v37, %v3241_v36 }
 0x1d3   : > { %2297 = vst [vmem:[%s3093_s12] sm:$0xff] %v2296_v15   ;;  %2373 = vst [vmem:[%s3093_s12 + $0x8] sm:$0xff] %v2301_v6   ;;  %v2326_v17 = vpack.c.bf16 %v3250_v41, %v3247_v38  ;;  %v2331_v21 = vpack.c.bf16 %v3256_v43, %v3253_v42  ;;  %v2336_v23 = vpack.c.bf16 %v3263_v49, %v3260_v48 }
 0x1d4   : > { %v1662_v22 = vadd.f32 %v1661_v18, %v3230_v29  ;;  %2374 = vst [vmem:[%s3093_s12 + $0x10] sm:$0xff] %v2306_v19   ;;  %2375 = vst [vmem:[%s3093_s12 + $0x18] sm:$0xff] %v2311_v20   ;;  %v2341_v24 = vpack.c.bf16 %v3269_v51, %v3266_v50  ;;  %v2346_v27 = vpack.c.bf16 %v3275_v56, %v3272_v55 }
 0x1d5   : > { %2376 = vst [vmem:[%s3093_s12 + $0x20] sm:$0xff] %v2316_v25   ;;  %v1728_v31 = vadd.f32 %v1727_v26, %v1697_v11  ;;  %2377 = vst [vmem:[%s3093_s12 + $0x28] sm:$0xff] %v2321_v16   ;;  %v2351_v32 = vpack.c.bf16 %v3282_v60, %v3278_v57  ;;  %v2356_v33 = vpack.c.bf16 %v3292_v0, %v3285_v61 }
 0x1d6   : > { %2378 = vst [vmem:[%s3093_s12 + $0x30] sm:$0xff] %v2326_v17   ;;  %2379 = vst [vmem:[%s3093_s12 + $0x38] sm:$0xff] %v2331_v21   ;;  %v2361_v34 = vpack.c.bf16 %v3298_v2, %v3295_v1  ;;  %v1663_v39 = vadd.f32 %v1662_v22, %v3233_v30  ;;  %v2366_v40 = vpack.c.bf16 %v3305_v5, %v3302_v4 }
 0x1d7   : > { %2380 = vst [vmem:[%s3093_s12 + $0x40] sm:$0xff] %v2336_v23   ;;  %2381 = vst [vmem:[%s3093_s12 + $0x48] sm:$0xff] %v2341_v24   ;;  %v2371_v44 = vpack.c.bf16 %v3313_v9, %v3308_v7  ;;  %v1700_v45 = vmul.f32 %v3227_v28, %v3227_v28  ;;  %v1729_v46 = vadd.f32 %v1728_v31, %v1698_v12 }
 0x1d8   : > { %2382 = vst [vmem:[%s3093_s12 + $0x50] sm:$0xff] %v2346_v27   ;;  %2383 = vst [vmem:[%s3093_s12 + $0x58] sm:$0xff] %v2351_v32   ;;  %v1664_v47 = vadd.f32 %v1663_v39, %v3238_v35  ;;  %v1701_v52 = vmul.f32 %v3230_v29, %v3230_v29  ;;  %v1702_v58 = vmul.f32 %v3233_v30, %v3233_v30 }
 0x1d9   : > { %2384 = vst [vmem:[%s3093_s12 + $0x60] sm:$0xff] %v2356_v33   ;;  %2385 = vst [vmem:[%s3093_s12 + $0x68] sm:$0xff] %v2361_v34   ;;  %v1730_v53 = vadd.f32 %v1729_v46, %v1699_v13  ;;  %v1703_v62 = vmul.f32 %v3238_v35, %v3238_v35  ;;  %v1704_v8 = vmul.f32 %v3241_v36, %v3241_v36 }
 0x1da   : > { %2386 = vst [vmem:[%s3093_s12 + $0x70] sm:$0xff] %v2366_v40   ;;  %2387 = vst [vmem:[%s3093_s12 + $0x78] sm:$0xff] %v2371_v44   ;;  %v1665_v54 = vadd.f32 %v1664_v47, %v3241_v36  ;;  %v1705_v11 = vmul.f32 %v3244_v37, %v3244_v37  ;;  %v1706_v13 = vmul.f32 %v3247_v38, %v3247_v38 }
 0x1db   : > { %v1731_v59 = vadd.f32 %v1730_v53, %v1700_v45  ;;  %v1707_v15 = vmul.f32 %v3250_v41, %v3250_v41  ;;  %v1708_v18 = vmul.f32 %v3253_v42, %v3253_v42  ;;  %v1709_v20 = vmul.f32 %v3256_v43, %v3256_v43 }
 0x1dc   : > { %v1666_v28 = vadd.f32 %v1665_v54, %v3244_v37  ;;  %v1710_v26 = vmul.f32 %v3260_v48, %v3260_v48  ;;  %v1711_v17 = vmul.f32 %v3263_v49, %v3263_v49  ;;  %v1712_v22 = vmul.f32 %v3266_v50, %v3266_v50 }
 0x1dd   : > { %v1732_v63 = vadd.f32 %v1731_v59, %v1701_v52  ;;  %v1713_v24 = vmul.f32 %v3269_v51, %v3269_v51  ;;  %v1714_v31 = vmul.f32 %v3272_v55, %v3272_v55  ;;  %v1715_v33 = vmul.f32 %v3275_v56, %v3275_v56 }
 0x1de   : > { %v1667_v3 = vadd.f32 %v1666_v28, %v3247_v38  ;;  %v1716_v39 = vmul.f32 %v3278_v57, %v3278_v57  ;;  %v1717_v44 = vmul.f32 %v3282_v60, %v3282_v60  ;;  %v1718_v46 = vmul.f32 %v3285_v61, %v3285_v61 }
 0x1df   : > { %v1733_v10 = vadd.f32 %v1732_v63, %v1702_v58  ;;  %v1719_v52 = vmul.f32 %v3292_v0, %v3292_v0  ;;  %v1720_v54 = vmul.f32 %v3295_v1, %v3295_v1  ;;  %v1721_v59 = vmul.f32 %v3298_v2, %v3298_v2 }
 0x1e0   : > { %v1668_v29 = vadd.f32 %v1667_v3, %v3250_v41  ;;  %v1723_v3 = vmul.f32 %v3305_v5, %v3305_v5 }
 0x1e1   : > { %v1734_v12 = vadd.f32 %v1733_v10, %v1703_v62  ;;  %v1722_v62 = vmul.f32 %v3302_v4, %v3302_v4  ;;  %v1724_v10 = vmul.f32 %v3308_v7, %v3308_v7 }
 0x1e2   : > { %v1669_v30 = vadd.f32 %v1668_v29, %v3253_v42 }
 0x1e3   : > { %v1735_v14 = vadd.f32 %v1734_v12, %v1704_v8 }
 0x1e4   : > { %v1670_v35 = vadd.f32 %v1669_v30, %v3256_v43 }
 0x1e5   : > { %v1736_v6 = vadd.f32 %v1735_v14, %v1705_v11  ;;  %v1725_v11 = vmul.f32 %v3313_v9, %v3313_v9 }
 0x1e6   : > { %v1671_v36 = vadd.f32 %v1670_v35, %v3260_v48 }
 0x1e7   : > { %v1737_v19 = vadd.f32 %v1736_v6, %v1706_v13 }
 0x1e8   : > { %v1672_v37 = vadd.f32 %v1671_v36, %v3263_v49 }
 0x1e9   : > { %v1738_v25 = vadd.f32 %v1737_v19, %v1707_v15 }
 0x1ea   : > { %v1673_v38 = vadd.f32 %v1672_v37, %v3266_v50 }
 0x1eb   : > { %v1739_v16 = vadd.f32 %v1738_v25, %v1708_v18 }
 0x1ec   : > { %v1674_v41 = vadd.f32 %v1673_v38, %v3269_v51 }
 0x1ed   : > { %v1740_v21 = vadd.f32 %v1739_v16, %v1709_v20 }
 0x1ee   : > { %v1675_v42 = vadd.f32 %v1674_v41, %v3272_v55 }
 0x1ef   : > { %v1741_v23 = vadd.f32 %v1740_v21, %v1710_v26 }
 0x1f0   : > { %v1676_v43 = vadd.f32 %v1675_v42, %v3275_v56 }
 0x1f1   : > { %v1742_v27 = vadd.f32 %v1741_v23, %v1711_v17 }
 0x1f2   : > { %v1677_v48 = vadd.f32 %v1676_v43, %v3278_v57 }
 0x1f3   : > { %v1743_v32 = vadd.f32 %v1742_v27, %v1712_v22 }
 0x1f4   : > { %v1678_v49 = vadd.f32 %v1677_v48, %v3282_v60 }
 0x1f5   : > { %v1744_v34 = vadd.f32 %v1743_v32, %v1713_v24 }
 0x1f6   : > { %v1679_v50 = vadd.f32 %v1678_v49, %v3285_v61 }
 0x1f7   : > { %v1745_v40 = vadd.f32 %v1744_v34, %v1714_v31 }
 0x1f8   : > { %v1680_v51 = vadd.f32 %v1679_v50, %v3292_v0 }
 0x1f9   : > { %v1746_v45 = vadd.f32 %v1745_v40, %v1715_v33 }
 0x1fa   : > { %v1681_v55 = vadd.f32 %v1680_v51, %v3295_v1 }
 0x1fb   : > { %v1747_v47 = vadd.f32 %v1746_v45, %v1716_v39 }
 0x1fc   : > { %v1682_v56 = vadd.f32 %v1681_v55, %v3298_v2 }
 0x1fd   : > { %v1748_v53 = vadd.f32 %v1747_v47, %v1717_v44 }
 0x1fe   : > { %v1683_v57 = vadd.f32 %v1682_v56, %v3302_v4 }
 0x1ff   : > { %v1749_v58 = vadd.f32 %v1748_v53, %v1718_v46 }
 0x200   : > { %v1684_v60 = vadd.f32 %v1683_v57, %v3305_v5 }
 0x201   : > { %v1750_v28 = vadd.f32 %v1749_v58, %v1719_v52 }
 0x202   : > { %v1685_v61 = vadd.f32 %v1684_v60, %v3308_v7 }
 0x203   : > { %v1751_v63 = vadd.f32 %v1750_v28, %v1720_v54 }
 0x204   : > { %v1686_v0 = vadd.f32 %v1685_v61, %v3313_v9 }
 0x205   : > { %v1752_v1 = vadd.f32 %v1751_v63, %v1721_v59 }
 0x206   : > { %v1687_v8 = vrot.slane %v1686_v0, 4 }
 0x207   : > { %v1753_v29 = vadd.f32 %v1752_v1, %v1722_v62 }
 0x208   : > { %v1688_v2 = vadd.f32 %v1687_v8, %v1686_v0 }
 0x209   : > { %v1754_v12 = vadd.f32 %v1753_v29, %v1723_v3 }
 0x20a   : > { %v1689_v4 = vrot.slane %v1688_v2, 2 }
 0x20b   : > { %v1755_v30 = vadd.f32 %v1754_v12, %v1724_v10 }
 0x20c   : > { %v1690_v13 = vadd.f32 %v1689_v4, %v1688_v2 }
 0x20d   : > { %v1756_v14 = vadd.f32 %v1755_v30, %v1725_v11 }
 0x20e   : > { %v1691_v35 = vrot.slane %v1690_v13, 1 }
 0x20f   : > { %v1757_v15 = vrot.slane %v1756_v14, 4 }
 0x210   : > { %v1692_v5 = vadd.f32 %v1691_v35, %v1690_v13 }
 0x211   : > { %v1758_v6 = vadd.f32 %v1757_v15, %v1756_v14 }
 0x212   : > { %1693 = vst [vmem:[%s479_s15] sm:$0x1] %v1692_v5 }
 0x213   : > { %v1759_v7 = vrot.slane %v1758_v6, 2 }
 0x215   : > { %v1760_v36 = vadd.f32 %v1759_v7, %v1758_v6 }
 0x217   : > { %v1761_v18 = vrot.slane %v1760_v36, 1 }
 0x219   : > { %v1762_v19 = vadd.f32 %v1761_v18, %v1760_v36 }
 0x21b   : > { %1763 = vst [vmem:[%s485_s27] sm:$0x1] %v1762_v19 }
 0x21c PF: > { %s16_s24 = sadd.s32 1, %s2851_s24   ;;  %s3485_s18 = smov %s2831_s19 }
 0x21d   : > { %p13_p1 = scmp.ge.s32.totalorder %s16_s24, 6   ;;  %s3486_s19 = smov %s2935_s6 }
 0x21e   : > { %s3487_s20 = smov %s2843_s22  ;;  %s3488_s21 = smov %s2847_s23 }
 0x21f   : > { %s3489_s22 = smov %s3492_s25  ;;  %s3490_s23 = smov %s3496_s26 }
 0x220   :  { %15 = sbr.rel (!%p13_p1) target bundleno = 4 (0x4), region = 128 }

// kernel: discriminator_forward.12
= control target key start
LH: loop header
LB: loop body
LE: loop exit
PB: predicated region body
PF: predicated region fallthrough
CT: control target
= control target key end

     0   :  { %s652_s12 = smov 0   ;;  %s654_s13 = smov 0   ;;  %s759_s0 = inlined_call_operand.vmem [shape: bf16[2,64,256], index: 0, kind: input, shape index: {}]   ;;  %s760_s1 = inlined_call_operand.vmem [shape: f32[2,1,256], index: 1, kind: input, shape index: {}]   ;;  %s761_s2 = inlined_call_operand.vmem [shape: f32[2,1,256], index: 2, kind: input, shape index: {}]   ;;  %s762_s3 = inlined_call_operand.vmem [shape: bf16[2,64,256], index: 3, kind: output, shape index: {}]  }
   0x1   :  { %s656_s14 = smov 0  }
   0x2 LB: > { %s25_s15 = sadd.s32 1, %s626_s13  ;;  %p557_p0 = scmp.ge.s32.totalorder %s630_s14, 1  ;;  %s630_s14 = sphi %s656_s14, %s13_s14   ;;  %s626_s13 = sphi %s654_s13, %s764_s13   ;;  %s622_s12 = sphi %s652_s12, %s763_s12  }
   0x3   : > { %p27_p1 = scmp.ge.s32.totalorder %s25_s15, 2  ;;  %p177_p2 = scmp.lt.s32.totalorder %s630_s14, 3 }
   0x5   : > { %s766_s15 = smov (%p27_p1, %s25_s15), 0  ;;  %p178_p3 = pnand %p557_p0, %p177_p2 }
   0x6   : > { %p220_p4 = scmp.lt.s32.totalorder (!%p178_p3), %s622_s12, 1 }
   0x7   : > { %181 = sbr.rel (%p178_p3) target bundleno = 50 (0x32), region = 32 }
   0xc   : > { %v275_v0 = vlaneseq  ;;  %s768_s12 = smov (!%p220_p4, %s622_s12), 1 }
   0xd   : > { %s574_s16 = sshll.u32 %s768_s12, 6  ;;  %s560_s17 = sshll.u32 %s768_s12, 1 }
   0xe   : > { %v276_v1 = vshrl.u32 %v275_v0, 7  ;;  %s679_s20 = scalar_lea.vmem %s759_s0, %s574_s16  ;;  %s233_s23 = scalar_lea.vmem %s760_s1, %s560_s17 }
   0xf   : > { %s237_s26 = scalar_lea.vmem %s761_s2, %s560_s17  ;;  %v249_v4 = vld [vmem:[%s679_s20] sm:$0xff]  ;;  %v250_v6 = vld [vmem:[%s679_s20 + $0x8] sm:$0xff]  ;;  %v251_v12 = vld [vmem:[%s679_s20 + $0x10] sm:$0xff]  ;;  %s716_s29 = scalar_lea.vmem %s762_s3, %s574_s16 }
  0x10   : > { %v277_v2 = vsub.s32 0, %v276_v1  ;;  %v281_v3 = vsub.s32 1, %v276_v1  ;;  %v273_v5 = vld [vmem:[%s233_s23] sm:$0x3]  ;;  %v257_v7 = vunpack.c.l.bf16 %v249_v4  ;;  %v258_v8 = vunpack.c.h.bf16 %v249_v4  ;;  %v252_v13 = vld [vmem:[%s679_s20 + $0x18] sm:$0xff]  ;;  %v254_v47 = vld [vmem:[%s679_s20 + $0x28] sm:$0xff] }
  0x11   : > { %v301_v11 = vld [vmem:[%s237_s26] sm:$0x3]  ;;  %v259_v16 = vunpack.c.l.bf16 %v250_v6  ;;  %v260_v17 = vunpack.c.h.bf16 %v250_v6  ;;  %v261_v20 = vunpack.c.l.bf16 %v251_v12  ;;  %v262_v21 = vunpack.c.h.bf16 %v251_v12  ;;  %v255_v57 = vld [vmem:[%s679_s20 + $0x30] sm:$0xff]  ;;  %v256_v1 = vld [vmem:[%s679_s20 + $0x38] sm:$0xff] }
  0x12   : > { %v689_v9 = vrot.slane %v273_v5, %v277_v2  ;;  %v691_v10 = vrot.slane %v273_v5, %v281_v3  ;;  %v695_v14 = vrot.slane %v301_v11, %v277_v2  ;;  %v697_v15 = vrot.slane %v301_v11, %v281_v3  ;;  %v253_v46 = vld [vmem:[%s679_s20 + $0x20] sm:$0xff] }
  0x13   : > { %v263_v24 = vunpack.c.l.bf16 %v252_v13  ;;  %v264_v25 = vunpack.c.h.bf16 %v252_v13  ;;  %v265_v54 = vunpack.c.l.bf16 %v253_v46  ;;  %v266_v55 = vunpack.c.h.bf16 %v253_v46 }
  0x14   : > { %v285_v18 = vsub.f32 %v257_v7, %v689_v9  ;;  %v286_v19 = vsub.f32 %v258_v8, %v691_v10  ;;  %v287_v22 = vsub.f32 %v259_v16, %v689_v9  ;;  %v288_v23 = vsub.f32 %v260_v17, %v691_v10 }
  0x15   : > { %v289_v28 = vsub.f32 %v261_v20, %v689_v9  ;;  %v290_v29 = vsub.f32 %v262_v21, %v691_v10  ;;  %v291_v32 = vsub.f32 %v263_v24, %v689_v9  ;;  %v292_v33 = vsub.f32 %v264_v25, %v691_v10 }
  0x16   : > { %v313_v26 = vmul.f32 %v695_v14, %v285_v18  ;;  %v314_v27 = vmul.f32 %v697_v15, %v286_v19  ;;  %v315_v30 = vmul.f32 %v695_v14, %v287_v22  ;;  %v316_v31 = vmul.f32 %v697_v15, %v288_v23 }
  0x17   : > { %v317_v40 = vmul.f32 %v695_v14, %v289_v28  ;;  %v318_v41 = vmul.f32 %v697_v15, %v290_v29  ;;  %v319_v45 = vmul.f32 %v695_v14, %v291_v32  ;;  %v320_v51 = vmul.f32 %v697_v15, %v292_v33 }
  0x18   : > { %vm329_vm0 = vcmp.gt.f32.partialorder %v313_v26, 0.0  ;;  %vm330_vm1 = vcmp.gt.f32.partialorder %v314_v27, 0.0  ;;  %v345_v34 = vmul.f32 0.2, %v313_v26  ;;  %v346_v35 = vmul.f32 0.2, %v314_v27 }
  0x19   : > { %vm331_vm2 = vcmp.gt.f32.partialorder %v315_v30, 0.0  ;;  %vm332_vm3 = vcmp.gt.f32.partialorder %v316_v31, 0.0  ;;  %v347_v36 = vmul.f32 0.2, %v315_v30  ;;  %v348_v37 = vmul.f32 0.2, %v316_v31 }
  0x1a   : > { %v361_v38 = vsel %vm329_vm0, %v313_v26, %v345_v34  ;;  %v362_v39 = vsel %vm330_vm1, %v314_v27, %v346_v35  ;;  %vm333_vm4 = vcmp.gt.f32.partialorder %v317_v40, 0.0  ;;  %vm334_vm5 = vcmp.gt.f32.partialorder %v318_v41, 0.0 }
  0x1b   : > { %v576_v42 = vpack.c.bf16 %v362_v39, %v361_v38  ;;  %v363_v43 = vsel %vm331_vm2, %v315_v30, %v347_v36  ;;  %v364_v44 = vsel %vm332_vm3, %v316_v31, %v348_v37  ;;  %v349_v49 = vmul.f32 0.2, %v317_v40 }
  0x1c   : > { %v577_v48 = vpack.c.bf16 %v364_v44, %v363_v43  ;;  %v350_v50 = vmul.f32 0.2, %v318_v41  ;;  %vm335_vm6 = vcmp.gt.f32.partialorder %v319_v45, 0.0  ;;  %v351_v52 = vmul.f32 0.2, %v319_v45 }
  0x1d   : > { %425 = vst [vmem:[%s716_s29] sm:$0xff] %v576_v42  ;;  %v365_v53 = vsel %vm333_vm4, %v317_v40, %v349_v49  ;;  %v267_v56 = vunpack.c.l.bf16 %v254_v47  ;;  %vm336_vm7 = vcmp.gt.f32.partialorder %v320_v51, 0.0  ;;  %v352_v59 = vmul.f32 0.2, %v320_v51 }
  0x1e   : > { %426 = vst [vmem:[%s716_s29 + $0x8] sm:$0xff] %v577_v48  ;;  %v366_v58 = vsel %vm334_vm5, %v318_v41, %v350_v50  ;;  %v367_v60 = vsel %vm335_vm6, %v319_v45, %v351_v52  ;;  %v293_v62 = vsub.f32 %v265_v54, %v689_v9  ;;  %v294_v63 = vsub.f32 %v266_v55, %v691_v10 }
  0x1f   : > { %v578_v61 = vpack.c.bf16 %v366_v58, %v365_v53  ;;  %v268_v0 = vunpack.c.h.bf16 %v254_v47  ;;  %v368_v2 = vsel %vm336_vm7, %v320_v51, %v352_v59  ;;  %v295_v3 = vsub.f32 %v267_v56, %v689_v9 }
  0x20   : > { %v269_v4 = vunpack.c.l.bf16 %v255_v57  ;;  %v270_v5 = vunpack.c.h.bf16 %v255_v57  ;;  %v579_v6 = vpack.c.bf16 %v368_v2, %v367_v60  ;;  %v321_v7 = vmul.f32 %v695_v14, %v293_v62 }
  0x21   : > { %427 = vst [vmem:[%s716_s29 + $0x10] sm:$0xff] %v578_v61  ;;  %v322_v8 = vmul.f32 %v697_v15, %v294_v63  ;;  %v296_v11 = vsub.f32 %v268_v0, %v691_v10  ;;  %v323_v12 = vmul.f32 %v695_v14, %v295_v3  ;;  %v271_v17 = vunpack.c.l.bf16 %v256_v1 }
  0x22   : > { %v297_v13 = vsub.f32 %v269_v4, %v689_v9  ;;  %v298_v16 = vsub.f32 %v270_v5, %v691_v10  ;;  %428 = vst [vmem:[%s716_s29 + $0x18] sm:$0xff] %v579_v6  ;;  %vm337_vm8 = vcmp.gt.f32.partialorder %v321_v7, 0.0  ;;  %v353_v18 = vmul.f32 0.2, %v321_v7 }
  0x23   : > { %vm338_vm9 = vcmp.gt.f32.partialorder %v322_v8, 0.0  ;;  %v354_v19 = vmul.f32 0.2, %v322_v8  ;;  %v324_v20 = vmul.f32 %v697_v15, %v296_v11  ;;  %vm339_vm10 = vcmp.gt.f32.partialorder %v323_v12, 0.0 }
  0x24   : > { %v355_v21 = vmul.f32 0.2, %v323_v12  ;;  %v325_v22 = vmul.f32 %v695_v14, %v297_v13  ;;  %v369_v23 = vsel %vm337_vm8, %v321_v7, %v353_v18  ;;  %v326_v25 = vmul.f32 %v697_v15, %v298_v16 }
  0x25   : > { %v370_v24 = vsel %vm338_vm9, %v322_v8, %v354_v19  ;;  %v272_v26 = vunpack.c.h.bf16 %v256_v1  ;;  %vm340_vm11 = vcmp.gt.f32.partialorder %v324_v20, 0.0  ;;  %v356_v28 = vmul.f32 0.2, %v324_v20 }
  0x26   : > { %v580_v27 = vpack.c.bf16 %v370_v24, %v369_v23  ;;  %v371_v29 = vsel %vm339_vm10, %v323_v12, %v355_v21  ;;  %vm341_vm12 = vcmp.gt.f32.partialorder %v325_v22, 0.0  ;;  %vm342_vm13 = vcmp.gt.f32.partialorder %v326_v25, 0.0 }
  0x27   : > { %v357_v30 = vmul.f32 0.2, %v325_v22  ;;  %v358_v31 = vmul.f32 0.2, %v326_v25  ;;  %v372_v32 = vsel %vm340_vm11, %v324_v20, %v356_v28  ;;  %v299_v33 = vsub.f32 %v271_v17, %v689_v9 }
  0x28   : > { %429 = vst [vmem:[%s716_s29 + $0x20] sm:$0xff] %v580_v27  ;;  %v300_v34 = vsub.f32 %v272_v26, %v691_v10  ;;  %v581_v35 = vpack.c.bf16 %v372_v32, %v371_v29 }
  0x29   : > { %v373_v36 = vsel %vm341_vm12, %v325_v22, %v357_v30  ;;  %v374_v37 = vsel %vm342_vm13, %v326_v25, %v358_v31  ;;  %v327_v39 = vmul.f32 %v695_v14, %v299_v33 }
  0x2a   : > { %v582_v38 = vpack.c.bf16 %v374_v37, %v373_v36  ;;  %v328_v40 = vmul.f32 %v697_v15, %v300_v34  ;;  %430 = vst [vmem:[%s716_s29 + $0x28] sm:$0xff] %v581_v35 }
  0x2b   : > { %vm343_vm14 = vcmp.gt.f32.partialorder %v327_v39, 0.0  ;;  %v359_v41 = vmul.f32 0.2, %v327_v39 }
  0x2c   : > { %431 = vst [vmem:[%s716_s29 + $0x30] sm:$0xff] %v582_v38  ;;  %vm344_vm15 = vcmp.gt.f32.partialorder %v328_v40, 0.0  ;;  %v360_v42 = vmul.f32 0.2, %v328_v40 }
  0x2d   : > { %v375_v43 = vsel %vm343_vm14, %v327_v39, %v359_v41 }
  0x2e   : > { %v376_v44 = vsel %vm344_vm15, %v328_v40, %v360_v42 }
  0x2f   : > { %v583_v9 = vpack.c.bf16 %v376_v44, %v375_v43 }
  0x31   : > { %432 = vst [vmem:[%s716_s29 + $0x38] sm:$0xff] %v583_v9 }
  0x32 PF: > { %s13_s14 = sadd.s32 1, %s630_s14   ;;  %s763_s12 = smov %s626_s13 }
  0x33   : > { %p10_p5 = scmp.ge.s32.totalorder %s13_s14, 4   ;;  %s764_s13 = smov %s766_s15 }
  0x35   :  { %12 = sbr.rel (!%p10_p5) target bundleno = 2 (0x2), region = 68 }

// kernel: discriminator_forward.11
= control target key start
LH: loop header
LB: loop body
LE: loop exit
PB: predicated region body
PF: predicated region fallthrough
CT: control target
= control target key end

     0   :  { %s1932_s18 = smov 0   ;;  %s1934_s19 = smov 0   ;;  %s2162_s0 = inlined_call_operand.vmem [shape: bf16[128,2048], index: 0, kind: input, shape index: {}]   ;;  %s2163_s1 = inlined_call_operand.vmem [shape: bf16[2048,256], index: 1, kind: input, shape index: {}]   ;;  %s2164_s2 = inlined_call_operand.vmem [shape: f32[1,256], index: 2, kind: input, shape index: {}]   ;;  %s2165_s3 = inlined_call_operand.vmem [shape: bf16[128,256], index: 3, kind: output, shape index: {0}]   ;;  %s2166_s4 = inlined_call_operand.vmem [shape: f32[2,1,256], index: 4, kind: output, shape index: {1}]   ;;  %s2167_s5 = inlined_call_operand.vmem [shape: f32[2,1,256], index: 5, kind: output, shape index: {2}]  }
   0x1   :  { %s1936_s20 = smov 0   ;;  %s1938_s21 = smov 0  }
   0x2   :  { %s1940_s22 = smov 0   ;;  %s1942_s23 = smov 0  }
   0x3   :  { %s1944_s24 = smov 0  }
   0x4 LB: > { %s28_s25 = sadd.s32 1, %s1890_s22  ;;  %s35_s26 = sadd.s32 1, %s1894_s23  ;;  %s1898_s24 = sphi %s1944_s24, %s16_s24   ;;  %s1894_s23 = sphi %s1942_s23, %s2173_s23   ;;  %s1890_s22 = sphi %s1940_s22, %s2172_s22   ;;  %s1886_s21 = sphi %s1938_s21, %s2171_s21   ;;  %s1882_s20 = sphi %s1936_s20, %s2170_s20   ;;  %s1878_s19 = sphi %s1934_s19, %s2169_s19   ;;  %s1874_s18 = sphi %s1932_s18, %s2168_s18  }
   0x5   : > { %p29_p0 = scmp.ge.s32.totalorder %s28_s25, 4  ;;  %p51_p1 = scmp.ne.s32.totalorder %s1878_s19, %s1874_s18 }
   0x6   : > { %p52_p2 = scmp.eq.s32.totalorder %s1898_s24, 0  ;;  %s44_s30 = sadd.s32 1, %s1878_s19 }
   0x7   : > { %s2175_s25 = smov (%p29_p0, %s28_s25), 0  ;;  %s2177_s26 = smov (!%p29_p0, %s35_s26), %s1894_s23 }
   0x8   : > { %p53_p3 = por %p52_p2, %p51_p1  ;;  %p37_p4 = scmp.ge.s32.totalorder %s2177_s26, 2 }
   0x9   : > { %s40_s27 = ssub.s32 %s1890_s22, %s2175_s25  ;;  %p1547_p6 = scmp.ge.s32.totalorder %s1898_s24, 8 }
   0xa   : > { %s2179_s26 = smov (%p37_p4, %s2177_s26), 0 }
   0xb   : > { %s39_s28 = ssub.s32 %s1894_s23, %s2179_s26  ;;  %223 = sbr.rel (%p1547_p6) target bundleno = 31 (0x1f), region = 20 }
   0xc   : > { %s41_s29 = sor.u32 %s40_s27, %s39_s28 }
   0xd   : > { %p42_p5 = scmp.eq.s32.totalorder %s41_s29, 0 }
   0xf   : > { %s1983_s6 = scalar_select %p42_p5, %s1878_s19, %s44_s30  }
  0x10   : > { %226 = sbr.rel (!%p53_p3) target bundleno = 31 (0x1f), region = 24  ;;  %s228_s7 = sand.u32 (%p53_p3), 1, %s1878_s19  }
  0x11   : > { %s1550_s8 = sshll.u32 (%p53_p3), %s1890_s22, 2  ;;  %s1548_s9 = sshll.u32 (%p53_p3), %s228_s7, 7 }
  0x12   : > { %s1655_s10 = sshll.u32 (%p53_p3), %s1894_s23, 7  ;;  %s230_s16 = scalar_lea.vmem (%p53_p3), [#allocation3], %s1548_s9 }
  0x13   : > { %s234_s11 = sadd.s32 (%p53_p3), %s1655_s10, %s1550_s8 }
  0x14   : > { %s1552_s12 = sshll.u32 (%p53_p3), %s234_s11, 2 }
  0x15   : > { %s1992_s15 = scalar_lea.vmem %s2162_s0, %s1552_s12 }
  0x16   : > { %v249_v0 = vld [vmem:[%s1992_s15] sm:$0xff]  ;;  %v251_v1 = vld [vmem:[%s1992_s15 + $0x8] sm:$0xff] }
  0x17   : > { %v253_v2 = vld [vmem:[%s1992_s15 + $0x40] sm:$0xff]  ;;  %250 = vst [vmem:[%s230_s16] sm:$0xff] %v249_v0  ;;  %252 = vst [vmem:[%s230_s16 + $0x8] sm:$0xff] %v251_v1  ;;  %v255_v3 = vld [vmem:[%s1992_s15 + $0x48] sm:$0xff] }
  0x18   : > { %254 = vst [vmem:[%s230_s16 + $0x10] sm:$0xff] %v253_v2  ;;  %v257_v4 = vld [vmem:[%s1992_s15 + $0x80] sm:$0xff]  ;;  %v259_v5 = vld [vmem:[%s1992_s15 + $0x88] sm:$0xff]  ;;  %256 = vst [vmem:[%s230_s16 + $0x18] sm:$0xff] %v255_v3 }
  0x19   : > { %258 = vst [vmem:[%s230_s16 + $0x20] sm:$0xff] %v257_v4  ;;  %260 = vst [vmem:[%s230_s16 + $0x28] sm:$0xff] %v259_v5  ;;  %v261_v6 = vld [vmem:[%s1992_s15 + $0xc0] sm:$0xff]  ;;  %v263_v7 = vld [vmem:[%s1992_s15 + $0xc8] sm:$0xff] }
  0x1a   : > { %v265_v8 = vld [vmem:[%s1992_s15 + $0x100] sm:$0xff]  ;;  %262 = vst [vmem:[%s230_s16 + $0x30] sm:$0xff] %v261_v6  ;;  %264 = vst [vmem:[%s230_s16 + $0x38] sm:$0xff] %v263_v7  ;;  %v267_v9 = vld [vmem:[%s1992_s15 + $0x108] sm:$0xff] }
  0x1b   : > { %266 = vst [vmem:[%s230_s16 + $0x40] sm:$0xff] %v265_v8  ;;  %v269_v10 = vld [vmem:[%s1992_s15 + $0x140] sm:$0xff]  ;;  %v271_v11 = vld [vmem:[%s1992_s15 + $0x148] sm:$0xff]  ;;  %268 = vst [vmem:[%s230_s16 + $0x48] sm:$0xff] %v267_v9 }
  0x1c   : > { %270 = vst [vmem:[%s230_s16 + $0x50] sm:$0xff] %v269_v10  ;;  %272 = vst [vmem:[%s230_s16 + $0x58] sm:$0xff] %v271_v11  ;;  %v273_v12 = vld [vmem:[%s1992_s15 + $0x180] sm:$0xff]  ;;  %v275_v13 = vld [vmem:[%s1992_s15 + $0x188] sm:$0xff] }
  0x1d   : > { %v277_v14 = vld [vmem:[%s1992_s15 + $0x1c0] sm:$0xff]  ;;  %274 = vst [vmem:[%s230_s16 + $0x60] sm:$0xff] %v273_v12  ;;  %276 = vst [vmem:[%s230_s16 + $0x68] sm:$0xff] %v275_v13  ;;  %v279_v15 = vld [vmem:[%s1992_s15 + $0x1c8] sm:$0xff] }
  0x1e   : > { %278 = vst [vmem:[%s230_s16 + $0x70] sm:$0xff] %v277_v14  ;;  %280 = vst [vmem:[%s230_s16 + $0x78] sm:$0xff] %v279_v15 }
  0x1f PF: > { %p1553_p7 = scmp.ge.s32.totalorder %s1898_s24, 1  ;;  %p300_p8 = scmp.lt.s32.totalorder %s1898_s24, 9 }
  0x21   : > { %p301_p9 = pnand %p1553_p7, %p300_p8 }
  0x22   : > { %s307_s17 = sand.u32 (!%p301_p9), 1, %s1874_s18   ;;  %s1555_s27 = sshll.u32 (!%p301_p9), %s1882_s20, 6 }
  0x23   : > { %304 = sbr.rel (%p301_p9) target bundleno = 402 (0x192), region = 51  ;;  %s1554_s28 = sshll.u32 (!%p301_p9), %s307_s17, 7 }
  0x24   : > { %p373_p10 = scmp.lt.s32.totalorder (!%p301_p9), %s1555_s27, 255  ;;  %s1558_s29 = sshll.u32 (!%p301_p9), %s1886_s21, 3 }
  0x25   : > { %p390_p11 = scmp.lt.s32.totalorder (!%p301_p9), %s1558_s29, 15  ;;  %p401_p12 = scmp.lt.s32.totalorder (!%p301_p9), %s1886_s21, 1 }
  0x26   : > { %p1563_p13 = scmp.ne.s32.totalorder (!%p301_p9), %s1882_s20, 0 }
  0x28   : > { %s2181_s27 = smov (!%p373_p10, %s1555_s27), 255  ;;  %s2183_s29 = smov (!%p390_p11, %s1558_s29), 15 }
  0x29   : > { %s1656_s30 = sshll.u32 %s2181_s27, 3  ;;  %s2185_s21 = smov (!%p401_p12, %s1886_s21), 1 }
  0x2a   : > { %s2019_s9 = scalar_lea.vmem %s2163_s1, %s1656_s30  ;;  %s1657_s10 = sshll.u32 %s2183_s29, 3 }
  0x2b   : > { %s2025_s18 = scalar_lea.vmem %s2165_s3, %s1657_s10  ;;  %s1561_s13 = sshll.u32 %s2185_s21, 1 }
  0x2c   : > { %s2030_s16 = scalar_lea.vmem %s2166_s4, %s1561_s13  ;;  %s2035_s7 = scalar_lea.vmem %s2167_s5, %s1561_s13 }
  0x2d   : > { %s2037_s30 = scalar_lea.vmem [#allocation3], %s1554_s28  ;;  %421 = sbr.rel (%p1563_p13) target bundleno = 59 (0x3b), region = 59 }
  0x32   : > { %v1900_v16 = vmov 0.0  }
  0x33   : > { %422 = vst [vmem:[#allocation2 + $0x30] sm:$0xff] %v1900_v16  ;;  %423 = vst [vmem:[#allocation2] sm:$0xff] %v1900_v16 }
  0x34   : > { %424 = vst [vmem:[#allocation2 + $0x58] sm:$0xff] %v1900_v16  ;;  %425 = vst [vmem:[#allocation2 + $0x18] sm:$0xff] %v1900_v16 }
  0x35   : > { %426 = vst [vmem:[#allocation2 + $0x50] sm:$0xff] %v1900_v16  ;;  %427 = vst [vmem:[#allocation2 + $0x68] sm:$0xff] %v1900_v16 }
  0x36   : > { %428 = vst [vmem:[#allocation2 + $0x8] sm:$0xff] %v1900_v16  ;;  %429 = vst [vmem:[#allocation2 + $0x48] sm:$0xff] %v1900_v16 }
  0x37   : > { %430 = vst [vmem:[#allocation2 + $0x40] sm:$0xff] %v1900_v16  ;;  %431 = vst [vmem:[#allocation2 + $0x20] sm:$0xff] %v1900_v16 }
  0x38   : > { %432 = vst [vmem:[#allocation2 + $0x10] sm:$0xff] %v1900_v16  ;;  %433 = vst [vmem:[#allocation2 + $0x38] sm:$0xff] %v1900_v16 }
  0x39   : > { %434 = vst [vmem:[#allocation2 + $0x60] sm:$0xff] %v1900_v16  ;;  %435 = vst [vmem:[#allocation2 + $0x70] sm:$0xff] %v1900_v16 }
  0x3a   : > { %436 = vst [vmem:[#allocation2 + $0x78] sm:$0xff] %v1900_v16  ;;  %437 = vst [vmem:[#allocation2 + $0x28] sm:$0xff] %v1900_v16 }
  0x3b PF: > { %v1724_v17 = vld [vmem:[%s2019_s9 + $0x74] ss:$8 sps:$4 sm:$0xff]   ;;  %v1728_v19 = vld [vmem:[%s2019_s9 + $0x70] ss:$8 sps:$4 sm:$0xff]   ;;  %v1730_v21 = vld [vmem:[%s2019_s9 + $0x64] ss:$8 sps:$4 sm:$0xff]  }
  0x3c   : > { %v1726_v18 = vld [vmem:[%s2019_s9 + $0x174] ss:$8 sps:$4 sm:$0xff]   ;;  %934 = vmatprep.subr.bf16.mxu0 %v1724_v17  ;;  %v1729_v20 = vld [vmem:[%s2019_s9 + $0x170] ss:$8 sps:$4 sm:$0xff]   ;;  %v1732_v22 = vld [vmem:[%s2019_s9 + $0x164] ss:$8 sps:$4 sm:$0xff]  }
  0x3d   : > { %1007 = vmatprep.subr.bf16.mxu1 %v1726_v18  ;;  %935 = vmatpush1.bf16.msra.mxu0 %v1728_v19  ;;  %v1734_v23 = vld [vmem:[%s2019_s9 + $0x60] ss:$8 sps:$4 sm:$0xff]   ;;  %v1736_v25 = vld [vmem:[%s2019_s9 + $0x54] ss:$8 sps:$4 sm:$0xff]   ;;  %v1740_v27 = vld [vmem:[%s2019_s9 + $0x50] ss:$8 sps:$4 sm:$0xff]  }
  0x3e   : > { %1008 = vmatpush1.bf16.msra.mxu1 %v1729_v20  ;;  %936 = vmatprep.subr.bf16.mxu0 %v1730_v21  ;;  %v1735_v24 = vld [vmem:[%s2019_s9 + $0x160] ss:$8 sps:$4 sm:$0xff]   ;;  %v1738_v26 = vld [vmem:[%s2019_s9 + $0x154] ss:$8 sps:$4 sm:$0xff]   ;;  %v1741_v28 = vld [vmem:[%s2019_s9 + $0x150] ss:$8 sps:$4 sm:$0xff]  }
  0x3f   : > { %1009 = vmatprep.subr.bf16.mxu1 %v1732_v22  ;;  %v1742_v29 = vld [vmem:[%s2019_s9 + $0x44] ss:$8 sps:$4 sm:$0xff]   ;;  %v1746_v31 = vld [vmem:[%s2019_s9 + $0x40] ss:$8 sps:$4 sm:$0xff]   ;;  %v1748_v33 = vld [vmem:[%s2019_s9 + $0x34] ss:$8 sps:$4 sm:$0xff]  }
  0x40   : > { %v1744_v30 = vld [vmem:[%s2019_s9 + $0x144] ss:$8 sps:$4 sm:$0xff]   ;;  %v1747_v32 = vld [vmem:[%s2019_s9 + $0x140] ss:$8 sps:$4 sm:$0xff]   ;;  %v1750_v34 = vld [vmem:[%s2019_s9 + $0x134] ss:$8 sps:$4 sm:$0xff]  }
  0x41   : > { %937 = vmatpush1.bf16.msra.mxu0 %v1734_v23  ;;  %v1752_v35 = vld [vmem:[%s2019_s9 + $0x30] ss:$8 sps:$4 sm:$0xff]   ;;  %v1754_v37 = vld [vmem:[%s2019_s9 + $0x24] ss:$8 sps:$4 sm:$0xff]   ;;  %v1758_v39 = vld [vmem:[%s2019_s9 + $0x20] ss:$8 sps:$4 sm:$0xff]  }
  0x42   : > { %1010 = vmatpush1.bf16.msra.mxu1 %v1735_v24  ;;  %938 = vmatprep.subr.bf16.mxu0 %v1736_v25  ;;  %v1753_v36 = vld [vmem:[%s2019_s9 + $0x130] ss:$8 sps:$4 sm:$0xff]   ;;  %v1756_v38 = vld [vmem:[%s2019_s9 + $0x124] ss:$8 sps:$4 sm:$0xff]   ;;  %v1759_v40 = vld [vmem:[%s2019_s9 + $0x120] ss:$8 sps:$4 sm:$0xff]  }
  0x43   : > { %1011 = vmatprep.subr.bf16.mxu1 %v1738_v26  ;;  %v1760_v41 = vld [vmem:[%s2019_s9 + $0x14] ss:$8 sps:$4 sm:$0xff]   ;;  %v1764_v43 = vld [vmem:[%s2019_s9 + $0x10] ss:$8 sps:$4 sm:$0xff]   ;;  %v1766_v45 = vld [vmem:[%s2019_s9 + $0x4] ss:$8 sps:$4 sm:$0xff]  }
  0x44   : > { %v1762_v42 = vld [vmem:[%s2019_s9 + $0x114] ss:$8 sps:$4 sm:$0xff]   ;;  %v1765_v44 = vld [vmem:[%s2019_s9 + $0x110] ss:$8 sps:$4 sm:$0xff]   ;;  %v1768_v46 = vld [vmem:[%s2019_s9 + $0x104] ss:$8 sps:$4 sm:$0xff]  }
  0x45   : > { %939 = vmatpush1.bf16.msra.mxu0 %v1740_v27  ;;  %v1770_v47 = vld [vmem:[%s2019_s9] ss:$8 sps:$4 sm:$0xff]   ;;  %v1772_v49 = vld [vmem:[%s2019_s9 + $0xf4] ss:$8 sps:$4 sm:$0xff]   ;;  %v1776_v51 = vld [vmem:[%s2019_s9 + $0xf0] ss:$8 sps:$4 sm:$0xff]  }
  0x46   : > { %1012 = vmatpush1.bf16.msra.mxu1 %v1741_v28  ;;  %940 = vmatprep.subr.bf16.mxu0 %v1742_v29  ;;  %v1771_v48 = vld [vmem:[%s2019_s9 + $0x100] ss:$8 sps:$4 sm:$0xff]   ;;  %v1774_v50 = vld [vmem:[%s2019_s9 + $0x1f4] ss:$8 sps:$4 sm:$0xff]   ;;  %v1777_v52 = vld [vmem:[%s2019_s9 + $0x1f0] ss:$8 sps:$4 sm:$0xff]  }
  0x47   : > { %1013 = vmatprep.subr.bf16.mxu1 %v1744_v30  ;;  %v1778_v53 = vld [vmem:[%s2019_s9 + $0xe4] ss:$8 sps:$4 sm:$0xff]   ;;  %v1782_v55 = vld [vmem:[%s2019_s9 + $0xe0] ss:$8 sps:$4 sm:$0xff]   ;;  %v1784_v57 = vld [vmem:[%s2019_s9 + $0xd4] ss:$8 sps:$4 sm:$0xff]  }
  0x48   : > { %v1780_v54 = vld [vmem:[%s2019_s9 + $0x1e4] ss:$8 sps:$4 sm:$0xff]   ;;  %v1783_v56 = vld [vmem:[%s2019_s9 + $0x1e0] ss:$8 sps:$4 sm:$0xff]   ;;  %v1786_v58 = vld [vmem:[%s2019_s9 + $0x1d4] ss:$8 sps:$4 sm:$0xff]  }
  0x49   : > { %941 = vmatpush1.bf16.msra.mxu0 %v1746_v31  ;;  %v1788_v59 = vld [vmem:[%s2019_s9 + $0xd0] ss:$8 sps:$4 sm:$0xff]   ;;  %v1790_v61 = vld [vmem:[%s2019_s9 + $0xc4] ss:$8 sps:$4 sm:$0xff]   ;;  %v1794_v63 = vld [vmem:[%s2019_s9 + $0xc0] ss:$8 sps:$4 sm:$0xff]  }
  0x4a   : > { %1014 = vmatpush1.bf16.msra.mxu1 %v1747_v32  ;;  %942 = vmatprep.subr.bf16.mxu0 %v1748_v33  ;;  %v1789_v60 = vld [vmem:[%s2019_s9 + $0x1d0] ss:$8 sps:$4 sm:$0xff]   ;;  %v1792_v62 = vld [vmem:[%s2019_s9 + $0x1c4] ss:$8 sps:$4 sm:$0xff]   ;;  %v1795_v0 = vld [vmem:[%s2019_s9 + $0x1c0] ss:$8 sps:$4 sm:$0xff]  }
  0x4b   : > { %1015 = vmatprep.subr.bf16.mxu1 %v1750_v34  ;;  %v1796_v1 = vld [vmem:[%s2019_s9 + $0xb4] ss:$8 sps:$4 sm:$0xff]   ;;  %v1800_v5 = vld [vmem:[%s2019_s9 + $0xb0] ss:$8 sps:$4 sm:$0xff]   ;;  %v1802_v7 = vld [vmem:[%s2019_s9 + $0xa4] ss:$8 sps:$4 sm:$0xff]  }
  0x4c   : > { %v1822_v2 = vld [vmem:[%s2037_s30 + $0x4] ss:$16 sps:$4 sm:$0xff]   ;;  %v1825_v4 = vld [vmem:[%s2037_s30 + $0xc] ss:$16 sps:$4 sm:$0xff]   ;;  %v1801_v6 = vld [vmem:[%s2019_s9 + $0x1b0] ss:$8 sps:$4 sm:$0xff]  }
  0x4d   : > { %943 = vmatpush1.bf16.msra.mxu0 %v1752_v35  ;;  %v1798_v3 = vld [vmem:[%s2019_s9 + $0x1b4] ss:$8 sps:$4 sm:$0xff]   ;;  %966 = vmatprep.mubr.bf16.mxu0 %v1822_v2  ;;  %v1804_v8 = vld [vmem:[%s2019_s9 + $0x1a4] ss:$8 sps:$4 sm:$0xff]   ;;  %v1806_v9 = vld [vmem:[%s2019_s9 + $0xa0] ss:$8 sps:$4 sm:$0xff]  }
  0x4e   : > { %1016 = vmatpush1.bf16.msra.mxu1 %v1753_v36  ;;  %944 = vmatprep.subr.bf16.mxu0 %v1754_v37  ;;  %v1807_v10 = vld [vmem:[%s2019_s9 + $0x1a0] ss:$8 sps:$4 sm:$0xff]   ;;  %v1808_v11 = vld [vmem:[%s2019_s9 + $0x94] ss:$8 sps:$4 sm:$0xff]   ;;  %v1812_v13 = vld [vmem:[%s2019_s9 + $0x90] ss:$8 sps:$4 sm:$0xff]  }
  0x4f   : > { %1017 = vmatprep.subr.bf16.mxu1 %v1756_v38  ;;  %1039 = vmatprep.mubr.bf16.mxu1 %v1825_v4  ;;  %v1810_v12 = vld [vmem:[%s2019_s9 + $0x194] ss:$8 sps:$4 sm:$0xff]   ;;  %v1813_v14 = vld [vmem:[%s2019_s9 + $0x190] ss:$8 sps:$4 sm:$0xff]   ;;  %v1814_v15 = vld [vmem:[%s2019_s9 + $0x84] ss:$8 sps:$4 sm:$0xff]  }
  0x50   : > { %v1816_v16 = vld [vmem:[%s2019_s9 + $0x184] ss:$8 sps:$4 sm:$0xff]   ;;  %v1818_v17 = vld [vmem:[%s2019_s9 + $0x80] ss:$8 sps:$4 sm:$0xff]   ;;  %v438_v34 = vld [vmem:[#allocation2 + $0x30] sm:$0xff]  ;;  %p1644_p0 = scmp.ne.s32.totalorder %s1882_s20, 3 }
  0x51   : > { %945 = vmatpush1.bf16.msra.mxu0 %v1758_v39  ;;  %v1819_v18 = vld [vmem:[%s2019_s9 + $0x180] ss:$8 sps:$4 sm:$0xff]   ;;  %v1826_v21 = vld [vmem:[%s2037_s30 + $0x24] ss:$16 sps:$4 sm:$0xff]   ;;  %v1828_v22 = vld [vmem:[%s2037_s30 + $0x2c] ss:$16 sps:$4 sm:$0xff]  }
  0x52   : > { %1018 = vmatpush1.bf16.msra.mxu1 %v1759_v40  ;;  %946 = vmatprep.subr.bf16.mxu0 %v1760_v41  ;;  %v1820_v19 = vld [vmem:[%s2037_s30] ss:$16 sps:$4 sm:$0xff]   ;;  %v1823_v20 = vld [vmem:[%s2037_s30 + $0x8] ss:$16 sps:$4 sm:$0xff]   ;;  %v1832_v25 = vld [vmem:[%s2037_s30 + $0x44] ss:$16 sps:$4 sm:$0xff]  }
  0x53   : > { %1019 = vmatprep.subr.bf16.mxu1 %v1762_v42  ;;  %v1830_v23 = vld [vmem:[%s2037_s30 + $0x20] ss:$16 sps:$4 sm:$0xff]   ;;  %v1831_v24 = vld [vmem:[%s2037_s30 + $0x28] ss:$16 sps:$4 sm:$0xff]   ;;  %v1834_v26 = vld [vmem:[%s2037_s30 + $0x4c] ss:$16 sps:$4 sm:$0xff]  }
  0x54   : > { %v1836_v27 = vld [vmem:[%s2037_s30 + $0x40] ss:$16 sps:$4 sm:$0xff]   ;;  %v1837_v28 = vld [vmem:[%s2037_s30 + $0x48] ss:$16 sps:$4 sm:$0xff]   ;;  %v1838_v29 = vld [vmem:[%s2037_s30 + $0x64] ss:$16 sps:$4 sm:$0xff]  }
  0x55   : > { %947 = vmatpush1.bf16.msra.mxu0 %v1764_v43  ;;  %v1840_v30 = vld [vmem:[%s2037_s30 + $0x6c] ss:$16 sps:$4 sm:$0xff]   ;;  %v1842_v31 = vld [vmem:[%s2037_s30 + $0x60] ss:$16 sps:$4 sm:$0xff]   ;;  %v1843_v32 = vld [vmem:[%s2037_s30 + $0x68] ss:$16 sps:$4 sm:$0xff]  }
  0x56   : > { %1020 = vmatpush1.bf16.msra.mxu1 %v1765_v44  ;;  %948 = vmatprep.subr.bf16.mxu0 %v1766_v45  ;;  %v439_v38 = vld [vmem:[#allocation2] sm:$0xff]  ;;  %v440_v43 = vld [vmem:[#allocation2 + $0x58] sm:$0xff]  ;;  %v445_v4 = vld [vmem:[#allocation2 + $0x48] sm:$0xff] }
  0x57   : > { %1021 = vmatprep.subr.bf16.mxu1 %v1768_v46 }
  0x59   : > { %949 = vmatpush1.bf16.msra.mxu0 %v1770_v47 }
  0x5a   : > { %1022 = vmatpush1.bf16.msra.mxu1 %v1771_v48  ;;  %950 = vmatprep.subr.bf16.mxu0 %v1772_v49  ;;  %v441_v48 = vld [vmem:[#allocation2 + $0x18] sm:$0xff] }
  0x5b   : > { %1023 = vmatprep.subr.bf16.mxu1 %v1774_v50 }
  0x5d   : > { %951 = vmatpush2.bf16.msra.mxu0 %v1776_v51 }
  0x5e   : > { %1024 = vmatpush2.bf16.msra.mxu1 %v1777_v52  ;;  %952 = vmatprep.subr.bf16.mxu0 %v1778_v53  ;;  %v442_v53 = vld [vmem:[#allocation2 + $0x50] sm:$0xff] }
  0x5f   : > { %1025 = vmatprep.subr.bf16.mxu1 %v1780_v54 }
  0x61   : > { %953 = vmatpush2.bf16.msra.mxu0 %v1782_v55 }
  0x62   : > { %1026 = vmatpush2.bf16.msra.mxu1 %v1783_v56  ;;  %954 = vmatprep.subr.bf16.mxu0 %v1784_v57 }
  0x63   : > { %1027 = vmatprep.subr.bf16.mxu1 %v1786_v58  ;;  %v443_v58 = vld [vmem:[#allocation2 + $0x68] sm:$0xff] }
  0x65   : > { %955 = vmatpush2.bf16.msra.mxu0 %v1788_v59 }
  0x66   : > { %1028 = vmatpush2.bf16.msra.mxu1 %v1789_v60  ;;  %956 = vmatprep.subr.bf16.mxu0 %v1790_v61 }
  0x67   : > { %1029 = vmatprep.subr.bf16.mxu1 %v1792_v62 }
  0x69   : > { %957 = vmatpush2.bf16.msra.mxu0 %v1794_v63  ;;  %v444_v63 = vld [vmem:[#allocation2 + $0x8] sm:$0xff] }
  0x6a   : > { %1030 = vmatpush2.bf16.msra.mxu1 %v1795_v0  ;;  %958 = vmatprep.subr.bf16.mxu0 %v1796_v1 }
  0x6b   : > { %1031 = vmatprep.subr.bf16.mxu1 %v1798_v3 }
  0x6d   : > { %959 = vmatpush2.bf16.msra.mxu0 %v1800_v5 }
  0x6e   : > { %1032 = vmatpush2.bf16.msra.mxu1 %v1801_v6  ;;  %960 = vmatprep.subr.bf16.mxu0 %v1802_v7 }
  0x6f   : > { %1033 = vmatprep.subr.bf16.mxu1 %v1804_v8 }
  0x71   : > { %961 = vmatpush2.bf16.msra.mxu0 %v1806_v9  ;;  %v446_v9 = vld [vmem:[#allocation2 + $0x40] sm:$0xff] }
  0x72   : > { %1034 = vmatpush2.bf16.msra.mxu1 %v1807_v10  ;;  %962 = vmatprep.subr.bf16.mxu0 %v1808_v11 }
  0x73   : > { %1035 = vmatprep.subr.bf16.mxu1 %v1810_v12 }
  0x75   : > { %963 = vmatpush2.bf16.msra.mxu0 %v1812_v13 }
  0x76   : > { %1036 = vmatpush2.bf16.msra.mxu1 %v1813_v14  ;;  %964 = vmatprep.subr.bf16.mxu0 %v1814_v15  ;;  %v447_v14 = vld [vmem:[#allocation2 + $0x20] sm:$0xff] }
  0x77   : > { %1037 = vmatprep.subr.bf16.mxu1 %v1816_v16 }
  0x79   : > { %965 = vmatpush2.bf16.msra.mxu0 %v1818_v17 }
  0x7a   : > { %1038 = vmatpush2.bf16.msra.mxu1 %v1819_v18 }
  0x7c   : > { %967 = vmatmul.mubr.bf16.vlgmr.msra.gmra.mxu0 %v1820_v19  ;;  %v448_v19 = vld [vmem:[#allocation2 + $0x10] sm:$0xff] }
  0x7d   : > { %1040 = vmatmul.mubr.bf16.vlgmr.msra.gmra.mxu1 %v1823_v20  ;;  %976 = vmatprep.mubr.bf16.mxu0 %v1826_v21 }
  0x7e   : > { %1049 = vmatprep.mubr.bf16.mxu1 %v1828_v22 }
  0x84   : > { %977 = vmatmul.mubr.bf16.gmra.mxu0 %v1830_v23 }
  0x85   : > { %1050 = vmatmul.mubr.bf16.gmra.mxu1 %v1831_v24  ;;  %986 = vmatprep.mubr.bf16.mxu0 %v1832_v25  ;;  %v449_v24 = vld [vmem:[#allocation2 + $0x38] sm:$0xff] }
  0x86   : > { %1059 = vmatprep.mubr.bf16.mxu1 %v1834_v26 }
  0x8c   : > { %987 = vmatmul.mubr.bf16.gmra.mxu0 %v1836_v27 }
  0x8d   : > { %1060 = vmatmul.mubr.bf16.gmra.mxu1 %v1837_v28  ;;  %996 = vmatprep.mubr.bf16.mxu0 %v1838_v29  ;;  %v450_v29 = vld [vmem:[#allocation2 + $0x60] sm:$0xff] }
  0x8e   : > { %1069 = vmatprep.mubr.bf16.mxu1 %v1840_v30 }
  0x94   : > { %997 = vmatmul.mubr.bf16.gmra.mxu0 %v1842_v31 }
  0x95   : > { %1070 = vmatmul.mubr.bf16.gmra.mxu1 %v1843_v32 }
 0x13c   : > { %v968_v33 = vpop.f32.mrf.mxu0 }
 0x13d   : > { %v1041_v35 = vpop.f32.mrf.mxu1 }
 0x13e   : > { %v1042_v36 = vadd.f32 %v1041_v35, %v968_v33  ;;  %v970_v37 = vpop.f32.mrf.mxu0 }
 0x13f   : > { %v1043_v39 = vpop.f32.mrf.mxu1 }
 0x140   : > { %v1080_v40 = vadd.f32 %v1042_v36, %v438_v34  ;;  %v1044_v41 = vadd.f32 %v1043_v39, %v970_v37  ;;  %v972_v42 = vpop.f32.mrf.mxu0  ;;  %v451_v34 = vld [vmem:[#allocation2 + $0x70] sm:$0xff]  ;;  %v452_v39 = vld [vmem:[#allocation2 + $0x78] sm:$0xff] }
 0x141   : > { %v1045_v44 = vpop.f32.mrf.mxu1 }
 0x142   : > { %1096 = vst [vmem:[#allocation2 + $0x30] sm:$0xff] %v1080_v40  ;;  %v1081_v45 = vadd.f32 %v1044_v41, %v439_v38  ;;  %v1046_v46 = vadd.f32 %v1045_v44, %v972_v42  ;;  %v974_v47 = vpop.f32.mrf.mxu0  ;;  %v453_v44 = vld [vmem:[#allocation2 + $0x28] sm:$0xff] }
 0x143   : > { %v1047_v49 = vpop.f32.mrf.mxu1 }
 0x144   : > { %1097 = vst [vmem:[#allocation2] sm:$0xff] %v1081_v45  ;;  %v1082_v50 = vadd.f32 %v1046_v46, %v440_v43  ;;  %v1048_v51 = vadd.f32 %v1047_v49, %v974_v47  ;;  %v978_v52 = vpop.f32.mrf.mxu0 }
 0x145   : > { %v1051_v54 = vpop.f32.mrf.mxu1 }
 0x146   : > { %1098 = vst [vmem:[#allocation2 + $0x58] sm:$0xff] %v1082_v50  ;;  %v1083_v55 = vadd.f32 %v1048_v51, %v441_v48  ;;  %v1052_v56 = vadd.f32 %v1051_v54, %v978_v52  ;;  %v980_v57 = vpop.f32.mrf.mxu0 }
 0x147   : > { %v1053_v59 = vpop.f32.mrf.mxu1 }
 0x148   : > { %1099 = vst [vmem:[#allocation2 + $0x18] sm:$0xff] %v1083_v55  ;;  %v1084_v60 = vadd.f32 %v1052_v56, %v442_v53  ;;  %v1054_v61 = vadd.f32 %v1053_v59, %v980_v57  ;;  %v982_v62 = vpop.f32.mrf.mxu0 }
 0x149   : > { %v1055_v0 = vpop.f32.mrf.mxu1 }
 0x14a   : > { %1100 = vst [vmem:[#allocation2 + $0x50] sm:$0xff] %v1084_v60  ;;  %v1085_v1 = vadd.f32 %v1054_v61, %v443_v58  ;;  %v1056_v2 = vadd.f32 %v1055_v0, %v982_v62  ;;  %v984_v3 = vpop.f32.mrf.mxu0 }
 0x14b   : > { %v1057_v5 = vpop.f32.mrf.mxu1 }
 0x14c   : > { %1101 = vst [vmem:[#allocation2 + $0x68] sm:$0xff] %v1085_v1  ;;  %v1086_v6 = vadd.f32 %v1056_v2, %v444_v63  ;;  %v1058_v7 = vadd.f32 %v1057_v5, %v984_v3  ;;  %v988_v8 = vpop.f32.mrf.mxu0 }
 0x14d   : > { %v1061_v10 = vpop.f32.mrf.mxu1 }
 0x14e   : > { %1102 = vst [vmem:[#allocation2 + $0x8] sm:$0xff] %v1086_v6  ;;  %v1087_v11 = vadd.f32 %v1058_v7, %v445_v4  ;;  %v1062_v12 = vadd.f32 %v1061_v10, %v988_v8  ;;  %v990_v13 = vpop.f32.mrf.mxu0 }
 0x14f   : > { %v1063_v15 = vpop.f32.mrf.mxu1 }
 0x150   : > { %1103 = vst [vmem:[#allocation2 + $0x48] sm:$0xff] %v1087_v11  ;;  %v1088_v16 = vadd.f32 %v1062_v12, %v446_v9  ;;  %v1064_v17 = vadd.f32 %v1063_v15, %v990_v13  ;;  %v992_v18 = vpop.f32.mrf.mxu0 }
 0x151   : > { %v1065_v20 = vpop.f32.mrf.mxu1 }
 0x152   : > { %1104 = vst [vmem:[#allocation2 + $0x40] sm:$0xff] %v1088_v16  ;;  %v1089_v21 = vadd.f32 %v1064_v17, %v447_v14  ;;  %v1066_v22 = vadd.f32 %v1065_v20, %v992_v18  ;;  %v994_v23 = vpop.f32.mrf.mxu0 }
 0x153   : > { %v1067_v25 = vpop.f32.mrf.mxu1 }
 0x154   : > { %1105 = vst [vmem:[#allocation2 + $0x20] sm:$0xff] %v1089_v21  ;;  %v1090_v26 = vadd.f32 %v1066_v22, %v448_v19  ;;  %v1068_v27 = vadd.f32 %v1067_v25, %v994_v23  ;;  %v998_v28 = vpop.f32.mrf.mxu0 }
 0x155   : > { %v1071_v30 = vpop.f32.mrf.mxu1 }
 0x156   : > { %1106 = vst [vmem:[#allocation2 + $0x10] sm:$0xff] %v1090_v26  ;;  %v1091_v31 = vadd.f32 %v1068_v27, %v449_v24  ;;  %v1072_v32 = vadd.f32 %v1071_v30, %v998_v28  ;;  %v1000_v33 = vpop.f32.mrf.mxu0 }
 0x157   : > { %v1073_v35 = vpop.f32.mrf.mxu1 }
 0x158   : > { %1107 = vst [vmem:[#allocation2 + $0x38] sm:$0xff] %v1091_v31  ;;  %v1092_v36 = vadd.f32 %v1072_v32, %v450_v29  ;;  %v1074_v37 = vadd.f32 %v1073_v35, %v1000_v33  ;;  %v1002_v38 = vpop.f32.mrf.mxu0 }
 0x159   : > { %v1075_v40 = vpop.f32.mrf.mxu1 }
 0x15a   : > { %1108 = vst [vmem:[#allocation2 + $0x60] sm:$0xff] %v1092_v36  ;;  %v1093_v41 = vadd.f32 %v1074_v37, %v451_v34  ;;  %v1076_v42 = vadd.f32 %v1075_v40, %v1002_v38  ;;  %v1004_v43 = vpop.f32.mrf.mxu0 }
 0x15b   : > { %v1077_v45 = vpop.f32.mrf.mxu1 }
 0x15c   : > { %1109 = vst [vmem:[#allocation2 + $0x70] sm:$0xff] %v1093_v41  ;;  %v1094_v46 = vadd.f32 %v1076_v42, %v452_v39  ;;  %v1078_v47 = vadd.f32 %v1077_v45, %v1004_v43  ;;  %1115 = sbr.rel (%p1644_p0) target bundleno = 402 (0x192), region = 63 }
 0x15e   : > { %1110 = vst [vmem:[#allocation2 + $0x78] sm:$0xff] %v1094_v46  ;;  %v1095_v48 = vadd.f32 %v1078_v47, %v453_v44 }
 0x160   : > { %1111 = vst [vmem:[#allocation2 + $0x28] sm:$0xff] %v1095_v48 }
 0x161   : > { %v1134_v49 = vlaneseq  ;;  %v1116_v51 = vld [vmem:[#allocation2 + $0x30] sm:$0xff]  ;;  %v1117_v54 = vld [vmem:[#allocation2] sm:$0xff]  ;;  %v1118_v55 = vld [vmem:[#allocation2 + $0x58] sm:$0xff] }
 0x162   : > { %v1132_v56 = vld [vmem:[%s2164_s2] sm:$0x3]  ;;  %v1119_v57 = vld [vmem:[#allocation2 + $0x18] sm:$0xff]  ;;  %v1120_v58 = vld [vmem:[#allocation2 + $0x50] sm:$0xff] }
 0x163   : > { %v2122_v50 = vshrl.u32 %v1134_v49, 7  ;;  %v1121_v59 = vld [vmem:[#allocation2 + $0x68] sm:$0xff]  ;;  %v1124_v0 = vld [vmem:[#allocation2 + $0x40] sm:$0xff]  ;;  %v1126_v2 = vld [vmem:[#allocation2 + $0x10] sm:$0xff]  ;;  %vm1206_vm0 = vcmp.lt.s32.totalorder %v1134_v49, 256 }
 0x164   : > { %v1122_v62 = vld [vmem:[#allocation2 + $0x8] sm:$0xff]  ;;  %v1125_v1 = vld [vmem:[#allocation2 + $0x20] sm:$0xff]  ;;  %v1127_v3 = vld [vmem:[#allocation2 + $0x38] sm:$0xff] }
 0x165   : > { %v1136_v52 = vsub.s32 0, %v2122_v50  ;;  %v1140_v53 = vsub.s32 1, %v2122_v50  ;;  %v1123_v63 = vld [vmem:[#allocation2 + $0x48] sm:$0xff]  ;;  %v1128_v4 = vld [vmem:[#allocation2 + $0x60] sm:$0xff]  ;;  %v1129_v5 = vld [vmem:[#allocation2 + $0x70] sm:$0xff] }
 0x166   : > { %v1130_v14 = vld [vmem:[#allocation2 + $0x78] sm:$0xff] }
 0x167   : > { %v1137_v60 = vrot.slane %v1132_v56, %v1136_v52  ;;  %v1141_v61 = vrot.slane %v1132_v56, %v1140_v53  ;;  %v1131_v15 = vld [vmem:[#allocation2 + $0x28] sm:$0xff] }
 0x169   : > { %v1144_v6 = vadd.f32 %v1137_v60, %v1116_v51  ;;  %v1145_v7 = vadd.f32 %v1141_v61, %v1117_v54  ;;  %v1146_v8 = vadd.f32 %v1137_v60, %v1118_v55  ;;  %v1147_v9 = vadd.f32 %v1141_v61, %v1119_v57 }
 0x16a   : > { %v1148_v10 = vadd.f32 %v1137_v60, %v1120_v58  ;;  %v1149_v11 = vadd.f32 %v1141_v61, %v1121_v59  ;;  %v1150_v12 = vadd.f32 %v1137_v60, %v1122_v62  ;;  %v1151_v13 = vadd.f32 %v1141_v61, %v1123_v63 }
 0x16b   : > { %v1152_v16 = vadd.f32 %v1137_v60, %v1124_v0  ;;  %v1153_v17 = vadd.f32 %v1141_v61, %v1125_v1  ;;  %v1154_v18 = vadd.f32 %v1137_v60, %v1126_v2  ;;  %v1155_v19 = vadd.f32 %v1141_v61, %v1127_v3 }
 0x16c   : > { %v1156_v20 = vadd.f32 %v1137_v60, %v1128_v4  ;;  %v1157_v21 = vadd.f32 %v1141_v61, %v1129_v5  ;;  %v1160_v22 = vadd.f32 %v1146_v8, %v1144_v6  ;;  %v1173_v23 = vadd.f32 %v1147_v9, %v1145_v7 }
 0x16d   : > { %v1209_v24 = vmul.f32 %v1144_v6, %v1144_v6  ;;  %v1210_v25 = vmul.f32 %v1145_v7, %v1145_v7  ;;  %v1211_v26 = vmul.f32 %v1146_v8, %v1146_v8  ;;  %v1212_v27 = vmul.f32 %v1147_v9, %v1147_v9 }
 0x16e   : > { %v1158_v28 = vadd.f32 %v1137_v60, %v1130_v14  ;;  %v1159_v29 = vadd.f32 %v1141_v61, %v1131_v15  ;;  %v1161_v30 = vadd.f32 %v1160_v22, %v1148_v10  ;;  %v1174_v31 = vadd.f32 %v1173_v23, %v1149_v11 }
 0x16f   : > { %v1213_v32 = vmul.f32 %v1148_v10, %v1148_v10  ;;  %v1214_v33 = vmul.f32 %v1149_v11, %v1149_v11  ;;  %v1215_v34 = vmul.f32 %v1150_v12, %v1150_v12  ;;  %v1216_v35 = vmul.f32 %v1151_v13, %v1151_v13 }
 0x170   : > { %v1162_v36 = vadd.f32 %v1161_v30, %v1150_v12  ;;  %v1175_v37 = vadd.f32 %v1174_v31, %v1151_v13  ;;  %v1217_v38 = vmul.f32 %v1152_v16, %v1152_v16  ;;  %v1218_v39 = vmul.f32 %v1153_v17, %v1153_v17 }
 0x171   : > { %v1219_v40 = vmul.f32 %v1154_v18, %v1154_v18  ;;  %v1220_v41 = vmul.f32 %v1155_v19, %v1155_v19  ;;  %v1225_v42 = vadd.f32 %v1211_v26, %v1209_v24  ;;  %v1238_v43 = vadd.f32 %v1212_v27, %v1210_v25 }
 0x172   : > { %v1163_v44 = vadd.f32 %v1162_v36, %v1152_v16  ;;  %v1176_v45 = vadd.f32 %v1175_v37, %v1153_v17  ;;  %v1658_v46 = vpack.c.bf16 %v1145_v7, %v1144_v6  ;;  %v1659_v47 = vpack.c.bf16 %v1147_v9, %v1146_v8 }
 0x173   : > { %v1226_v48 = vadd.f32 %v1225_v42, %v1213_v32  ;;  %v1239_v51 = vadd.f32 %v1238_v43, %v1214_v33  ;;  %v1660_v52 = vpack.c.bf16 %v1149_v11, %v1148_v10  ;;  %v1661_v53 = vpack.c.bf16 %v1151_v13, %v1150_v12 }
 0x174   : > { %v1164_v54 = vadd.f32 %v1163_v44, %v1154_v18  ;;  %v1177_v55 = vadd.f32 %v1176_v45, %v1155_v19  ;;  %1318 = vst [vmem:[%s2025_s18] sm:$0xff] %v1658_v46  ;;  %1319 = vst [vmem:[%s2025_s18 + $0x8] sm:$0xff] %v1659_v47  ;;  %v1662_v56 = vpack.c.bf16 %v1153_v17, %v1152_v16  ;;  %v1901_v16 = vmov 1966171168  }
 0x175   : > { %v1663_v57 = vpack.c.bf16 %v1155_v19, %v1154_v18  ;;  %v1227_v58 = vadd.f32 %v1226_v48, %v1215_v34  ;;  %v1240_v59 = vadd.f32 %v1239_v51, %v1216_v35  ;;  %1320 = vst [vmem:[%s2025_s18 + $0x10] sm:$0xff] %v1660_v52  ;;  %1321 = vst [vmem:[%s2025_s18 + $0x18] sm:$0xff] %v1661_v53  ;;  %v1190_v17 = vunpack.c.l.s4 %v1901_v16 }
 0x176   : > { %v1664_v60 = vpack.c.bf16 %v1157_v21, %v1156_v20  ;;  %v1665_v61 = vpack.c.bf16 %v1159_v29, %v1158_v28  ;;  %v1165_v62 = vadd.f32 %v1164_v54, %v1156_v20  ;;  %v1178_v63 = vadd.f32 %v1177_v55, %v1157_v21  ;;  %1322 = vst [vmem:[%s2025_s18 + $0x20] sm:$0xff] %v1662_v56 }
 0x177   : > { %1323 = vst [vmem:[%s2025_s18 + $0x28] sm:$0xff] %v1663_v57  ;;  %v1221_v0 = vmul.f32 %v1156_v20, %v1156_v20  ;;  %v1222_v1 = vmul.f32 %v1157_v21, %v1157_v21  ;;  %v1228_v2 = vadd.f32 %v1227_v58, %v1217_v38  ;;  %v1241_v3 = vadd.f32 %v1240_v59, %v1218_v39 }
 0x178   : > { %1324 = vst [vmem:[%s2025_s18 + $0x30] sm:$0xff] %v1664_v60  ;;  %1325 = vst [vmem:[%s2025_s18 + $0x38] sm:$0xff] %v1665_v61  ;;  %v1166_v4 = vadd.f32 %v1165_v62, %v1158_v28  ;;  %v1179_v5 = vadd.f32 %v1178_v63, %v1159_v29  ;;  %v1223_v6 = vmul.f32 %v1158_v28, %v1158_v28  ;;  %v1191_v26 = vunpack.c.0.s8 %v1190_v17 }
 0x179   : > { %v1224_v7 = vmul.f32 %v1159_v29, %v1159_v29  ;;  %v1229_v8 = vadd.f32 %v1228_v2, %v1219_v40  ;;  %v1242_v9 = vadd.f32 %v1241_v3, %v1220_v41 }
 0x17a   : > { %v1167_v10 = vrot.slane %v1166_v4, 4  ;;  %v1180_v11 = vrot.slane %v1179_v5, 4  ;;  %v1194_v35 = vsub.s32 %v1191_v26, %v2122_v50 }
 0x17b   : > { %v1230_v12 = vadd.f32 %v1229_v8, %v1221_v0  ;;  %v1243_v13 = vadd.f32 %v1242_v9, %v1222_v1 }
 0x17c   : > { %v1168_v14 = vadd.f32 %v1167_v10, %v1166_v4  ;;  %v1181_v15 = vadd.f32 %v1180_v11, %v1179_v5 }
 0x17d   : > { %v1231_v18 = vadd.f32 %v1230_v12, %v1223_v6  ;;  %v1244_v19 = vadd.f32 %v1243_v13, %v1224_v7 }
 0x17e   : > { %v1169_v20 = vrot.slane %v1168_v14, 2  ;;  %v1182_v21 = vrot.slane %v1181_v15, 2 }
 0x17f   : > { %v1232_v22 = vrot.slane %v1231_v18, 4  ;;  %v1245_v23 = vrot.slane %v1244_v19, 4 }
 0x180   : > { %v1170_v24 = vadd.f32 %v1169_v20, %v1168_v14  ;;  %v1183_v25 = vadd.f32 %v1182_v21, %v1181_v15 }
 0x181   : > { %v1233_v27 = vadd.f32 %v1232_v22, %v1231_v18  ;;  %v1246_v28 = vadd.f32 %v1245_v23, %v1244_v19 }
 0x182   : > { %v1171_v29 = vrot.slane %v1170_v24, 1  ;;  %v1184_v30 = vrot.slane %v1183_v25, 1 }
 0x183   : > { %v1234_v31 = vrot.slane %v1233_v27, 2  ;;  %v1247_v32 = vrot.slane %v1246_v28, 2 }
 0x184   : > { %v1172_v33 = vadd.f32 %v1171_v29, %v1170_v24  ;;  %v1185_v34 = vadd.f32 %v1184_v30, %v1183_v25 }
 0x185   : > { %v1235_v36 = vadd.f32 %v1234_v31, %v1233_v27  ;;  %v1248_v37 = vadd.f32 %v1247_v32, %v1246_v28 }
 0x186   : > { %v1188_v38 = vcombine.low %v1172_v33, %v1185_v34 }
 0x187   : > { %v1236_v39 = vrot.slane %v1235_v36, 1  ;;  %v1249_v40 = vrot.slane %v1248_v37, 1 }
 0x188   : > { %v1195_v41 = vrot.slane %v1188_v38, %v1194_v35 }
 0x189   : > { %v1237_v42 = vadd.f32 %v1236_v39, %v1235_v36  ;;  %v1250_v43 = vadd.f32 %v1249_v40, %v1248_v37 }
 0x18a   : > { %v1202_v44 = vrot.slane %v1195_v41, %v1194_v35 }
 0x18b   : > { %v1253_v45 = vcombine.low %v1237_v42, %v1250_v43 }
 0x18c   : > { %1208 = vst.msk [vmem:[%s2030_s16] sm:$0x3] %vm1206_vm0, %v1202_v44 }
 0x18d   : > { %v1260_v46 = vrot.slane %v1253_v45, %v1194_v35 }
 0x18f   : > { %v1267_v47 = vrot.slane %v1260_v46, %v1194_v35 }
 0x191   : > { %1269 = vst.msk [vmem:[%s2035_s7] sm:$0x3] %vm1206_vm0, %v1267_v47 }
 0x192 PF: > { %s16_s24 = sadd.s32 1, %s1898_s24   ;;  %s2168_s18 = smov %s1878_s19 }
 0x193   : > { %p13_p1 = scmp.ge.s32.totalorder %s16_s24, 10   ;;  %s2169_s19 = smov %s1983_s6 }
 0x194   : > { %s2170_s20 = smov %s1890_s22  ;;  %s2171_s21 = smov %s1894_s23 }
 0x195   : > { %s2172_s22 = smov %s2175_s25  ;;  %s2173_s23 = smov %s2179_s26 }
 0x196   :  { %15 = sbr.rel (!%p13_p1) target bundleno = 4 (0x4), region = 128 }

// kernel: discriminator_forward.14
= control target key start
LH: loop header
LB: loop body
LE: loop exit
PB: predicated region body
PF: predicated region fallthrough
CT: control target
= control target key end

     0   :  { %s584_s12 = smov 0   ;;  %s586_s13 = smov 0   ;;  %s631_s0 = inlined_call_operand.vmem [shape: bf16[2,16,512], index: 0, kind: input, shape index: {}]   ;;  %s632_s1 = inlined_call_operand.vmem [shape: f32[2,1,512], index: 1, kind: input, shape index: {}]   ;;  %s633_s2 = inlined_call_operand.vmem [shape: f32[2,1,512], index: 2, kind: input, shape index: {}]   ;;  %s634_s3 = inlined_call_operand.vmem [shape: bf16[2,16,512], index: 3, kind: output, shape index: {}]  }
   0x1   :  { %s588_s14 = smov 0  }
   0x2 LB: > { %s25_s15 = sadd.s32 1, %s558_s13  ;;  %p497_p0 = scmp.ge.s32.totalorder %s562_s14, 1  ;;  %s562_s14 = sphi %s588_s14, %s13_s14   ;;  %s558_s13 = sphi %s586_s13, %s636_s13   ;;  %s554_s12 = sphi %s584_s12, %s635_s12  }
   0x3   : > { %p27_p1 = scmp.ge.s32.totalorder %s25_s15, 2  ;;  %p177_p2 = scmp.lt.s32.totalorder %s562_s14, 3 }
   0x5   : > { %s638_s15 = smov (%p27_p1, %s25_s15), 0  ;;  %p178_p3 = pnand %p497_p0, %p177_p2 }
   0x6   : > { %p220_p4 = scmp.lt.s32.totalorder (!%p178_p3), %s554_s12, 1 }
   0x7   : > { %181 = sbr.rel (%p178_p3) target bundleno = 36 (0x24), region = 32 }
   0xc   : > { %v263_v0 = vlaneseq  ;;  %s640_s12 = smov (!%p220_p4, %s554_s12), 1 }
   0xd   : > { %s510_s16 = sshll.u32 %s640_s12, 5  ;;  %s500_s17 = sshll.u32 %s640_s12, 2 }
   0xe   : > { %v264_v1 = vshrl.u32 %v263_v0, 7  ;;  %s228_s20 = scalar_lea.vmem %s631_s0, %s510_s16  ;;  %s233_s23 = scalar_lea.vmem %s632_s1, %s500_s17 }
   0xf   : > { %s237_s26 = scalar_lea.vmem %s633_s2, %s500_s17  ;;  %v249_v4 = vld [vmem:[%s228_s20] sm:$0xff]  ;;  %v250_v5 = vld [vmem:[%s228_s20 + $0x8] sm:$0xff]  ;;  %v251_v6 = vld [vmem:[%s228_s20 + $0x10] sm:$0xff]  ;;  %s247_s29 = scalar_lea.vmem %s634_s3, %s510_s16 }
  0x10   : > { %v265_v2 = vsub.s32 0, %v264_v1  ;;  %v269_v3 = vsub.s32 1, %v264_v1  ;;  %v273_v7 = vsub.s32 2, %v264_v1  ;;  %v277_v8 = vsub.s32 3, %v264_v1  ;;  %v252_v9 = vld [vmem:[%s228_s20 + $0x18] sm:$0xff] }
  0x11   : > { %v253_v10 = vunpack.c.l.bf16 %v249_v4  ;;  %v254_v11 = vunpack.c.h.bf16 %v249_v4  ;;  %v255_v12 = vunpack.c.l.bf16 %v250_v5  ;;  %v256_v13 = vunpack.c.h.bf16 %v250_v5  ;;  %v261_v14 = vld [vmem:[%s233_s23] sm:$0xf] }
  0x12   : > { %v291_v15 = vld [vmem:[%s237_s26] sm:$0xf]  ;;  %v257_v16 = vunpack.c.l.bf16 %v251_v6  ;;  %v258_v17 = vunpack.c.h.bf16 %v251_v6  ;;  %v259_v18 = vunpack.c.l.bf16 %v252_v9  ;;  %v260_v19 = vunpack.c.h.bf16 %v252_v9 }
  0x13   : > { %v266_v20 = vrot.slane %v261_v14, %v265_v2  ;;  %v270_v21 = vrot.slane %v261_v14, %v269_v3  ;;  %v296_v22 = vrot.slane %v291_v15, %v265_v2  ;;  %v300_v23 = vrot.slane %v291_v15, %v269_v3 }
  0x14   : > { %v274_v24 = vrot.slane %v261_v14, %v273_v7  ;;  %v278_v25 = vrot.slane %v261_v14, %v277_v8  ;;  %v304_v26 = vrot.slane %v291_v15, %v273_v7  ;;  %v308_v27 = vrot.slane %v291_v15, %v277_v8 }
  0x15   : > { %v283_v28 = vsub.f32 %v253_v10, %v266_v20  ;;  %v284_v29 = vsub.f32 %v254_v11, %v270_v21  ;;  %v287_v30 = vsub.f32 %v257_v16, %v266_v20  ;;  %v288_v31 = vsub.f32 %v258_v17, %v270_v21 }
  0x16   : > { %v285_v32 = vsub.f32 %v255_v12, %v274_v24  ;;  %v286_v33 = vsub.f32 %v256_v13, %v278_v25  ;;  %v289_v34 = vsub.f32 %v259_v18, %v274_v24  ;;  %v290_v35 = vsub.f32 %v260_v19, %v278_v25 }
  0x17   : > { %v313_v36 = vmul.f32 %v296_v22, %v283_v28  ;;  %v314_v37 = vmul.f32 %v300_v23, %v284_v29  ;;  %v317_v38 = vmul.f32 %v296_v22, %v287_v30  ;;  %v318_v39 = vmul.f32 %v300_v23, %v288_v31 }
  0x18   : > { %v315_v40 = vmul.f32 %v304_v26, %v285_v32  ;;  %v316_v41 = vmul.f32 %v308_v27, %v286_v33  ;;  %v319_v42 = vmul.f32 %v304_v26, %v289_v34  ;;  %v320_v43 = vmul.f32 %v308_v27, %v290_v35 }
  0x19   : > { %vm321_vm0 = vcmp.gt.f32.partialorder %v313_v36, 0.0  ;;  %vm322_vm1 = vcmp.gt.f32.partialorder %v314_v37, 0.0  ;;  %v329_v44 = vmul.f32 0.2, %v313_v36  ;;  %v330_v45 = vmul.f32 0.2, %v314_v37 }
  0x1a   : > { %vm323_vm2 = vcmp.gt.f32.partialorder %v315_v40, 0.0  ;;  %vm324_vm3 = vcmp.gt.f32.partialorder %v316_v41, 0.0  ;;  %v331_v46 = vmul.f32 0.2, %v315_v40  ;;  %v332_v47 = vmul.f32 0.2, %v316_v41 }
  0x1b   : > { %v337_v48 = vsel %vm321_vm0, %v313_v36, %v329_v44  ;;  %v338_v49 = vsel %vm322_vm1, %v314_v37, %v330_v45  ;;  %vm325_vm4 = vcmp.gt.f32.partialorder %v317_v38, 0.0  ;;  %vm326_vm5 = vcmp.gt.f32.partialorder %v318_v39, 0.0 }
  0x1c   : > { %v512_v50 = vpack.c.bf16 %v338_v49, %v337_v48  ;;  %v339_v51 = vsel %vm323_vm2, %v315_v40, %v331_v46  ;;  %v340_v52 = vsel %vm324_vm3, %v316_v41, %v332_v47  ;;  %v333_v53 = vmul.f32 0.2, %v317_v38 }
  0x1d   : > { %v513_v54 = vpack.c.bf16 %v340_v52, %v339_v51  ;;  %v334_v55 = vmul.f32 0.2, %v318_v39  ;;  %vm327_vm6 = vcmp.gt.f32.partialorder %v319_v42, 0.0  ;;  %vm328_vm7 = vcmp.gt.f32.partialorder %v320_v43, 0.0 }
  0x1e   : > { %369 = vst [vmem:[%s247_s29] sm:$0xff] %v512_v50  ;;  %v341_v56 = vsel %vm325_vm4, %v317_v38, %v333_v53  ;;  %v335_v57 = vmul.f32 0.2, %v319_v42  ;;  %v336_v58 = vmul.f32 0.2, %v320_v43 }
  0x1f   : > { %370 = vst [vmem:[%s247_s29 + $0x8] sm:$0xff] %v513_v54  ;;  %v342_v59 = vsel %vm326_vm5, %v318_v39, %v334_v55 }
  0x20   : > { %v514_v60 = vpack.c.bf16 %v342_v59, %v341_v56  ;;  %v343_v61 = vsel %vm327_vm6, %v319_v42, %v335_v57  ;;  %v344_v62 = vsel %vm328_vm7, %v320_v43, %v336_v58 }
  0x21   : > { %v515_v63 = vpack.c.bf16 %v344_v62, %v343_v61 }
  0x22   : > { %371 = vst [vmem:[%s247_s29 + $0x10] sm:$0xff] %v514_v60 }
  0x23   : > { %372 = vst [vmem:[%s247_s29 + $0x18] sm:$0xff] %v515_v63 }
  0x24 PF: > { %s13_s14 = sadd.s32 1, %s562_s14   ;;  %s635_s12 = smov %s558_s13 }
  0x25   : > { %p10_p5 = scmp.ge.s32.totalorder %s13_s14, 4   ;;  %s636_s13 = smov %s638_s15 }
  0x27   :  { %12 = sbr.rel (!%p10_p5) target bundleno = 2 (0x2), region = 68 }

// kernel: discriminator_forward.13
= control target key start
LH: loop header
LB: loop body
LE: loop exit
PB: predicated region body
PF: predicated region fallthrough
CT: control target
= control target key end

     0   :  { %s2418_s0 = inlined_call_operand.vmem [shape: bf16[32,4096], index: 0, kind: input, shape index: {}]   ;;  %s2419_s1 = inlined_call_operand.vmem [shape: bf16[4096,512], index: 1, kind: input, shape index: {}]   ;;  %s2420_s2 = inlined_call_operand.vmem [shape: f32[1,512], index: 2, kind: input, shape index: {}]   ;;  %s2421_s3 = inlined_call_operand.vmem [shape: bf16[32,512], index: 3, kind: output, shape index: {0}]   ;;  %s2422_s4 = inlined_call_operand.vmem [shape: f32[2,1,512], index: 4, kind: output, shape index: {1}]   ;;  %s2423_s5 = inlined_call_operand.vmem [shape: f32[2,1,512], index: 5, kind: output, shape index: {2}]  }
   0x1   :  { %2430 = sst [smem:[#allocation14_spill]] %s2418_s0 }
   0x2   :  { %2431 = sst [smem:[#allocation15_spill]] %s2419_s1 }
   0x3   :  { %2432 = sst [smem:[#allocation16_spill]] %s2421_s3 }
   0x4   :  { %2433 = sst [smem:[#allocation17_spill]] %s2422_s4 }
   0x5   :  { %2434 = sst [smem:[#allocation18_spill]] %s2423_s5 }
   0x6   :  { %s1977_s18 = smov 0   ;;  %s1979_s19 = smov 0  }
   0x7   :  { %s1981_s20 = smov 0   ;;  %s1983_s21 = smov 0  }
   0x8   :  { %s1985_s22 = smov 0   ;;  %s1987_s23 = smov 0  }
   0x9   :  { %s1989_s24 = smov 0   ;;  %s1991_s25 = smov 0  }
   0xa   :  { %s1993_s26 = smov 0   ;;  %s1995_s27 = smov 0  }
   0xb   :  { %s1997_s28 = smov 0   ;;  %s1999_s29 = smov 0  }
   0xc   :  { %s2001_s30 = smov 0  }
   0xd LB: > { %2435 = sst [smem:[#allocation6_spill]] %s1919_s24  ;;  %s28_s7 = sadd.s32 1, %s1931_s27  ;;  %s1943_s30 = sphi %s2001_s30, %s16_s30   ;;  %s1939_s29 = sphi %s1999_s29, %s2463_s29   ;;  %s1935_s28 = sphi %s1997_s28, %s2462_s28   ;;  %s1931_s27 = sphi %s1995_s27, %s2461_s27   ;;  %s1927_s26 = sphi %s1993_s26, %s2460_s26   ;;  %s1923_s25 = sphi %s1991_s25, %s2459_s25   ;;  %s1919_s24 = sphi %s1989_s24, %s2458_s24   ;;  %s1915_s23 = sphi %s1987_s23, %s2469_s23   ;;  %s1911_s22 = sphi %s1985_s22, %s2468_s22   ;;  %s1907_s21 = sphi %s1983_s21, %s2467_s21   ;;  %s1903_s20 = sphi %s1981_s20, %s2466_s20   ;;  %s1899_s19 = sphi %s1979_s19, %s2465_s19   ;;  %s1895_s18 = sphi %s1977_s18, %s2464_s18  }
   0xe   : > { %2436 = sst [smem:[#allocation7_spill]] %s1931_s27  ;;  %p29_p0 = scmp.ge.s32.totalorder %s28_s7, 8 }
   0xf   : > { %2437 = sst [smem:[#allocation8_spill]] %s1935_s28  ;;  %s31_s8 = sadd.s32 1, %s1935_s28 }
  0x10   : > { %2438 = sst [smem:[#allocation9_spill]] %s1939_s29  ;;  %s35_s9 = sadd.s32 1, %s1939_s29 }
  0x11   : > { %s44_s10 = sadd.s32 1, %s1915_s23  ;;  %s2471_s7 = smov (%p29_p0, %s28_s7), 0 }
  0x12   : > { %2439 = sst [smem:[#allocation10_spill]] %s2471_s7  ;;  %s2473_s8 = smov (!%p29_p0, %s31_s8), %s1935_s28 }
  0x13   : > { %s40_s11 = ssub.s32 %s1931_s27, %s2471_s7  ;;  %p51_p1 = scmp.ne.s32.totalorder %s1915_s23, %s1911_s22 }
  0x14   : > { %p33_p2 = scmp.ge.s32.totalorder %s2473_s8, 2  ;;  %p52_p3 = scmp.eq.s32.totalorder %s1943_s30, 0 }
  0x15   : > { %s72_s12 = sadd.s32 1, %s1907_s21  ;;  %p79_p4 = scmp.ne.s32.totalorder %s1907_s21, %s1903_s20 }
  0x16   : > { %s2475_s8 = smov (%p33_p2, %s2473_s8), 0  ;;  %s2477_s9 = smov (!%p33_p2, %s35_s9), %s1939_s29 }
  0x17   : > { %2440 = sst [smem:[#allocation11_spill]] %s2475_s8  ;;  %p2061_p5 = por %p52_p3, %p51_p1 }
  0x18   : > { %s68_s14 = ssub.s32 %s1935_s28, %s2475_s8  ;;  %p37_p6 = scmp.ge.s32.totalorder %s2477_s9, 2 }
  0x19   : > { %s69_s15 = sor.u32 %s68_s14, %s40_s11  ;;  %p2067_p8 = por %p79_p4, %p52_p3 }
  0x1a   : > { %p70_p7 = scmp.eq.s32.totalorder %s69_s15, 0  ;;  %s2479_s9 = smov (%p37_p6, %s2477_s9), 0 }
  0x1b   : > { %2443 = sst [smem:[#allocation12_spill]] %s2479_s9  ;;  %s39_s6 = ssub.s32 %s1939_s29, %s2479_s9 }
  0x1c   : > { %s2074_s17 = scalar_select %p70_p7, %s1907_s21, %s72_s12  }
  0x1d   : > { %s126_s7 = sadd.s32 1, %s1899_s19  ;;  %s41_s3 = sor.u32 %s40_s11, %s39_s6 }
  0x1e   : > { %s123_s24 = sor.u32 %s68_s14, %s39_s6  ;;  %p42_p9 = scmp.eq.s32.totalorder %s41_s3, 0 }
  0x1f   : > { %p124_p10 = scmp.eq.s32.totalorder %s123_s24, 0  ;;  %p136_p11 = scmp.ne.s32.totalorder %s1899_s19, %s1895_s18 }
  0x20   : > { %s2444_s8 = sadd.s32 4294967295, %s1943_s30   ;;  %p1529_p0 = scmp.ge.s32.totalorder %s1943_s30, 32 }
  0x21   : > { %p137_p12 = scmp.eq.s32.totalorder %s2444_s8, 31 }
  0x22   : > { %s2084_s5 = scalar_select %p42_p9, %s1915_s23, %s44_s10  }
  0x23   : > { %s2087_s15 = scalar_select %p124_p10, %s1899_s19, %s126_s7  }
  0x24   : > { %2445 = sst [smem:[#allocation13_spill]] %s2084_s5  ;;  %p2089_p13 = por %p137_p12, %p136_p11 }
  0x25   : > { %215 = sbr.rel (%p1529_p0) target bundleno = 96 (0x60), region = 16 }
  0x2a   : > { %218 = sbr.rel (!%p2061_p5) target bundleno = 54 (0x36), region = 20  ;;  %s220_s3 = sand.u32 (%p2061_p5), 1, %s1915_s23  }
  0x2b   : > { %s1532_s24 = sshll.u32 (%p2061_p5), %s1931_s27, 2  ;;  %s1530_s6 = sshll.u32 (%p2061_p5), %s220_s3, 5 }
  0x2c   : > { %s1628_s8 = sshll.u32 (%p2061_p5), %s1939_s29, 6  ;;  %s2447_s0 = sld [smem:[#allocation14_spill]] (%p2061_p5) }
  0x2d   : > { %s226_s10 = sadd.s32 (%p2061_p5), %s1628_s8, %s1532_s24  ;;  %s222_s9 = scalar_lea.vmem (%p2061_p5), [#allocation3], %s1530_s6 }
  0x2e   : > { %s1534_s7 = sshll.u32 (%p2061_p5), %s226_s10, 2 }
  0x32   : > { %s228_s14 = scalar_lea.vmem %s2447_s0, %s1534_s7 }
  0x33   : > { %v241_v0 = vld [vmem:[%s228_s14] sm:$0xff]  ;;  %v243_v1 = vld [vmem:[%s228_s14 + $0x8] sm:$0xff] }
  0x34   : > { %v245_v2 = vld [vmem:[%s228_s14 + $0x80] sm:$0xff]  ;;  %242 = vst [vmem:[%s222_s9] sm:$0xff] %v241_v0  ;;  %244 = vst [vmem:[%s222_s9 + $0x8] sm:$0xff] %v243_v1  ;;  %v247_v3 = vld [vmem:[%s228_s14 + $0x88] sm:$0xff] }
  0x35   : > { %246 = vst [vmem:[%s222_s9 + $0x10] sm:$0xff] %v245_v2  ;;  %248 = vst [vmem:[%s222_s9 + $0x18] sm:$0xff] %v247_v3 }
  0x36 PF: > { %254 = sbr.rel (!%p2067_p8) target bundleno = 96 (0x60), region = 43  ;;  %s256_s13 = sand.u32 (%p2067_p8), 1, %s1907_s21  }
  0x37   : > { %s1537_s3 = sshll.u32 (%p2067_p8), %s1935_s28, 1  ;;  %s1535_s24 = sshll.u32 (%p2067_p8), %s256_s13, 9 }
  0x38   : > { %s1629_s8 = sshll.u32 (%p2067_p8), %s1931_s27, 8  ;;  %s2448_s1 = sld [smem:[#allocation15_spill]] (%p2067_p8) }
  0x39   : > { %s262_s10 = sadd.s32 (%p2067_p8), %s1629_s8, %s1537_s3  ;;  %s2115_s9 = scalar_lea.vmem (%p2067_p8), [#allocation4], %s1535_s24 }
  0x3a   : > { %s1539_s7 = sshll.u32 (%p2067_p8), %s262_s10, 2 }
  0x3e   : > { %s2110_s12 = scalar_lea.vmem %s2448_s1, %s1539_s7 }
  0x3f   : > { %v419_v4 = vld [vmem:[%s2110_s12] sm:$0xff]  ;;  %v421_v5 = vld [vmem:[%s2110_s12 + $0x10] sm:$0xff] }
  0x40   : > { %v423_v6 = vld [vmem:[%s2110_s12 + $0x20] sm:$0xff]  ;;  %420 = vst [vmem:[%s2115_s9] sm:$0xff] %v419_v4  ;;  %422 = vst [vmem:[%s2115_s9 + $0x8] sm:$0xff] %v421_v5  ;;  %v425_v7 = vld [vmem:[%s2110_s12 + $0x30] sm:$0xff] }
  0x41   : > { %424 = vst [vmem:[%s2115_s9 + $0x10] sm:$0xff] %v423_v6  ;;  %v427_v8 = vld [vmem:[%s2110_s12 + $0x40] sm:$0xff]  ;;  %v429_v9 = vld [vmem:[%s2110_s12 + $0x50] sm:$0xff]  ;;  %426 = vst [vmem:[%s2115_s9 + $0x18] sm:$0xff] %v425_v7 }
  0x42   : > { %428 = vst [vmem:[%s2115_s9 + $0x20] sm:$0xff] %v427_v8  ;;  %430 = vst [vmem:[%s2115_s9 + $0x28] sm:$0xff] %v429_v9  ;;  %v431_v10 = vld [vmem:[%s2110_s12 + $0x60] sm:$0xff]  ;;  %v433_v11 = vld [vmem:[%s2110_s12 + $0x70] sm:$0xff] }
  0x43   : > { %v435_v12 = vld [vmem:[%s2110_s12 + $0x80] sm:$0xff]  ;;  %432 = vst [vmem:[%s2115_s9 + $0x30] sm:$0xff] %v431_v10  ;;  %434 = vst [vmem:[%s2115_s9 + $0x38] sm:$0xff] %v433_v11  ;;  %v437_v13 = vld [vmem:[%s2110_s12 + $0x90] sm:$0xff] }
  0x44   : > { %436 = vst [vmem:[%s2115_s9 + $0x40] sm:$0xff] %v435_v12  ;;  %v439_v14 = vld [vmem:[%s2110_s12 + $0xa0] sm:$0xff]  ;;  %v441_v15 = vld [vmem:[%s2110_s12 + $0xb0] sm:$0xff]  ;;  %438 = vst [vmem:[%s2115_s9 + $0x48] sm:$0xff] %v437_v13 }
  0x45   : > { %440 = vst [vmem:[%s2115_s9 + $0x50] sm:$0xff] %v439_v14  ;;  %442 = vst [vmem:[%s2115_s9 + $0x58] sm:$0xff] %v441_v15  ;;  %v443_v16 = vld [vmem:[%s2110_s12 + $0xc0] sm:$0xff]  ;;  %v445_v17 = vld [vmem:[%s2110_s12 + $0xd0] sm:$0xff] }
  0x46   : > { %v447_v18 = vld [vmem:[%s2110_s12 + $0xe0] sm:$0xff]  ;;  %444 = vst [vmem:[%s2115_s9 + $0x60] sm:$0xff] %v443_v16  ;;  %446 = vst [vmem:[%s2115_s9 + $0x68] sm:$0xff] %v445_v17  ;;  %v449_v19 = vld [vmem:[%s2110_s12 + $0xf0] sm:$0xff] }
  0x47   : > { %448 = vst [vmem:[%s2115_s9 + $0x70] sm:$0xff] %v447_v18  ;;  %v451_v20 = vld [vmem:[%s2110_s12 + $0x100] sm:$0xff]  ;;  %v453_v21 = vld [vmem:[%s2110_s12 + $0x110] sm:$0xff]  ;;  %450 = vst [vmem:[%s2115_s9 + $0x78] sm:$0xff] %v449_v19 }
  0x48   : > { %452 = vst [vmem:[%s2115_s9 + $0x80] sm:$0xff] %v451_v20  ;;  %454 = vst [vmem:[%s2115_s9 + $0x88] sm:$0xff] %v453_v21  ;;  %v455_v22 = vld [vmem:[%s2110_s12 + $0x120] sm:$0xff]  ;;  %v457_v23 = vld [vmem:[%s2110_s12 + $0x130] sm:$0xff] }
  0x49   : > { %v459_v24 = vld [vmem:[%s2110_s12 + $0x140] sm:$0xff]  ;;  %456 = vst [vmem:[%s2115_s9 + $0x90] sm:$0xff] %v455_v22  ;;  %458 = vst [vmem:[%s2115_s9 + $0x98] sm:$0xff] %v457_v23  ;;  %v461_v25 = vld [vmem:[%s2110_s12 + $0x150] sm:$0xff] }
  0x4a   : > { %460 = vst [vmem:[%s2115_s9 + $0xa0] sm:$0xff] %v459_v24  ;;  %v463_v26 = vld [vmem:[%s2110_s12 + $0x160] sm:$0xff]  ;;  %v465_v27 = vld [vmem:[%s2110_s12 + $0x170] sm:$0xff]  ;;  %462 = vst [vmem:[%s2115_s9 + $0xa8] sm:$0xff] %v461_v25 }
  0x4b   : > { %464 = vst [vmem:[%s2115_s9 + $0xb0] sm:$0xff] %v463_v26  ;;  %466 = vst [vmem:[%s2115_s9 + $0xb8] sm:$0xff] %v465_v27  ;;  %v467_v28 = vld [vmem:[%s2110_s12 + $0x180] sm:$0xff]  ;;  %v469_v29 = vld [vmem:[%s2110_s12 + $0x190] sm:$0xff] }
  0x4c   : > { %v471_v30 = vld [vmem:[%s2110_s12 + $0x1a0] sm:$0xff]  ;;  %468 = vst [vmem:[%s2115_s9 + $0xc0] sm:$0xff] %v467_v28  ;;  %470 = vst [vmem:[%s2115_s9 + $0xc8] sm:$0xff] %v469_v29  ;;  %v473_v31 = vld [vmem:[%s2110_s12 + $0x1b0] sm:$0xff] }
  0x4d   : > { %472 = vst [vmem:[%s2115_s9 + $0xd0] sm:$0xff] %v471_v30  ;;  %v475_v32 = vld [vmem:[%s2110_s12 + $0x1c0] sm:$0xff]  ;;  %v477_v33 = vld [vmem:[%s2110_s12 + $0x1d0] sm:$0xff]  ;;  %474 = vst [vmem:[%s2115_s9 + $0xd8] sm:$0xff] %v473_v31 }
  0x4e   : > { %476 = vst [vmem:[%s2115_s9 + $0xe0] sm:$0xff] %v475_v32  ;;  %478 = vst [vmem:[%s2115_s9 + $0xe8] sm:$0xff] %v477_v33  ;;  %v479_v34 = vld [vmem:[%s2110_s12 + $0x1e0] sm:$0xff]  ;;  %v481_v35 = vld [vmem:[%s2110_s12 + $0x1f0] sm:$0xff] }
  0x4f   : > { %v483_v36 = vld [vmem:[%s2110_s12 + $0x200] sm:$0xff]  ;;  %480 = vst [vmem:[%s2115_s9 + $0xf0] sm:$0xff] %v479_v34  ;;  %482 = vst [vmem:[%s2115_s9 + $0xf8] sm:$0xff] %v481_v35  ;;  %v485_v37 = vld [vmem:[%s2110_s12 + $0x210] sm:$0xff] }
  0x50   : > { %484 = vst [vmem:[%s2115_s9 + $0x100] sm:$0xff] %v483_v36  ;;  %v487_v38 = vld [vmem:[%s2110_s12 + $0x220] sm:$0xff]  ;;  %v489_v39 = vld [vmem:[%s2110_s12 + $0x230] sm:$0xff]  ;;  %486 = vst [vmem:[%s2115_s9 + $0x108] sm:$0xff] %v485_v37 }
  0x51   : > { %488 = vst [vmem:[%s2115_s9 + $0x110] sm:$0xff] %v487_v38  ;;  %490 = vst [vmem:[%s2115_s9 + $0x118] sm:$0xff] %v489_v39  ;;  %v491_v40 = vld [vmem:[%s2110_s12 + $0x240] sm:$0xff]  ;;  %v493_v41 = vld [vmem:[%s2110_s12 + $0x250] sm:$0xff] }
  0x52   : > { %v495_v42 = vld [vmem:[%s2110_s12 + $0x260] sm:$0xff]  ;;  %492 = vst [vmem:[%s2115_s9 + $0x120] sm:$0xff] %v491_v40  ;;  %494 = vst [vmem:[%s2115_s9 + $0x128] sm:$0xff] %v493_v41  ;;  %v497_v43 = vld [vmem:[%s2110_s12 + $0x270] sm:$0xff] }
  0x53   : > { %496 = vst [vmem:[%s2115_s9 + $0x130] sm:$0xff] %v495_v42  ;;  %v499_v44 = vld [vmem:[%s2110_s12 + $0x280] sm:$0xff]  ;;  %v501_v45 = vld [vmem:[%s2110_s12 + $0x290] sm:$0xff]  ;;  %498 = vst [vmem:[%s2115_s9 + $0x138] sm:$0xff] %v497_v43 }
  0x54   : > { %500 = vst [vmem:[%s2115_s9 + $0x140] sm:$0xff] %v499_v44  ;;  %502 = vst [vmem:[%s2115_s9 + $0x148] sm:$0xff] %v501_v45  ;;  %v503_v46 = vld [vmem:[%s2110_s12 + $0x2a0] sm:$0xff]  ;;  %v505_v47 = vld [vmem:[%s2110_s12 + $0x2b0] sm:$0xff] }
  0x55   : > { %v507_v48 = vld [vmem:[%s2110_s12 + $0x2c0] sm:$0xff]  ;;  %504 = vst [vmem:[%s2115_s9 + $0x150] sm:$0xff] %v503_v46  ;;  %506 = vst [vmem:[%s2115_s9 + $0x158] sm:$0xff] %v505_v47  ;;  %v509_v49 = vld [vmem:[%s2110_s12 + $0x2d0] sm:$0xff] }
  0x56   : > { %508 = vst [vmem:[%s2115_s9 + $0x160] sm:$0xff] %v507_v48  ;;  %v511_v50 = vld [vmem:[%s2110_s12 + $0x2e0] sm:$0xff]  ;;  %v513_v51 = vld [vmem:[%s2110_s12 + $0x2f0] sm:$0xff]  ;;  %510 = vst [vmem:[%s2115_s9 + $0x168] sm:$0xff] %v509_v49 }
  0x57   : > { %512 = vst [vmem:[%s2115_s9 + $0x170] sm:$0xff] %v511_v50  ;;  %514 = vst [vmem:[%s2115_s9 + $0x178] sm:$0xff] %v513_v51  ;;  %v515_v52 = vld [vmem:[%s2110_s12 + $0x300] sm:$0xff]  ;;  %v517_v53 = vld [vmem:[%s2110_s12 + $0x310] sm:$0xff] }
  0x58   : > { %v519_v54 = vld [vmem:[%s2110_s12 + $0x320] sm:$0xff]  ;;  %516 = vst [vmem:[%s2115_s9 + $0x180] sm:$0xff] %v515_v52  ;;  %518 = vst [vmem:[%s2115_s9 + $0x188] sm:$0xff] %v517_v53  ;;  %v521_v55 = vld [vmem:[%s2110_s12 + $0x330] sm:$0xff] }
  0x59   : > { %520 = vst [vmem:[%s2115_s9 + $0x190] sm:$0xff] %v519_v54  ;;  %v523_v56 = vld [vmem:[%s2110_s12 + $0x340] sm:$0xff]  ;;  %v525_v57 = vld [vmem:[%s2110_s12 + $0x350] sm:$0xff]  ;;  %522 = vst [vmem:[%s2115_s9 + $0x198] sm:$0xff] %v521_v55 }
  0x5a   : > { %524 = vst [vmem:[%s2115_s9 + $0x1a0] sm:$0xff] %v523_v56  ;;  %526 = vst [vmem:[%s2115_s9 + $0x1a8] sm:$0xff] %v525_v57  ;;  %v527_v58 = vld [vmem:[%s2110_s12 + $0x360] sm:$0xff]  ;;  %v529_v59 = vld [vmem:[%s2110_s12 + $0x370] sm:$0xff] }
  0x5b   : > { %v531_v60 = vld [vmem:[%s2110_s12 + $0x380] sm:$0xff]  ;;  %528 = vst [vmem:[%s2115_s9 + $0x1b0] sm:$0xff] %v527_v58  ;;  %530 = vst [vmem:[%s2115_s9 + $0x1b8] sm:$0xff] %v529_v59  ;;  %v533_v61 = vld [vmem:[%s2110_s12 + $0x390] sm:$0xff] }
  0x5c   : > { %532 = vst [vmem:[%s2115_s9 + $0x1c0] sm:$0xff] %v531_v60  ;;  %v535_v62 = vld [vmem:[%s2110_s12 + $0x3a0] sm:$0xff]  ;;  %v537_v63 = vld [vmem:[%s2110_s12 + $0x3b0] sm:$0xff]  ;;  %534 = vst [vmem:[%s2115_s9 + $0x1c8] sm:$0xff] %v533_v61 }
  0x5d   : > { %536 = vst [vmem:[%s2115_s9 + $0x1d0] sm:$0xff] %v535_v62  ;;  %538 = vst [vmem:[%s2115_s9 + $0x1d8] sm:$0xff] %v537_v63  ;;  %v539_v0 = vld [vmem:[%s2110_s12 + $0x3c0] sm:$0xff]  ;;  %v541_v1 = vld [vmem:[%s2110_s12 + $0x3d0] sm:$0xff] }
  0x5e   : > { %v543_v2 = vld [vmem:[%s2110_s12 + $0x3e0] sm:$0xff]  ;;  %540 = vst [vmem:[%s2115_s9 + $0x1e0] sm:$0xff] %v539_v0  ;;  %542 = vst [vmem:[%s2115_s9 + $0x1e8] sm:$0xff] %v541_v1  ;;  %v545_v3 = vld [vmem:[%s2110_s12 + $0x3f0] sm:$0xff] }
  0x5f   : > { %544 = vst [vmem:[%s2115_s9 + $0x1f0] sm:$0xff] %v543_v2  ;;  %546 = vst [vmem:[%s2115_s9 + $0x1f8] sm:$0xff] %v545_v3 }
  0x60 PF: > { %p1540_p1 = scmp.ge.s32.totalorder %s1943_s30, 1  ;;  %p559_p2 = scmp.lt.s32.totalorder %s1943_s30, 33 }
  0x62   : > { %p560_p3 = pnand %p1540_p1, %p559_p2 }
  0x63   : > { %s566_s16 = sand.u32 (!%p560_p3), 1, %s1911_s22   ;;  %s573_s14 = sand.u32 (!%p560_p3), 1, %s1903_s20  }
  0x64   : > { %563 = sbr.rel (%p560_p3) target bundleno = 439 (0x1b7), region = 85  ;;  %s1541_s13 = sshll.u32 (!%p560_p3), %s566_s16, 5 }
  0x65   : > { %s1542_s3 = sshll.u32 (!%p560_p3), %s573_s14, 9  ;;  %s600_s24 = sand.u32 (!%p560_p3), 1, %s1895_s18  }
  0x66   : > { %s2248_s8 = sshll.u32 (!%p560_p3), %s1923_s25, 1  ;;  %s1543_s10 = sshll.u32 (!%p560_p3), %s600_s24, 4 }
  0x67   : > { %p628_p4 = scmp.lt.s32.totalorder (!%p560_p3), %s2248_s8, 3  ;;  %p635_p5 = scmp.lt.s32.totalorder (!%p560_p3), %s1927_s26, 1 }
  0x68   : > { %s2449_s16 = sld [smem:[#allocation17_spill]] (!%p560_p3)  ;;  %s2271_s28 = scalar_lea.vmem (!%p560_p3), [#allocation3], %s1541_s13 }
  0x69   : > { %s2253_s7 = scalar_select %p628_p4, %s2248_s8, 3 }
  0x6a   : > { %s636_s11 = scalar_select %p635_p5, %s1927_s26, 1 }
  0x6b   : > { %s630_s22 = scalar_lea.vmem %s2420_s2, %s2253_s7  ;;  %s2450_s1 = sld [smem:[#allocation18_spill]] }
  0x6c   : > { %s1546_s20 = sshll.u32 %s636_s11, 2  ;;  %s2273_s27 = scalar_lea.vmem [#allocation4], %s1542_s3 }
  0x6d   : > { %s2261_s9 = sadd.s32 %s1546_s20, %s2253_s7  ;;  %s2275_s5 = scalar_lea.vmem [#allocation5], %s1543_s10 }
  0x6e   : > { %s641_s14 = scalar_lea.vmem %s2449_s16, %s2261_s9  ;;  %s2451_s6 = sld [smem:[#allocation6_spill]] }
  0x71   : > { %s650_s29 = scalar_lea.vmem %s2450_s1, %s2261_s9 }
  0x74   : > { %p1549_p6 = scmp.ne.s32.totalorder %s2451_s6, 0 }
  0x76   : > { %655 = sbr.rel (%p1549_p6) target bundleno = 126 (0x7e), region = 97 }
  0x7b   : > { %v1945_v4 = vmov 0.0  }
  0x7c   : > { %656 = vst [vmem:[#allocation2 + $0x10] sm:$0xff] %v1945_v4  ;;  %657 = vst [vmem:[#allocation2] sm:$0xff] %v1945_v4 }
  0x7d   : > { %658 = vst [vmem:[#allocation2 + $0x18] sm:$0xff] %v1945_v4  ;;  %659 = vst [vmem:[#allocation2 + $0x8] sm:$0xff] %v1945_v4 }
  0x7e PF: > { %v1739_v5 = vld [vmem:[%s2273_s27 + $0x74] ss:$8 sps:$4 sm:$0xff]   ;;  %v1743_v7 = vld [vmem:[%s2273_s27 + $0x70] ss:$8 sps:$4 sm:$0xff]   ;;  %v1745_v9 = vld [vmem:[%s2273_s27 + $0x64] ss:$8 sps:$4 sm:$0xff]  }
  0x7f   : > { %v1741_v6 = vld [vmem:[%s2273_s27 + $0x174] ss:$8 sps:$4 sm:$0xff]   ;;  %1072 = vmatprep.subr.bf16.mxu0 %v1739_v5  ;;  %v1744_v8 = vld [vmem:[%s2273_s27 + $0x170] ss:$8 sps:$4 sm:$0xff]   ;;  %v1747_v10 = vld [vmem:[%s2273_s27 + $0x164] ss:$8 sps:$4 sm:$0xff]  }
  0x80   : > { %1115 = vmatprep.subr.bf16.mxu1 %v1741_v6  ;;  %1073 = vmatpush1.bf16.msra.mxu0 %v1743_v7  ;;  %v1749_v11 = vld [vmem:[%s2273_s27 + $0x60] ss:$8 sps:$4 sm:$0xff]   ;;  %v1751_v13 = vld [vmem:[%s2273_s27 + $0x54] ss:$8 sps:$4 sm:$0xff]   ;;  %v1755_v15 = vld [vmem:[%s2273_s27 + $0x50] ss:$8 sps:$4 sm:$0xff]  }
  0x81   : > { %1116 = vmatpush1.bf16.msra.mxu1 %v1744_v8  ;;  %1074 = vmatprep.subr.bf16.mxu0 %v1745_v9  ;;  %v1750_v12 = vld [vmem:[%s2273_s27 + $0x160] ss:$8 sps:$4 sm:$0xff]   ;;  %v1753_v14 = vld [vmem:[%s2273_s27 + $0x154] ss:$8 sps:$4 sm:$0xff]   ;;  %v1756_v16 = vld [vmem:[%s2273_s27 + $0x150] ss:$8 sps:$4 sm:$0xff]  }
  0x82   : > { %1117 = vmatprep.subr.bf16.mxu1 %v1747_v10  ;;  %v1757_v17 = vld [vmem:[%s2273_s27 + $0x44] ss:$8 sps:$4 sm:$0xff]   ;;  %v1761_v19 = vld [vmem:[%s2273_s27 + $0x40] ss:$8 sps:$4 sm:$0xff]   ;;  %v1763_v21 = vld [vmem:[%s2273_s27 + $0x34] ss:$8 sps:$4 sm:$0xff]  }
  0x83   : > { %v1759_v18 = vld [vmem:[%s2273_s27 + $0x144] ss:$8 sps:$4 sm:$0xff]   ;;  %v1762_v20 = vld [vmem:[%s2273_s27 + $0x140] ss:$8 sps:$4 sm:$0xff]   ;;  %v1765_v22 = vld [vmem:[%s2273_s27 + $0x134] ss:$8 sps:$4 sm:$0xff]  }
  0x84   : > { %1075 = vmatpush1.bf16.msra.mxu0 %v1749_v11  ;;  %v1767_v23 = vld [vmem:[%s2273_s27 + $0x30] ss:$8 sps:$4 sm:$0xff]   ;;  %v1769_v25 = vld [vmem:[%s2273_s27 + $0x24] ss:$8 sps:$4 sm:$0xff]   ;;  %v1773_v27 = vld [vmem:[%s2273_s27 + $0x20] ss:$8 sps:$4 sm:$0xff]  }
  0x85   : > { %1118 = vmatpush1.bf16.msra.mxu1 %v1750_v12  ;;  %1076 = vmatprep.subr.bf16.mxu0 %v1751_v13  ;;  %v1768_v24 = vld [vmem:[%s2273_s27 + $0x130] ss:$8 sps:$4 sm:$0xff]   ;;  %v1771_v26 = vld [vmem:[%s2273_s27 + $0x124] ss:$8 sps:$4 sm:$0xff]   ;;  %v1774_v28 = vld [vmem:[%s2273_s27 + $0x120] ss:$8 sps:$4 sm:$0xff]  }
  0x86   : > { %1119 = vmatprep.subr.bf16.mxu1 %v1753_v14  ;;  %v1775_v29 = vld [vmem:[%s2273_s27 + $0x14] ss:$8 sps:$4 sm:$0xff]   ;;  %v1779_v31 = vld [vmem:[%s2273_s27 + $0x10] ss:$8 sps:$4 sm:$0xff]   ;;  %v1781_v33 = vld [vmem:[%s2273_s27 + $0x4] ss:$8 sps:$4 sm:$0xff]  }
  0x87   : > { %v1777_v30 = vld [vmem:[%s2273_s27 + $0x114] ss:$8 sps:$4 sm:$0xff]   ;;  %v1780_v32 = vld [vmem:[%s2273_s27 + $0x110] ss:$8 sps:$4 sm:$0xff]   ;;  %v1783_v34 = vld [vmem:[%s2273_s27 + $0x104] ss:$8 sps:$4 sm:$0xff]  }
  0x88   : > { %1077 = vmatpush1.bf16.msra.mxu0 %v1755_v15  ;;  %v1785_v35 = vld [vmem:[%s2273_s27] ss:$8 sps:$4 sm:$0xff]   ;;  %v1787_v37 = vld [vmem:[%s2273_s27 + $0xf4] ss:$8 sps:$4 sm:$0xff]   ;;  %v1791_v39 = vld [vmem:[%s2273_s27 + $0xf0] ss:$8 sps:$4 sm:$0xff]  }
  0x89   : > { %1120 = vmatpush1.bf16.msra.mxu1 %v1756_v16  ;;  %1078 = vmatprep.subr.bf16.mxu0 %v1757_v17  ;;  %v1786_v36 = vld [vmem:[%s2273_s27 + $0x100] ss:$8 sps:$4 sm:$0xff]   ;;  %v1789_v38 = vld [vmem:[%s2273_s27 + $0x1f4] ss:$8 sps:$4 sm:$0xff]   ;;  %v1792_v40 = vld [vmem:[%s2273_s27 + $0x1f0] ss:$8 sps:$4 sm:$0xff]  }
  0x8a   : > { %1121 = vmatprep.subr.bf16.mxu1 %v1759_v18  ;;  %v1793_v41 = vld [vmem:[%s2273_s27 + $0xe4] ss:$8 sps:$4 sm:$0xff]   ;;  %v1797_v43 = vld [vmem:[%s2273_s27 + $0xe0] ss:$8 sps:$4 sm:$0xff]   ;;  %v1799_v45 = vld [vmem:[%s2273_s27 + $0xd4] ss:$8 sps:$4 sm:$0xff]  }
  0x8b   : > { %v1795_v42 = vld [vmem:[%s2273_s27 + $0x1e4] ss:$8 sps:$4 sm:$0xff]   ;;  %v1798_v44 = vld [vmem:[%s2273_s27 + $0x1e0] ss:$8 sps:$4 sm:$0xff]   ;;  %v1801_v46 = vld [vmem:[%s2273_s27 + $0x1d4] ss:$8 sps:$4 sm:$0xff]  }
  0x8c   : > { %1079 = vmatpush1.bf16.msra.mxu0 %v1761_v19  ;;  %v1803_v47 = vld [vmem:[%s2273_s27 + $0xd0] ss:$8 sps:$4 sm:$0xff]   ;;  %v1805_v49 = vld [vmem:[%s2273_s27 + $0xc4] ss:$8 sps:$4 sm:$0xff]   ;;  %v1809_v51 = vld [vmem:[%s2273_s27 + $0xc0] ss:$8 sps:$4 sm:$0xff]  }
  0x8d   : > { %1122 = vmatpush1.bf16.msra.mxu1 %v1762_v20  ;;  %1080 = vmatprep.subr.bf16.mxu0 %v1763_v21  ;;  %v1804_v48 = vld [vmem:[%s2273_s27 + $0x1d0] ss:$8 sps:$4 sm:$0xff]   ;;  %v1807_v50 = vld [vmem:[%s2273_s27 + $0x1c4] ss:$8 sps:$4 sm:$0xff]   ;;  %v1810_v53 = vld [vmem:[%s2273_s27 + $0x1c0] ss:$8 sps:$4 sm:$0xff]  }
  0x8e   : > { %1123 = vmatprep.subr.bf16.mxu1 %v1765_v22  ;;  %v1837_v52 = vld [vmem:[%s2271_s28 + $0x4] ss:$16 sps:$4 sm:$0xff]   ;;  %v1840_v56 = vld [vmem:[%s2271_s28 + $0xc] ss:$16 sps:$4 sm:$0xff]   ;;  %v1815_v57 = vld [vmem:[%s2273_s27 + $0xb0] ss:$8 sps:$4 sm:$0xff]  }
  0x8f   : > { %v1811_v54 = vld [vmem:[%s2273_s27 + $0xb4] ss:$8 sps:$4 sm:$0xff]   ;;  %1104 = vmatprep.mubr.bf16.mxu0 %v1837_v52  ;;  %1147 = vmatprep.mubr.bf16.mxu1 %v1840_v56  ;;  %v1816_v58 = vld [vmem:[%s2273_s27 + $0x1b0] ss:$8 sps:$4 sm:$0xff]   ;;  %v1817_v59 = vld [vmem:[%s2273_s27 + $0xa4] ss:$8 sps:$4 sm:$0xff]  }
  0x90   : > { %1081 = vmatpush1.bf16.msra.mxu0 %v1767_v23  ;;  %v1813_v55 = vld [vmem:[%s2273_s27 + $0x1b4] ss:$8 sps:$4 sm:$0xff]   ;;  %v1819_v60 = vld [vmem:[%s2273_s27 + $0x1a4] ss:$8 sps:$4 sm:$0xff]   ;;  %v1821_v61 = vld [vmem:[%s2273_s27 + $0xa0] ss:$8 sps:$4 sm:$0xff]  }
  0x91   : > { %1124 = vmatpush1.bf16.msra.mxu1 %v1768_v24  ;;  %1082 = vmatprep.subr.bf16.mxu0 %v1769_v25  ;;  %v1822_v62 = vld [vmem:[%s2273_s27 + $0x1a0] ss:$8 sps:$4 sm:$0xff]   ;;  %v1823_v63 = vld [vmem:[%s2273_s27 + $0x94] ss:$8 sps:$4 sm:$0xff]   ;;  %v1827_v1 = vld [vmem:[%s2273_s27 + $0x90] ss:$8 sps:$4 sm:$0xff]  }
  0x92   : > { %1125 = vmatprep.subr.bf16.mxu1 %v1771_v26  ;;  %v1825_v0 = vld [vmem:[%s2273_s27 + $0x194] ss:$8 sps:$4 sm:$0xff]   ;;  %v1828_v2 = vld [vmem:[%s2273_s27 + $0x190] ss:$8 sps:$4 sm:$0xff]   ;;  %v1829_v3 = vld [vmem:[%s2273_s27 + $0x84] ss:$8 sps:$4 sm:$0xff]  }
  0x93   : > { %v1831_v4 = vld [vmem:[%s2273_s27 + $0x184] ss:$8 sps:$4 sm:$0xff]   ;;  %v1833_v5 = vld [vmem:[%s2273_s27 + $0x80] ss:$8 sps:$4 sm:$0xff]   ;;  %v660_v10 = vld [vmem:[#allocation2 + $0x10] sm:$0xff]  ;;  %s2452_s0 = sld [smem:[#allocation6_spill]] }
  0x94   : > { %1083 = vmatpush1.bf16.msra.mxu0 %v1773_v27  ;;  %v1834_v6 = vld [vmem:[%s2273_s27 + $0x180] ss:$8 sps:$4 sm:$0xff]   ;;  %v662_v19 = vld [vmem:[#allocation2 + $0x18] sm:$0xff] }
  0x95   : > { %1126 = vmatpush1.bf16.msra.mxu1 %v1774_v28  ;;  %1084 = vmatprep.subr.bf16.mxu0 %v1775_v29  ;;  %v1835_v7 = vld [vmem:[%s2271_s28] ss:$16 sps:$4 sm:$0xff]   ;;  %v1838_v8 = vld [vmem:[%s2271_s28 + $0x8] ss:$16 sps:$4 sm:$0xff]  }
  0x96   : > { %1127 = vmatprep.subr.bf16.mxu1 %v1777_v30  ;;  %v661_v14 = vld [vmem:[#allocation2] sm:$0xff]  ;;  %v663_v24 = vld [vmem:[#allocation2 + $0x8] sm:$0xff] }
  0x98   : > { %1085 = vmatpush1.bf16.msra.mxu0 %v1779_v31 }
  0x99   : > { %1128 = vmatpush1.bf16.msra.mxu1 %v1780_v32  ;;  %1086 = vmatprep.subr.bf16.mxu0 %v1781_v33  ;;  %p1618_p7 = scmp.ne.s32.totalorder %s2452_s0, 7 }
  0x9a   : > { %1129 = vmatprep.subr.bf16.mxu1 %v1783_v34 }
  0x9c   : > { %1087 = vmatpush1.bf16.msra.mxu0 %v1785_v35 }
  0x9d   : > { %1130 = vmatpush1.bf16.msra.mxu1 %v1786_v36  ;;  %1088 = vmatprep.subr.bf16.mxu0 %v1787_v37 }
  0x9e   : > { %1131 = vmatprep.subr.bf16.mxu1 %v1789_v38 }
  0xa0   : > { %1089 = vmatpush2.bf16.msra.mxu0 %v1791_v39 }
  0xa1   : > { %1132 = vmatpush2.bf16.msra.mxu1 %v1792_v40  ;;  %1090 = vmatprep.subr.bf16.mxu0 %v1793_v41 }
  0xa2   : > { %1133 = vmatprep.subr.bf16.mxu1 %v1795_v42 }
  0xa4   : > { %1091 = vmatpush2.bf16.msra.mxu0 %v1797_v43 }
  0xa5   : > { %1134 = vmatpush2.bf16.msra.mxu1 %v1798_v44  ;;  %1092 = vmatprep.subr.bf16.mxu0 %v1799_v45 }
  0xa6   : > { %1135 = vmatprep.subr.bf16.mxu1 %v1801_v46 }
  0xa8   : > { %1093 = vmatpush2.bf16.msra.mxu0 %v1803_v47 }
  0xa9   : > { %1136 = vmatpush2.bf16.msra.mxu1 %v1804_v48  ;;  %1094 = vmatprep.subr.bf16.mxu0 %v1805_v49 }
  0xaa   : > { %1137 = vmatprep.subr.bf16.mxu1 %v1807_v50 }
  0xac   : > { %1095 = vmatpush2.bf16.msra.mxu0 %v1809_v51 }
  0xad   : > { %1138 = vmatpush2.bf16.msra.mxu1 %v1810_v53  ;;  %1096 = vmatprep.subr.bf16.mxu0 %v1811_v54 }
  0xae   : > { %1139 = vmatprep.subr.bf16.mxu1 %v1813_v55 }
  0xb0   : > { %1097 = vmatpush2.bf16.msra.mxu0 %v1815_v57 }
  0xb1   : > { %1140 = vmatpush2.bf16.msra.mxu1 %v1816_v58  ;;  %1098 = vmatprep.subr.bf16.mxu0 %v1817_v59 }
  0xb2   : > { %1141 = vmatprep.subr.bf16.mxu1 %v1819_v60 }
  0xb4   : > { %1099 = vmatpush2.bf16.msra.mxu0 %v1821_v61 }
  0xb5   : > { %1142 = vmatpush2.bf16.msra.mxu1 %v1822_v62  ;;  %1100 = vmatprep.subr.bf16.mxu0 %v1823_v63 }
  0xb6   : > { %1143 = vmatprep.subr.bf16.mxu1 %v1825_v0 }
  0xb8   : > { %1101 = vmatpush2.bf16.msra.mxu0 %v1827_v1 }
  0xb9   : > { %1144 = vmatpush2.bf16.msra.mxu1 %v1828_v2  ;;  %1102 = vmatprep.subr.bf16.mxu0 %v1829_v3 }
  0xba   : > { %1145 = vmatprep.subr.bf16.mxu1 %v1831_v4 }
  0xbc   : > { %1103 = vmatpush2.bf16.msra.mxu0 %v1833_v5 }
  0xbd   : > { %1146 = vmatpush2.bf16.msra.mxu1 %v1834_v6 }
  0xbf   : > { %1105 = vmatmul.mubr.bf16.vlgmr.msra.gmra.mxu0 %v1835_v7 }
  0xc0   : > { %1148 = vmatmul.mubr.bf16.vlgmr.msra.gmra.mxu1 %v1838_v8 }
 0x17f   : > { %v1106_v9 = vpop.f32.mrf.mxu0 }
 0x180   : > { %v1149_v11 = vpop.f32.mrf.mxu1 }
 0x181   : > { %v1150_v12 = vadd.f32 %v1149_v11, %v1106_v9  ;;  %v1108_v13 = vpop.f32.mrf.mxu0 }
 0x182   : > { %v1151_v15 = vpop.f32.mrf.mxu1 }
 0x183   : > { %v1158_v16 = vadd.f32 %v1150_v12, %v660_v10  ;;  %v1152_v17 = vadd.f32 %v1151_v15, %v1108_v13  ;;  %v1110_v18 = vpop.f32.mrf.mxu0 }
 0x184   : > { %v1153_v20 = vpop.f32.mrf.mxu1 }
 0x185   : > { %1162 = vst [vmem:[#allocation2 + $0x10] sm:$0xff] %v1158_v16  ;;  %v1159_v21 = vadd.f32 %v1152_v17, %v661_v14  ;;  %v1154_v22 = vadd.f32 %v1153_v20, %v1110_v18  ;;  %v1112_v23 = vpop.f32.mrf.mxu0 }
 0x186   : > { %v1155_v25 = vpop.f32.mrf.mxu1 }
 0x187   : > { %1163 = vst [vmem:[#allocation2] sm:$0xff] %v1159_v21  ;;  %v1160_v26 = vadd.f32 %v1154_v22, %v662_v19  ;;  %v1156_v27 = vadd.f32 %v1155_v25, %v1112_v23  ;;  %1169 = sbr.rel (%p1618_p7) target bundleno = 430 (0x1ae), region = 101 }
 0x189   : > { %1164 = vst [vmem:[#allocation2 + $0x18] sm:$0xff] %v1160_v26  ;;  %v1161_v28 = vadd.f32 %v1156_v27, %v663_v24 }
 0x18b   : > { %1165 = vst [vmem:[#allocation2 + $0x8] sm:$0xff] %v1161_v28 }
 0x18c   : > { %v1176_v29 = vlaneseq  ;;  %v1174_v31 = vld [vmem:[%s630_s22] sm:$0x3]  ;;  %v1170_v32 = vld [vmem:[#allocation2 + $0x10] sm:$0xff]  ;;  %v1946_v58 = vmov 1966171168  }
 0x18d   : > { %v1208_v59 = vunpack.c.l.s4 %v1946_v58 }
 0x18e   : > { %v1177_v30 = vshrl.u32 %v1176_v29, 7  ;;  %v1171_v35 = vld [vmem:[#allocation2] sm:$0xff]  ;;  %vm1224_vm0 = vcmp.lt.s32.totalorder %v1176_v29, 256 }
 0x18f   : > { %v1209_v4 = vunpack.c.0.s8 %v1208_v59 }
 0x190   : > { %v1178_v33 = vsub.s32 0, %v1177_v30  ;;  %v1182_v34 = vsub.s32 1, %v1177_v30  ;;  %v1172_v36 = vld [vmem:[#allocation2 + $0x18] sm:$0xff] }
 0x191   : > { %v1212_v13 = vsub.s32 %v1209_v4, %v1177_v30 }
 0x192   : > { %v1173_v37 = vld [vmem:[#allocation2 + $0x8] sm:$0xff]  ;;  %v1179_v38 = vrot.slane %v1174_v31, %v1178_v33  ;;  %v1183_v39 = vrot.slane %v1174_v31, %v1182_v34 }
 0x194   : > { %v1186_v40 = vadd.f32 %v1179_v38, %v1170_v32  ;;  %v1187_v41 = vadd.f32 %v1183_v39, %v1171_v35  ;;  %v1188_v42 = vadd.f32 %v1179_v38, %v1172_v36  ;;  %v1189_v43 = vadd.f32 %v1183_v39, %v1173_v37 }
 0x196   : > { %v1190_v44 = vadd.f32 %v1188_v42, %v1186_v40  ;;  %v1197_v45 = vadd.f32 %v1189_v43, %v1187_v41  ;;  %v1227_v46 = vmul.f32 %v1186_v40, %v1186_v40  ;;  %v1228_v47 = vmul.f32 %v1187_v41, %v1187_v41 }
 0x197   : > { %v1229_v48 = vmul.f32 %v1188_v42, %v1188_v42  ;;  %v1230_v49 = vmul.f32 %v1189_v43, %v1189_v43  ;;  %v1630_v50 = vpack.c.bf16 %v1187_v41, %v1186_v40  ;;  %v1631_v51 = vpack.c.bf16 %v1189_v43, %v1188_v42 }
 0x198   : > { %v1191_v52 = vrot.slane %v1190_v44, 4  ;;  %v1198_v53 = vrot.slane %v1197_v45, 4 }
 0x199   : > { %v1231_v54 = vadd.f32 %v1229_v48, %v1227_v46  ;;  %v1238_v55 = vadd.f32 %v1230_v49, %v1228_v47  ;;  %1276 = vst [vmem:[%s2275_s5] sm:$0xff] %v1630_v50  ;;  %1277 = vst [vmem:[%s2275_s5 + $0x8] sm:$0xff] %v1631_v51 }
 0x19a   : > { %v1192_v56 = vadd.f32 %v1191_v52, %v1190_v44  ;;  %v1199_v57 = vadd.f32 %v1198_v53, %v1197_v45 }
 0x19b   : > { %v1232_v60 = vrot.slane %v1231_v54, 4  ;;  %v1239_v61 = vrot.slane %v1238_v55, 4 }
 0x19c   : > { %v1193_v62 = vrot.slane %v1192_v56, 2  ;;  %v1200_v63 = vrot.slane %v1199_v57, 2 }
 0x19d   : > { %v1233_v0 = vadd.f32 %v1232_v60, %v1231_v54  ;;  %v1240_v1 = vadd.f32 %v1239_v61, %v1238_v55 }
 0x19e   : > { %v1194_v2 = vadd.f32 %v1193_v62, %v1192_v56  ;;  %v1201_v3 = vadd.f32 %v1200_v63, %v1199_v57 }
 0x19f   : > { %v1234_v5 = vrot.slane %v1233_v0, 2  ;;  %v1241_v6 = vrot.slane %v1240_v1, 2 }
 0x1a0   : > { %v1195_v7 = vrot.slane %v1194_v2, 1  ;;  %v1202_v8 = vrot.slane %v1201_v3, 1 }
 0x1a1   : > { %v1235_v9 = vadd.f32 %v1234_v5, %v1233_v0  ;;  %v1242_v10 = vadd.f32 %v1241_v6, %v1240_v1 }
 0x1a2   : > { %v1196_v11 = vadd.f32 %v1195_v7, %v1194_v2  ;;  %v1203_v12 = vadd.f32 %v1202_v8, %v1201_v3 }
 0x1a3   : > { %v1236_v14 = vrot.slane %v1235_v9, 1  ;;  %v1243_v15 = vrot.slane %v1242_v10, 1 }
 0x1a4   : > { %v1206_v16 = vcombine.low %v1196_v11, %v1203_v12 }
 0x1a5   : > { %v1237_v17 = vadd.f32 %v1236_v14, %v1235_v9  ;;  %v1244_v18 = vadd.f32 %v1243_v15, %v1242_v10 }
 0x1a6   : > { %v1213_v19 = vrot.slane %v1206_v16, %v1212_v13 }
 0x1a7   : > { %v1247_v20 = vcombine.low %v1237_v17, %v1244_v18 }
 0x1a8   : > { %v1220_v21 = vrot.slane %v1213_v19, %v1212_v13 }
 0x1a9   : > { %v1254_v22 = vrot.slane %v1247_v20, %v1212_v13 }
 0x1aa   : > { %1226 = vst.msk [vmem:[%s641_s14] sm:$0x3] %vm1224_vm0, %v1220_v21 }
 0x1ab   : > { %v1261_v23 = vrot.slane %v1254_v22, %v1212_v13 }
 0x1ad   : > { %1263 = vst.msk [vmem:[%s650_s29] sm:$0x3] %vm1224_vm0, %v1261_v23 }
 0x1ae PF: > { %1300 = sbr.rel (!%p2089_p13) target bundleno = 439 (0x1b7), region = 105  ;;  %s1632_s12 = sshll.u32 (%p2089_p13), %s1927_s26, 3  ;;  %v1337_v24 = vld [vmem:[%s2275_s5] sm:$0xff] (%p2089_p13)  ;;  %v1339_v25 = vld [vmem:[%s2275_s5 + $0x8] sm:$0xff] (%p2089_p13) }
 0x1af   : > { %s1304_s22 = sadd.s32 (%p2089_p13), %s1632_s12, %s2248_s8  ;;  %s2455_s16 = sld [smem:[#allocation16_spill]] (%p2089_p13) }
 0x1b0   : > { %s1625_s20 = sshll.u32 (%p2089_p13), %s1304_s22, 2 }
 0x1b5   : > { %s1306_s14 = scalar_lea.vmem %s2455_s16, %s1625_s20 }
 0x1b6   : > { %1338 = vst [vmem:[%s1306_s14] sm:$0xff] %v1337_v24  ;;  %1340 = vst [vmem:[%s1306_s14 + $0x10] sm:$0xff] %v1339_v25 }
 0x1b7 PF: > { %s16_s30 = sadd.s32 1, %s1943_s30   ;;  %s2457_s5 = sld [smem:[#allocation13_spill]] }
 0x1b8   : > { %p2374_p8 = scmp.ge.s32.totalorder %s16_s30, 34   ;;  %s2458_s24 = sld [smem:[#allocation7_spill]] }
 0x1b9   : > { %s2459_s25 = sld [smem:[#allocation8_spill]]  ;;  %s2464_s18 = smov %s1899_s19 }
 0x1ba   : > { %s2460_s26 = sld [smem:[#allocation9_spill]]  ;;  %s2465_s19 = smov %s2087_s15 }
 0x1bb   : > { %s2461_s27 = sld [smem:[#allocation10_spill]]  ;;  %s2466_s20 = smov %s1907_s21 }
 0x1bc   : > { %s2462_s28 = sld [smem:[#allocation11_spill]]  ;;  %s2467_s21 = smov %s2074_s17 }
 0x1bd   : > { %s2463_s29 = sld [smem:[#allocation12_spill]]  ;;  %s2468_s22 = smov %s1915_s23 }
 0x1be   : > { %s2469_s23 = smov %s2457_s5  ;;  %15 = sbr.rel (!%p2374_p8) target bundleno = 13 (0xd), region = 209 }

// kernel: discriminator_forward.15
= control target key start
LH: loop header
LB: loop body
LE: loop exit
PB: predicated region body
PF: predicated region fallthrough
CT: control target
= control target key end

     0   :  { %s689_s0 = inlined_call_operand.vmem [shape: bf16[32,8192], index: 0, kind: input, shape index: {}]   ;;  %s690_s1 = inlined_call_operand.vmem [shape: bf16[1,8192], index: 1, kind: input, shape index: {}]   ;;  %s691_s2 = inlined_call_operand.<no memory space> [shape: f32[1,1], index: 2, kind: input, shape index: {}]   ;;  %s692_s3 = inlined_call_operand.vmem [shape: f32[32,1], index: 3, kind: output, shape index: {}]  }
   0x1   :  { %v8_v0 = vstv %s691_s2 }
   0x2   :  { %9 = vst [vmem:[#allocation3] sm:$0x1] %v8_v0 }
   0x3   :  { %s592_s14 = smov 0   ;;  %s594_s15 = smov 0  }
   0x4   :  { %s596_s16 = smov 0   ;;  %s598_s17 = smov 0  }
   0x5   :  { %s600_s18 = smov 0  }
   0x6 LB: > { %s24_s2 = sadd.s32 1, %s562_s17  ;;  %p43_p1 = scmp.ne.s32.totalorder %s554_s15, %s550_s14  ;;  %s566_s18 = sphi %s600_s18, %s15_s18   ;;  %s562_s17 = sphi %s598_s17, %s696_s17   ;;  %s558_s16 = sphi %s596_s16, %s695_s16   ;;  %s554_s15 = sphi %s594_s15, %s694_s15   ;;  %s550_s14 = sphi %s592_s14, %s693_s14  }
   0x7   : > { %p25_p0 = scmp.ge.s32.totalorder %s24_s2, 16  ;;  %p44_p2 = scmp.eq.s32.totalorder %s566_s18, 0 }
   0x8   : > { %s36_s20 = sadd.s32 1, %s554_s15  ;;  %p472_p5 = scmp.ge.s32.totalorder %s566_s18, 16 }
   0x9   : > { %s698_s2 = smov (%p25_p0, %s24_s2), 0  ;;  %p45_p3 = por %p44_p2, %p43_p1 }
   0xa   : > { %s32_s19 = ssub.s32 %s562_s17, %s698_s2  ;;  %145 = sbr.rel (%p472_p5) target bundleno = 23 (0x17), region = 20 }
   0xb   : > { %p34_p4 = scmp.eq.s32.totalorder %s32_s19, 0 }
   0xd   : > { %s627_s21 = scalar_select %p34_p4, %s554_s15, %s36_s20  }
   0xf   : > { %148 = sbr.rel (!%p45_p3) target bundleno = 23 (0x17), region = 24  ;;  %s150_s22 = sand.u32 (%p45_p3), 1, %s554_s15  }
  0x10   : > { %s486_s23 = sshll.u32 (%p45_p3), %s562_s17, 4  ;;  %s473_s24 = sshll.u32 (%p45_p3), %s150_s22, 6 }
  0x11   : > { %s158_s27 = scalar_lea.vmem (%p45_p3), %s689_s0, %s486_s23  ;;  %s152_s28 = scalar_lea.vmem (%p45_p3), [#allocation4], %s473_s24 }
  0x12   : > { %v171_v1 = vld [vmem:[%s158_s27] sm:$0xff] (%p45_p3)  ;;  %v173_v2 = vld [vmem:[%s158_s27 + $0x8] sm:$0xff] (%p45_p3) }
  0x13   : > { %v175_v3 = vld [vmem:[%s158_s27 + $0x100] sm:$0xff] (%p45_p3)  ;;  %172 = vst [vmem:[%s152_s28] sm:$0xff] (%p45_p3), %v171_v1  ;;  %174 = vst [vmem:[%s152_s28 + $0x8] sm:$0xff] (%p45_p3), %v173_v2  ;;  %v177_v4 = vld [vmem:[%s158_s27 + $0x108] sm:$0xff] (%p45_p3) }
  0x14   : > { %176 = vst [vmem:[%s152_s28 + $0x10] sm:$0xff] %v175_v3  ;;  %v179_v5 = vld [vmem:[%s158_s27 + $0x200] sm:$0xff]  ;;  %v181_v6 = vld [vmem:[%s158_s27 + $0x208] sm:$0xff]  ;;  %178 = vst [vmem:[%s152_s28 + $0x18] sm:$0xff] %v177_v4 }
  0x15   : > { %180 = vst [vmem:[%s152_s28 + $0x20] sm:$0xff] %v179_v5  ;;  %182 = vst [vmem:[%s152_s28 + $0x28] sm:$0xff] %v181_v6  ;;  %v183_v7 = vld [vmem:[%s158_s27 + $0x300] sm:$0xff]  ;;  %v185_v8 = vld [vmem:[%s158_s27 + $0x308] sm:$0xff] }
  0x16   : > { %184 = vst [vmem:[%s152_s28 + $0x30] sm:$0xff] %v183_v7  ;;  %186 = vst [vmem:[%s152_s28 + $0x38] sm:$0xff] %v185_v8 }
  0x17 PF: > { %p476_p6 = scmp.ge.s32.totalorder %s566_s18, 1  ;;  %p199_p7 = scmp.lt.s32.totalorder %s566_s18, 17 }
  0x19   : > { %p200_p8 = pnand %p476_p6, %p199_p7 }
  0x1a   : > { %s206_s29 = sand.u32 (!%p200_p8), 1, %s550_s14   ;;  %s478_s30 = sshll.u32 (!%p200_p8), %s558_s16, 2 }
  0x1b   : > { %203 = sbr.rel (%p200_p8) target bundleno = 214 (0xd6), region = 51  ;;  %s477_s4 = sshll.u32 (!%p200_p8), %s206_s29, 6 }
  0x1c   : > { %p236_p9 = scmp.lt.s32.totalorder (!%p200_p8), %s478_s30, 63  ;;  %s642_s8 = scalar_lea.vmem (!%p200_p8), [#allocation4], %s477_s4 }
  0x1d   : > { %p479_p10 = scmp.ne.s32.totalorder (!%p200_p8), %s558_s16, 0 }
  0x20   : > { %s700_s30 = smov (!%p236_p9, %s478_s30), 63  ;;  %249 = sbr.rel (%p479_p10) target bundleno = 40 (0x28), region = 59 }
  0x21   : > { %s238_s7 = scalar_lea.vmem %s690_s1, %s700_s30 }
  0x25   : > { %vm250_vm0 = vcmask 7168   ;;  %v568_v9 = vmov 0.0  }
  0x26   : > { %251 = vst.msk [vmem:[#allocation2] sm:$0xff] %vm250_vm0, %v568_v9  ;;  %252 = vst.msk [vmem:[#allocation2 + $0x8] sm:$0xff] %vm250_vm0, %v568_v9 }
  0x27   : > { %253 = vst.msk [vmem:[#allocation2 + $0x10] sm:$0xff] %vm250_vm0, %v568_v9  ;;  %254 = vst.msk [vmem:[#allocation2 + $0x18] sm:$0xff] %vm250_vm0, %v568_v9 }
  0x28 PF: > { %v259_v10 = vld [vmem:[%s642_s8 + $0x20] sm:$0xff]  ;;  %v260_v11 = vld [vmem:[%s642_s8 + $0x28] sm:$0xff]  ;;  %v282_v13 = vlaneseq  ;;  %v261_v25 = vld [vmem:[%s642_s8 + $0x30] sm:$0xff]  ;;  %vm362_vm1 = vcmask 7168   ;;  %p480_p11 = scmp.ne.s32.totalorder %s558_s16, 15 }
  0x29   : > { %v279_v12 = vld [vmem:[%s238_s7] sm:$0xf]  ;;  %v256_v17 = vld [vmem:[%s642_s8 + $0x8] sm:$0xff]  ;;  %v271_v18 = vunpack.c.l.bf16 %v259_v10  ;;  %v272_v19 = vunpack.c.h.bf16 %v259_v10  ;;  %v273_v20 = vunpack.c.l.bf16 %v260_v11  ;;  %v274_v27 = vunpack.c.h.bf16 %v260_v11  ;;  %v257_v35 = vld [vmem:[%s642_s8 + $0x10] sm:$0xff] }
  0x2a   : > { %v280_v14 = vunpack.c.l.bf16 %v279_v12  ;;  %v283_v15 = vshrl.u32 %v282_v13, 7  ;;  %v255_v16 = vld [vmem:[%s642_s8] sm:$0xff]  ;;  %v262_v26 = vld [vmem:[%s642_s8 + $0x38] sm:$0xff]  ;;  %v265_v30 = vunpack.c.l.bf16 %v256_v17  ;;  %v266_v37 = vunpack.c.h.bf16 %v256_v17 }
  0x2b   : > { %v263_v28 = vunpack.c.l.bf16 %v255_v16  ;;  %v264_v29 = vunpack.c.h.bf16 %v255_v16  ;;  %v258_v36 = vld [vmem:[%s642_s8 + $0x18] sm:$0xff]  ;;  %v275_v38 = vunpack.c.l.bf16 %v261_v25  ;;  %v276_v39 = vunpack.c.h.bf16 %v261_v25 }
  0x2c   : > { %v284_v21 = vsub.s32 0, %v283_v15  ;;  %v288_v22 = vsub.s32 2, %v283_v15  ;;  %v292_v23 = vsub.s32 4, %v283_v15  ;;  %v296_v24 = vsub.s32 6, %v283_v15 }
  0x2d   : > { %v277_v40 = vunpack.c.l.bf16 %v262_v26  ;;  %v278_v45 = vunpack.c.h.bf16 %v262_v26  ;;  %v267_v46 = vunpack.c.l.bf16 %v257_v35  ;;  %v268_v47 = vunpack.c.h.bf16 %v257_v35  ;;  %v334_v15 = vld [vmem:[#allocation2] sm:$0xff] }
  0x2e   : > { %v285_v31 = vrot.slane %v280_v14, %v284_v21  ;;  %v289_v32 = vrot.slane %v280_v14, %v288_v22  ;;  %v293_v33 = vrot.slane %v280_v14, %v292_v23  ;;  %v297_v34 = vrot.slane %v280_v14, %v296_v24  ;;  %v336_v14 = vld [vmem:[#allocation2 + $0x10] sm:$0xff] }
  0x2f   : > { %v269_v48 = vunpack.c.l.bf16 %v258_v36  ;;  %v270_v52 = vunpack.c.h.bf16 %v258_v36 }
  0x30   : > { %v305_v41 = vrot.slane %v285_v31, %v284_v21  ;;  %v309_v42 = vrot.slane %v289_v32, %v284_v21  ;;  %v313_v43 = vrot.slane %v293_v33, %v284_v21  ;;  %v317_v44 = vrot.slane %v297_v34, %v284_v21  ;;  %v335_v21 = vld [vmem:[#allocation2 + $0x8] sm:$0xff] }
  0x32   : > { %v326_v49 = vmul.f32 %v305_v41, %v271_v18  ;;  %v327_v50 = vmul.f32 %v309_v42, %v272_v19  ;;  %v328_v51 = vmul.f32 %v313_v43, %v273_v20  ;;  %v329_v53 = vmul.f32 %v317_v44, %v274_v27  ;;  %v337_v20 = vld [vmem:[#allocation2 + $0x18] sm:$0xff] }
  0x33   : > { %v318_v54 = vmul.f32 %v305_v41, %v263_v28  ;;  %v319_v55 = vmul.f32 %v309_v42, %v264_v29  ;;  %v320_v56 = vmul.f32 %v313_v43, %v265_v30  ;;  %v330_v58 = vmul.f32 %v305_v41, %v275_v38 }
  0x34   : > { %v348_v57 = vadd.f32 %v327_v50, %v326_v49  ;;  %v331_v59 = vmul.f32 %v309_v42, %v276_v39  ;;  %v332_v60 = vmul.f32 %v313_v43, %v277_v40  ;;  %v321_v61 = vmul.f32 %v317_v44, %v266_v37 }
  0x35   : > { %v338_v62 = vadd.f32 %v319_v55, %v318_v54  ;;  %v322_v63 = vmul.f32 %v305_v41, %v267_v46  ;;  %v323_v0 = vmul.f32 %v309_v42, %v268_v47  ;;  %v333_v2 = vmul.f32 %v317_v44, %v278_v45 }
  0x36   : > { %v349_v1 = vadd.f32 %v348_v57, %v328_v51  ;;  %v353_v3 = vadd.f32 %v331_v59, %v330_v58  ;;  %v324_v4 = vmul.f32 %v313_v43, %v269_v48  ;;  %v325_v6 = vmul.f32 %v317_v44, %v270_v52 }
  0x37   : > { %v339_v5 = vadd.f32 %v338_v62, %v320_v56  ;;  %v343_v7 = vadd.f32 %v323_v0, %v322_v63 }
  0x38   : > { %v350_v8 = vadd.f32 %v349_v1, %v329_v53  ;;  %v354_v9 = vadd.f32 %v353_v3, %v332_v60 }
  0x39   : > { %v340_v10 = vadd.f32 %v339_v5, %v321_v61  ;;  %v344_v11 = vadd.f32 %v343_v7, %v324_v4 }
  0x3a   : > { %351 = vadd.xlane.f32.xlu1 %v350_v8  ;;  %v355_v12 = vadd.f32 %v354_v9, %v333_v2 }
  0x3b   : > { %341 = vadd.xlane.f32.xlu0 %v340_v10  ;;  %v345_v13 = vadd.f32 %v344_v11, %v325_v6 }
  0x3e   : > { %356 = vadd.xlane.f32.xlu1 %v355_v12 }
  0x3f   : > { %346 = vadd.xlane.f32.xlu0 %v345_v13 }
  0xc3   : > { %v352_v16 = vpop.xlane.xlu1 %351 }
  0xc4   : > { %v360_v17 = vadd.f32 %v352_v16, %v336_v14  ;;  %v342_v18 = vpop.xlane.xlu0 %341 }
  0xc5   : > { %v358_v19 = vadd.f32 %v342_v18, %v334_v15 }
  0xc6   : > { %365 = vst.msk [vmem:[#allocation2 + $0x10] sm:$0xff] %vm362_vm1, %v360_v17 }
  0xc7   : > { %363 = vst.msk [vmem:[#allocation2] sm:$0xff] %vm362_vm1, %v358_v19  ;;  %v357_v22 = vpop.xlane.xlu1 %356  ;;  %370 = sbr.rel (%p480_p11) target bundleno = 214 (0xd6), region = 63 }
  0xc8   : > { %v361_v23 = vadd.f32 %v357_v22, %v337_v20  ;;  %v347_v24 = vpop.xlane.xlu0 %346 }
  0xc9   : > { %v359_v25 = vadd.f32 %v347_v24, %v335_v21 }
  0xca   : > { %366 = vst.msk [vmem:[#allocation2 + $0x18] sm:$0xff] %vm362_vm1, %v361_v23 }
  0xcb   : > { %364 = vst.msk [vmem:[#allocation2 + $0x8] sm:$0xff] %vm362_vm1, %v359_v25 }
  0xcc   : > { %v481_v27 = vld [vmem:[#allocation3] ss:$0 sm:$0xff] }
  0xcd   : > { %v373_v31 = vld [vmem:[#allocation2 + $0x10] sm:$0xff] }
  0xce   : > { %v371_v26 = vld [vmem:[#allocation2] sm:$0xff]  ;;  %v384_v33 = vadd.f32 %v481_v27, %v373_v31 }
  0xcf   : > { %v382_v29 = vadd.f32 %v481_v27, %v371_v26 }
  0xd0   : > { %388 = vst.msk [vmem:[%s692_s3 + $0x10] sm:$0xff] %vm362_vm1, %v384_v33 }
  0xd1   : > { %v374_v32 = vld [vmem:[#allocation2 + $0x18] sm:$0xff]  ;;  %386 = vst.msk [vmem:[%s692_s3] sm:$0xff] %vm362_vm1, %v382_v29 }
  0xd2   : > { %v372_v28 = vld [vmem:[#allocation2 + $0x8] sm:$0xff]  ;;  %v385_v34 = vadd.f32 %v481_v27, %v374_v32 }
  0xd3   : > { %v383_v30 = vadd.f32 %v481_v27, %v372_v28 }
  0xd4   : > { %389 = vst.msk [vmem:[%s692_s3 + $0x18] sm:$0xff] %vm362_vm1, %v385_v34 }
  0xd5   : > { %387 = vst.msk [vmem:[%s692_s3 + $0x8] sm:$0xff] %vm362_vm1, %v383_v30 }
  0xd6 PF: > { %s15_s18 = sadd.s32 1, %s566_s18   ;;  %s693_s14 = smov %s554_s15 }
  0xd7   : > { %p12_p12 = scmp.ge.s32.totalorder %s15_s18, 18   ;;  %s694_s15 = smov %s627_s21 }
  0xd8   : > { %s695_s16 = smov %s562_s17  ;;  %s696_s17 = smov %s698_s2 }
  0xd9   :  { %14 = sbr.rel (!%p12_p12) target bundleno = 6 (0x6), region = 101 }

</bundles_post_ra>
